<compile_context>
chip_gen: v7x
topology: tpu7x:2x2x1
jax: 0.10.0
libtpu: 0.0.40
codegen_flags: <defaults>
</compile_context>

<pallas_src>
import functools

import jax
import jax.numpy as jnp
import numpy as np
from jax.experimental import pallas as pl
from jax.experimental.pallas import tpu as pltpu


def make_token_encoder_kernel(filters, max_chars, char_vocab):
    """Build a fused kernel for a fixed filter configuration."""
    widths = [w for (w, _oc) in filters]

    def kernel(*refs):
        o_ref = refs[-1]
        char_ids_ref, tok_ref, char_tab_ref = refs[0], refs[1], refs[2]
        idx = 3
        conv_tap_refs, conv_b_refs = [], []
        for w in widths:
            conv_tap_refs.append(refs[idx:idx + w])
            conv_b_refs.append(refs[idx + w])
            idx += w + 1
        (hw_wh_ref, hw_wg_ref, hw_bh_ref, hw_bg_ref,
         cnn_w_ref, cnn_b_ref, out_wc_ref, out_wt_ref, out_b_ref) = refs[idx:idx + 9]

        L = max_chars
        TNL = char_ids_ref.shape[0]          # tile_n * L  (tokens*positions = sublane axis)
        TN = TNL // L

        # --- fused char-embedding gather: one-hot (TN*L, V) @ table (V, C) on the MXU ---
        ids = char_ids_ref[...]                                        # (TN*L, 1) int32
        iota = jax.lax.broadcasted_iota(jnp.int32, (TNL, char_vocab), 1)
        onehot = jnp.where(iota == ids, 1.0, 0.0).astype(jnp.bfloat16)
        x = jnp.dot(onehot, char_tab_ref[...],
                    preferred_element_type=jnp.float32).astype(jnp.bfloat16)  # (TN*L, C)

        # --- char CNN: tap-hoisted matmuls + shifted adds + max over positions + relu ---
        feats = []
        for (w, oc), tap_refs, b_ref in zip(filters, conv_tap_refs, conv_b_refs):
            npos = L - w + 1
            # w matmuls at M = TN*L (instead of w*(L-w+1) matmuls at M = TN)
            taps = [jnp.dot(x, t_ref[...], preferred_element_type=jnp.float32)
                        .reshape(TN, L, oc)
                    for t_ref in tap_refs]
            s = taps[0][:, :npos, :]
            for k in range(1, w):
                s = s + taps[k][:, k:k + npos, :]
            y = jnp.max(s, axis=1) + b_ref[...]       # bias hoisted past the max (equivalent)
            feats.append(jnp.maximum(y, 0.0))         # (TN, oc) f32
        h = jnp.concatenate(feats, axis=-1)           # (TN, final_dim) f32

        # --- highway (1 layer); weights pre-split -> no lane slicing of a 2*fd tensor ---
        h_bf = h.astype(jnp.bfloat16)
        new_x = jnp.maximum(
            jnp.dot(h_bf, hw_wh_ref[...], preferred_element_type=jnp.float32)
            + hw_bh_ref[...], 0.0)
        gate = jax.nn.sigmoid(
            jnp.dot(h_bf, hw_wg_ref[...], preferred_element_type=jnp.float32)
            + hw_bg_ref[...])                         # f32 transcendental / gating math
        h = gate * h + (1.0 - gate) * new_x

        # --- CNNEncoder.out_proj ---
        c = jnp.dot(h.astype(jnp.bfloat16), cnn_w_ref[...],
                    preferred_element_type=jnp.float32) + cnn_b_ref[...]

        # --- TokenEncoder.out_proj; [c, tok] lane concat replaced by split weights ---
        out = (jnp.dot(c.astype(jnp.bfloat16), out_wc_ref[...],
                       preferred_element_type=jnp.float32)
               + jnp.dot(tok_ref[...], out_wt_ref[...],
                         preferred_element_type=jnp.float32)
               + out_b_ref[...])
        o_ref[...] = out.astype(o_ref.dtype)

    return kernel


def _full_spec(shape):
    nd = len(shape)
    return pl.BlockSpec(shape, lambda i, _nd=nd: (0,) * _nd)


def token_encoder_forward(params, token_input, char_input, filters, *, tile_n=256):
    """token_input (seq,bsz) int32, char_input (seq,bsz,L) int32."""
    seq_len, bsz, L = char_input.shape
    N = seq_len * bsz
    n_tiles = int(pl.cdiv(N, tile_n))
    N_pad = n_tiles * tile_n

    char_ids = char_input.reshape(N, L).astype(jnp.int32)
    tok_ids = token_input.reshape(N).astype(jnp.int32)
    if N_pad != N:
        pad = N_pad - N
        char_ids = jnp.pad(char_ids, ((0, pad), (0, 0)))   # id 0 -> zero embedding row
        tok_ids = jnp.pad(tok_ids, ((0, pad),))
    # (N_pad*L, 1): token*position is the sublane axis inside the kernel.
    char_ids = char_ids.reshape(N_pad * L, 1)

    # Token-embedding gather stays in XLA (token vocab can be large); char gather is fused.
    tok_emb = jnp.take(params["token_embed"], tok_ids, axis=0)         # (N_pad, Td) bf16

    char_vocab, _C = params["char_embed"].shape
    Td = tok_emb.shape[-1]
    embed_dim = params["out_b"].shape[-1]

    flat_weights = [params["char_embed"]]
    for fi, (w, _oc) in enumerate(filters):
        flat_weights += [params["conv_w"][fi][k] for k in range(w)]    # per-tap (C, oc)
        flat_weights.append(params["conv_b"][fi])
    flat_weights += [params["hw_wh"], params["hw_wg"], params["hw_bh"], params["hw_bg"],
                     params["cnn_w"], params["cnn_b"],
                     params["out_wc"], params["out_wt"], params["out_b"]]
    w_specs = [_full_spec(w.shape) for w in flat_weights]
    # TODO(synk): for production-sized weights, stage them once into VMEM scratch (their
    # index_map is constant) instead of letting the pipeline double-buffer every weight.

    kernel = make_token_encoder_kernel(filters, L, char_vocab)

    out = pl.pallas_call(
        kernel,
        out_shape=jax.ShapeDtypeStruct((N_pad, embed_dim), jnp.float32),
        grid=(n_tiles,),
        in_specs=[pl.BlockSpec((tile_n * L, 1), lambda i: (i, 0)),     # char ids
                  pl.BlockSpec((tile_n, Td), lambda i: (i, 0))         # token embeddings
                  ] + w_specs,
        out_specs=pl.BlockSpec((tile_n, embed_dim), lambda i: (i, 0)),
        compiler_params=pltpu.CompilerParams(
            dimension_semantics=("parallel",),
            vmem_limit_bytes=32 * 1024 * 1024),
    )(char_ids, tok_emb, *flat_weights)

    return out[:N].reshape(seq_len, bsz, embed_dim)


def reference_forward(params, token_input, char_input, filters):
    """Pure-JAX f32 reference mirroring the PyTorch TokenEncoder (eval mode)."""
    f32 = lambda a: a.astype(jnp.float32)
    seq_len, bsz, L = char_input.shape
    N = seq_len * bsz
    x = jnp.take(f32(params["char_embed"]), char_input.reshape(N, L), axis=0)   # (N, L, C)
    feats = []
    for fi, (w, _oc) in enumerate(filters):
        W = f32(params["conv_w"][fi])       # (w, C, oc)
        b = f32(params["conv_b"][fi])
        ys = []
        for t in range(L - w + 1):
            acc = b
            for k in range(w):
                acc = acc + x[:, t + k, :] @ W[k]
            ys.append(acc)
        y = jnp.max(jnp.stack(ys, axis=0), axis=0)
        feats.append(jax.nn.relu(y))
    h = jnp.concatenate(feats, axis=-1)
    new_x = jax.nn.relu(h @ f32(params["hw_wh"]) + f32(params["hw_bh"]))
    gate = jax.nn.sigmoid(h @ f32(params["hw_wg"]) + f32(params["hw_bg"]))
    h = gate * h + (1.0 - gate) * new_x
    c = h @ f32(params["cnn_w"]) + f32(params["cnn_b"])
    tok = jnp.take(f32(params["token_embed"]), token_input.reshape(N), axis=0)
    out = c @ f32(params["out_wc"]) + tok @ f32(params["out_wt"]) + f32(params["out_b"])
    return out.reshape(seq_len, bsz, -1)


def init_params(key, *, token_vocab, char_vocab, char_dim, token_dim,
                embed_dim, filters, char2token_dim):
    nf = len(filters)
    ks = jax.random.split(key, 7 + nf)
    ki = iter(ks)

    def normal_bf16(k, shape, std=0.02):
        return (std * jax.random.normal(k, shape, dtype=jnp.float32)).astype(jnp.bfloat16)

    params = {}
    # Embeddings (padding_idx = 0 row is zeroed), bf16 for the MXU data path.
    params["char_embed"] = normal_bf16(next(ki), (char_vocab, char_dim)).at[0].set(0)
    params["token_embed"] = normal_bf16(next(ki), (token_vocab, token_dim)).at[0].set(0)

    # Conv1d weights stored as (width, in_c, out_c) bf16; biases (1, out_c) f32.
    params["conv_w"], params["conv_b"] = [], []
    for (w, oc) in filters:
        params["conv_w"].append(normal_bf16(next(ki), (w, char_dim, oc)))
        params["conv_b"].append(jnp.zeros((1, oc), jnp.float32))

    final_dim = sum(f[1] for f in filters)
    # Highway Linear(fd, 2*fd) split into the new_x half (bias 0) and gate half (bias 1).
    params["hw_wh"] = normal_bf16(next(ki), (final_dim, final_dim))
    params["hw_wg"] = normal_bf16(next(ki), (final_dim, final_dim))
    params["hw_bh"] = jnp.zeros((1, final_dim), jnp.float32)
    params["hw_bg"] = jnp.ones((1, final_dim), jnp.float32)
    # CNNEncoder.out_proj
    params["cnn_w"] = normal_bf16(next(ki), (final_dim, char2token_dim))
    params["cnn_b"] = jnp.zeros((1, char2token_dim), jnp.float32)
    # TokenEncoder.out_proj split into the char2token half and the token-embedding half.
    params["out_wc"] = normal_bf16(next(ki), (char2token_dim, embed_dim))
    params["out_wt"] = normal_bf16(next(ki), (token_dim, embed_dim))
    params["out_b"] = jnp.zeros((1, embed_dim), jnp.float32)
    return params


if __name__ == "__main__":
    key = jax.random.PRNGKey(0)
    seq_len, bsz, max_chars = 8, 2, 8
    token_vocab, char_vocab = 50, 40
    char_dim, token_dim = 16, 16
    char2token_dim, embed_dim = 32, 32
    filters = [(2, 16), (3, 16)]           # final_dim = 32

    k_par, k_tok, k_chr = jax.random.split(key, 3)
    params = init_params(k_par, token_vocab=token_vocab, char_vocab=char_vocab,
                         char_dim=char_dim, token_dim=token_dim, embed_dim=embed_dim,
                         filters=filters, char2token_dim=char2token_dim)

    token_input = jax.random.randint(k_tok, (seq_len, bsz), 1, token_vocab, dtype=jnp.int32)
    char_input = jax.random.randint(k_chr, (seq_len, bsz, max_chars), 1, char_vocab,
                                    dtype=jnp.int32)

    # tile_n=128 for this small test (N=16 is padded to one tile); use 256-512 at real scale.
    fwd = functools.partial(token_encoder_forward, filters=filters, tile_n=128)
    out = jax.block_until_ready(jax.jit(fwd)(params, token_input, char_input))

    ref = reference_forward(params, token_input, char_input, filters)
    assert out.shape == (seq_len, bsz, embed_dim)
    np.testing.assert_allclose(np.asarray(out), np.asarray(ref), rtol=2e-2, atol=5e-4)

    print("KERNEL_OK")
</pallas_src>

<mosaic_0001>
module attributes {stable_mosaic.version = 11 : i64} {
  func.func @kernel(%arg0: i32, %arg1: memref<1024x1xi32, #tpu.memory_space<vmem>>, %arg2: memref<128x16xbf16, #tpu.memory_space<vmem>>, %arg3: memref<40x16xbf16, #tpu.memory_space<vmem>>, %arg4: memref<16x16xbf16, #tpu.memory_space<vmem>>, %arg5: memref<16x16xbf16, #tpu.memory_space<vmem>>, %arg6: memref<1x16xf32, #tpu.memory_space<vmem>>, %arg7: memref<16x16xbf16, #tpu.memory_space<vmem>>, %arg8: memref<16x16xbf16, #tpu.memory_space<vmem>>, %arg9: memref<16x16xbf16, #tpu.memory_space<vmem>>, %arg10: memref<1x16xf32, #tpu.memory_space<vmem>>, %arg11: memref<32x32xbf16, #tpu.memory_space<vmem>>, %arg12: memref<32x32xbf16, #tpu.memory_space<vmem>>, %arg13: memref<1x32xf32, #tpu.memory_space<vmem>>, %arg14: memref<1x32xf32, #tpu.memory_space<vmem>>, %arg15: memref<32x32xbf16, #tpu.memory_space<vmem>>, %arg16: memref<1x32xf32, #tpu.memory_space<vmem>>, %arg17: memref<32x32xbf16, #tpu.memory_space<vmem>>, %arg18: memref<16x32xbf16, #tpu.memory_space<vmem>>, %arg19: memref<1x32xf32, #tpu.memory_space<vmem>>, %arg20: memref<128x32xf32, #tpu.memory_space<vmem>>) attributes {dimension_semantics = [#tpu.dimension_semantics<parallel>], iteration_bounds = array<i64: 1>, scalar_prefetch = 0 : i64, scratch_operands = 0 : i64, tpu.core_type = #tpu.core_type<tc>, window_params = [{transform_indices = @transform_0, window_bounds = array<i64: 1024, 1>}, {transform_indices = @transform_1, window_bounds = array<i64: 128, 16>}, {pipeline_mode = #tpu.pipeline_mode<synchronous>, transform_indices = @transform_2, window_bounds = array<i64: 40, 16>}, {pipeline_mode = #tpu.pipeline_mode<synchronous>, transform_indices = @transform_3, window_bounds = array<i64: 16, 16>}, {pipeline_mode = #tpu.pipeline_mode<synchronous>, transform_indices = @transform_4, window_bounds = array<i64: 16, 16>}, {pipeline_mode = #tpu.pipeline_mode<synchronous>, transform_indices = @transform_5, window_bounds = array<i64: 1, 16>}, {pipeline_mode = #tpu.pipeline_mode<synchronous>, transform_indices = @transform_6, window_bounds = array<i64: 16, 16>}, {pipeline_mode = #tpu.pipeline_mode<synchronous>, transform_indices = @transform_7, window_bounds = array<i64: 16, 16>}, {pipeline_mode = #tpu.pipeline_mode<synchronous>, transform_indices = @transform_8, window_bounds = array<i64: 16, 16>}, {pipeline_mode = #tpu.pipeline_mode<synchronous>, transform_indices = @transform_9, window_bounds = array<i64: 1, 16>}, {pipeline_mode = #tpu.pipeline_mode<synchronous>, transform_indices = @transform_10, window_bounds = array<i64: 32, 32>}, {pipeline_mode = #tpu.pipeline_mode<synchronous>, transform_indices = @transform_11, window_bounds = array<i64: 32, 32>}, {pipeline_mode = #tpu.pipeline_mode<synchronous>, transform_indices = @transform_12, window_bounds = array<i64: 1, 32>}, {pipeline_mode = #tpu.pipeline_mode<synchronous>, transform_indices = @transform_13, window_bounds = array<i64: 1, 32>}, {pipeline_mode = #tpu.pipeline_mode<synchronous>, transform_indices = @transform_14, window_bounds = array<i64: 32, 32>}, {pipeline_mode = #tpu.pipeline_mode<synchronous>, transform_indices = @transform_15, window_bounds = array<i64: 1, 32>}, {pipeline_mode = #tpu.pipeline_mode<synchronous>, transform_indices = @transform_16, window_bounds = array<i64: 32, 32>}, {pipeline_mode = #tpu.pipeline_mode<synchronous>, transform_indices = @transform_17, window_bounds = array<i64: 16, 32>}, {pipeline_mode = #tpu.pipeline_mode<synchronous>, transform_indices = @transform_18, window_bounds = array<i64: 1, 32>}, {transform_indices = @transform_19, window_bounds = array<i64: 128, 32>}]} {
    %c0 = arith.constant 0 : index
    %c0_0 = arith.constant 0 : index
    %0 = vector.load %arg1[%c0, %c0_0] : memref<1024x1xi32, #tpu.memory_space<vmem>>, vector<1024x1xi32>
    %1 = tpu.iota {dimensions = array<i32: 1>} : vector<1024x40xi32>
    %2 = vector.broadcast %0 : vector<1024x1xi32> to vector<1024x40xi32>
    %3 = arith.cmpi eq, %1, %2 : vector<1024x40xi32>
    %cst = arith.constant 1.000000e+00 : f32
    %cst_1 = arith.constant 0.000000e+00 : f32
    %4 = vector.broadcast %cst : f32 to vector<1024x40xf32>
    %5 = vector.broadcast %cst_1 : f32 to vector<1024x40xf32>
    %6 = arith.select %3, %4, %5 : vector<1024x40xi1>, vector<1024x40xf32>
    %7 = arith.truncf %6 : vector<1024x40xf32> to vector<1024x40xbf16>
    %c0_2 = arith.constant 0 : index
    %c0_3 = arith.constant 0 : index
    %8 = vector.load %arg3[%c0_2, %c0_3] : memref<40x16xbf16, #tpu.memory_space<vmem>>, vector<40x16xbf16>
    %cst_4 = arith.constant dense<0.000000e+00> : vector<1024x16xf32>
    %9 = tpu.matmul %7, %8, %cst_4 {dimension_numbers = #tpu.dot_dimension_numbers<[1], [0], [0], [1], [0, 0, 1, 1], [], []>} : vector<1024x40xbf16>, vector<40x16xbf16>, vector<1024x16xf32> -> vector<1024x16xf32>
    %10 = arith.truncf %9 : vector<1024x16xf32> to vector<1024x16xbf16>
    %c0_5 = arith.constant 0 : index
    %c0_6 = arith.constant 0 : index
    %11 = vector.load %arg4[%c0_5, %c0_6] : memref<16x16xbf16, #tpu.memory_space<vmem>>, vector<16x16xbf16>
    %cst_7 = arith.constant dense<0.000000e+00> : vector<1024x16xf32>
    %12 = tpu.matmul %10, %11, %cst_7 {dimension_numbers = #tpu.dot_dimension_numbers<[1], [0], [0], [1], [0, 0, 1, 1], [], []>} : vector<1024x16xbf16>, vector<16x16xbf16>, vector<1024x16xf32> -> vector<1024x16xf32>
    %13 = vector.shape_cast %12 : vector<1024x16xf32> to vector<128x8x16xf32>
    %c0_8 = arith.constant 0 : index
    %c0_9 = arith.constant 0 : index
    %14 = vector.load %arg5[%c0_8, %c0_9] : memref<16x16xbf16, #tpu.memory_space<vmem>>, vector<16x16xbf16>
    %cst_10 = arith.constant dense<0.000000e+00> : vector<1024x16xf32>
    %15 = tpu.matmul %10, %14, %cst_10 {dimension_numbers = #tpu.dot_dimension_numbers<[1], [0], [0], [1], [0, 0, 1, 1], [], []>} : vector<1024x16xbf16>, vector<16x16xbf16>, vector<1024x16xf32> -> vector<1024x16xf32>
    %16 = vector.shape_cast %15 : vector<1024x16xf32> to vector<128x8x16xf32>
    %17 = vector.extract_strided_slice %13 {offsets = [0, 0, 0], sizes = [128, 7, 16], strides = [1, 1, 1]} : vector<128x8x16xf32> to vector<128x7x16xf32>
    %18 = vector.extract_strided_slice %16 {offsets = [0, 1, 0], sizes = [128, 7, 16], strides = [1, 1, 1]} : vector<128x8x16xf32> to vector<128x7x16xf32>
    %19 = arith.addf %17, %18 : vector<128x7x16xf32>
    %cst_11 = arith.constant dense<0xFF800000> : vector<128x16xf32>
    %20 = vector.multi_reduction <maximumf>, %19, %cst_11 [1] : vector<128x7x16xf32> to vector<128x16xf32>
    %c0_12 = arith.constant 0 : index
    %c0_13 = arith.constant 0 : index
    %21 = vector.load %arg6[%c0_12, %c0_13] : memref<1x16xf32, #tpu.memory_space<vmem>>, vector<1x16xf32>
    %22 = vector.broadcast %21 : vector<1x16xf32> to vector<128x16xf32>
    %23 = arith.addf %20, %22 : vector<128x16xf32>
    %cst_14 = arith.constant 0.000000e+00 : f32
    %24 = vector.broadcast %cst_14 : f32 to vector<128x16xf32>
    %25 = arith.maximumf %23, %24 : vector<128x16xf32>
    %c0_15 = arith.constant 0 : index
    %c0_16 = arith.constant 0 : index
    %26 = vector.load %arg7[%c0_15, %c0_16] : memref<16x16xbf16, #tpu.memory_space<vmem>>, vector<16x16xbf16>
    %cst_17 = arith.constant dense<0.000000e+00> : vector<1024x16xf32>
    %27 = tpu.matmul %10, %26, %cst_17 {dimension_numbers = #tpu.dot_dimension_numbers<[1], [0], [0], [1], [0, 0, 1, 1], [], []>} : vector<1024x16xbf16>, vector<16x16xbf16>, vector<1024x16xf32> -> vector<1024x16xf32>
    %28 = vector.shape_cast %27 : vector<1024x16xf32> to vector<128x8x16xf32>
    %c0_18 = arith.constant 0 : index
    %c0_19 = arith.constant 0 : index
    %29 = vector.load %arg8[%c0_18, %c0_19] : memref<16x16xbf16, #tpu.memory_space<vmem>>, vector<16x16xbf16>
    %cst_20 = arith.constant dense<0.000000e+00> : vector<1024x16xf32>
    %30 = tpu.matmul %10, %29, %cst_20 {dimension_numbers = #tpu.dot_dimension_numbers<[1], [0], [0], [1], [0, 0, 1, 1], [], []>} : vector<1024x16xbf16>, vector<16x16xbf16>, vector<1024x16xf32> -> vector<1024x16xf32>
    %31 = vector.shape_cast %30 : vector<1024x16xf32> to vector<128x8x16xf32>
    %c0_21 = arith.constant 0 : index
    %c0_22 = arith.constant 0 : index
    %32 = vector.load %arg9[%c0_21, %c0_22] : memref<16x16xbf16, #tpu.memory_space<vmem>>, vector<16x16xbf16>
    %cst_23 = arith.constant dense<0.000000e+00> : vector<1024x16xf32>
    %33 = tpu.matmul %10, %32, %cst_23 {dimension_numbers = #tpu.dot_dimension_numbers<[1], [0], [0], [1], [0, 0, 1, 1], [], []>} : vector<1024x16xbf16>, vector<16x16xbf16>, vector<1024x16xf32> -> vector<1024x16xf32>
    %34 = vector.shape_cast %33 : vector<1024x16xf32> to vector<128x8x16xf32>
    %35 = vector.extract_strided_slice %28 {offsets = [0, 0, 0], sizes = [128, 6, 16], strides = [1, 1, 1]} : vector<128x8x16xf32> to vector<128x6x16xf32>
    %36 = vector.extract_strided_slice %31 {offsets = [0, 1, 0], sizes = [128, 6, 16], strides = [1, 1, 1]} : vector<128x8x16xf32> to vector<128x6x16xf32>
    %37 = arith.addf %35, %36 : vector<128x6x16xf32>
    %38 = vector.extract_strided_slice %34 {offsets = [0, 2, 0], sizes = [128, 6, 16], strides = [1, 1, 1]} : vector<128x8x16xf32> to vector<128x6x16xf32>
    %39 = arith.addf %37, %38 : vector<128x6x16xf32>
    %cst_24 = arith.constant dense<0xFF800000> : vector<128x16xf32>
    %40 = vector.multi_reduction <maximumf>, %39, %cst_24 [1] : vector<128x6x16xf32> to vector<128x16xf32>
    %c0_25 = arith.constant 0 : index
    %c0_26 = arith.constant 0 : index
    %41 = vector.load %arg10[%c0_25, %c0_26] : memref<1x16xf32, #tpu.memory_space<vmem>>, vector<1x16xf32>
    %42 = vector.broadcast %41 : vector<1x16xf32> to vector<128x16xf32>
    %43 = arith.addf %40, %42 : vector<128x16xf32>
    %cst_27 = arith.constant 0.000000e+00 : f32
    %44 = vector.broadcast %cst_27 : f32 to vector<128x16xf32>
    %45 = arith.maximumf %43, %44 : vector<128x16xf32>
    %46 = tpu.concatenate %25, %45 in 1 : vector<128x16xf32>, vector<128x16xf32> -> vector<128x32xf32>
    %47 = arith.truncf %46 : vector<128x32xf32> to vector<128x32xbf16>
    %c0_28 = arith.constant 0 : index
    %c0_29 = arith.constant 0 : index
    %48 = vector.load %arg11[%c0_28, %c0_29] : memref<32x32xbf16, #tpu.memory_space<vmem>>, vector<32x32xbf16>
    %cst_30 = arith.constant dense<0.000000e+00> : vector<128x32xf32>
    %49 = tpu.matmul %47, %48, %cst_30 {dimension_numbers = #tpu.dot_dimension_numbers<[1], [0], [0], [1], [0, 0, 1, 1], [], []>} : vector<128x32xbf16>, vector<32x32xbf16>, vector<128x32xf32> -> vector<128x32xf32>
    %c0_31 = arith.constant 0 : index
    %c0_32 = arith.constant 0 : index
    %50 = vector.load %arg13[%c0_31, %c0_32] : memref<1x32xf32, #tpu.memory_space<vmem>>, vector<1x32xf32>
    %51 = vector.broadcast %50 : vector<1x32xf32> to vector<128x32xf32>
    %52 = arith.addf %49, %51 : vector<128x32xf32>
    %cst_33 = arith.constant 0.000000e+00 : f32
    %53 = vector.broadcast %cst_33 : f32 to vector<128x32xf32>
    %54 = arith.maximumf %52, %53 : vector<128x32xf32>
    %c0_34 = arith.constant 0 : index
    %c0_35 = arith.constant 0 : index
    %55 = vector.load %arg12[%c0_34, %c0_35] : memref<32x32xbf16, #tpu.memory_space<vmem>>, vector<32x32xbf16>
    %cst_36 = arith.constant dense<0.000000e+00> : vector<128x32xf32>
    %56 = tpu.matmul %47, %55, %cst_36 {dimension_numbers = #tpu.dot_dimension_numbers<[1], [0], [0], [1], [0, 0, 1, 1], [], []>} : vector<128x32xbf16>, vector<32x32xbf16>, vector<128x32xf32> -> vector<128x32xf32>
    %c0_37 = arith.constant 0 : index
    %c0_38 = arith.constant 0 : index
    %57 = vector.load %arg14[%c0_37, %c0_38] : memref<1x32xf32, #tpu.memory_space<vmem>>, vector<1x32xf32>
    %58 = vector.broadcast %57 : vector<1x32xf32> to vector<128x32xf32>
    %59 = arith.addf %56, %58 : vector<128x32xf32>
    %60 = arith.negf %59 : vector<128x32xf32>
    %61 = math.exp %60 : vector<128x32xf32>
    %cst_39 = arith.constant 1.000000e+00 : f32
    %62 = vector.broadcast %cst_39 : f32 to vector<128x32xf32>
    %63 = arith.addf %62, %61 : vector<128x32xf32>
    %64 = arith.divf %62, %63 : vector<128x32xf32>
    %65 = arith.mulf %64, %46 : vector<128x32xf32>
    %cst_40 = arith.constant 1.000000e+00 : f32
    %66 = vector.broadcast %cst_40 : f32 to vector<128x32xf32>
    %67 = arith.subf %66, %64 : vector<128x32xf32>
    %68 = arith.mulf %67, %54 : vector<128x32xf32>
    %69 = arith.addf %65, %68 : vector<128x32xf32>
    %70 = arith.truncf %69 : vector<128x32xf32> to vector<128x32xbf16>
    %c0_41 = arith.constant 0 : index
    %c0_42 = arith.constant 0 : index
    %71 = vector.load %arg15[%c0_41, %c0_42] : memref<32x32xbf16, #tpu.memory_space<vmem>>, vector<32x32xbf16>
    %cst_43 = arith.constant dense<0.000000e+00> : vector<128x32xf32>
    %72 = tpu.matmul %70, %71, %cst_43 {dimension_numbers = #tpu.dot_dimension_numbers<[1], [0], [0], [1], [0, 0, 1, 1], [], []>} : vector<128x32xbf16>, vector<32x32xbf16>, vector<128x32xf32> -> vector<128x32xf32>
    %c0_44 = arith.constant 0 : index
    %c0_45 = arith.constant 0 : index
    %73 = vector.load %arg16[%c0_44, %c0_45] : memref<1x32xf32, #tpu.memory_space<vmem>>, vector<1x32xf32>
    %74 = vector.broadcast %73 : vector<1x32xf32> to vector<128x32xf32>
    %75 = arith.addf %72, %74 : vector<128x32xf32>
    %76 = arith.truncf %75 : vector<128x32xf32> to vector<128x32xbf16>
    %c0_46 = arith.constant 0 : index
    %c0_47 = arith.constant 0 : index
    %77 = vector.load %arg17[%c0_46, %c0_47] : memref<32x32xbf16, #tpu.memory_space<vmem>>, vector<32x32xbf16>
    %cst_48 = arith.constant dense<0.000000e+00> : vector<128x32xf32>
    %78 = tpu.matmul %76, %77, %cst_48 {dimension_numbers = #tpu.dot_dimension_numbers<[1], [0], [0], [1], [0, 0, 1, 1], [], []>} : vector<128x32xbf16>, vector<32x32xbf16>, vector<128x32xf32> -> vector<128x32xf32>
    %c0_49 = arith.constant 0 : index
    %c0_50 = arith.constant 0 : index
    %79 = vector.load %arg2[%c0_49, %c0_50] : memref<128x16xbf16, #tpu.memory_space<vmem>>, vector<128x16xbf16>
    %c0_51 = arith.constant 0 : index
    %c0_52 = arith.constant 0 : index
    %80 = vector.load %arg18[%c0_51, %c0_52] : memref<16x32xbf16, #tpu.memory_space<vmem>>, vector<16x32xbf16>
    %cst_53 = arith.constant dense<0.000000e+00> : vector<128x32xf32>
    %81 = tpu.matmul %79, %80, %cst_53 {dimension_numbers = #tpu.dot_dimension_numbers<[1], [0], [0], [1], [0, 0, 1, 1], [], []>} : vector<128x16xbf16>, vector<16x32xbf16>, vector<128x32xf32> -> vector<128x32xf32>
    %82 = arith.addf %78, %81 : vector<128x32xf32>
    %c0_54 = arith.constant 0 : index
    %c0_55 = arith.constant 0 : index
    %83 = vector.load %arg19[%c0_54, %c0_55] : memref<1x32xf32, #tpu.memory_space<vmem>>, vector<1x32xf32>
    %84 = vector.broadcast %83 : vector<1x32xf32> to vector<128x32xf32>
    %85 = arith.addf %82, %84 : vector<128x32xf32>
    %c0_56 = arith.constant 0 : index
    %c0_57 = arith.constant 0 : index
    %86 = vector.load %arg20[%c0_56, %c0_57] : memref<128x32xf32, #tpu.memory_space<vmem>>, vector<128x32xf32>
    tpu.vector_store %arg20[%c0_56, %c0_57], %85 {strides = array<i32>} : memref<128x32xf32, #tpu.memory_space<vmem>>, vector<128x32xf32>,
    return
  }
  func.func @transform_0(%arg0: i32) -> (i32, i32) {
    %c0_i32 = arith.constant 0 : i32
    %c0_i32_0 = arith.constant 0 : i32
    return %arg0, %c0_i32 : i32, i32
  }
  func.func @transform_1(%arg0: i32) -> (i32, i32) {
    %c0_i32 = arith.constant 0 : i32
    %c0_i32_0 = arith.constant 0 : i32
    return %arg0, %c0_i32 : i32, i32
  }
  func.func @transform_2(%arg0: i32) -> (i32, i32) {
    %c0_i32 = arith.constant 0 : i32
    %c0_i32_0 = arith.constant 0 : i32
    %c0_i32_1 = arith.constant 0 : i32
    return %c0_i32, %c0_i32_0 : i32, i32
  }
  func.func @transform_3(%arg0: i32) -> (i32, i32) {
    %c0_i32 = arith.constant 0 : i32
    %c0_i32_0 = arith.constant 0 : i32
    %c0_i32_1 = arith.constant 0 : i32
    return %c0_i32, %c0_i32_0 : i32, i32
  }
  func.func @transform_4(%arg0: i32) -> (i32, i32) {
    %c0_i32 = arith.constant 0 : i32
    %c0_i32_0 = arith.constant 0 : i32
    %c0_i32_1 = arith.constant 0 : i32
    return %c0_i32, %c0_i32_0 : i32, i32
  }
  func.func @transform_5(%arg0: i32) -> (i32, i32) {
    %c0_i32 = arith.constant 0 : i32
    %c0_i32_0 = arith.constant 0 : i32
    %c0_i32_1 = arith.constant 0 : i32
    return %c0_i32, %c0_i32_0 : i32, i32
  }
  func.func @transform_6(%arg0: i32) -> (i32, i32) {
    %c0_i32 = arith.constant 0 : i32
    %c0_i32_0 = arith.constant 0 : i32
    %c0_i32_1 = arith.constant 0 : i32
    return %c0_i32, %c0_i32_0 : i32, i32
  }
  func.func @transform_7(%arg0: i32) -> (i32, i32) {
    %c0_i32 = arith.constant 0 : i32
    %c0_i32_0 = arith.constant 0 : i32
    %c0_i32_1 = arith.constant 0 : i32
    return %c0_i32, %c0_i32_0 : i32, i32
  }
  func.func @transform_8(%arg0: i32) -> (i32, i32) {
    %c0_i32 = arith.constant 0 : i32
    %c0_i32_0 = arith.constant 0 : i32
    %c0_i32_1 = arith.constant 0 : i32
    return %c0_i32, %c0_i32_0 : i32, i32
  }
  func.func @transform_9(%arg0: i32) -> (i32, i32) {
    %c0_i32 = arith.constant 0 : i32
    %c0_i32_0 = arith.constant 0 : i32
    %c0_i32_1 = arith.constant 0 : i32
    return %c0_i32, %c0_i32_0 : i32, i32
  }
  func.func @transform_10(%arg0: i32) -> (i32, i32) {
    %c0_i32 = arith.constant 0 : i32
    %c0_i32_0 = arith.constant 0 : i32
    %c0_i32_1 = arith.constant 0 : i32
    return %c0_i32, %c0_i32_0 : i32, i32
  }
  func.func @transform_11(%arg0: i32) -> (i32, i32) {
    %c0_i32 = arith.constant 0 : i32
    %c0_i32_0 = arith.constant 0 : i32
    %c0_i32_1 = arith.constant 0 : i32
    return %c0_i32, %c0_i32_0 : i32, i32
  }
  func.func @transform_12(%arg0: i32) -> (i32, i32) {
    %c0_i32 = arith.constant 0 : i32
    %c0_i32_0 = arith.constant 0 : i32
    %c0_i32_1 = arith.constant 0 : i32
    return %c0_i32, %c0_i32_0 : i32, i32
  }
  func.func @transform_13(%arg0: i32) -> (i32, i32) {
    %c0_i32 = arith.constant 0 : i32
    %c0_i32_0 = arith.constant 0 : i32
    %c0_i32_1 = arith.constant 0 : i32
    return %c0_i32, %c0_i32_0 : i32, i32
  }
  func.func @transform_14(%arg0: i32) -> (i32, i32) {
    %c0_i32 = arith.constant 0 : i32
    %c0_i32_0 = arith.constant 0 : i32
    %c0_i32_1 = arith.constant 0 : i32
    return %c0_i32, %c0_i32_0 : i32, i32
  }
  func.func @transform_15(%arg0: i32) -> (i32, i32) {
    %c0_i32 = arith.constant 0 : i32
    %c0_i32_0 = arith.constant 0 : i32
    %c0_i32_1 = arith.constant 0 : i32
    return %c0_i32, %c0_i32_0 : i32, i32
  }
  func.func @transform_16(%arg0: i32) -> (i32, i32) {
    %c0_i32 = arith.constant 0 : i32
    %c0_i32_0 = arith.constant 0 : i32
    %c0_i32_1 = arith.constant 0 : i32
    return %c0_i32, %c0_i32_0 : i32, i32
  }
  func.func @transform_17(%arg0: i32) -> (i32, i32) {
    %c0_i32 = arith.constant 0 : i32
    %c0_i32_0 = arith.constant 0 : i32
    %c0_i32_1 = arith.constant 0 : i32
    return %c0_i32, %c0_i32_0 : i32, i32
  }
  func.func @transform_18(%arg0: i32) -> (i32, i32) {
    %c0_i32 = arith.constant 0 : i32
    %c0_i32_0 = arith.constant 0 : i32
    %c0_i32_1 = arith.constant 0 : i32
    return %c0_i32, %c0_i32_0 : i32, i32
  }
  func.func @transform_19(%arg0: i32) -> (i32, i32) {
    %c0_i32 = arith.constant 0 : i32
    %c0_i32_0 = arith.constant 0 : i32
    return %arg0, %c0_i32 : i32, i32
  }
}

</mosaic_0001>

<bundles_post_ra>
// kernel: token_encoder_forward.1
= control target key start
LH: loop header
LB: loop body
LE: loop exit
PB: predicated region body
PF: predicated region fallthrough
CT: control target
= control target key end

     0   :  { %v12222_v0 = vmov 0   ;;  %vm1110_vm0 = vcmask 1043456   ;;  %vm917_vm5 = vcmask 326656   ;;  %s17924_s0 = inlined_call_operand.vmem [shape: s32[1024,1], index: 0, kind: input, shape index: {}]   ;;  %s17925_s2 = inlined_call_operand.vmem [shape: bf16[40,16], index: 2, kind: input, shape index: {}]   ;;  %s17926_s3 = inlined_call_operand.vmem [shape: bf16[16,16], index: 3, kind: input, shape index: {}]   ;;  %s17927_s4 = inlined_call_operand.vmem [shape: bf16[16,16], index: 4, kind: input, shape index: {}]   ;;  %s17928_s6 = inlined_call_operand.vmem [shape: bf16[16,16], index: 6, kind: input, shape index: {}]   ;;  %s17929_s7 = inlined_call_operand.vmem [shape: bf16[16,16], index: 7, kind: input, shape index: {}]   ;;  %s17930_s8 = inlined_call_operand.vmem [shape: bf16[16,16], index: 8, kind: input, shape index: {}]   ;;  %s17931_s5 = inlined_call_operand.vmem [shape: f32[1,16], index: 5, kind: input, shape index: {}]   ;;  %s17932_s9 = inlined_call_operand.vmem [shape: f32[1,16], index: 9, kind: input, shape index: {}]   ;;  %s17933_s11 = inlined_call_operand.vmem [shape: bf16[32,32], index: 11, kind: input, shape index: {}]   ;;  %s17934_s10 = inlined_call_operand.vmem [shape: bf16[32,32], index: 10, kind: input, shape index: {}]   ;;  %s17935_s14 = inlined_call_operand.vmem [shape: bf16[32,32], index: 14, kind: input, shape index: {}]   ;;  %s17936_s13 = inlined_call_operand.vmem [shape: f32[1,32], index: 13, kind: input, shape index: {}]   ;;  %s17937_s12 = inlined_call_operand.vmem [shape: f32[1,32], index: 12, kind: input, shape index: {}]   ;;  %s17938_s17 = inlined_call_operand.vmem [shape: bf16[16,32], index: 17, kind: input, shape index: {}]   ;;  %s17939_s1 = inlined_call_operand.vmem [shape: bf16[128,16], index: 1, kind: input, shape index: {}]   ;;  %s17940_s16 = inlined_call_operand.vmem [shape: bf16[32,32], index: 16, kind: input, shape index: {}]   ;;  %s17941_s15 = inlined_call_operand.vmem [shape: f32[1,32], index: 15, kind: input, shape index: {}]   ;;  %s17942_s18 = inlined_call_operand.vmem [shape: f32[1,32], index: 18, kind: input, shape index: {}]   ;;  %s17943_s19 = inlined_call_operand.vmem [shape: f32[128,32], index: 19, kind: output, shape index: {}]  }
   0x1   :  { %18156 = sst [smem:[#allocation395_spill]] %s17924_s0  ;;  %12124 = vset.pattern.permute.xlu1 %v12222_v0  ;;  %12123 = vset.pattern.permute.xlu0 %v12222_v0  ;;  %s12224_s0 = smov 16  }
   0x2   :  { %18157 = sst [smem:[#allocation396_spill]] %s17925_s2  ;;  %s18160_s20 = sld [smem:[#allocation395_spill]] }
   0x3   :  { %18158 = sst [smem:[#allocation397_spill]] %s17926_s3  ;;  %s18161_s21 = sld [smem:[#allocation396_spill]] }
   0x4   :  { %18159 = sst [smem:[#allocation398_spill]] %s17927_s4  ;;  %s18162_s2 = sld [smem:[#allocation397_spill]] }
   0x8   :  { %v65_v1 = vld [vmem:[%s18160_s20 + $0x10] sm:$0xff]  ;;  %v63_v2 = vld [vmem:[%s18160_s20] sm:$0xff]  ;;  %v66_v3 = vld [vmem:[%s18160_s20 + $0x18] sm:$0xff] }
   0x9   :  { %200 = vperm.xlu1 %12124, %v65_v1   ;;  %194 = vperm.xlu0 %12123, %v63_v2   ;;  %v64_v4 = vld [vmem:[%s18160_s20 + $0x8] sm:$0xff]  ;;  %v67_v6 = vld [vmem:[%s18160_s20 + $0x20] sm:$0xff]  ;;  %v70_v7 = vld [vmem:[%s18160_s20 + $0x38] sm:$0xff] }
   0xa   :  { %v68_v5 = vld [vmem:[%s18160_s20 + $0x28] sm:$0xff]  ;;  %v69_v8 = vld [vmem:[%s18160_s20 + $0x30] sm:$0xff]  ;;  %v71_v10 = vld [vmem:[%s18160_s20 + $0x40] sm:$0xff] }
   0xb   :  { %v72_v9 = vld [vmem:[%s18160_s20 + $0x48] sm:$0xff]  ;;  %v74_v11 = vld [vmem:[%s18160_s20 + $0x58] sm:$0xff]  ;;  %v73_v12 = vld [vmem:[%s18160_s20 + $0x50] sm:$0xff] }
   0xc   :  { %v76_v13 = vld [vmem:[%s18160_s20 + $0x68] sm:$0xff]  ;;  %v75_v14 = vld [vmem:[%s18160_s20 + $0x60] sm:$0xff]  ;;  %v78_v17 = vld [vmem:[%s18160_s20 + $0x78] sm:$0xff] }
   0xd   :  { %203 = vperm.xlu1 %12124, %v66_v3   ;;  %197 = vperm.xlu0 %12123, %v64_v4   ;;  %v12125_v15 = vld [vmem:[%s18161_s21] sm:$0xff]   ;;  %v12126_v16 = vld [vmem:[%s18161_s21 + $0x8] sm:$0xff]   ;;  %v77_v18 = vld [vmem:[%s18160_s20 + $0x70] sm:$0xff] }
   0xe   :  { %11214 = vmatprep.subr.bf16.mxu0 %v12125_v15  ;;  %12096 = vmatprep.subr.bf16.mxu1 %v12125_v15  ;;  %v12127_v19 = vld [vmem:[%s18161_s21 + $0x10] ss:$0 sps:$4 sm:$0xff]   ;;  %v80_v20 = vld [vmem:[%s18160_s20 + $0x88] sm:$0xff]  ;;  %v79_v21 = vld [vmem:[%s18160_s20 + $0x80] sm:$0xff]  ;;  %s18163_s21 = sld [smem:[#allocation398_spill]] }
   0xf   :  { %11215 = vmatpush3.bf16.msra.mxu0 %v12125_v15  ;;  %12099 = vmatpush3.bf16.msra.mxu1 %v12125_v15  ;;  %v1112_v22 = vsel %vm1110_vm0, %v12127_v19, 0  ;;  %v82_v23 = vld [vmem:[%s18160_s20 + $0x98] sm:$0xff]  ;;  %v81_v24 = vld [vmem:[%s18160_s20 + $0x90] sm:$0xff]  ;;  %v84_v25 = vld [vmem:[%s18160_s20 + $0xa8] sm:$0xff]  ;;  %v12223_v15 = vmov 0.0  }
  0x10   :  { %11216 = vmatprep.subr.bf16.mxu0 %v12126_v16  ;;  %12097 = vmatprep.subr.bf16.mxu1 %v12126_v16  ;;  %v83_v26 = vld [vmem:[%s18160_s20 + $0xa0] sm:$0xff]  ;;  %v86_v27 = vld [vmem:[%s18160_s20 + $0xb8] sm:$0xff]  ;;  %v85_v28 = vld [vmem:[%s18160_s20 + $0xb0] sm:$0xff] }
  0x11   :  { %209 = vperm.xlu1 %12124, %v68_v5   ;;  %206 = vperm.xlu0 %12123, %v67_v6   ;;  %v88_v29 = vld [vmem:[%s18160_s20 + $0xc8] sm:$0xff]  ;;  %v87_v30 = vld [vmem:[%s18160_s20 + $0xc0] sm:$0xff]  ;;  %v90_v31 = vld [vmem:[%s18160_s20 + $0xd8] sm:$0xff]  ;;  %v191_v5 = vlaneseq }
  0x12   :  { %v89_v32 = vld [vmem:[%s18160_s20 + $0xd0] sm:$0xff]  ;;  %v92_v33 = vld [vmem:[%s18160_s20 + $0xe8] sm:$0xff]  ;;  %v91_v34 = vld [vmem:[%s18160_s20 + $0xe0] sm:$0xff] }
  0x13   :  { %11217 = vmatpush3.bf16.msra.mxu0 %v12126_v16  ;;  %12100 = vmatpush3.bf16.msra.mxu1 %v12126_v16  ;;  %v94_v35 = vld [vmem:[%s18160_s20 + $0xf8] sm:$0xff]  ;;  %v93_v36 = vld [vmem:[%s18160_s20 + $0xf0] sm:$0xff]  ;;  %v96_v37 = vld [vmem:[%s18160_s20 + $0x108] sm:$0xff] }
  0x14   :  { %12118 = vmatprep.subr.msk.bf16.mxu0 %vm1110_vm0, %v12127_v19  ;;  %12119 = vmatprep.subr.msk.bf16.mxu1 %vm1110_vm0, %v12127_v19  ;;  %v95_v38 = vld [vmem:[%s18160_s20 + $0x100] sm:$0xff]  ;;  %v98_v39 = vld [vmem:[%s18160_s20 + $0x118] sm:$0xff]  ;;  %v97_v40 = vld [vmem:[%s18160_s20 + $0x110] sm:$0xff] }
  0x15   :  { %215 = vperm.xlu1 %12124, %v70_v7   ;;  %212 = vperm.xlu0 %12123, %v69_v8   ;;  %v100_v41 = vld [vmem:[%s18160_s20 + $0x128] sm:$0xff]  ;;  %v99_v42 = vld [vmem:[%s18160_s20 + $0x120] sm:$0xff]  ;;  %v102_v43 = vld [vmem:[%s18160_s20 + $0x138] sm:$0xff]  ;;  %v12532_v8 = vand.u32 127, %v191_v5 }
  0x16   :  { %v101_v44 = vld [vmem:[%s18160_s20 + $0x130] sm:$0xff]  ;;  %v104_v45 = vld [vmem:[%s18160_s20 + $0x148] sm:$0xff]  ;;  %v103_v46 = vld [vmem:[%s18160_s20 + $0x140] sm:$0xff] }
  0x17   :  { %11219 = vmatpush3.bf16.msra.mxu0 %v1112_v22  ;;  %12101 = vmatpush3.bf16.msra.mxu1 %v1112_v22  ;;  %v106_v47 = vld [vmem:[%s18160_s20 + $0x158] sm:$0xff]  ;;  %v105_v48 = vld [vmem:[%s18160_s20 + $0x150] sm:$0xff]  ;;  %v108_v49 = vld [vmem:[%s18160_s20 + $0x168] sm:$0xff] }
  0x18   :  { %v107_v50 = vld [vmem:[%s18160_s20 + $0x160] sm:$0xff]  ;;  %v110_v51 = vld [vmem:[%s18160_s20 + $0x178] sm:$0xff]  ;;  %v109_v52 = vld [vmem:[%s18160_s20 + $0x170] sm:$0xff] }
  0x19   :  { %221 = vperm.xlu1 %12124, %v72_v9   ;;  %218 = vperm.xlu0 %12123, %v71_v10   ;;  %v112_v53 = vld [vmem:[%s18160_s20 + $0x188] sm:$0xff]  ;;  %v111_v54 = vld [vmem:[%s18160_s20 + $0x180] sm:$0xff]  ;;  %v114_v55 = vld [vmem:[%s18160_s20 + $0x198] sm:$0xff] }
  0x1a   :  { %v113_v56 = vld [vmem:[%s18160_s20 + $0x190] sm:$0xff]  ;;  %v116_v57 = vld [vmem:[%s18160_s20 + $0x1a8] sm:$0xff]  ;;  %v115_v58 = vld [vmem:[%s18160_s20 + $0x1a0] sm:$0xff] }
  0x1b   :  { %v118_v59 = vld [vmem:[%s18160_s20 + $0x1b8] sm:$0xff]  ;;  %v117_v60 = vld [vmem:[%s18160_s20 + $0x1b0] sm:$0xff]  ;;  %v120_v61 = vld [vmem:[%s18160_s20 + $0x1c8] sm:$0xff] }
  0x1c   :  { %v119_v62 = vld [vmem:[%s18160_s20 + $0x1c0] sm:$0xff]  ;;  %v122_v63 = vld [vmem:[%s18160_s20 + $0x1d8] sm:$0xff]  ;;  %v121_v0 = vld [vmem:[%s18160_s20 + $0x1d0] sm:$0xff] }
  0x1d   :  { %227 = vperm.xlu1 %12124, %v74_v11   ;;  %224 = vperm.xlu0 %12123, %v73_v12   ;;  %v124_v1 = vld [vmem:[%s18160_s20 + $0x1e8] sm:$0xff]  ;;  %v123_v2 = vld [vmem:[%s18160_s20 + $0x1e0] sm:$0xff]  ;;  %v126_v3 = vld [vmem:[%s18160_s20 + $0x1f8] sm:$0xff] }
  0x1e   :  { %v125_v4 = vld [vmem:[%s18160_s20 + $0x1f0] sm:$0xff]  ;;  %v128_v6 = vld [vmem:[%s18160_s20 + $0x208] sm:$0xff]  ;;  %v127_v7 = vld [vmem:[%s18160_s20 + $0x200] sm:$0xff] }
  0x1f   :  { %v130_v11 = vld [vmem:[%s18160_s20 + $0x218] sm:$0xff]  ;;  %v129_v12 = vld [vmem:[%s18160_s20 + $0x210] sm:$0xff]  ;;  %v131_v19 = vld [vmem:[%s18160_s20 + $0x220] sm:$0xff] }
  0x21   :  { %233 = vperm.xlu1 %12124, %v76_v13   ;;  %230 = vperm.xlu0 %12123, %v75_v14  }
  0x25   :  { %239 = vperm.xlu1 %12124, %v78_v17   ;;  %236 = vperm.xlu0 %12123, %v77_v18   ;;  %v132_v18 = vld [vmem:[%s18160_s20 + $0x228] sm:$0xff] }
  0x29   :  { %245 = vperm.xlu1 %12124, %v80_v20   ;;  %242 = vperm.xlu0 %12123, %v79_v21  }
  0x2d   :  { %251 = vperm.xlu1 %12124, %v82_v23   ;;  %248 = vperm.xlu0 %12123, %v81_v24  }
  0x31   :  { %257 = vperm.xlu1 %12124, %v84_v25   ;;  %254 = vperm.xlu0 %12123, %v83_v26  }
  0x35   :  { %263 = vperm.xlu1 %12124, %v86_v27   ;;  %260 = vperm.xlu0 %12123, %v85_v28   ;;  %v134_v28 = vld [vmem:[%s18160_s20 + $0x238] sm:$0xff] }
  0x39   :  { %269 = vperm.xlu1 %12124, %v88_v29   ;;  %266 = vperm.xlu0 %12123, %v87_v30   ;;  %v133_v29 = vld [vmem:[%s18160_s20 + $0x230] sm:$0xff] }
  0x3d   :  { %275 = vperm.xlu1 %12124, %v90_v31   ;;  %272 = vperm.xlu0 %12123, %v89_v32  }
  0x41   :  { %281 = vperm.xlu1 %12124, %v92_v33   ;;  %278 = vperm.xlu0 %12123, %v91_v34  }
  0x45   :  { %287 = vperm.xlu1 %12124, %v94_v35   ;;  %284 = vperm.xlu0 %12123, %v93_v36   ;;  %v136_v35 = vld [vmem:[%s18160_s20 + $0x248] sm:$0xff]  ;;  %v135_v36 = vld [vmem:[%s18160_s20 + $0x240] sm:$0xff] }
  0x49   :  { %293 = vperm.xlu1 %12124, %v96_v37   ;;  %290 = vperm.xlu0 %12123, %v95_v38  }
  0x4d   :  { %299 = vperm.xlu1 %12124, %v98_v39   ;;  %296 = vperm.xlu0 %12123, %v97_v40  }
  0x51   :  { %305 = vperm.xlu1 %12124, %v100_v41   ;;  %302 = vperm.xlu0 %12123, %v99_v42   ;;  %v138_v42 = vld [vmem:[%s18160_s20 + $0x258] sm:$0xff] }
  0x55   :  { %311 = vperm.xlu1 %12124, %v102_v43   ;;  %308 = vperm.xlu0 %12123, %v101_v44   ;;  %v137_v43 = vld [vmem:[%s18160_s20 + $0x250] sm:$0xff] }
  0x59   :  { %317 = vperm.xlu1 %12124, %v104_v45   ;;  %314 = vperm.xlu0 %12123, %v103_v46  }
  0x5d   :  { %323 = vperm.xlu1 %12124, %v106_v47   ;;  %320 = vperm.xlu0 %12123, %v105_v48  }
  0x61   :  { %329 = vperm.xlu1 %12124, %v108_v49   ;;  %326 = vperm.xlu0 %12123, %v107_v50   ;;  %v140_v49 = vld [vmem:[%s18160_s20 + $0x268] sm:$0xff]  ;;  %v139_v50 = vld [vmem:[%s18160_s20 + $0x260] sm:$0xff] }
  0x65   :  { %335 = vperm.xlu1 %12124, %v110_v51   ;;  %332 = vperm.xlu0 %12123, %v109_v52  }
  0x69   :  { %341 = vperm.xlu1 %12124, %v112_v53   ;;  %338 = vperm.xlu0 %12123, %v111_v54  }
  0x6d   :  { %347 = vperm.xlu1 %12124, %v114_v55   ;;  %344 = vperm.xlu0 %12123, %v113_v56   ;;  %v142_v56 = vld [vmem:[%s18160_s20 + $0x278] sm:$0xff] }
  0x71   :  { %353 = vperm.xlu1 %12124, %v116_v57   ;;  %350 = vperm.xlu0 %12123, %v115_v58   ;;  %v141_v57 = vld [vmem:[%s18160_s20 + $0x270] sm:$0xff] }
  0x75   :  { %359 = vperm.xlu1 %12124, %v118_v59   ;;  %356 = vperm.xlu0 %12123, %v117_v60  }
  0x79   :  { %365 = vperm.xlu1 %12124, %v120_v61   ;;  %362 = vperm.xlu0 %12123, %v119_v62  }
  0x7d   :  { %371 = vperm.xlu1 %12124, %v122_v63   ;;  %368 = vperm.xlu0 %12123, %v121_v0   ;;  %v144_v63 = vld [vmem:[%s18160_s20 + $0x288] sm:$0xff]  ;;  %v143_v0 = vld [vmem:[%s18160_s20 + $0x280] sm:$0xff] }
  0x81   :  { %377 = vperm.xlu1 %12124, %v124_v1   ;;  %374 = vperm.xlu0 %12123, %v123_v2  }
  0x85   :  { %383 = vperm.xlu1 %12124, %v126_v3   ;;  %380 = vperm.xlu0 %12123, %v125_v4  }
  0x88   :  { %v201_v9 = vpop.permute.xlu1 %200  ;;  %v195_v10 = vpop.permute.xlu0 %194 }
  0x89   :  { %389 = vperm.xlu1 %12124, %v128_v6   ;;  %386 = vperm.xlu0 %12123, %v127_v7   ;;  %vm579_vm1 = vcmp.eq.s32.totalorder %v12532_v8, %v201_v9  ;;  %vm577_vm2 = vcmp.eq.s32.totalorder %v12532_v8, %v195_v10  ;;  %v146_v6 = vld [vmem:[%s18160_s20 + $0x298] sm:$0xff]  ;;  %v145_v7 = vld [vmem:[%s18160_s20 + $0x290] sm:$0xff] }
  0x8a   :  { %v707_v16 = vsel %vm579_vm1, 1.0, %v12223_v15  ;;  %v705_v20 = vsel %vm577_vm2, 1.0, %v12223_v15 }
  0x8c   :  { %v204_v13 = vpop.permute.xlu1 %203  ;;  %v198_v14 = vpop.permute.xlu0 %197 }
  0x8d   :  { %vm580_vm3 = vcmp.eq.s32.totalorder %v12532_v8, %v204_v13  ;;  %vm578_vm4 = vcmp.eq.s32.totalorder %v12532_v8, %v198_v14  ;;  %395 = vperm.xlu1 %12124, %v130_v11   ;;  %392 = vperm.xlu0 %12123, %v129_v12   ;;  %v148_v14 = vld [vmem:[%s18160_s20 + $0x2a8] sm:$0xff] }
  0x8e   :  { %v708_v17 = vsel %vm580_vm3, 1.0, %v12223_v15  ;;  %v706_v21 = vsel %vm578_vm4, 1.0, %v12223_v15 }
  0x8f   :  { %v834_v22 = vpack.c.bf16 %v708_v17, %v707_v16  ;;  %v833_v23 = vpack.c.bf16 %v706_v21, %v705_v20  ;;  %v147_v16 = vld [vmem:[%s18160_s20 + $0x2a0] sm:$0xff] }
  0x90   :  { %v210_v24 = vpop.permute.xlu1 %209  ;;  %v207_v25 = vpop.permute.xlu0 %206 }
  0x91   :  { %vm582_vm6 = vcmp.eq.s32.totalorder %v12532_v8, %v210_v24  ;;  %vm581_vm7 = vcmp.eq.s32.totalorder %v12532_v8, %v207_v25  ;;  %401 = vperm.xlu1 %12124, %v132_v18   ;;  %398 = vperm.xlu0 %12123, %v131_v19  }
  0x92   :  { %v710_v26 = vsel %vm582_vm6, 1.0, %v12223_v15  ;;  %v709_v27 = vsel %vm581_vm7, 1.0, %v12223_v15  ;;  %11220 = vmatprep.mubr.msk.bf16.mxu0 %vm917_vm5, %v833_v23  ;;  %v149_v23 = vld [vmem:[%s18160_s20 + $0x2b0] sm:$0xff] }
  0x93   :  { %v835_v30 = vpack.c.bf16 %v710_v26, %v709_v27  ;;  %11221 = vmatmul.mubr.msk.bf16.vlgmr.msra.gmra.mrb[0].mxu0 %vm917_vm5, %v834_v22  ;;  %v150_v22 = vld [vmem:[%s18160_s20 + $0x2b8] sm:$0xff] }
  0x94   :  { %v216_v31 = vpop.permute.xlu1 %215  ;;  %v213_v32 = vpop.permute.xlu0 %212 }
  0x95   :  { %vm584_vm8 = vcmp.eq.s32.totalorder %v12532_v8, %v216_v31  ;;  %vm583_vm9 = vcmp.eq.s32.totalorder %v12532_v8, %v213_v32  ;;  %407 = vperm.xlu1 %12124, %v134_v28   ;;  %404 = vperm.xlu0 %12123, %v133_v29   ;;  %v152_v29 = vld [vmem:[%s18160_s20 + $0x2c8] sm:$0xff] }
  0x96   :  { %v712_v33 = vsel %vm584_vm8, 1.0, %v12223_v15  ;;  %v711_v34 = vsel %vm583_vm9, 1.0, %v12223_v15  ;;  %11224 = vmatprep.mubr.msk.bf16.mxu0 %vm917_vm5, %v835_v30  ;;  %v151_v30 = vld [vmem:[%s18160_s20 + $0x2c0] sm:$0xff] }
  0x97   :  { %v836_v37 = vpack.c.bf16 %v712_v33, %v711_v34 }
  0x98   :  { %v222_v38 = vpop.permute.xlu1 %221  ;;  %v219_v39 = vpop.permute.xlu0 %218 }
  0x99   :  { %vm586_vm10 = vcmp.eq.s32.totalorder %v12532_v8, %v222_v38  ;;  %vm585_vm11 = vcmp.eq.s32.totalorder %v12532_v8, %v219_v39  ;;  %413 = vperm.xlu1 %12124, %v136_v35   ;;  %410 = vperm.xlu0 %12123, %v135_v36   ;;  %v154_v36 = vld [vmem:[%s18160_s20 + $0x2d8] sm:$0xff] }
  0x9a   :  { %v714_v40 = vsel %vm586_vm10, 1.0, %v12223_v15  ;;  %v713_v41 = vsel %vm585_vm11, 1.0, %v12223_v15 }
  0x9b   :  { %v837_v44 = vpack.c.bf16 %v714_v40, %v713_v41  ;;  %11225 = vmatmul.mubr.msk.bf16.gmra.mrb[4].mxu0 %vm917_vm5, %v836_v37  ;;  %v153_v37 = vld [vmem:[%s18160_s20 + $0x2d0] sm:$0xff] }
  0x9c   :  { %v228_v45 = vpop.permute.xlu1 %227  ;;  %v225_v46 = vpop.permute.xlu0 %224 }
  0x9d   :  { %vm588_vm12 = vcmp.eq.s32.totalorder %v12532_v8, %v228_v45  ;;  %vm587_vm13 = vcmp.eq.s32.totalorder %v12532_v8, %v225_v46  ;;  %419 = vperm.xlu1 %12124, %v138_v42   ;;  %416 = vperm.xlu0 %12123, %v137_v43   ;;  %v156_v43 = vld [vmem:[%s18160_s20 + $0x2e8] sm:$0xff] }
  0x9e   :  { %v716_v47 = vsel %vm588_vm12, 1.0, %v12223_v15  ;;  %v715_v48 = vsel %vm587_vm13, 1.0, %v12223_v15  ;;  %11228 = vmatprep.mubr.msk.bf16.mxu0 %vm917_vm5, %v837_v44  ;;  %v155_v44 = vld [vmem:[%s18160_s20 + $0x2e0] sm:$0xff] }
  0x9f   :  { %v838_v51 = vpack.c.bf16 %v716_v47, %v715_v48 }
  0xa0   :  { %v234_v52 = vpop.permute.xlu1 %233  ;;  %v231_v53 = vpop.permute.xlu0 %230 }
  0xa1   :  { %vm590_vm14 = vcmp.eq.s32.totalorder %v12532_v8, %v234_v52  ;;  %vm589_vm15 = vcmp.eq.s32.totalorder %v12532_v8, %v231_v53  ;;  %425 = vperm.xlu1 %12124, %v140_v49   ;;  %422 = vperm.xlu0 %12123, %v139_v50   ;;  %v158_v50 = vld [vmem:[%s18160_s20 + $0x2f8] sm:$0xff] }
  0xa2   :  { %v718_v54 = vsel %vm590_vm14, 1.0, %v12223_v15  ;;  %v717_v55 = vsel %vm589_vm15, 1.0, %v12223_v15 }
  0xa3   :  { %v839_v58 = vpack.c.bf16 %v718_v54, %v717_v55  ;;  %11229 = vmatmul.mubr.msk.bf16.gmra.mrb[8].mxu0 %vm917_vm5, %v838_v51  ;;  %v157_v51 = vld [vmem:[%s18160_s20 + $0x2f0] sm:$0xff] }
  0xa4   :  { %v240_v59 = vpop.permute.xlu1 %239  ;;  %v237_v60 = vpop.permute.xlu0 %236 }
  0xa5   :  { %vm592_vm0 = vcmp.eq.s32.totalorder %v12532_v8, %v240_v59  ;;  %vm591_vm1 = vcmp.eq.s32.totalorder %v12532_v8, %v237_v60  ;;  %431 = vperm.xlu1 %12124, %v142_v56   ;;  %428 = vperm.xlu0 %12123, %v141_v57   ;;  %v160_v57 = vld [vmem:[%s18160_s20 + $0x308] sm:$0xff] }
  0xa6   :  { %v720_v61 = vsel %vm592_vm0, 1.0, %v12223_v15  ;;  %v719_v62 = vsel %vm591_vm1, 1.0, %v12223_v15  ;;  %11232 = vmatprep.mubr.msk.bf16.mxu0 %vm917_vm5, %v839_v58  ;;  %v159_v58 = vld [vmem:[%s18160_s20 + $0x300] sm:$0xff] }
  0xa7   :  { %v840_v1 = vpack.c.bf16 %v720_v61, %v719_v62 }
  0xa8   :  { %v246_v2 = vpop.permute.xlu1 %245  ;;  %v243_v3 = vpop.permute.xlu0 %242 }
  0xa9   :  { %vm594_vm2 = vcmp.eq.s32.totalorder %v12532_v8, %v246_v2  ;;  %vm593_vm3 = vcmp.eq.s32.totalorder %v12532_v8, %v243_v3  ;;  %437 = vperm.xlu1 %12124, %v144_v63   ;;  %434 = vperm.xlu0 %12123, %v143_v0   ;;  %v162_v0 = vld [vmem:[%s18160_s20 + $0x318] sm:$0xff] }
  0xaa   :  { %v722_v4 = vsel %vm594_vm2, 1.0, %v12223_v15  ;;  %v721_v5 = vsel %vm593_vm3, 1.0, %v12223_v15 }
  0xab   :  { %v841_v9 = vpack.c.bf16 %v722_v4, %v721_v5  ;;  %11233 = vmatmul.mubr.msk.bf16.gmra.mrb[12].mxu0 %vm917_vm5, %v840_v1  ;;  %v161_v1 = vld [vmem:[%s18160_s20 + $0x310] sm:$0xff] }
  0xac   :  { %v252_v10 = vpop.permute.xlu1 %251  ;;  %v249_v11 = vpop.permute.xlu0 %248 }
  0xad   :  { %vm596_vm4 = vcmp.eq.s32.totalorder %v12532_v8, %v252_v10  ;;  %vm595_vm6 = vcmp.eq.s32.totalorder %v12532_v8, %v249_v11  ;;  %443 = vperm.xlu1 %12124, %v146_v6   ;;  %440 = vperm.xlu0 %12123, %v145_v7   ;;  %v164_v7 = vld [vmem:[%s18160_s20 + $0x328] sm:$0xff] }
  0xae   :  { %v724_v12 = vsel %vm596_vm4, 1.0, %v12223_v15  ;;  %v723_v13 = vsel %vm595_vm6, 1.0, %v12223_v15  ;;  %11236 = vmatprep.mubr.msk.bf16.mxu0 %vm917_vm5, %v841_v9  ;;  %v163_v9 = vld [vmem:[%s18160_s20 + $0x320] sm:$0xff] }
  0xaf   :  { %v842_v17 = vpack.c.bf16 %v724_v12, %v723_v13 }
  0xb0   :  { %v258_v18 = vpop.permute.xlu1 %257  ;;  %v255_v19 = vpop.permute.xlu0 %254 }
  0xb1   :  { %vm598_vm7 = vcmp.eq.s32.totalorder %v12532_v8, %v258_v18  ;;  %vm597_vm8 = vcmp.eq.s32.totalorder %v12532_v8, %v255_v19  ;;  %449 = vperm.xlu1 %12124, %v148_v14   ;;  %446 = vperm.xlu0 %12123, %v147_v16   ;;  %v166_v16 = vld [vmem:[%s18160_s20 + $0x338] sm:$0xff] }
  0xb2   :  { %v726_v20 = vsel %vm598_vm7, 1.0, %v12223_v15  ;;  %v725_v21 = vsel %vm597_vm8, 1.0, %v12223_v15 }
  0xb3   :  { %v843_v24 = vpack.c.bf16 %v726_v20, %v725_v21  ;;  %11237 = vmatmul.mubr.msk.bf16.gmra.mrb[16].mxu0 %vm917_vm5, %v842_v17  ;;  %v165_v17 = vld [vmem:[%s18160_s20 + $0x330] sm:$0xff] }
  0xb4   :  { %v264_v25 = vpop.permute.xlu1 %263  ;;  %v261_v26 = vpop.permute.xlu0 %260 }
  0xb5   :  { %vm600_vm9 = vcmp.eq.s32.totalorder %v12532_v8, %v264_v25  ;;  %vm599_vm10 = vcmp.eq.s32.totalorder %v12532_v8, %v261_v26  ;;  %455 = vperm.xlu1 %12124, %v150_v22   ;;  %452 = vperm.xlu0 %12123, %v149_v23   ;;  %v184_v23 = vld [vmem:[%s18160_s20 + $0x3c8] sm:$0xff] }
  0xb6   :  { %v728_v27 = vsel %vm600_vm9, 1.0, %v12223_v15  ;;  %v727_v28 = vsel %vm599_vm10, 1.0, %v12223_v15  ;;  %11240 = vmatprep.mubr.msk.bf16.mxu0 %vm917_vm5, %v843_v24  ;;  %v183_v24 = vld [vmem:[%s18160_s20 + $0x3c0] sm:$0xff] }
  0xb7   :  { %v844_v31 = vpack.c.bf16 %v728_v27, %v727_v28 }
  0xb8   :  { %v270_v32 = vpop.permute.xlu1 %269  ;;  %v267_v33 = vpop.permute.xlu0 %266 }
  0xb9   :  { %vm602_vm11 = vcmp.eq.s32.totalorder %v12532_v8, %v270_v32  ;;  %vm601_vm12 = vcmp.eq.s32.totalorder %v12532_v8, %v267_v33  ;;  %461 = vperm.xlu1 %12124, %v152_v29   ;;  %458 = vperm.xlu0 %12123, %v151_v30   ;;  %v186_v30 = vld [vmem:[%s18160_s20 + $0x3d8] sm:$0xff] }
  0xba   :  { %v730_v34 = vsel %vm602_vm11, 1.0, %v12223_v15  ;;  %v729_v35 = vsel %vm601_vm12, 1.0, %v12223_v15 }
  0xbb   :  { %v845_v38 = vpack.c.bf16 %v730_v34, %v729_v35  ;;  %11241 = vmatmul.mubr.msk.bf16.gmra.mrb[20].mxu0 %vm917_vm5, %v844_v31  ;;  %v185_v31 = vld [vmem:[%s18160_s20 + $0x3d0] sm:$0xff] }
  0xbc   :  { %v276_v39 = vpop.permute.xlu1 %275  ;;  %v273_v40 = vpop.permute.xlu0 %272 }
  0xbd   :  { %vm604_vm13 = vcmp.eq.s32.totalorder %v12532_v8, %v276_v39  ;;  %vm603_vm14 = vcmp.eq.s32.totalorder %v12532_v8, %v273_v40  ;;  %467 = vperm.xlu1 %12124, %v154_v36   ;;  %464 = vperm.xlu0 %12123, %v153_v37   ;;  %v168_v37 = vld [vmem:[%s18160_s20 + $0x348] sm:$0xff] }
  0xbe   :  { %v732_v41 = vsel %vm604_vm13, 1.0, %v12223_v15  ;;  %v731_v42 = vsel %vm603_vm14, 1.0, %v12223_v15  ;;  %11244 = vmatprep.mubr.msk.bf16.mxu0 %vm917_vm5, %v845_v38  ;;  %v167_v38 = vld [vmem:[%s18160_s20 + $0x340] sm:$0xff] }
  0xbf   :  { %v846_v45 = vpack.c.bf16 %v732_v41, %v731_v42 }
  0xc0   :  { %v282_v46 = vpop.permute.xlu1 %281  ;;  %v279_v47 = vpop.permute.xlu0 %278 }
  0xc1   :  { %vm606_vm15 = vcmp.eq.s32.totalorder %v12532_v8, %v282_v46  ;;  %vm605_vm0 = vcmp.eq.s32.totalorder %v12532_v8, %v279_v47  ;;  %473 = vperm.xlu1 %12124, %v156_v43   ;;  %470 = vperm.xlu0 %12123, %v155_v44   ;;  %v170_v44 = vld [vmem:[%s18160_s20 + $0x358] sm:$0xff] }
  0xc2   :  { %v734_v48 = vsel %vm606_vm15, 1.0, %v12223_v15  ;;  %v733_v49 = vsel %vm605_vm0, 1.0, %v12223_v15 }
  0xc3   :  { %v847_v52 = vpack.c.bf16 %v734_v48, %v733_v49  ;;  %11245 = vmatmul.mubr.msk.bf16.gmra.mrb[24].mxu0 %vm917_vm5, %v846_v45  ;;  %v169_v45 = vld [vmem:[%s18160_s20 + $0x350] sm:$0xff] }
  0xc4   :  { %v288_v53 = vpop.permute.xlu1 %287  ;;  %v285_v54 = vpop.permute.xlu0 %284 }
  0xc5   :  { %vm608_vm1 = vcmp.eq.s32.totalorder %v12532_v8, %v288_v53  ;;  %vm607_vm2 = vcmp.eq.s32.totalorder %v12532_v8, %v285_v54  ;;  %479 = vperm.xlu1 %12124, %v158_v50   ;;  %476 = vperm.xlu0 %12123, %v157_v51   ;;  %v188_v51 = vld [vmem:[%s18160_s20 + $0x3e8] sm:$0xff] }
  0xc6   :  { %v736_v55 = vsel %vm608_vm1, 1.0, %v12223_v15  ;;  %v735_v56 = vsel %vm607_vm2, 1.0, %v12223_v15  ;;  %11248 = vmatprep.mubr.msk.bf16.mxu0 %vm917_vm5, %v847_v52  ;;  %v187_v52 = vld [vmem:[%s18160_s20 + $0x3e0] sm:$0xff] }
  0xc7   :  { %v848_v59 = vpack.c.bf16 %v736_v55, %v735_v56 }
  0xc8   :  { %v294_v60 = vpop.permute.xlu1 %293  ;;  %v291_v61 = vpop.permute.xlu0 %290 }
  0xc9   :  { %vm610_vm3 = vcmp.eq.s32.totalorder %v12532_v8, %v294_v60  ;;  %vm609_vm4 = vcmp.eq.s32.totalorder %v12532_v8, %v291_v61  ;;  %485 = vperm.xlu1 %12124, %v160_v57   ;;  %482 = vperm.xlu0 %12123, %v159_v58   ;;  %v190_v58 = vld [vmem:[%s18160_s20 + $0x3f8] sm:$0xff] }
  0xca   :  { %v738_v62 = vsel %vm610_vm3, 1.0, %v12223_v15  ;;  %v737_v63 = vsel %vm609_vm4, 1.0, %v12223_v15 }
  0xcb   :  { %v849_v2 = vpack.c.bf16 %v738_v62, %v737_v63  ;;  %11249 = vmatmul.mubr.msk.bf16.gmra.mrb[28].mxu0 %vm917_vm5, %v848_v59  ;;  %v189_v59 = vld [vmem:[%s18160_s20 + $0x3f0] sm:$0xff]  ;;  %v12813_v63 = vld [vmem:[%s18162_s2] sm:$0xff]  }
  0xcc   :  { %v300_v3 = vpop.permute.xlu1 %299  ;;  %v297_v4 = vpop.permute.xlu0 %296  ;;  %11348 = vmatprep.subr.bf16.mxu1 %v12813_v63 }
  0xcd   :  { %vm612_vm6 = vcmp.eq.s32.totalorder %v12532_v8, %v300_v3  ;;  %vm611_vm7 = vcmp.eq.s32.totalorder %v12532_v8, %v297_v4  ;;  %491 = vperm.xlu1 %12124, %v162_v0   ;;  %488 = vperm.xlu0 %12123, %v161_v1   ;;  %v171_v3 = vld [vmem:[%s18160_s20 + $0x360] sm:$0xff] }
  0xce   :  { %v740_v5 = vsel %vm612_vm6, 1.0, %v12223_v15  ;;  %v739_v6 = vsel %vm611_vm7, 1.0, %v12223_v15  ;;  %11252 = vmatprep.mubr.msk.bf16.mxu0 %vm917_vm5, %v849_v2  ;;  %v172_v2 = vld [vmem:[%s18160_s20 + $0x368] sm:$0xff] }
  0xcf   :  { %v850_v10 = vpack.c.bf16 %v740_v5, %v739_v6 }
  0xd0   :  { %v306_v11 = vpop.permute.xlu1 %305  ;;  %v303_v12 = vpop.permute.xlu0 %302 }
  0xd1   :  { %vm614_vm8 = vcmp.eq.s32.totalorder %v12532_v8, %v306_v11  ;;  %vm613_vm9 = vcmp.eq.s32.totalorder %v12532_v8, %v303_v12  ;;  %497 = vperm.xlu1 %12124, %v164_v7   ;;  %494 = vperm.xlu0 %12123, %v163_v9   ;;  %v173_v11 = vld [vmem:[%s18160_s20 + $0x370] sm:$0xff] }
  0xd2   :  { %v742_v13 = vsel %vm614_vm8, 1.0, %v12223_v15  ;;  %v741_v14 = vsel %vm613_vm9, 1.0, %v12223_v15 }
  0xd3   :  { %v851_v18 = vpack.c.bf16 %v742_v13, %v741_v14  ;;  %11253 = vmatmul.mubr.msk.bf16.gmra.mrb[32].mxu0 %vm917_vm5, %v850_v10  ;;  %v174_v10 = vld [vmem:[%s18160_s20 + $0x378] sm:$0xff] }
  0xd4   :  { %v312_v19 = vpop.permute.xlu1 %311  ;;  %v309_v20 = vpop.permute.xlu0 %308 }
  0xd5   :  { %vm616_vm10 = vcmp.eq.s32.totalorder %v12532_v8, %v312_v19  ;;  %vm615_vm11 = vcmp.eq.s32.totalorder %v12532_v8, %v309_v20  ;;  %503 = vperm.xlu1 %12124, %v166_v16   ;;  %500 = vperm.xlu0 %12123, %v165_v17   ;;  %v175_v19 = vld [vmem:[%s18160_s20 + $0x380] sm:$0xff] }
  0xd6   :  { %v744_v21 = vsel %vm616_vm10, 1.0, %v12223_v15  ;;  %v743_v22 = vsel %vm615_vm11, 1.0, %v12223_v15  ;;  %11256 = vmatprep.mubr.msk.bf16.mxu0 %vm917_vm5, %v851_v18  ;;  %v176_v18 = vld [vmem:[%s18160_s20 + $0x388] sm:$0xff] }
  0xd7   :  { %v852_v25 = vpack.c.bf16 %v744_v21, %v743_v22 }
  0xd8   :  { %v318_v26 = vpop.permute.xlu1 %317  ;;  %v315_v27 = vpop.permute.xlu0 %314 }
  0xd9   :  { %vm618_vm12 = vcmp.eq.s32.totalorder %v12532_v8, %v318_v26  ;;  %vm617_vm13 = vcmp.eq.s32.totalorder %v12532_v8, %v315_v27  ;;  %557 = vperm.xlu1 %12124, %v184_v23   ;;  %554 = vperm.xlu0 %12123, %v183_v24   ;;  %v177_v26 = vld [vmem:[%s18160_s20 + $0x390] sm:$0xff] }
  0xda   :  { %v746_v28 = vsel %vm618_vm12, 1.0, %v12223_v15  ;;  %v745_v29 = vsel %vm617_vm13, 1.0, %v12223_v15 }
  0xdb   :  { %v853_v32 = vpack.c.bf16 %v746_v28, %v745_v29  ;;  %11257 = vmatmul.mubr.msk.bf16.gmra.mrb[36].mxu0 %vm917_vm5, %v852_v25  ;;  %v178_v25 = vld [vmem:[%s18160_s20 + $0x398] sm:$0xff] }
  0xdc   :  { %v324_v33 = vpop.permute.xlu1 %323  ;;  %v321_v34 = vpop.permute.xlu0 %320 }
  0xdd   :  { %vm620_vm14 = vcmp.eq.s32.totalorder %v12532_v8, %v324_v33  ;;  %vm619_vm15 = vcmp.eq.s32.totalorder %v12532_v8, %v321_v34  ;;  %563 = vperm.xlu1 %12124, %v186_v30   ;;  %560 = vperm.xlu0 %12123, %v185_v31   ;;  %v179_v33 = vld [vmem:[%s18160_s20 + $0x3a0] sm:$0xff] }
  0xde   :  { %v748_v35 = vsel %vm620_vm14, 1.0, %v12223_v15  ;;  %v747_v36 = vsel %vm619_vm15, 1.0, %v12223_v15  ;;  %11260 = vmatprep.mubr.msk.bf16.mxu0 %vm917_vm5, %v853_v32  ;;  %v180_v32 = vld [vmem:[%s18160_s20 + $0x3a8] sm:$0xff] }
  0xdf   :  { %v854_v39 = vpack.c.bf16 %v748_v35, %v747_v36 }
  0xe0   :  { %v330_v40 = vpop.permute.xlu1 %329  ;;  %v327_v41 = vpop.permute.xlu0 %326 }
  0xe1   :  { %vm622_vm0 = vcmp.eq.s32.totalorder %v12532_v8, %v330_v40  ;;  %vm621_vm1 = vcmp.eq.s32.totalorder %v12532_v8, %v327_v41  ;;  %509 = vperm.xlu1 %12124, %v168_v37   ;;  %506 = vperm.xlu0 %12123, %v167_v38   ;;  %v181_v40 = vld [vmem:[%s18160_s20 + $0x3b0] sm:$0xff] }
  0xe2   :  { %v750_v42 = vsel %vm622_vm0, 1.0, %v12223_v15  ;;  %v749_v43 = vsel %vm621_vm1, 1.0, %v12223_v15 }
  0xe3   :  { %v855_v46 = vpack.c.bf16 %v750_v42, %v749_v43  ;;  %11261 = vmatmul.mubr.msk.bf16.gmra.mrb[40].mxu0 %vm917_vm5, %v854_v39  ;;  %v182_v39 = vld [vmem:[%s18160_s20 + $0x3b8] sm:$0xff] }
  0xe4   :  { %v336_v47 = vpop.permute.xlu1 %335  ;;  %v333_v48 = vpop.permute.xlu0 %332 }
  0xe5   :  { %vm624_vm2 = vcmp.eq.s32.totalorder %v12532_v8, %v336_v47  ;;  %vm623_vm3 = vcmp.eq.s32.totalorder %v12532_v8, %v333_v48  ;;  %515 = vperm.xlu1 %12124, %v170_v44   ;;  %512 = vperm.xlu0 %12123, %v169_v45  }
  0xe6   :  { %v752_v49 = vsel %vm624_vm2, 1.0, %v12223_v15  ;;  %v751_v50 = vsel %vm623_vm3, 1.0, %v12223_v15  ;;  %11264 = vmatprep.mubr.msk.bf16.mxu0 %vm917_vm5, %v855_v46 }
  0xe7   :  { %v856_v53 = vpack.c.bf16 %v752_v49, %v751_v50 }
  0xe8   :  { %v342_v54 = vpop.permute.xlu1 %341  ;;  %v339_v55 = vpop.permute.xlu0 %338 }
  0xe9   :  { %vm626_vm4 = vcmp.eq.s32.totalorder %v12532_v8, %v342_v54  ;;  %vm625_vm6 = vcmp.eq.s32.totalorder %v12532_v8, %v339_v55  ;;  %569 = vperm.xlu1 %12124, %v188_v51   ;;  %566 = vperm.xlu0 %12123, %v187_v52   ;;  %v12130_v54 = vld [vmem:[%s17928_s6] sm:$0xff]  }
  0xea   :  { %v754_v56 = vsel %vm626_vm4, 1.0, %v12223_v15  ;;  %v753_v57 = vsel %vm625_vm6, 1.0, %v12223_v15  ;;  %11608 = vmatprep.subr.bf16.mxu0 %v12130_v54 }
  0xeb   :  { %v857_v60 = vpack.c.bf16 %v754_v56, %v753_v57  ;;  %11265 = vmatmul.mubr.msk.bf16.gmra.mrb[44].mxu0 %vm917_vm5, %v856_v53 }
  0xec   :  { %v348_v61 = vpop.permute.xlu1 %347  ;;  %v345_v62 = vpop.permute.xlu0 %344  ;;  %11609 = vmatpush3.bf16.msra.mxu0 %v12130_v54 }
  0xed   :  { %vm628_vm7 = vcmp.eq.s32.totalorder %v12532_v8, %v348_v61  ;;  %vm627_vm8 = vcmp.eq.s32.totalorder %v12532_v8, %v345_v62  ;;  %575 = vperm.xlu1 %12124, %v190_v58   ;;  %572 = vperm.xlu0 %12123, %v189_v59  }
  0xee   :  { %v756_v0 = vsel %vm628_vm7, 1.0, %v12223_v15  ;;  %v755_v1 = vsel %vm627_vm8, 1.0, %v12223_v15  ;;  %11268 = vmatprep.mubr.msk.bf16.mxu0 %vm917_vm5, %v857_v60 }
  0xef   :  { %v858_v4 = vpack.c.bf16 %v756_v0, %v755_v1 }
  0xf0   :  { %v354_v5 = vpop.permute.xlu1 %353  ;;  %v351_v6 = vpop.permute.xlu0 %350 }
  0xf1   :  { %vm630_vm9 = vcmp.eq.s32.totalorder %v12532_v8, %v354_v5  ;;  %vm629_vm10 = vcmp.eq.s32.totalorder %v12532_v8, %v351_v6  ;;  %521 = vperm.xlu1 %12124, %v172_v2   ;;  %518 = vperm.xlu0 %12123, %v171_v3  }
  0xf2   :  { %v758_v7 = vsel %vm630_vm9, 1.0, %v12223_v15  ;;  %v757_v9 = vsel %vm629_vm10, 1.0, %v12223_v15 }
  0xf3   :  { %v859_v12 = vpack.c.bf16 %v758_v7, %v757_v9  ;;  %11269 = vmatmul.mubr.msk.bf16.gmra.mrb[48].mxu0 %vm917_vm5, %v858_v4 }
  0xf4   :  { %v360_v13 = vpop.permute.xlu1 %359  ;;  %v357_v14 = vpop.permute.xlu0 %356 }
  0xf5   :  { %vm632_vm11 = vcmp.eq.s32.totalorder %v12532_v8, %v360_v13  ;;  %vm631_vm12 = vcmp.eq.s32.totalorder %v12532_v8, %v357_v14  ;;  %527 = vperm.xlu1 %12124, %v174_v10   ;;  %524 = vperm.xlu0 %12123, %v173_v11  }
  0xf6   :  { %v760_v16 = vsel %vm632_vm11, 1.0, %v12223_v15  ;;  %v759_v17 = vsel %vm631_vm12, 1.0, %v12223_v15  ;;  %11272 = vmatprep.mubr.msk.bf16.mxu0 %vm917_vm5, %v859_v12 }
  0xf7   :  { %v860_v20 = vpack.c.bf16 %v760_v16, %v759_v17 }
  0xf8   :  { %v366_v21 = vpop.permute.xlu1 %365  ;;  %v363_v22 = vpop.permute.xlu0 %362 }
  0xf9   :  { %vm634_vm13 = vcmp.eq.s32.totalorder %v12532_v8, %v366_v21  ;;  %vm633_vm14 = vcmp.eq.s32.totalorder %v12532_v8, %v363_v22  ;;  %533 = vperm.xlu1 %12124, %v176_v18   ;;  %530 = vperm.xlu0 %12123, %v175_v19  }
  0xfa   :  { %v762_v23 = vsel %vm634_vm13, 1.0, %v12223_v15  ;;  %v761_v24 = vsel %vm633_vm14, 1.0, %v12223_v15 }
  0xfb   :  { %v861_v27 = vpack.c.bf16 %v762_v23, %v761_v24  ;;  %11273 = vmatmul.mubr.msk.bf16.gmra.mrb[52].mxu0 %vm917_vm5, %v860_v20 }
  0xfc   :  { %v372_v28 = vpop.permute.xlu1 %371  ;;  %v369_v29 = vpop.permute.xlu0 %368 }
  0xfd   :  { %vm636_vm15 = vcmp.eq.s32.totalorder %v12532_v8, %v372_v28  ;;  %vm635_vm0 = vcmp.eq.s32.totalorder %v12532_v8, %v369_v29  ;;  %539 = vperm.xlu1 %12124, %v178_v25   ;;  %536 = vperm.xlu0 %12123, %v177_v26  }
  0xfe   :  { %v764_v30 = vsel %vm636_vm15, 1.0, %v12223_v15  ;;  %v763_v31 = vsel %vm635_vm0, 1.0, %v12223_v15  ;;  %11276 = vmatprep.mubr.msk.bf16.mxu0 %vm917_vm5, %v861_v27 }
  0xff   :  { %v862_v34 = vpack.c.bf16 %v764_v30, %v763_v31 }
 0x100   :  { %v378_v35 = vpop.permute.xlu1 %377  ;;  %v375_v36 = vpop.permute.xlu0 %374 }
 0x101   :  { %vm638_vm1 = vcmp.eq.s32.totalorder %v12532_v8, %v378_v35  ;;  %vm637_vm2 = vcmp.eq.s32.totalorder %v12532_v8, %v375_v36  ;;  %545 = vperm.xlu1 %12124, %v180_v32   ;;  %542 = vperm.xlu0 %12123, %v179_v33  }
 0x102   :  { %v766_v37 = vsel %vm638_vm1, 1.0, %v12223_v15  ;;  %v765_v38 = vsel %vm637_vm2, 1.0, %v12223_v15 }
 0x103   :  { %v863_v41 = vpack.c.bf16 %v766_v37, %v765_v38  ;;  %11277 = vmatmul.mubr.msk.bf16.gmra.mrb[56].mxu0 %vm917_vm5, %v862_v34 }
 0x104   :  { %v384_v42 = vpop.permute.xlu1 %383  ;;  %v381_v43 = vpop.permute.xlu0 %380 }
 0x105   :  { %vm640_vm3 = vcmp.eq.s32.totalorder %v12532_v8, %v384_v42  ;;  %vm639_vm4 = vcmp.eq.s32.totalorder %v12532_v8, %v381_v43  ;;  %551 = vperm.xlu1 %12124, %v182_v39   ;;  %548 = vperm.xlu0 %12123, %v181_v40  }
 0x106   :  { %v768_v44 = vsel %vm640_vm3, 1.0, %v12223_v15  ;;  %v767_v45 = vsel %vm639_vm4, 1.0, %v12223_v15  ;;  %11280 = vmatprep.mubr.msk.bf16.mxu0 %vm917_vm5, %v863_v41 }
 0x107   :  { %v864_v46 = vpack.c.bf16 %v768_v44, %v767_v45 }
 0x108   :  { %v390_v47 = vpop.permute.xlu1 %389  ;;  %v387_v48 = vpop.permute.xlu0 %386 }
 0x109   :  { %vm642_vm6 = vcmp.eq.s32.totalorder %v12532_v8, %v390_v47  ;;  %vm641_vm7 = vcmp.eq.s32.totalorder %v12532_v8, %v387_v48 }
 0x10a   :  { %v770_v49 = vsel %vm642_vm6, 1.0, %v12223_v15  ;;  %v769_v50 = vsel %vm641_vm7, 1.0, %v12223_v15 }
 0x10b   :  { %v865_v51 = vpack.c.bf16 %v770_v49, %v769_v50  ;;  %11281 = vmatmul.mubr.msk.bf16.gmra.mrb[60].mxu0 %vm917_vm5, %v864_v46 }
 0x10c   :  { %v396_v52 = vpop.permute.xlu1 %395  ;;  %v393_v53 = vpop.permute.xlu0 %392 }
 0x10d   :  { %vm644_vm8 = vcmp.eq.s32.totalorder %v12532_v8, %v396_v52  ;;  %vm643_vm9 = vcmp.eq.s32.totalorder %v12532_v8, %v393_v53  ;;  %11284 = vmatprep.mubr.msk.bf16.mxu0 %vm917_vm5, %v865_v51 }
 0x10e   :  { %v772_v55 = vsel %vm644_vm8, 1.0, %v12223_v15  ;;  %v771_v56 = vsel %vm643_vm9, 1.0, %v12223_v15 }
 0x10f   :  { %v866_v57 = vpack.c.bf16 %v772_v55, %v771_v56 }
 0x110   :  { %v402_v58 = vpop.permute.xlu1 %401  ;;  %v399_v59 = vpop.permute.xlu0 %398 }
 0x111   :  { %vm646_vm10 = vcmp.eq.s32.totalorder %v12532_v8, %v402_v58  ;;  %vm645_vm11 = vcmp.eq.s32.totalorder %v12532_v8, %v399_v59 }
 0x112   :  { %v774_v60 = vsel %vm646_vm10, 1.0, %v12223_v15  ;;  %v773_v61 = vsel %vm645_vm11, 1.0, %v12223_v15 }
 0x113   :  { %v867_v62 = vpack.c.bf16 %v774_v60, %v773_v61  ;;  %11285 = vmatmul.mubr.msk.bf16.gmra.mrb[64].mxu0 %vm917_vm5, %v866_v57 }
 0x114   :  { %v408_v0 = vpop.permute.xlu1 %407  ;;  %v405_v1 = vpop.permute.xlu0 %404 }
 0x115   :  { %vm648_vm12 = vcmp.eq.s32.totalorder %v12532_v8, %v408_v0  ;;  %vm647_vm13 = vcmp.eq.s32.totalorder %v12532_v8, %v405_v1  ;;  %11288 = vmatprep.mubr.msk.bf16.mxu0 %vm917_vm5, %v867_v62 }
 0x116   :  { %v776_v2 = vsel %vm648_vm12, 1.0, %v12223_v15  ;;  %v775_v3 = vsel %vm647_vm13, 1.0, %v12223_v15 }
 0x117   :  { %v868_v4 = vpack.c.bf16 %v776_v2, %v775_v3 }
 0x118   :  { %v414_v5 = vpop.permute.xlu1 %413  ;;  %v411_v6 = vpop.permute.xlu0 %410 }
 0x119   :  { %vm650_vm14 = vcmp.eq.s32.totalorder %v12532_v8, %v414_v5  ;;  %vm649_vm15 = vcmp.eq.s32.totalorder %v12532_v8, %v411_v6 }
 0x11a   :  { %v778_v7 = vsel %vm650_vm14, 1.0, %v12223_v15  ;;  %v777_v9 = vsel %vm649_vm15, 1.0, %v12223_v15 }
 0x11b   :  { %v869_v10 = vpack.c.bf16 %v778_v7, %v777_v9  ;;  %11289 = vmatmul.mubr.msk.bf16.gmra.mrb[68].mxu0 %vm917_vm5, %v868_v4 }
 0x11c   :  { %v420_v11 = vpop.permute.xlu1 %419  ;;  %v417_v12 = vpop.permute.xlu0 %416 }
 0x11d   :  { %vm652_vm0 = vcmp.eq.s32.totalorder %v12532_v8, %v420_v11  ;;  %vm651_vm1 = vcmp.eq.s32.totalorder %v12532_v8, %v417_v12  ;;  %11292 = vmatprep.mubr.msk.bf16.mxu0 %vm917_vm5, %v869_v10 }
 0x11e   :  { %v780_v13 = vsel %vm652_vm0, 1.0, %v12223_v15  ;;  %v779_v14 = vsel %vm651_vm1, 1.0, %v12223_v15 }
 0x11f   :  { %v870_v16 = vpack.c.bf16 %v780_v13, %v779_v14 }
 0x120   :  { %v426_v17 = vpop.permute.xlu1 %425  ;;  %v423_v18 = vpop.permute.xlu0 %422 }
 0x121   :  { %vm654_vm2 = vcmp.eq.s32.totalorder %v12532_v8, %v426_v17  ;;  %vm653_vm3 = vcmp.eq.s32.totalorder %v12532_v8, %v423_v18 }
 0x122   :  { %v782_v19 = vsel %vm654_vm2, 1.0, %v12223_v15  ;;  %v781_v20 = vsel %vm653_vm3, 1.0, %v12223_v15 }
 0x123   :  { %v871_v21 = vpack.c.bf16 %v782_v19, %v781_v20  ;;  %11293 = vmatmul.mubr.msk.bf16.gmra.mrb[72].mxu0 %vm917_vm5, %v870_v16 }
 0x124   :  { %v432_v22 = vpop.permute.xlu1 %431  ;;  %v429_v23 = vpop.permute.xlu0 %428 }
 0x125   :  { %vm656_vm4 = vcmp.eq.s32.totalorder %v12532_v8, %v432_v22  ;;  %vm655_vm6 = vcmp.eq.s32.totalorder %v12532_v8, %v429_v23  ;;  %11296 = vmatprep.mubr.msk.bf16.mxu0 %vm917_vm5, %v871_v21 }
 0x126   :  { %v784_v24 = vsel %vm656_vm4, 1.0, %v12223_v15  ;;  %v783_v25 = vsel %vm655_vm6, 1.0, %v12223_v15 }
 0x127   :  { %v872_v26 = vpack.c.bf16 %v784_v24, %v783_v25 }
 0x128   :  { %v438_v27 = vpop.permute.xlu1 %437  ;;  %v435_v28 = vpop.permute.xlu0 %434 }
 0x129   :  { %vm658_vm7 = vcmp.eq.s32.totalorder %v12532_v8, %v438_v27  ;;  %vm657_vm8 = vcmp.eq.s32.totalorder %v12532_v8, %v435_v28 }
 0x12a   :  { %v786_v29 = vsel %vm658_vm7, 1.0, %v12223_v15  ;;  %v785_v30 = vsel %vm657_vm8, 1.0, %v12223_v15 }
 0x12b   :  { %v873_v31 = vpack.c.bf16 %v786_v29, %v785_v30  ;;  %11297 = vmatmul.mubr.msk.bf16.gmra.mrb[76].mxu0 %vm917_vm5, %v872_v26 }
 0x12c   :  { %v444_v32 = vpop.permute.xlu1 %443  ;;  %v441_v33 = vpop.permute.xlu0 %440 }
 0x12d   :  { %vm660_vm9 = vcmp.eq.s32.totalorder %v12532_v8, %v444_v32  ;;  %vm659_vm10 = vcmp.eq.s32.totalorder %v12532_v8, %v441_v33  ;;  %11300 = vmatprep.mubr.msk.bf16.mxu0 %vm917_vm5, %v873_v31 }
 0x12e   :  { %v788_v34 = vsel %vm660_vm9, 1.0, %v12223_v15  ;;  %v787_v35 = vsel %vm659_vm10, 1.0, %v12223_v15 }
 0x12f   :  { %v874_v36 = vpack.c.bf16 %v788_v34, %v787_v35 }
 0x130   :  { %v450_v37 = vpop.permute.xlu1 %449  ;;  %v447_v38 = vpop.permute.xlu0 %446 }
 0x131   :  { %vm662_vm11 = vcmp.eq.s32.totalorder %v12532_v8, %v450_v37  ;;  %vm661_vm12 = vcmp.eq.s32.totalorder %v12532_v8, %v447_v38 }
 0x132   :  { %v790_v39 = vsel %vm662_vm11, 1.0, %v12223_v15  ;;  %v789_v40 = vsel %vm661_vm12, 1.0, %v12223_v15 }
 0x133   :  { %v875_v41 = vpack.c.bf16 %v790_v39, %v789_v40  ;;  %11301 = vmatmul.mubr.msk.bf16.gmra.mrb[80].mxu0 %vm917_vm5, %v874_v36  ;;  %v13001_v36 = vld [vmem:[%s18163_s21] sm:$0xff]  }
 0x134   :  { %v456_v42 = vpop.permute.xlu1 %455  ;;  %v453_v43 = vpop.permute.xlu0 %452 }
 0x135   :  { %vm664_vm13 = vcmp.eq.s32.totalorder %v12532_v8, %v456_v42  ;;  %vm663_vm14 = vcmp.eq.s32.totalorder %v12532_v8, %v453_v43  ;;  %11304 = vmatprep.mubr.msk.bf16.mxu0 %vm917_vm5, %v875_v41 }
 0x136   :  { %v792_v44 = vsel %vm664_vm13, 1.0, %v12223_v15  ;;  %v791_v45 = vsel %vm663_vm14, 1.0, %v12223_v15 }
 0x137   :  { %v876_v46 = vpack.c.bf16 %v792_v44, %v791_v45 }
 0x138   :  { %v462_v47 = vpop.permute.xlu1 %461  ;;  %v459_v48 = vpop.permute.xlu0 %458 }
 0x139   :  { %vm666_vm15 = vcmp.eq.s32.totalorder %v12532_v8, %v462_v47  ;;  %vm665_vm0 = vcmp.eq.s32.totalorder %v12532_v8, %v459_v48 }
 0x13a   :  { %v794_v49 = vsel %vm666_vm15, 1.0, %v12223_v15  ;;  %v793_v50 = vsel %vm665_vm0, 1.0, %v12223_v15 }
 0x13b   :  { %v877_v51 = vpack.c.bf16 %v794_v49, %v793_v50  ;;  %11305 = vmatmul.mubr.msk.bf16.gmra.mrb[84].mxu0 %vm917_vm5, %v876_v46 }
 0x13c   :  { %v468_v52 = vpop.permute.xlu1 %467  ;;  %v465_v53 = vpop.permute.xlu0 %464 }
 0x13d   :  { %vm668_vm1 = vcmp.eq.s32.totalorder %v12532_v8, %v468_v52  ;;  %vm667_vm2 = vcmp.eq.s32.totalorder %v12532_v8, %v465_v53  ;;  %11308 = vmatprep.mubr.msk.bf16.mxu0 %vm917_vm5, %v877_v51 }
 0x13e   :  { %v796_v54 = vsel %vm668_vm1, 1.0, %v12223_v15  ;;  %v795_v55 = vsel %vm667_vm2, 1.0, %v12223_v15 }
 0x13f   :  { %v878_v56 = vpack.c.bf16 %v796_v54, %v795_v55 }
 0x140   :  { %v474_v57 = vpop.permute.xlu1 %473  ;;  %v471_v58 = vpop.permute.xlu0 %470 }
 0x141   :  { %vm670_vm3 = vcmp.eq.s32.totalorder %v12532_v8, %v474_v57  ;;  %vm669_vm4 = vcmp.eq.s32.totalorder %v12532_v8, %v471_v58 }
 0x142   :  { %v798_v59 = vsel %vm670_vm3, 1.0, %v12223_v15  ;;  %v797_v60 = vsel %vm669_vm4, 1.0, %v12223_v15 }
 0x143   :  { %v879_v61 = vpack.c.bf16 %v798_v59, %v797_v60  ;;  %11309 = vmatmul.mubr.msk.bf16.gmra.mrb[88].mxu0 %vm917_vm5, %v878_v56 }
 0x144   :  { %v480_v62 = vpop.permute.xlu1 %479  ;;  %v477_v0 = vpop.permute.xlu0 %476 }
 0x145   :  { %vm672_vm6 = vcmp.eq.s32.totalorder %v12532_v8, %v480_v62  ;;  %vm671_vm7 = vcmp.eq.s32.totalorder %v12532_v8, %v477_v0  ;;  %11312 = vmatprep.mubr.msk.bf16.mxu0 %vm917_vm5, %v879_v61 }
 0x146   :  { %v800_v1 = vsel %vm672_vm6, 1.0, %v12223_v15  ;;  %v799_v2 = vsel %vm671_vm7, 1.0, %v12223_v15 }
 0x147   :  { %v880_v3 = vpack.c.bf16 %v800_v1, %v799_v2 }
 0x148   :  { %v486_v4 = vpop.permute.xlu1 %485  ;;  %v483_v5 = vpop.permute.xlu0 %482 }
 0x149   :  { %vm674_vm8 = vcmp.eq.s32.totalorder %v12532_v8, %v486_v4  ;;  %vm673_vm9 = vcmp.eq.s32.totalorder %v12532_v8, %v483_v5 }
 0x14a   :  { %v802_v6 = vsel %vm674_vm8, 1.0, %v12223_v15  ;;  %v801_v7 = vsel %vm673_vm9, 1.0, %v12223_v15 }
 0x14b   :  { %v881_v9 = vpack.c.bf16 %v802_v6, %v801_v7  ;;  %11313 = vmatmul.mubr.msk.bf16.gmra.mrb[92].mxu0 %vm917_vm5, %v880_v3 }
 0x14c   :  { %v492_v10 = vpop.permute.xlu1 %491  ;;  %v489_v11 = vpop.permute.xlu0 %488 }
 0x14d   :  { %vm676_vm10 = vcmp.eq.s32.totalorder %v12532_v8, %v492_v10  ;;  %vm675_vm11 = vcmp.eq.s32.totalorder %v12532_v8, %v489_v11  ;;  %11316 = vmatprep.mubr.msk.bf16.mxu0 %vm917_vm5, %v881_v9 }
 0x14e   :  { %v804_v12 = vsel %vm676_vm10, 1.0, %v12223_v15  ;;  %v803_v13 = vsel %vm675_vm11, 1.0, %v12223_v15 }
 0x14f   :  { %v882_v14 = vpack.c.bf16 %v804_v12, %v803_v13 }
 0x150   :  { %v498_v16 = vpop.permute.xlu1 %497  ;;  %v495_v17 = vpop.permute.xlu0 %494 }
 0x151   :  { %vm678_vm12 = vcmp.eq.s32.totalorder %v12532_v8, %v498_v16  ;;  %vm677_vm13 = vcmp.eq.s32.totalorder %v12532_v8, %v495_v17 }
 0x152   :  { %v806_v18 = vsel %vm678_vm12, 1.0, %v12223_v15  ;;  %v805_v19 = vsel %vm677_vm13, 1.0, %v12223_v15  ;;  %vm1731_vm13 = vcmask 130048  }
 0x153   :  { %v883_v20 = vpack.c.bf16 %v806_v18, %v805_v19  ;;  %11317 = vmatmul.mubr.msk.bf16.gmra.mrb[96].mxu0 %vm917_vm5, %v882_v14 }
 0x154   :  { %v504_v21 = vpop.permute.xlu1 %503  ;;  %v501_v22 = vpop.permute.xlu0 %500 }
 0x155   :  { %vm680_vm14 = vcmp.eq.s32.totalorder %v12532_v8, %v504_v21  ;;  %vm679_vm15 = vcmp.eq.s32.totalorder %v12532_v8, %v501_v22  ;;  %11320 = vmatprep.mubr.msk.bf16.mxu0 %vm917_vm5, %v883_v20 }
 0x156   :  { %v808_v23 = vsel %vm680_vm14, 1.0, %v12223_v15  ;;  %v807_v24 = vsel %vm679_vm15, 1.0, %v12223_v15 }
 0x157   :  { %v884_v25 = vpack.c.bf16 %v808_v23, %v807_v24 }
 0x158   :  { %v558_v26 = vpop.permute.xlu1 %557  ;;  %v555_v27 = vpop.permute.xlu0 %554 }
 0x159   :  { %vm698_vm0 = vcmp.eq.s32.totalorder %v12532_v8, %v558_v26  ;;  %vm697_vm1 = vcmp.eq.s32.totalorder %v12532_v8, %v555_v27 }
 0x15a   :  { %v826_v28 = vsel %vm698_vm0, 1.0, %v12223_v15  ;;  %v825_v29 = vsel %vm697_vm1, 1.0, %v12223_v15 }
 0x15b   :  { %11321 = vmatmul.mubr.msk.bf16.gmra.mrb[100].mxu0 %vm917_vm5, %v884_v25  ;;  %v893_v30 = vpack.c.bf16 %v826_v28, %v825_v29 }
 0x15c   :  { %v564_v31 = vpop.permute.xlu1 %563  ;;  %v561_v32 = vpop.permute.xlu0 %560 }
 0x15d   :  { %vm700_vm2 = vcmp.eq.s32.totalorder %v12532_v8, %v564_v31  ;;  %vm699_vm3 = vcmp.eq.s32.totalorder %v12532_v8, %v561_v32  ;;  %11340 = vmatprep.mubr.msk.bf16.mxu1 %vm917_vm5, %v893_v30 }
 0x15e   :  { %v828_v33 = vsel %vm700_vm2, 1.0, %v12223_v15  ;;  %v827_v34 = vsel %vm699_vm3, 1.0, %v12223_v15 }
 0x15f   :  { %v894_v35 = vpack.c.bf16 %v828_v33, %v827_v34 }
 0x160   :  { %v510_v37 = vpop.permute.xlu1 %509  ;;  %v507_v38 = vpop.permute.xlu0 %506 }
 0x161   :  { %vm682_vm4 = vcmp.eq.s32.totalorder %v12532_v8, %v510_v37  ;;  %vm681_vm6 = vcmp.eq.s32.totalorder %v12532_v8, %v507_v38  ;;  %11341 = vmatmul.mubr.msk.bf16.vlgmr.msra.gmra.mrb[0].mxu1 %vm917_vm5, %v894_v35 }
 0x162   :  { %v810_v39 = vsel %vm682_vm4, 1.0, %v12223_v15  ;;  %v809_v40 = vsel %vm681_vm6, 1.0, %v12223_v15  ;;  %11349 = vmatpush3.bf16.msra.mxu1 %v12813_v63 }
 0x163   :  { %v885_v41 = vpack.c.bf16 %v810_v39, %v809_v40  ;;  %11478 = vmatprep.subr.bf16.mxu1 %v13001_v36 }
 0x164   :  { %v516_v42 = vpop.permute.xlu1 %515  ;;  %v513_v43 = vpop.permute.xlu0 %512 }
 0x165   :  { %vm684_vm7 = vcmp.eq.s32.totalorder %v12532_v8, %v516_v42  ;;  %vm683_vm8 = vcmp.eq.s32.totalorder %v12532_v8, %v513_v43  ;;  %11324 = vmatprep.mubr.msk.bf16.mxu0 %vm917_vm5, %v885_v41 }
 0x166   :  { %v812_v44 = vsel %vm684_vm7, 1.0, %v12223_v15  ;;  %v811_v45 = vsel %vm683_vm8, 1.0, %v12223_v15  ;;  %v11222_v46 = vpop.f32.mrb[0].mxu0 }
 0x167   :  { %v886_v47 = vpack.c.bf16 %v812_v44, %v811_v45  ;;  %v1148_v48 = vpop.f32.mrb[1].mxu0 }
 0x168   :  { %v11223_v49 = vpop.f32.mrb[2].mxu0  ;;  %v570_v63 = vpop.permute.xlu1 %569 }
 0x169   :  { %v13015_v50 = vpack.c.bf16 %v11223_v49, %v11222_v46  ;;  %vm702_vm9 = vcmp.eq.s32.totalorder %v12532_v8, %v570_v63  ;;  %v1151_v51 = vpop.f32.mrb[3].mxu0  ;;  %v567_v52 = vpop.permute.xlu0 %566  ;;  %11325 = vmatmul.mubr.msk.bf16.gmra.mrb[104].mxu0 %vm917_vm5, %v886_v47 }
 0x16a   :  { %v830_v53 = vsel %vm702_vm9, 1.0, %v12223_v15  ;;  %v13020_v54 = vpack.c.bf16 %v1151_v51, %v1148_v48  ;;  %vm701_vm10 = vcmp.eq.s32.totalorder %v12532_v8, %v567_v52 }
 0x16b   :  { %v829_v55 = vsel %vm701_vm10, 1.0, %v12223_v15 }
 0x16c   :  { %v895_v56 = vpack.c.bf16 %v830_v53, %v829_v55  ;;  %v576_v57 = vpop.permute.xlu1 %575 }
 0x16d   :  { %vm704_vm11 = vcmp.eq.s32.totalorder %v12532_v8, %v576_v57  ;;  %v573_v58 = vpop.permute.xlu0 %572 }
 0x16e   :  { %v832_v59 = vsel %vm704_vm11, 1.0, %v12223_v15  ;;  %vm703_vm12 = vcmp.eq.s32.totalorder %v12532_v8, %v573_v58  ;;  %v11226_v60 = vpop.f32.mrb[4].mxu0  ;;  %11344 = vmatprep.mubr.msk.bf16.mxu1 %vm917_vm5, %v895_v56  ;;  %vm8666_vm11 = vcmask 1041409  }
 0x16f   :  { %v831_v61 = vsel %vm703_vm12, 1.0, %v12223_v15  ;;  %v1164_v62 = vpop.f32.mrb[5].mxu0  ;;  %vm7377_vm12 = vcmask 128000  }
 0x170   :  { %v896_v0 = vpack.c.bf16 %v832_v59, %v831_v61  ;;  %v11227_v1 = vpop.f32.mrb[6].mxu0  ;;  %v522_v2 = vpop.permute.xlu1 %521 }
 0x171   :  { %v13029_v3 = vpack.c.bf16 %v11227_v1, %v11226_v60  ;;  %vm686_vm14 = vcmp.eq.s32.totalorder %v12532_v8, %v522_v2  ;;  %v1167_v4 = vpop.f32.mrb[7].mxu0  ;;  %v519_v5 = vpop.permute.xlu0 %518 }
 0x172   :  { %v814_v6 = vsel %vm686_vm14, 1.0, %v12223_v15  ;;  %v13033_v7 = vpack.c.bf16 %v1167_v4, %v1164_v62  ;;  %vm685_vm15 = vcmp.eq.s32.totalorder %v12532_v8, %v519_v5  ;;  %11345 = vmatmul.mubr.msk.bf16.gmra.mrb[4].mxu1 %vm917_vm5, %v896_v0  ;;  %vm8669_vm14 = vcmask 1042434  }
 0x173   :  { %v813_v9 = vsel %vm685_vm15, 1.0, %v12223_v15  ;;  %11350 = vmatprep.mubr.msk.bf16.mxu1 %vm1731_vm13, %v13020_v54  ;;  %vm8672_vm15 = vcmask 1043459  }
 0x174   :  { %v887_v10 = vpack.c.bf16 %v814_v6, %v813_v9  ;;  %v528_v11 = vpop.permute.xlu1 %527 }
 0x175   :  { %vm688_vm0 = vcmp.eq.s32.totalorder %v12532_v8, %v528_v11  ;;  %v525_v12 = vpop.permute.xlu0 %524 }
 0x176   :  { %v816_v13 = vsel %vm688_vm0, 1.0, %v12223_v15  ;;  %vm687_vm1 = vcmp.eq.s32.totalorder %v12532_v8, %v525_v12  ;;  %v11230_v14 = vpop.f32.mrb[8].mxu0  ;;  %11328 = vmatprep.mubr.msk.bf16.mxu0 %vm917_vm5, %v887_v10  ;;  %vm8675_vm0 = vcmask 1044484  }
 0x177   :  { %v815_v16 = vsel %vm687_vm1, 1.0, %v12223_v15  ;;  %v1180_v17 = vpop.f32.mrb[9].mxu0  ;;  %vm8678_vm1 = vcmask 1045509  }
 0x178   :  { %v888_v18 = vpack.c.bf16 %v816_v13, %v815_v16  ;;  %v11231_v19 = vpop.f32.mrb[10].mxu0  ;;  %v534_v20 = vpop.permute.xlu1 %533 }
 0x179   :  { %v13045_v21 = vpack.c.bf16 %v11231_v19, %v11230_v14  ;;  %vm690_vm2 = vcmp.eq.s32.totalorder %v12532_v8, %v534_v20  ;;  %v1183_v22 = vpop.f32.mrb[11].mxu0  ;;  %v531_v23 = vpop.permute.xlu0 %530 }
 0x17a   :  { %v818_v24 = vsel %vm690_vm2, 1.0, %v12223_v15  ;;  %v13049_v25 = vpack.c.bf16 %v1183_v22, %v1180_v17  ;;  %vm689_vm3 = vcmp.eq.s32.totalorder %v12532_v8, %v531_v23  ;;  %11329 = vmatmul.mubr.msk.bf16.gmra.mrb[108].mxu0 %vm917_vm5, %v888_v18  ;;  %11351 = vmatmul.mubr.msk.bf16.vlgmr.msra.gmra.mrb[8].mxu1 %vm1731_vm13, %v13015_v50  ;;  %vm8681_vm2 = vcmask 1046534  }
 0x17b   :  { %v817_v26 = vsel %vm689_vm3, 1.0, %v12223_v15  ;;  %11354 = vmatprep.mubr.msk.bf16.mxu1 %vm1731_vm13, %v13033_v7  ;;  %11479 = vmatpush3.bf16.msra.mxu1 %v13001_v36  ;;  %vm8684_vm3 = vcmask 1047559  }
 0x17c   :  { %v889_v27 = vpack.c.bf16 %v818_v24, %v817_v26  ;;  %v540_v28 = vpop.permute.xlu1 %539 }
 0x17d   :  { %vm692_vm4 = vcmp.eq.s32.totalorder %v12532_v8, %v540_v28  ;;  %v537_v29 = vpop.permute.xlu0 %536 }
 0x17e   :  { %v820_v30 = vsel %vm692_vm4, 1.0, %v12223_v15  ;;  %vm691_vm6 = vcmp.eq.s32.totalorder %v12532_v8, %v537_v29  ;;  %v11234_v31 = vpop.f32.mrb[12].mxu0  ;;  %11332 = vmatprep.mubr.msk.bf16.mxu0 %vm917_vm5, %v889_v27  ;;  %vm9359_vm4 = vcmask 261120  }
 0x17f   :  { %v819_v32 = vsel %vm691_vm6, 1.0, %v12223_v15  ;;  %v1196_v33 = vpop.f32.mrb[13].mxu0 }
 0x180   :  { %v890_v34 = vpack.c.bf16 %v820_v30, %v819_v32  ;;  %v11235_v35 = vpop.f32.mrb[14].mxu0  ;;  %v546_v37 = vpop.permute.xlu1 %545 }
 0x181   :  { %v13064_v38 = vpack.c.bf16 %v11235_v35, %v11234_v31  ;;  %vm694_vm7 = vcmp.eq.s32.totalorder %v12532_v8, %v546_v37  ;;  %v1199_v36 = vpop.f32.mrb[15].mxu0  ;;  %v543_v39 = vpop.permute.xlu0 %542 }
 0x182   :  { %v822_v40 = vsel %vm694_vm7, 1.0, %v12223_v15  ;;  %v13068_v41 = vpack.c.bf16 %v1199_v36, %v1196_v33  ;;  %vm693_vm8 = vcmp.eq.s32.totalorder %v12532_v8, %v543_v39  ;;  %11333 = vmatmul.mubr.msk.bf16.gmra.mrb[112].mxu0 %vm917_vm5, %v890_v34  ;;  %11355 = vmatmul.mubr.msk.bf16.gmra.mrb[12].mxu1 %vm1731_vm13, %v13029_v3 }
 0x183   :  { %v821_v42 = vsel %vm693_vm8, 1.0, %v12223_v15  ;;  %11358 = vmatprep.mubr.msk.bf16.mxu1 %vm1731_vm13, %v13049_v25 }
 0x184   :  { %v891_v43 = vpack.c.bf16 %v822_v40, %v821_v42  ;;  %v552_v44 = vpop.permute.xlu1 %551 }
 0x185   :  { %vm696_vm9 = vcmp.eq.s32.totalorder %v12532_v8, %v552_v44  ;;  %v549_v45 = vpop.permute.xlu0 %548 }
 0x186   :  { %v824_v46 = vsel %vm696_vm9, 1.0, %v12223_v15  ;;  %vm695_vm10 = vcmp.eq.s32.totalorder %v12532_v8, %v549_v45  ;;  %v11238_v47 = vpop.f32.mrb[16].mxu0  ;;  %11336 = vmatprep.mubr.msk.bf16.mxu0 %vm917_vm5, %v891_v43 }
 0x187   :  { %v823_v48 = vsel %vm695_vm10, 1.0, %v12223_v15  ;;  %v1212_v49 = vpop.f32.mrb[17].mxu0 }
 0x188   :  { %v892_v63 = vpack.c.bf16 %v824_v46, %v823_v48  ;;  %v11239_v51 = vpop.f32.mrb[18].mxu0 }
 0x189   :  { %v13082_v52 = vpack.c.bf16 %v11239_v51, %v11238_v47  ;;  %v1215_v53 = vpop.f32.mrb[19].mxu0 }
 0x18a   :  { %v13084_v55 = vpack.c.bf16 %v1215_v53, %v1212_v49  ;;  %11337 = vmatmul.mubr.msk.bf16.gmra.mrb[116].mxu0 %vm917_vm5, %v892_v63  ;;  %11359 = vmatmul.mubr.msk.bf16.gmra.mrb[16].mxu1 %vm1731_vm13, %v13045_v21  ;;  %vm3534_vm5 = vcmask 129024  }
 0x18b   :  { %11362 = vmatprep.mubr.msk.bf16.mxu1 %vm1731_vm13, %v13068_v41  ;;  %11610 = vmatprep.mubr.msk.bf16.mxu0 %vm1731_vm13, %v13020_v54 }
 0x18e   :  { %v11242_v8 = vpop.f32.mrb[20].mxu0 }
 0x18f   :  { %v1228_v15 = vpop.f32.mrb[21].mxu0 }
 0x190   :  { %v11243_v56 = vpop.f32.mrb[22].mxu0 }
 0x191   :  { %v13093_v57 = vpack.c.bf16 %v11243_v56, %v11242_v8  ;;  %v1231_v58 = vpop.f32.mrb[23].mxu0 }
 0x192   :  { %v13095_v59 = vpack.c.bf16 %v1231_v58, %v1228_v15  ;;  %11363 = vmatmul.mubr.msk.bf16.gmra.mrb[20].mxu1 %vm1731_vm13, %v13064_v38  ;;  %11611 = vmatmul.mubr.msk.bf16.vlgmr.msra.gmra.mrb[120].mxu0 %vm1731_vm13, %v13015_v50 }
 0x193   :  { %11366 = vmatprep.mubr.msk.bf16.mxu1 %vm1731_vm13, %v13084_v55  ;;  %11614 = vmatprep.mubr.msk.bf16.mxu0 %vm1731_vm13, %v13033_v7 }
 0x196   :  { %v11246_v60 = vpop.f32.mrb[24].mxu0 }
 0x197   :  { %v1244_v61 = vpop.f32.mrb[25].mxu0 }
 0x198   :  { %v11247_v62 = vpop.f32.mrb[26].mxu0 }
 0x199   :  { %v13105_v0 = vpack.c.bf16 %v11247_v62, %v11246_v60  ;;  %v1247_v1 = vpop.f32.mrb[27].mxu0 }
 0x19a   :  { %v13107_v2 = vpack.c.bf16 %v1247_v1, %v1244_v61  ;;  %11367 = vmatmul.mubr.msk.bf16.gmra.mrb[24].mxu1 %vm1731_vm13, %v13082_v52  ;;  %11615 = vmatmul.mubr.msk.bf16.gmra.mrb[124].mxu0 %vm1731_vm13, %v13029_v3 }
 0x19b   :  { %11370 = vmatprep.mubr.msk.bf16.mxu1 %vm1731_vm13, %v13095_v59  ;;  %11618 = vmatprep.mubr.msk.bf16.mxu0 %vm1731_vm13, %v13049_v25 }
 0x19e   :  { %v11250_v4 = vpop.f32.mrb[28].mxu0 }
 0x19f   :  { %v1260_v5 = vpop.f32.mrb[29].mxu0 }
 0x1a0   :  { %v11251_v6 = vpop.f32.mrb[30].mxu0 }
 0x1a1   :  { %v13117_v9 = vpack.c.bf16 %v11251_v6, %v11250_v4  ;;  %v1263_v10 = vpop.f32.mrb[31].mxu0 }
 0x1a2   :  { %v13119_v11 = vpack.c.bf16 %v1263_v10, %v1260_v5  ;;  %11371 = vmatmul.mubr.msk.bf16.gmra.mrb[28].mxu1 %vm1731_vm13, %v13093_v57  ;;  %11619 = vmatmul.mubr.msk.bf16.gmra.mrb[128].mxu0 %vm1731_vm13, %v13045_v21 }
 0x1a3   :  { %11374 = vmatprep.mubr.msk.bf16.mxu1 %vm1731_vm13, %v13107_v2  ;;  %11622 = vmatprep.mubr.msk.bf16.mxu0 %vm1731_vm13, %v13068_v41 }
 0x1a6   :  { %v11254_v12 = vpop.f32.mrb[32].mxu0 }
 0x1a7   :  { %v1276_v13 = vpop.f32.mrb[33].mxu0 }
 0x1a8   :  { %v11255_v14 = vpop.f32.mrb[34].mxu0 }
 0x1a9   :  { %v13129_v16 = vpack.c.bf16 %v11255_v14, %v11254_v12  ;;  %v1279_v17 = vpop.f32.mrb[35].mxu0 }
 0x1aa   :  { %v13131_v18 = vpack.c.bf16 %v1279_v17, %v1276_v13  ;;  %11375 = vmatmul.mubr.msk.bf16.gmra.mrb[32].mxu1 %vm1731_vm13, %v13105_v0  ;;  %11623 = vmatmul.mubr.msk.bf16.gmra.mrb[132].mxu0 %vm1731_vm13, %v13064_v38 }
 0x1ab   :  { %11378 = vmatprep.mubr.msk.bf16.mxu1 %vm1731_vm13, %v13119_v11  ;;  %11626 = vmatprep.mubr.msk.bf16.mxu0 %vm1731_vm13, %v13084_v55 }
 0x1ae   :  { %v11258_v19 = vpop.f32.mrb[36].mxu0 }
 0x1af   :  { %v1292_v20 = vpop.f32.mrb[37].mxu0 }
 0x1b0   :  { %v11259_v22 = vpop.f32.mrb[38].mxu0 }
 0x1b1   :  { %v13141_v23 = vpack.c.bf16 %v11259_v22, %v11258_v19  ;;  %v1295_v24 = vpop.f32.mrb[39].mxu0 }
 0x1b2   :  { %v13143_v26 = vpack.c.bf16 %v1295_v24, %v1292_v20  ;;  %11379 = vmatmul.mubr.msk.bf16.gmra.mrb[36].mxu1 %vm1731_vm13, %v13117_v9  ;;  %11627 = vmatmul.mubr.msk.bf16.gmra.mrb[136].mxu0 %vm1731_vm13, %v13082_v52 }
 0x1b3   :  { %18164 = vst [vmem:[#allocation2_spill] sm:$0xff] %v13141_v23  ;;  %11382 = vmatprep.mubr.msk.bf16.mxu1 %vm1731_vm13, %v13131_v18  ;;  %11630 = vmatprep.mubr.msk.bf16.mxu0 %vm1731_vm13, %v13095_v59 }
 0x1b4   :  { %18165 = vst [vmem:[#allocation3_spill] sm:$0xff] %v13143_v26 }
 0x1b6   :  { %v11262_v27 = vpop.f32.mrb[40].mxu0 }
 0x1b7   :  { %v1308_v28 = vpop.f32.mrb[41].mxu0 }
 0x1b8   :  { %v11263_v29 = vpop.f32.mrb[42].mxu0 }
 0x1b9   :  { %v13153_v30 = vpack.c.bf16 %v11263_v29, %v11262_v27  ;;  %v1311_v31 = vpop.f32.mrb[43].mxu0 }
 0x1ba   :  { %v13155_v32 = vpack.c.bf16 %v1311_v31, %v1308_v28  ;;  %11383 = vmatmul.mubr.msk.bf16.gmra.mrb[40].mxu1 %vm1731_vm13, %v13129_v16  ;;  %11631 = vmatmul.mubr.msk.bf16.gmra.mrb[140].mxu0 %vm1731_vm13, %v13093_v57 }
 0x1bb   :  { %18166 = vst [vmem:[#allocation4_spill] sm:$0xff] %v13153_v30  ;;  %11386 = vmatprep.mubr.msk.bf16.mxu1 %vm1731_vm13, %v13143_v26  ;;  %11634 = vmatprep.mubr.msk.bf16.mxu0 %vm1731_vm13, %v13107_v2 }
 0x1bc   :  { %18167 = vst [vmem:[#allocation5_spill] sm:$0xff] %v13155_v32 }
 0x1be   :  { %v11266_v33 = vpop.f32.mrb[44].mxu0 }
 0x1bf   :  { %v1324_v34 = vpop.f32.mrb[45].mxu0 }
 0x1c0   :  { %v11267_v35 = vpop.f32.mrb[46].mxu0 }
 0x1c1   :  { %v13165_v37 = vpack.c.bf16 %v11267_v35, %v11266_v33  ;;  %v1327_v36 = vpop.f32.mrb[47].mxu0 }
 0x1c2   :  { %v13167_v39 = vpack.c.bf16 %v1327_v36, %v1324_v34  ;;  %11387 = vmatmul.mubr.msk.bf16.gmra.mrb[44].mxu1 %vm1731_vm13, %v13141_v23  ;;  %11635 = vmatmul.mubr.msk.bf16.gmra.mrb[144].mxu0 %vm1731_vm13, %v13105_v0 }
 0x1c3   :  { %18168 = vst [vmem:[#allocation6_spill] sm:$0xff] %v13165_v37  ;;  %11390 = vmatprep.mubr.msk.bf16.mxu1 %vm1731_vm13, %v13155_v32  ;;  %11638 = vmatprep.mubr.msk.bf16.mxu0 %vm1731_vm13, %v13119_v11 }
 0x1c4   :  { %18169 = vst [vmem:[#allocation7_spill] sm:$0xff] %v13167_v39 }
 0x1c6   :  { %v11270_v40 = vpop.f32.mrb[48].mxu0 }
 0x1c7   :  { %v1340_v42 = vpop.f32.mrb[49].mxu0 }
 0x1c8   :  { %v11271_v43 = vpop.f32.mrb[50].mxu0 }
 0x1c9   :  { %v13177_v44 = vpack.c.bf16 %v11271_v43, %v11270_v40  ;;  %v1343_v45 = vpop.f32.mrb[51].mxu0  ;;  %v13264_v43 = vld [vmem:[%s17929_s7] sm:$0xff]  }
 0x1ca   :  { %v13179_v46 = vpack.c.bf16 %v1343_v45, %v1340_v42  ;;  %11391 = vmatmul.mubr.msk.bf16.gmra.mrb[48].mxu1 %vm1731_vm13, %v13153_v30  ;;  %11639 = vmatmul.mubr.msk.bf16.gmra.mrb[148].mxu0 %vm1731_vm13, %v13117_v9 }
 0x1cb   :  { %18170 = vst [vmem:[#allocation8_spill] sm:$0xff] %v13177_v44  ;;  %11394 = vmatprep.mubr.msk.bf16.mxu1 %vm1731_vm13, %v13167_v39  ;;  %11642 = vmatprep.mubr.msk.bf16.mxu0 %vm1731_vm13, %v13131_v18 }
 0x1cc   :  { %18171 = vst [vmem:[#allocation9_spill] sm:$0xff] %v13179_v46  ;;  %11738 = vmatprep.subr.bf16.mxu1 %v13264_v43 }
 0x1ce   :  { %v11274_v47 = vpop.f32.mrb[52].mxu0 }
 0x1cf   :  { %v1356_v48 = vpop.f32.mrb[53].mxu0 }
 0x1d0   :  { %v11275_v49 = vpop.f32.mrb[54].mxu0 }
 0x1d1   :  { %v13189_v63 = vpack.c.bf16 %v11275_v49, %v11274_v47  ;;  %v1359_v51 = vpop.f32.mrb[55].mxu0  ;;  %v12132_v47 = vld [vmem:[%s17930_s8] sm:$0xff]  }
 0x1d2   :  { %v13191_v53 = vpack.c.bf16 %v1359_v51, %v1356_v48  ;;  %11395 = vmatmul.mubr.msk.bf16.gmra.mrb[52].mxu1 %vm1731_vm13, %v13165_v37  ;;  %11643 = vmatmul.mubr.msk.bf16.gmra.mrb[152].mxu0 %vm1731_vm13, %v13129_v16 }
 0x1d3   :  { %18172 = vst [vmem:[#allocation10_spill] sm:$0xff] %v13189_v63  ;;  %11398 = vmatprep.mubr.msk.bf16.mxu1 %vm1731_vm13, %v13179_v46  ;;  %11646 = vmatprep.mubr.msk.bf16.mxu0 %vm1731_vm13, %v13143_v26 }
 0x1d4   :  { %18173 = vst [vmem:[#allocation11_spill] sm:$0xff] %v13191_v53  ;;  %11868 = vmatprep.subr.bf16.mxu0 %v12132_v47 }
 0x1d5   :  { %11869 = vmatpush3.bf16.msra.mxu0 %v12132_v47 }
 0x1d6   :  { %v11278_v8 = vpop.f32.mrb[56].mxu0 }
 0x1d7   :  { %v1372_v15 = vpop.f32.mrb[57].mxu0 }
 0x1d8   :  { %v11279_v56 = vpop.f32.mrb[58].mxu0 }
 0x1d9   :  { %v13201_v58 = vpack.c.bf16 %v11279_v56, %v11278_v8  ;;  %v1375_v60 = vpop.f32.mrb[59].mxu0 }
 0x1da   :  { %v13203_v61 = vpack.c.bf16 %v1375_v60, %v1372_v15  ;;  %11399 = vmatmul.mubr.msk.bf16.gmra.mrb[56].mxu1 %vm1731_vm13, %v13177_v44  ;;  %11647 = vmatmul.mubr.msk.bf16.gmra.mrb[156].mxu0 %vm1731_vm13, %v13141_v23 }
 0x1db   :  { %18174 = vst [vmem:[#allocation12_spill] sm:$0xff] %v13201_v58  ;;  %11402 = vmatprep.mubr.msk.bf16.mxu1 %vm1731_vm13, %v13191_v53  ;;  %11650 = vmatprep.mubr.msk.bf16.mxu0 %vm1731_vm13, %v13155_v32 }
 0x1dc   :  { %18175 = vst [vmem:[#allocation13_spill] sm:$0xff] %v13203_v61 }
 0x1de   :  { %v11282_v62 = vpop.f32.mrb[60].mxu0 }
 0x1df   :  { %v1388_v1 = vpop.f32.mrb[61].mxu0 }
 0x1e0   :  { %v11283_v4 = vpop.f32.mrb[62].mxu0 }
 0x1e1   :  { %v13213_v5 = vpack.c.bf16 %v11283_v4, %v11282_v62  ;;  %v1391_v6 = vpop.f32.mrb[63].mxu0 }
 0x1e2   :  { %v13215_v10 = vpack.c.bf16 %v1391_v6, %v1388_v1  ;;  %11403 = vmatmul.mubr.msk.bf16.gmra.mrb[60].mxu1 %vm1731_vm13, %v13189_v63  ;;  %11651 = vmatmul.mubr.msk.bf16.gmra.mrb[160].mxu0 %vm1731_vm13, %v13153_v30 }
 0x1e3   :  { %18176 = vst [vmem:[#allocation14_spill] sm:$0xff] %v13213_v5  ;;  %11406 = vmatprep.mubr.msk.bf16.mxu1 %vm1731_vm13, %v13203_v61  ;;  %11654 = vmatprep.mubr.msk.bf16.mxu0 %vm1731_vm13, %v13167_v39 }
 0x1e4   :  { %18177 = vst [vmem:[#allocation15_spill] sm:$0xff] %v13215_v10 }
 0x1e6   :  { %v11286_v12 = vpop.f32.mrb[64].mxu0 }
 0x1e7   :  { %v1404_v13 = vpop.f32.mrb[65].mxu0 }
 0x1e8   :  { %v11287_v14 = vpop.f32.mrb[66].mxu0 }
 0x1e9   :  { %v13225_v17 = vpack.c.bf16 %v11287_v14, %v11286_v12  ;;  %v1407_v19 = vpop.f32.mrb[67].mxu0 }
 0x1ea   :  { %v13227_v20 = vpack.c.bf16 %v1407_v19, %v1404_v13  ;;  %11407 = vmatmul.mubr.msk.bf16.gmra.mrb[64].mxu1 %vm1731_vm13, %v13201_v58  ;;  %11655 = vmatmul.mubr.msk.bf16.gmra.mrb[164].mxu0 %vm1731_vm13, %v13165_v37 }
 0x1eb   :  { %18178 = vst [vmem:[#allocation16_spill] sm:$0xff] %v13225_v17  ;;  %11410 = vmatprep.mubr.msk.bf16.mxu1 %vm1731_vm13, %v13215_v10  ;;  %11658 = vmatprep.mubr.msk.bf16.mxu0 %vm1731_vm13, %v13179_v46 }
 0x1ec   :  { %18179 = vst [vmem:[#allocation17_spill] sm:$0xff] %v13227_v20 }
 0x1ee   :  { %v11290_v22 = vpop.f32.mrb[68].mxu0 }
 0x1ef   :  { %v1420_v24 = vpop.f32.mrb[69].mxu0 }
 0x1f0   :  { %v11291_v27 = vpop.f32.mrb[70].mxu0 }
 0x1f1   :  { %v13237_v28 = vpack.c.bf16 %v11291_v27, %v11290_v22  ;;  %v1423_v29 = vpop.f32.mrb[71].mxu0 }
 0x1f2   :  { %v13239_v31 = vpack.c.bf16 %v1423_v29, %v1420_v24  ;;  %11411 = vmatmul.mubr.msk.bf16.gmra.mrb[68].mxu1 %vm1731_vm13, %v13213_v5  ;;  %11659 = vmatmul.mubr.msk.bf16.gmra.mrb[168].mxu0 %vm1731_vm13, %v13177_v44 }
 0x1f3   :  { %18180 = vst [vmem:[#allocation18_spill] sm:$0xff] %v13237_v28  ;;  %11414 = vmatprep.mubr.msk.bf16.mxu1 %vm1731_vm13, %v13227_v20  ;;  %11662 = vmatprep.mubr.msk.bf16.mxu0 %vm1731_vm13, %v13191_v53 }
 0x1f4   :  { %18181 = vst [vmem:[#allocation19_spill] sm:$0xff] %v13239_v31 }
 0x1f6   :  { %v11294_v33 = vpop.f32.mrb[72].mxu0 }
 0x1f7   :  { %v1436_v34 = vpop.f32.mrb[73].mxu0 }
 0x1f8   :  { %v11295_v35 = vpop.f32.mrb[74].mxu0 }
 0x1f9   :  { %v13249_v36 = vpack.c.bf16 %v11295_v35, %v11294_v33  ;;  %v1439_v40 = vpop.f32.mrb[75].mxu0 }
 0x1fa   :  { %v13251_v42 = vpack.c.bf16 %v1439_v40, %v1436_v34  ;;  %11415 = vmatmul.mubr.msk.bf16.gmra.mrb[72].mxu1 %vm1731_vm13, %v13225_v17  ;;  %11663 = vmatmul.mubr.msk.bf16.gmra.mrb[172].mxu0 %vm1731_vm13, %v13189_v63 }
 0x1fb   :  { %18182 = vst [vmem:[#allocation20_spill] sm:$0xff] %v13249_v36  ;;  %11418 = vmatprep.mubr.msk.bf16.mxu1 %vm1731_vm13, %v13239_v31  ;;  %11666 = vmatprep.mubr.msk.bf16.mxu0 %vm1731_vm13, %v13203_v61 }
 0x1fc   :  { %18183 = vst [vmem:[#allocation21_spill] sm:$0xff] %v13251_v42 }
 0x1fe   :  { %v11298_v45 = vpop.f32.mrb[76].mxu0 }
 0x1ff   :  { %v1452_v48 = vpop.f32.mrb[77].mxu0 }
 0x200   :  { %v11299_v49 = vpop.f32.mrb[78].mxu0 }
 0x201   :  { %v13270_v51 = vpack.c.bf16 %v11299_v49, %v11298_v45  ;;  %v1455_v8 = vpop.f32.mrb[79].mxu0 }
 0x202   :  { %v13272_v15 = vpack.c.bf16 %v1455_v8, %v1452_v48  ;;  %11419 = vmatmul.mubr.msk.bf16.gmra.mrb[76].mxu1 %vm1731_vm13, %v13237_v28  ;;  %11667 = vmatmul.mubr.msk.bf16.gmra.mrb[176].mxu0 %vm1731_vm13, %v13201_v58 }
 0x203   :  { %18184 = vst [vmem:[#allocation22_spill] sm:$0xff] %v13270_v51  ;;  %11422 = vmatprep.mubr.msk.bf16.mxu1 %vm1731_vm13, %v13251_v42  ;;  %11670 = vmatprep.mubr.msk.bf16.mxu0 %vm1731_vm13, %v13215_v10 }
 0x204   :  { %18185 = vst [vmem:[#allocation23_spill] sm:$0xff] %v13272_v15 }
 0x206   :  { %v11302_v56 = vpop.f32.mrb[80].mxu0 }
 0x207   :  { %v1468_v60 = vpop.f32.mrb[81].mxu0 }
 0x208   :  { %v11303_v62 = vpop.f32.mrb[82].mxu0 }
 0x209   :  { %v13282_v1 = vpack.c.bf16 %v11303_v62, %v11302_v56  ;;  %v1471_v4 = vpop.f32.mrb[83].mxu0 }
 0x20a   :  { %v13284_v6 = vpack.c.bf16 %v1471_v4, %v1468_v60  ;;  %11423 = vmatmul.mubr.msk.bf16.gmra.mrb[80].mxu1 %vm1731_vm13, %v13249_v36  ;;  %11671 = vmatmul.mubr.msk.bf16.gmra.mrb[180].mxu0 %vm1731_vm13, %v13213_v5 }
 0x20b   :  { %18186 = vst [vmem:[#allocation24_spill] sm:$0xff] %v13282_v1  ;;  %11426 = vmatprep.mubr.msk.bf16.mxu1 %vm1731_vm13, %v13272_v15  ;;  %11674 = vmatprep.mubr.msk.bf16.mxu0 %vm1731_vm13, %v13227_v20 }
 0x20c   :  { %18187 = vst [vmem:[#allocation25_spill] sm:$0xff] %v13284_v6 }
 0x20e   :  { %v11306_v12 = vpop.f32.mrb[84].mxu0 }
 0x20f   :  { %v1484_v13 = vpop.f32.mrb[85].mxu0 }
 0x210   :  { %v11307_v14 = vpop.f32.mrb[86].mxu0 }
 0x211   :  { %v13294_v19 = vpack.c.bf16 %v11307_v14, %v11306_v12  ;;  %v1487_v22 = vpop.f32.mrb[87].mxu0 }
 0x212   :  { %v13296_v24 = vpack.c.bf16 %v1487_v22, %v1484_v13  ;;  %11427 = vmatmul.mubr.msk.bf16.gmra.mrb[84].mxu1 %vm1731_vm13, %v13270_v51  ;;  %11675 = vmatmul.mubr.msk.bf16.gmra.mrb[184].mxu0 %vm1731_vm13, %v13225_v17 }
 0x213   :  { %18188 = vst [vmem:[#allocation26_spill] sm:$0xff] %v13294_v19  ;;  %11430 = vmatprep.mubr.msk.bf16.mxu1 %vm1731_vm13, %v13284_v6  ;;  %11678 = vmatprep.mubr.msk.bf16.mxu0 %vm1731_vm13, %v13239_v31 }
 0x214   :  { %18189 = vst [vmem:[#allocation27_spill] sm:$0xff] %v13296_v24 }
 0x216   :  { %v11310_v27 = vpop.f32.mrb[88].mxu0 }
 0x217   :  { %v1500_v29 = vpop.f32.mrb[89].mxu0 }
 0x218   :  { %v11311_v33 = vpop.f32.mrb[90].mxu0 }
 0x219   :  { %v13306_v34 = vpack.c.bf16 %v11311_v33, %v11310_v27  ;;  %v1503_v35 = vpop.f32.mrb[91].mxu0 }
 0x21a   :  { %v13308_v40 = vpack.c.bf16 %v1503_v35, %v1500_v29  ;;  %11431 = vmatmul.mubr.msk.bf16.gmra.mrb[88].mxu1 %vm1731_vm13, %v13282_v1  ;;  %11679 = vmatmul.mubr.msk.bf16.gmra.mrb[188].mxu0 %vm1731_vm13, %v13237_v28 }
 0x21b   :  { %18190 = vst [vmem:[#allocation28_spill] sm:$0xff] %v13306_v34  ;;  %11434 = vmatprep.mubr.msk.bf16.mxu1 %vm1731_vm13, %v13296_v24  ;;  %11682 = vmatprep.mubr.msk.bf16.mxu0 %vm1731_vm13, %v13251_v42 }
 0x21c   :  { %18191 = vst [vmem:[#allocation29_spill] sm:$0xff] %v13308_v40 }
 0x21e   :  { %v11314_v45 = vpop.f32.mrb[92].mxu0 }
 0x21f   :  { %v1516_v47 = vpop.f32.mrb[93].mxu0 }
 0x220   :  { %v11315_v48 = vpop.f32.mrb[94].mxu0 }
 0x221   :  { %v13318_v49 = vpack.c.bf16 %v11315_v48, %v11314_v45  ;;  %v1519_v8 = vpop.f32.mrb[95].mxu0 }
 0x222   :  { %v13320_v56 = vpack.c.bf16 %v1519_v8, %v1516_v47  ;;  %11435 = vmatmul.mubr.msk.bf16.gmra.mrb[92].mxu1 %vm1731_vm13, %v13294_v19  ;;  %11683 = vmatmul.mubr.msk.bf16.gmra.mrb[192].mxu0 %vm1731_vm13, %v13249_v36 }
 0x223   :  { %18192 = vst [vmem:[#allocation30_spill] sm:$0xff] %v13318_v49  ;;  %11438 = vmatprep.mubr.msk.bf16.mxu1 %vm1731_vm13, %v13308_v40  ;;  %11686 = vmatprep.mubr.msk.bf16.mxu0 %vm1731_vm13, %v13272_v15 }
 0x224   :  { %18193 = vst [vmem:[#allocation31_spill] sm:$0xff] %v13320_v56 }
 0x226   :  { %v11318_v60 = vpop.f32.mrb[96].mxu0 }
 0x227   :  { %v1532_v62 = vpop.f32.mrb[97].mxu0 }
 0x228   :  { %v11319_v4 = vpop.f32.mrb[98].mxu0 }
 0x229   :  { %v13330_v12 = vpack.c.bf16 %v11319_v4, %v11318_v60  ;;  %v1535_v13 = vpop.f32.mrb[99].mxu0 }
 0x22a   :  { %v13332_v14 = vpack.c.bf16 %v1535_v13, %v1532_v62  ;;  %11439 = vmatmul.mubr.msk.bf16.gmra.mrb[96].mxu1 %vm1731_vm13, %v13306_v34  ;;  %11687 = vmatmul.mubr.msk.bf16.gmra.mrb[196].mxu0 %vm1731_vm13, %v13270_v51 }
 0x22b   :  { %18194 = vst [vmem:[#allocation32_spill] sm:$0xff] %v13330_v12  ;;  %11442 = vmatprep.mubr.msk.bf16.mxu1 %vm1731_vm13, %v13320_v56  ;;  %11690 = vmatprep.mubr.msk.bf16.mxu0 %vm1731_vm13, %v13284_v6 }
 0x22c   :  { %18195 = vst [vmem:[#allocation33_spill] sm:$0xff] %v13332_v14 }
 0x22e   :  { %v11322_v22 = vpop.f32.mrb[100].mxu0 }
 0x22f   :  { %v1548_v27 = vpop.f32.mrb[101].mxu0 }
 0x230   :  { %v11323_v29 = vpop.f32.mrb[102].mxu0 }
 0x231   :  { %v13342_v33 = vpack.c.bf16 %v11323_v29, %v11322_v22  ;;  %v1551_v35 = vpop.f32.mrb[103].mxu0 }
 0x232   :  { %v13344_v45 = vpack.c.bf16 %v1551_v35, %v1548_v27  ;;  %11443 = vmatmul.mubr.msk.bf16.gmra.mrb[100].mxu1 %vm1731_vm13, %v13318_v49  ;;  %11691 = vmatmul.mubr.msk.bf16.gmra.mrb[200].mxu0 %vm1731_vm13, %v13282_v1 }
 0x233   :  { %18196 = vst [vmem:[#allocation34_spill] sm:$0xff] %v13342_v33  ;;  %11446 = vmatprep.mubr.msk.bf16.mxu1 %vm1731_vm13, %v13332_v14  ;;  %11694 = vmatprep.mubr.msk.bf16.mxu0 %vm1731_vm13, %v13296_v24 }
 0x234   :  { %18197 = vst [vmem:[#allocation35_spill] sm:$0xff] %v13344_v45  ;;  %v11342_v47 = vpop.f32.mrb[0].mxu1 }
 0x235   :  { %v1628_v48 = vpop.f32.mrb[1].mxu1 }
 0x236   :  { %v11343_v8 = vpop.f32.mrb[2].mxu1 }
 0x237   :  { %v13354_v60 = vpack.c.bf16 %v11343_v8, %v11342_v47  ;;  %v1631_v62 = vpop.f32.mrb[3].mxu1 }
 0x238   :  { %v13356_v4 = vpack.c.bf16 %v1631_v62, %v1628_v48 }
 0x239   :  { %18198 = vst [vmem:[#allocation36_spill] sm:$0xff] %v13354_v60 }
 0x23a   :  { %18199 = vst [vmem:[#allocation37_spill] sm:$0xff] %v13356_v4  ;;  %11447 = vmatmul.mubr.msk.bf16.gmra.mrb[104].mxu1 %vm1731_vm13, %v13330_v12  ;;  %11695 = vmatmul.mubr.msk.bf16.gmra.mrb[204].mxu0 %vm1731_vm13, %v13294_v19 }
 0x23b   :  { %11450 = vmatprep.mubr.msk.bf16.mxu1 %vm1731_vm13, %v13344_v45  ;;  %11698 = vmatprep.mubr.msk.bf16.mxu0 %vm1731_vm13, %v13308_v40 }
 0x23c   :  { %v11326_v13 = vpop.f32.mrb[104].mxu0 }
 0x23d   :  { %v1564_v22 = vpop.f32.mrb[105].mxu0 }
 0x23e   :  { %v11327_v27 = vpop.f32.mrb[106].mxu0 }
 0x23f   :  { %v13366_v29 = vpack.c.bf16 %v11327_v27, %v11326_v13  ;;  %v1567_v35 = vpop.f32.mrb[107].mxu0 }
 0x240   :  { %v13368_v47 = vpack.c.bf16 %v1567_v35, %v1564_v22 }
 0x241   :  { %18200 = vst [vmem:[#allocation38_spill] sm:$0xff] %v13366_v29 }
 0x242   :  { %18201 = vst [vmem:[#allocation39_spill] sm:$0xff] %v13368_v47  ;;  %11451 = vmatmul.mubr.msk.bf16.gmra.mrb[108].mxu1 %vm1731_vm13, %v13342_v33  ;;  %11699 = vmatmul.mubr.msk.bf16.gmra.mrb[208].mxu0 %vm1731_vm13, %v13306_v34 }
 0x243   :  { %11454 = vmatprep.mubr.msk.bf16.mxu1 %vm1731_vm13, %v13368_v47  ;;  %11702 = vmatprep.mubr.msk.bf16.mxu0 %vm1731_vm13, %v13320_v56 }
 0x245   :  { %v11346_v48 = vpop.f32.mrb[4].mxu1 }
 0x246   :  { %v1644_v8 = vpop.f32.mrb[5].mxu1 }
 0x247   :  { %v11347_v62 = vpop.f32.mrb[6].mxu1 }
 0x248   :  { %v13378_v13 = vpack.c.bf16 %v11347_v62, %v11346_v48  ;;  %v1647_v27 = vpop.f32.mrb[7].mxu1 }
 0x249   :  { %v13380_v22 = vpack.c.bf16 %v1647_v27, %v1644_v8 }
 0x24a   :  { %18202 = vst [vmem:[#allocation40_spill] sm:$0xff] %v13378_v13  ;;  %11455 = vmatmul.mubr.msk.bf16.gmra.mrb[112].mxu1 %vm1731_vm13, %v13366_v29  ;;  %11703 = vmatmul.mubr.msk.bf16.gmra.mrb[212].mxu0 %vm1731_vm13, %v13318_v49 }
 0x24b   :  { %18203 = vst [vmem:[#allocation41_spill] sm:$0xff] %v13380_v22  ;;  %11706 = vmatprep.mubr.msk.bf16.mxu0 %vm1731_vm13, %v13332_v14 }
 0x24d   :  { %v11330_v35 = vpop.f32.mrb[108].mxu0  ;;  %v13388_v34 = vpop.f32.mrb[8].mxu1 }
 0x24e   :  { %18204 = vst [vmem:[#allocation42_spill] sm:$0xff] %v13388_v34  ;;  %v1580_v56 = vpop.f32.mrb[109].mxu0  ;;  %v13390_v40 = vpop.f32.mrb[9].mxu1 }
 0x24f   :  { %18205 = vst [vmem:[#allocation43_spill] sm:$0xff] %v13390_v40  ;;  %v11331_v48 = vpop.f32.mrb[110].mxu0  ;;  %v13392_v62 = vpop.f32.mrb[10].mxu1 }
 0x250   :  { %18206 = vst [vmem:[#allocation44_spill] sm:$0xff] %v13392_v62  ;;  %v13394_v8 = vpack.c.bf16 %v11331_v48, %v11330_v35  ;;  %v1583_v27 = vpop.f32.mrb[111].mxu0  ;;  %v13396_v19 = vpop.f32.mrb[11].mxu1 }
 0x251   :  { %18208 = vst [vmem:[#allocation46_spill] sm:$0xff] %v13396_v19  ;;  %v13398_v24 = vpack.c.bf16 %v1583_v27, %v1580_v56 }
 0x252   :  { %18207 = vst [vmem:[#allocation45_spill] sm:$0xff] %v13394_v8  ;;  %11707 = vmatmul.mubr.msk.bf16.gmra.mrb[216].mxu0 %vm1731_vm13, %v13330_v12 }
 0x253   :  { %18209 = vst [vmem:[#allocation47_spill] sm:$0xff] %v13398_v24  ;;  %11458 = vmatprep.mubr.msk.bf16.mxu1 %vm1731_vm13, %v13398_v24  ;;  %11710 = vmatprep.mubr.msk.bf16.mxu0 %vm1731_vm13, %v13344_v45 }
 0x254   :  { %11459 = vmatmul.mubr.msk.bf16.gmra.mrb[116].mxu1 %vm1731_vm13, %v13394_v8 }
 0x255   :  { %v11334_v62 = vpop.f32.mrb[112].mxu0  ;;  %v13408_v35 = vpop.f32.mrb[12].mxu1 }
 0x256   :  { %18210 = vst [vmem:[#allocation48_spill] sm:$0xff] %v13408_v35  ;;  %v1596_v48 = vpop.f32.mrb[113].mxu0  ;;  %v13410_v40 = vpop.f32.mrb[13].mxu1 }
 0x257   :  { %18211 = vst [vmem:[#allocation49_spill] sm:$0xff] %v13410_v40  ;;  %v11335_v56 = vpop.f32.mrb[114].mxu0  ;;  %v13412_v27 = vpop.f32.mrb[14].mxu1 }
 0x258   :  { %18212 = vst [vmem:[#allocation50_spill] sm:$0xff] %v13412_v27  ;;  %v13414_v19 = vpack.c.bf16 %v11335_v56, %v11334_v62  ;;  %v1599_v34 = vpop.f32.mrb[115].mxu0  ;;  %v13416_v12 = vpop.f32.mrb[15].mxu1 }
 0x259   :  { %18214 = vst [vmem:[#allocation52_spill] sm:$0xff] %v13416_v12  ;;  %v13418_v14 = vpack.c.bf16 %v1599_v34, %v1596_v48 }
 0x25a   :  { %18213 = vst [vmem:[#allocation51_spill] sm:$0xff] %v13414_v19  ;;  %11711 = vmatmul.mubr.msk.bf16.gmra.mrb[220].mxu0 %vm1731_vm13, %v13342_v33 }
 0x25b   :  { %18215 = vst [vmem:[#allocation53_spill] sm:$0xff] %v13418_v14  ;;  %11462 = vmatprep.mubr.msk.bf16.mxu1 %vm1731_vm13, %v13418_v14  ;;  %11714 = vmatprep.mubr.msk.bf16.mxu0 %vm1731_vm13, %v13368_v47 }
 0x25c   :  { %11463 = vmatmul.mubr.msk.bf16.gmra.mrb[120].mxu1 %vm1731_vm13, %v13414_v19 }
 0x25d   :  { %v11338_v27 = vpop.f32.mrb[116].mxu0  ;;  %v13428_v62 = vpop.f32.mrb[16].mxu1 }
 0x25e   :  { %18216 = vst [vmem:[#allocation54_spill] sm:$0xff] %v13428_v62  ;;  %v1612_v56 = vpop.f32.mrb[117].mxu0  ;;  %v13430_v40 = vpop.f32.mrb[17].mxu1 }
 0x25f   :  { %18217 = vst [vmem:[#allocation55_spill] sm:$0xff] %v13430_v40  ;;  %v11339_v34 = vpop.f32.mrb[118].mxu0  ;;  %v13432_v48 = vpop.f32.mrb[18].mxu1 }
 0x260   :  { %18218 = vst [vmem:[#allocation56_spill] sm:$0xff] %v13432_v48  ;;  %v13434_v12 = vpack.c.bf16 %v11339_v34, %v11338_v27  ;;  %v1615_v35 = vpop.f32.mrb[119].mxu0  ;;  %v13436_v33 = vpop.f32.mrb[19].mxu1 }
 0x261   :  { %18220 = vst [vmem:[#allocation58_spill] sm:$0xff] %v13436_v33  ;;  %v13438_v45 = vpack.c.bf16 %v1615_v35, %v1612_v56 }
 0x262   :  { %18219 = vst [vmem:[#allocation57_spill] sm:$0xff] %v13434_v12  ;;  %11715 = vmatmul.mubr.msk.bf16.gmra.mrb[224].mxu0 %vm1731_vm13, %v13366_v29 }
 0x263   :  { %18221 = vst [vmem:[#allocation59_spill] sm:$0xff] %v13438_v45  ;;  %11466 = vmatprep.mubr.msk.bf16.mxu1 %vm1731_vm13, %v13438_v45  ;;  %11718 = vmatprep.mubr.msk.bf16.mxu0 %vm1731_vm13, %v13398_v24 }
 0x264   :  { %11467 = vmatmul.mubr.msk.bf16.gmra.mrb[124].mxu1 %vm1731_vm13, %v13434_v12 }
 0x265   :  { %v13448_v48 = vpop.f32.mrb[20].mxu1  ;;  %11470 = vmatprep.mubr.msk.bf16.mxu1 %vm1731_vm13, %v13356_v4  ;;  %v13452_v27 = vpop.f32.mrb[120].mxu0 }
 0x266   :  { %18222 = vst [vmem:[#allocation60_spill] sm:$0xff] %v13448_v48  ;;  %18223 = vst [vmem:[#allocation61_spill] sm:$0xff] %v13452_v27  ;;  %v13454_v35 = vpop.f32.mrb[21].mxu1  ;;  %v13456_v56 = vpop.f32.mrb[121].mxu0 }
 0x267   :  { %18224 = vst [vmem:[#allocation62_spill] sm:$0xff] %v13454_v35  ;;  %18225 = vst [vmem:[#allocation63_spill] sm:$0xff] %v13456_v56  ;;  %v13458_v34 = vpop.f32.mrb[22].mxu1  ;;  %v13460_v33 = vpop.f32.mrb[122].mxu0 }
 0x268   :  { %18226 = vst [vmem:[#allocation64_spill] sm:$0xff] %v13458_v34  ;;  %18227 = vst [vmem:[#allocation65_spill] sm:$0xff] %v13460_v33  ;;  %v13462_v40 = vpop.f32.mrb[23].mxu1  ;;  %v13464_v62 = vpop.f32.mrb[123].mxu0 }
 0x269   :  { %18228 = vst [vmem:[#allocation66_spill] sm:$0xff] %v13462_v40  ;;  %18229 = vst [vmem:[#allocation67_spill] sm:$0xff] %v13464_v62 }
 0x26a   :  { %11719 = vmatmul.mubr.msk.bf16.gmra.mrb[228].mxu0 %vm1731_vm13, %v13394_v8 }
 0x26b   :  { %11722 = vmatprep.mubr.msk.bf16.mxu0 %vm1731_vm13, %v13418_v14 }
 0x26c   :  { %11471 = vmatmul.mubr.msk.bf16.gmra.mrb[128].mxu1 %vm1731_vm13, %v13354_v60 }
 0x26d   :  { %v13472_v27 = vpop.f32.mrb[24].mxu1  ;;  %11474 = vmatprep.mubr.msk.bf16.mxu1 %vm1731_vm13, %v13380_v22  ;;  %v13476_v56 = vpop.f32.mrb[124].mxu0 }
 0x26e   :  { %18230 = vst [vmem:[#allocation68_spill] sm:$0xff] %v13472_v27  ;;  %18231 = vst [vmem:[#allocation69_spill] sm:$0xff] %v13476_v56  ;;  %v13478_v33 = vpop.f32.mrb[25].mxu1  ;;  %v13480_v40 = vpop.f32.mrb[125].mxu0 }
 0x26f   :  { %18232 = vst [vmem:[#allocation70_spill] sm:$0xff] %v13478_v33  ;;  %18233 = vst [vmem:[#allocation71_spill] sm:$0xff] %v13480_v40  ;;  %v13482_v62 = vpop.f32.mrb[26].mxu1  ;;  %v13484_v34 = vpop.f32.mrb[126].mxu0 }
 0x270   :  { %18234 = vst [vmem:[#allocation72_spill] sm:$0xff] %v13482_v62  ;;  %18235 = vst [vmem:[#allocation73_spill] sm:$0xff] %v13484_v34  ;;  %v13486_v35 = vpop.f32.mrb[27].mxu1  ;;  %v13488_v48 = vpop.f32.mrb[127].mxu0 }
 0x271   :  { %18236 = vst [vmem:[#allocation74_spill] sm:$0xff] %v13486_v35  ;;  %18237 = vst [vmem:[#allocation75_spill] sm:$0xff] %v13488_v48 }
 0x272   :  { %11723 = vmatmul.mubr.msk.bf16.gmra.mrb[232].mxu0 %vm1731_vm13, %v13414_v19 }
 0x273   :  { %11726 = vmatprep.mubr.msk.bf16.mxu0 %vm1731_vm13, %v13438_v45 }
 0x274   :  { %11475 = vmatmul.mubr.msk.bf16.gmra.mrb[132].mxu1 %vm1731_vm13, %v13378_v13 }
 0x275   :  { %v13496_v56 = vpop.f32.mrb[28].mxu1  ;;  %11480 = vmatprep.mubr.msk.bf16.mxu1 %vm1731_vm13, %v13020_v54  ;;  %v13500_v40 = vpop.f32.mrb[128].mxu0 }
 0x276   :  { %18238 = vst [vmem:[#allocation76_spill] sm:$0xff] %v13496_v56  ;;  %18239 = vst [vmem:[#allocation77_spill] sm:$0xff] %v13500_v40  ;;  %v13502_v34 = vpop.f32.mrb[29].mxu1  ;;  %v13504_v35 = vpop.f32.mrb[129].mxu0 }
 0x277   :  { %18240 = vst [vmem:[#allocation78_spill] sm:$0xff] %v13502_v34  ;;  %18241 = vst [vmem:[#allocation79_spill] sm:$0xff] %v13504_v35  ;;  %v13506_v48 = vpop.f32.mrb[30].mxu1  ;;  %v13508_v62 = vpop.f32.mrb[130].mxu0 }
 0x278   :  { %18242 = vst [vmem:[#allocation80_spill] sm:$0xff] %v13506_v48  ;;  %18243 = vst [vmem:[#allocation81_spill] sm:$0xff] %v13508_v62  ;;  %v13510_v33 = vpop.f32.mrb[31].mxu1  ;;  %v13512_v27 = vpop.f32.mrb[131].mxu0 }
 0x279   :  { %18244 = vst [vmem:[#allocation82_spill] sm:$0xff] %v13510_v33  ;;  %18245 = vst [vmem:[#allocation83_spill] sm:$0xff] %v13512_v27 }
 0x27a   :  { %11727 = vmatmul.mubr.msk.bf16.gmra.mrb[236].mxu0 %vm1731_vm13, %v13434_v12 }
 0x27b   :  { %11730 = vmatprep.mubr.msk.bf16.mxu0 %vm1731_vm13, %v13356_v4 }
 0x27c   :  { %11481 = vmatmul.mubr.msk.bf16.vlgmr.msra.gmra.mrb[136].mxu1 %vm1731_vm13, %v13015_v50 }
 0x27d   :  { %11739 = vmatpush3.bf16.msra.mxu1 %v13264_v43  ;;  %v13521_v35 = vpop.f32.mrb[32].mxu1  ;;  %11484 = vmatprep.mubr.msk.bf16.mxu1 %vm1731_vm13, %v13033_v7  ;;  %v13525_v62 = vpop.f32.mrb[132].mxu0 }
 0x27e   :  { %18246 = vst [vmem:[#allocation84_spill] sm:$0xff] %v13525_v62  ;;  %v13527_v40 = vpop.f32.mrb[33].mxu1  ;;  %v13529_v27 = vpop.f32.mrb[133].mxu0 }
 0x27f   :  { %18247 = vst [vmem:[#allocation85_spill] sm:$0xff] %v13527_v40  ;;  %18248 = vst [vmem:[#allocation86_spill] sm:$0xff] %v13529_v27  ;;  %v13531_v33 = vpop.f32.mrb[34].mxu1  ;;  %v13533_v48 = vpop.f32.mrb[134].mxu0 }
 0x280   :  { %18249 = vst [vmem:[#allocation87_spill] sm:$0xff] %v13531_v33  ;;  %18250 = vst [vmem:[#allocation88_spill] sm:$0xff] %v13533_v48  ;;  %v13535_v34 = vpop.f32.mrb[35].mxu1  ;;  %v13537_v56 = vpop.f32.mrb[135].mxu0 }
 0x281   :  { %18251 = vst [vmem:[#allocation89_spill] sm:$0xff] %v13535_v34  ;;  %18252 = vst [vmem:[#allocation90_spill] sm:$0xff] %v13537_v56 }
 0x282   :  { %11731 = vmatmul.mubr.msk.bf16.gmra.mrb[240].mxu0 %vm1731_vm13, %v13354_v60 }
 0x283   :  { %11734 = vmatprep.mubr.msk.bf16.mxu0 %vm1731_vm13, %v13380_v22 }
 0x284   :  { %11485 = vmatmul.mubr.msk.bf16.gmra.mrb[140].mxu1 %vm1731_vm13, %v13029_v3 }
 0x285   :  { %v13545_v43 = vpop.f32.mrb[36].mxu1  ;;  %11488 = vmatprep.mubr.msk.bf16.mxu1 %vm1731_vm13, %v13049_v25  ;;  %v13549_v27 = vpop.f32.mrb[136].mxu0 }
 0x286   :  { %18253 = vst [vmem:[#allocation91_spill] sm:$0xff] %v13545_v43  ;;  %18254 = vst [vmem:[#allocation92_spill] sm:$0xff] %v13549_v27  ;;  %v13551_v48 = vpop.f32.mrb[37].mxu1  ;;  %v13553_v62 = vpop.f32.mrb[137].mxu0 }
 0x287   :  { %18255 = vst [vmem:[#allocation93_spill] sm:$0xff] %v13551_v48  ;;  %18256 = vst [vmem:[#allocation94_spill] sm:$0xff] %v13553_v62  ;;  %v13555_v56 = vpop.f32.mrb[38].mxu1  ;;  %v13557_v34 = vpop.f32.mrb[138].mxu0 }
 0x288   :  { %18257 = vst [vmem:[#allocation95_spill] sm:$0xff] %v13555_v56  ;;  %18258 = vst [vmem:[#allocation96_spill] sm:$0xff] %v13557_v34  ;;  %v13559_v33 = vpop.f32.mrb[39].mxu1  ;;  %v13561_v40 = vpop.f32.mrb[139].mxu0 }
 0x289   :  { %18259 = vst [vmem:[#allocation97_spill] sm:$0xff] %v13559_v33  ;;  %18260 = vst [vmem:[#allocation98_spill] sm:$0xff] %v13561_v40 }
 0x28a   :  { %11735 = vmatmul.mubr.msk.bf16.gmra.mrb[244].mxu0 %vm1731_vm13, %v13378_v13 }
 0x28b   :  { %11870 = vmatprep.mubr.msk.bf16.mxu0 %vm1731_vm13, %v13020_v54 }
 0x28c   :  { %11489 = vmatmul.mubr.msk.bf16.gmra.mrb[144].mxu1 %vm1731_vm13, %v13045_v21 }
 0x28d   :  { %v13569_v27 = vpop.f32.mrb[40].mxu1  ;;  %11492 = vmatprep.mubr.msk.bf16.mxu1 %vm1731_vm13, %v13068_v41  ;;  %v13573_v62 = vpop.f32.mrb[140].mxu0 }
 0x28e   :  { %18261 = vst [vmem:[#allocation99_spill] sm:$0xff] %v13569_v27  ;;  %18262 = vst [vmem:[#allocation100_spill] sm:$0xff] %v13573_v62  ;;  %v13575_v34 = vpop.f32.mrb[41].mxu1  ;;  %v13577_v33 = vpop.f32.mrb[141].mxu0 }
 0x28f   :  { %18263 = vst [vmem:[#allocation101_spill] sm:$0xff] %v13575_v34  ;;  %18264 = vst [vmem:[#allocation102_spill] sm:$0xff] %v13577_v33  ;;  %v13579_v40 = vpop.f32.mrb[42].mxu1  ;;  %v13581_v56 = vpop.f32.mrb[142].mxu0 }
 0x290   :  { %18265 = vst [vmem:[#allocation103_spill] sm:$0xff] %v13579_v40  ;;  %18266 = vst [vmem:[#allocation104_spill] sm:$0xff] %v13581_v56  ;;  %v13583_v48 = vpop.f32.mrb[43].mxu1  ;;  %v13585_v43 = vpop.f32.mrb[143].mxu0 }
 0x291   :  { %18267 = vst [vmem:[#allocation105_spill] sm:$0xff] %v13583_v48  ;;  %18268 = vst [vmem:[#allocation106_spill] sm:$0xff] %v13585_v43 }
 0x292   :  { %11871 = vmatmul.mubr.msk.bf16.vlgmr.msra.gmra.mrb[248].mxu0 %vm1731_vm13, %v13015_v50 }
 0x293   :  { %11874 = vmatprep.mubr.msk.bf16.mxu0 %vm1731_vm13, %v13033_v7 }
 0x294   :  { %11493 = vmatmul.mubr.msk.bf16.gmra.mrb[148].mxu1 %vm1731_vm13, %v13064_v38 }
 0x295   :  { %v13593_v62 = vpop.f32.mrb[44].mxu1  ;;  %11496 = vmatprep.mubr.msk.bf16.mxu1 %vm1731_vm13, %v13084_v55  ;;  %v13597_v33 = vpop.f32.mrb[144].mxu0 }
 0x296   :  { %18269 = vst [vmem:[#allocation107_spill] sm:$0xff] %v13593_v62  ;;  %18270 = vst [vmem:[#allocation108_spill] sm:$0xff] %v13597_v33  ;;  %v13599_v56 = vpop.f32.mrb[45].mxu1  ;;  %v13601_v48 = vpop.f32.mrb[145].mxu0 }
 0x297   :  { %18271 = vst [vmem:[#allocation109_spill] sm:$0xff] %v13599_v56  ;;  %18272 = vst [vmem:[#allocation110_spill] sm:$0xff] %v13601_v48  ;;  %v13603_v43 = vpop.f32.mrb[46].mxu1  ;;  %v13605_v40 = vpop.f32.mrb[146].mxu0 }
 0x298   :  { %18273 = vst [vmem:[#allocation111_spill] sm:$0xff] %v13603_v43  ;;  %18274 = vst [vmem:[#allocation112_spill] sm:$0xff] %v13605_v40  ;;  %v13607_v34 = vpop.f32.mrb[47].mxu1  ;;  %v13609_v27 = vpop.f32.mrb[147].mxu0 }
 0x299   :  { %18275 = vst [vmem:[#allocation113_spill] sm:$0xff] %v13607_v34  ;;  %18276 = vst [vmem:[#allocation114_spill] sm:$0xff] %v13609_v27 }
 0x29a   :  { %11875 = vmatmul.mubr.msk.bf16.gmra.mrb[252].mxu0 %vm1731_vm13, %v13029_v3 }
 0x29b   :  { %11878 = vmatprep.mubr.msk.bf16.mxu0 %vm1731_vm13, %v13049_v25 }
 0x29c   :  { %11497 = vmatmul.mubr.msk.bf16.gmra.mrb[152].mxu1 %vm1731_vm13, %v13082_v52 }
 0x29d   :  { %v13617_v33 = vpop.f32.mrb[48].mxu1  ;;  %11500 = vmatprep.mubr.msk.bf16.mxu1 %vm1731_vm13, %v13095_v59  ;;  %v13621_v48 = vpop.f32.mrb[148].mxu0 }
 0x29e   :  { %18277 = vst [vmem:[#allocation115_spill] sm:$0xff] %v13617_v33  ;;  %18278 = vst [vmem:[#allocation116_spill] sm:$0xff] %v13621_v48  ;;  %v13623_v40 = vpop.f32.mrb[49].mxu1  ;;  %v13625_v34 = vpop.f32.mrb[149].mxu0 }
 0x29f   :  { %18279 = vst [vmem:[#allocation117_spill] sm:$0xff] %v13623_v40  ;;  %18280 = vst [vmem:[#allocation118_spill] sm:$0xff] %v13625_v34  ;;  %v13627_v27 = vpop.f32.mrb[50].mxu1  ;;  %v13629_v43 = vpop.f32.mrb[150].mxu0 }
 0x2a0   :  { %18281 = vst [vmem:[#allocation119_spill] sm:$0xff] %v13627_v27  ;;  %18282 = vst [vmem:[#allocation120_spill] sm:$0xff] %v13629_v43  ;;  %v13631_v56 = vpop.f32.mrb[51].mxu1  ;;  %v13633_v62 = vpop.f32.mrb[151].mxu0 }
 0x2a1   :  { %18283 = vst [vmem:[#allocation121_spill] sm:$0xff] %v13631_v56  ;;  %18284 = vst [vmem:[#allocation122_spill] sm:$0xff] %v13633_v62 }
 0x2a2   :  { %11879 = vmatmul.mubr.msk.bf16.gmra.mrb[0].mxu0 %vm1731_vm13, %v13045_v21 }
 0x2a3   :  { %11882 = vmatprep.mubr.msk.bf16.mxu0 %vm1731_vm13, %v13068_v41 }
 0x2a4   :  { %11501 = vmatmul.mubr.msk.bf16.gmra.mrb[156].mxu1 %vm1731_vm13, %v13093_v57 }
 0x2a5   :  { %v13641_v48 = vpop.f32.mrb[52].mxu1  ;;  %11504 = vmatprep.mubr.msk.bf16.mxu1 %vm1731_vm13, %v13107_v2  ;;  %v13645_v34 = vpop.f32.mrb[152].mxu0 }
 0x2a6   :  { %18285 = vst [vmem:[#allocation123_spill] sm:$0xff] %v13641_v48  ;;  %18286 = vst [vmem:[#allocation124_spill] sm:$0xff] %v13645_v34  ;;  %v13647_v43 = vpop.f32.mrb[53].mxu1  ;;  %v13649_v56 = vpop.f32.mrb[153].mxu0 }
 0x2a7   :  { %18287 = vst [vmem:[#allocation125_spill] sm:$0xff] %v13647_v43  ;;  %18288 = vst [vmem:[#allocation126_spill] sm:$0xff] %v13649_v56  ;;  %v13651_v62 = vpop.f32.mrb[54].mxu1  ;;  %v13653_v27 = vpop.f32.mrb[154].mxu0 }
 0x2a8   :  { %18289 = vst [vmem:[#allocation127_spill] sm:$0xff] %v13651_v62  ;;  %18290 = vst [vmem:[#allocation128_spill] sm:$0xff] %v13653_v27  ;;  %v13655_v40 = vpop.f32.mrb[55].mxu1  ;;  %v13657_v33 = vpop.f32.mrb[155].mxu0 }
 0x2a9   :  { %18291 = vst [vmem:[#allocation129_spill] sm:$0xff] %v13655_v40  ;;  %18292 = vst [vmem:[#allocation130_spill] sm:$0xff] %v13657_v33 }
 0x2aa   :  { %11883 = vmatmul.mubr.msk.bf16.gmra.mrb[4].mxu0 %vm1731_vm13, %v13064_v38 }
 0x2ab   :  { %11886 = vmatprep.mubr.msk.bf16.mxu0 %vm1731_vm13, %v13084_v55 }
 0x2ac   :  { %11505 = vmatmul.mubr.msk.bf16.gmra.mrb[160].mxu1 %vm1731_vm13, %v13105_v0 }
 0x2ad   :  { %v13665_v34 = vpop.f32.mrb[56].mxu1  ;;  %11508 = vmatprep.mubr.msk.bf16.mxu1 %vm1731_vm13, %v13119_v11  ;;  %v13669_v56 = vpop.f32.mrb[156].mxu0 }
 0x2ae   :  { %18293 = vst [vmem:[#allocation131_spill] sm:$0xff] %v13665_v34  ;;  %18294 = vst [vmem:[#allocation132_spill] sm:$0xff] %v13669_v56  ;;  %v13671_v27 = vpop.f32.mrb[57].mxu1  ;;  %v13673_v40 = vpop.f32.mrb[157].mxu0 }
 0x2af   :  { %18295 = vst [vmem:[#allocation133_spill] sm:$0xff] %v13671_v27  ;;  %18296 = vst [vmem:[#allocation134_spill] sm:$0xff] %v13673_v40  ;;  %v13675_v33 = vpop.f32.mrb[58].mxu1  ;;  %v13677_v62 = vpop.f32.mrb[158].mxu0 }
 0x2b0   :  { %18297 = vst [vmem:[#allocation135_spill] sm:$0xff] %v13675_v33  ;;  %18298 = vst [vmem:[#allocation136_spill] sm:$0xff] %v13677_v62  ;;  %v13679_v43 = vpop.f32.mrb[59].mxu1  ;;  %v13681_v48 = vpop.f32.mrb[159].mxu0 }
 0x2b1   :  { %18299 = vst [vmem:[#allocation137_spill] sm:$0xff] %v13679_v43  ;;  %18300 = vst [vmem:[#allocation138_spill] sm:$0xff] %v13681_v48 }
 0x2b2   :  { %11887 = vmatmul.mubr.msk.bf16.gmra.mrb[8].mxu0 %vm1731_vm13, %v13082_v52 }
 0x2b3   :  { %11890 = vmatprep.mubr.msk.bf16.mxu0 %vm1731_vm13, %v13095_v59 }
 0x2b4   :  { %11509 = vmatmul.mubr.msk.bf16.gmra.mrb[164].mxu1 %vm1731_vm13, %v13117_v9 }
 0x2b5   :  { %v13689_v56 = vpop.f32.mrb[60].mxu1  ;;  %11512 = vmatprep.mubr.msk.bf16.mxu1 %vm1731_vm13, %v13131_v18  ;;  %v13693_v40 = vpop.f32.mrb[160].mxu0 }
 0x2b6   :  { %18301 = vst [vmem:[#allocation139_spill] sm:$0xff] %v13689_v56  ;;  %18302 = vst [vmem:[#allocation140_spill] sm:$0xff] %v13693_v40  ;;  %v13695_v62 = vpop.f32.mrb[61].mxu1  ;;  %v13697_v43 = vpop.f32.mrb[161].mxu0 }
 0x2b7   :  { %18303 = vst [vmem:[#allocation141_spill] sm:$0xff] %v13695_v62  ;;  %18304 = vst [vmem:[#allocation142_spill] sm:$0xff] %v13697_v43  ;;  %v13699_v48 = vpop.f32.mrb[62].mxu1  ;;  %v13701_v33 = vpop.f32.mrb[162].mxu0 }
 0x2b8   :  { %18305 = vst [vmem:[#allocation143_spill] sm:$0xff] %v13699_v48  ;;  %18306 = vst [vmem:[#allocation144_spill] sm:$0xff] %v13701_v33  ;;  %v13703_v27 = vpop.f32.mrb[63].mxu1  ;;  %v13705_v34 = vpop.f32.mrb[163].mxu0 }
 0x2b9   :  { %18307 = vst [vmem:[#allocation145_spill] sm:$0xff] %v13703_v27  ;;  %18308 = vst [vmem:[#allocation146_spill] sm:$0xff] %v13705_v34 }
 0x2ba   :  { %11891 = vmatmul.mubr.msk.bf16.gmra.mrb[12].mxu0 %vm1731_vm13, %v13093_v57 }
 0x2bb   :  { %11894 = vmatprep.mubr.msk.bf16.mxu0 %vm1731_vm13, %v13107_v2 }
 0x2bc   :  { %11513 = vmatmul.mubr.msk.bf16.gmra.mrb[168].mxu1 %vm1731_vm13, %v13129_v16 }
 0x2bd   :  { %v13713_v40 = vpop.f32.mrb[64].mxu1  ;;  %11516 = vmatprep.mubr.msk.bf16.mxu1 %vm1731_vm13, %v13143_v26  ;;  %v13717_v43 = vpop.f32.mrb[164].mxu0 }
 0x2be   :  { %18309 = vst [vmem:[#allocation147_spill] sm:$0xff] %v13713_v40  ;;  %18310 = vst [vmem:[#allocation148_spill] sm:$0xff] %v13717_v43  ;;  %v13719_v33 = vpop.f32.mrb[65].mxu1  ;;  %v13721_v27 = vpop.f32.mrb[165].mxu0 }
 0x2bf   :  { %18311 = vst [vmem:[#allocation149_spill] sm:$0xff] %v13719_v33  ;;  %18312 = vst [vmem:[#allocation150_spill] sm:$0xff] %v13721_v27  ;;  %v13723_v34 = vpop.f32.mrb[66].mxu1  ;;  %v13725_v48 = vpop.f32.mrb[166].mxu0 }
 0x2c0   :  { %18313 = vst [vmem:[#allocation151_spill] sm:$0xff] %v13723_v34  ;;  %18314 = vst [vmem:[#allocation152_spill] sm:$0xff] %v13725_v48  ;;  %v13727_v62 = vpop.f32.mrb[67].mxu1  ;;  %v13729_v56 = vpop.f32.mrb[167].mxu0 }
 0x2c1   :  { %18315 = vst [vmem:[#allocation153_spill] sm:$0xff] %v13727_v62  ;;  %18316 = vst [vmem:[#allocation154_spill] sm:$0xff] %v13729_v56 }
 0x2c2   :  { %11895 = vmatmul.mubr.msk.bf16.gmra.mrb[16].mxu0 %vm1731_vm13, %v13105_v0 }
 0x2c3   :  { %11898 = vmatprep.mubr.msk.bf16.mxu0 %vm1731_vm13, %v13119_v11 }
 0x2c4   :  { %11517 = vmatmul.mubr.msk.bf16.gmra.mrb[172].mxu1 %vm1731_vm13, %v13141_v23 }
 0x2c5   :  { %v13737_v43 = vpop.f32.mrb[68].mxu1  ;;  %11520 = vmatprep.mubr.msk.bf16.mxu1 %vm1731_vm13, %v13155_v32  ;;  %v13741_v27 = vpop.f32.mrb[168].mxu0 }
 0x2c6   :  { %18317 = vst [vmem:[#allocation155_spill] sm:$0xff] %v13737_v43  ;;  %18318 = vst [vmem:[#allocation156_spill] sm:$0xff] %v13741_v27  ;;  %v13743_v48 = vpop.f32.mrb[69].mxu1  ;;  %v13745_v62 = vpop.f32.mrb[169].mxu0 }
 0x2c7   :  { %18319 = vst [vmem:[#allocation157_spill] sm:$0xff] %v13743_v48  ;;  %18320 = vst [vmem:[#allocation158_spill] sm:$0xff] %v13745_v62  ;;  %v13747_v56 = vpop.f32.mrb[70].mxu1  ;;  %v13749_v34 = vpop.f32.mrb[170].mxu0 }
 0x2c8   :  { %18321 = vst [vmem:[#allocation159_spill] sm:$0xff] %v13747_v56  ;;  %18322 = vst [vmem:[#allocation160_spill] sm:$0xff] %v13749_v34  ;;  %v13751_v33 = vpop.f32.mrb[71].mxu1  ;;  %v13753_v40 = vpop.f32.mrb[171].mxu0 }
 0x2c9   :  { %18323 = vst [vmem:[#allocation161_spill] sm:$0xff] %v13751_v33  ;;  %18324 = vst [vmem:[#allocation162_spill] sm:$0xff] %v13753_v40 }
 0x2ca   :  { %11899 = vmatmul.mubr.msk.bf16.gmra.mrb[20].mxu0 %vm1731_vm13, %v13117_v9 }
 0x2cb   :  { %11902 = vmatprep.mubr.msk.bf16.mxu0 %vm1731_vm13, %v13131_v18 }
 0x2cc   :  { %11521 = vmatmul.mubr.msk.bf16.gmra.mrb[176].mxu1 %vm1731_vm13, %v13153_v30 }
 0x2cd   :  { %v13761_v27 = vpop.f32.mrb[72].mxu1  ;;  %11524 = vmatprep.mubr.msk.bf16.mxu1 %vm1731_vm13, %v13167_v39  ;;  %v13765_v62 = vpop.f32.mrb[172].mxu0 }
 0x2ce   :  { %18325 = vst [vmem:[#allocation163_spill] sm:$0xff] %v13761_v27  ;;  %18326 = vst [vmem:[#allocation164_spill] sm:$0xff] %v13765_v62  ;;  %v13767_v34 = vpop.f32.mrb[73].mxu1  ;;  %v13769_v33 = vpop.f32.mrb[173].mxu0 }
 0x2cf   :  { %18327 = vst [vmem:[#allocation165_spill] sm:$0xff] %v13767_v34  ;;  %18328 = vst [vmem:[#allocation166_spill] sm:$0xff] %v13769_v33  ;;  %v13771_v40 = vpop.f32.mrb[74].mxu1  ;;  %v13773_v56 = vpop.f32.mrb[174].mxu0 }
 0x2d0   :  { %18329 = vst [vmem:[#allocation167_spill] sm:$0xff] %v13771_v40  ;;  %18330 = vst [vmem:[#allocation168_spill] sm:$0xff] %v13773_v56  ;;  %v13775_v48 = vpop.f32.mrb[75].mxu1  ;;  %v13777_v43 = vpop.f32.mrb[175].mxu0 }
 0x2d1   :  { %18331 = vst [vmem:[#allocation169_spill] sm:$0xff] %v13775_v48  ;;  %18332 = vst [vmem:[#allocation170_spill] sm:$0xff] %v13777_v43 }
 0x2d2   :  { %11903 = vmatmul.mubr.msk.bf16.gmra.mrb[24].mxu0 %vm1731_vm13, %v13129_v16 }
 0x2d3   :  { %11906 = vmatprep.mubr.msk.bf16.mxu0 %vm1731_vm13, %v13143_v26 }
 0x2d4   :  { %11525 = vmatmul.mubr.msk.bf16.gmra.mrb[180].mxu1 %vm1731_vm13, %v13165_v37 }
 0x2d5   :  { %v13785_v62 = vpop.f32.mrb[76].mxu1  ;;  %11528 = vmatprep.mubr.msk.bf16.mxu1 %vm1731_vm13, %v13179_v46  ;;  %v13789_v33 = vpop.f32.mrb[176].mxu0 }
 0x2d6   :  { %18333 = vst [vmem:[#allocation171_spill] sm:$0xff] %v13785_v62  ;;  %18334 = vst [vmem:[#allocation172_spill] sm:$0xff] %v13789_v33  ;;  %v13791_v56 = vpop.f32.mrb[77].mxu1  ;;  %v13793_v48 = vpop.f32.mrb[177].mxu0 }
 0x2d7   :  { %18335 = vst [vmem:[#allocation173_spill] sm:$0xff] %v13791_v56  ;;  %18336 = vst [vmem:[#allocation174_spill] sm:$0xff] %v13793_v48  ;;  %v13795_v43 = vpop.f32.mrb[78].mxu1  ;;  %v13797_v40 = vpop.f32.mrb[178].mxu0 }
 0x2d8   :  { %18337 = vst [vmem:[#allocation175_spill] sm:$0xff] %v13795_v43  ;;  %18338 = vst [vmem:[#allocation176_spill] sm:$0xff] %v13797_v40  ;;  %v13799_v34 = vpop.f32.mrb[79].mxu1  ;;  %v13801_v27 = vpop.f32.mrb[179].mxu0 }
 0x2d9   :  { %18339 = vst [vmem:[#allocation177_spill] sm:$0xff] %v13799_v34  ;;  %18340 = vst [vmem:[#allocation178_spill] sm:$0xff] %v13801_v27 }
 0x2da   :  { %11907 = vmatmul.mubr.msk.bf16.gmra.mrb[28].mxu0 %vm1731_vm13, %v13141_v23 }
 0x2db   :  { %11910 = vmatprep.mubr.msk.bf16.mxu0 %vm1731_vm13, %v13155_v32 }
 0x2dc   :  { %11529 = vmatmul.mubr.msk.bf16.gmra.mrb[184].mxu1 %vm1731_vm13, %v13177_v44 }
 0x2dd   :  { %v13809_v33 = vpop.f32.mrb[80].mxu1  ;;  %11532 = vmatprep.mubr.msk.bf16.mxu1 %vm1731_vm13, %v13191_v53  ;;  %v13813_v48 = vpop.f32.mrb[180].mxu0 }
 0x2de   :  { %18341 = vst [vmem:[#allocation179_spill] sm:$0xff] %v13809_v33  ;;  %18342 = vst [vmem:[#allocation180_spill] sm:$0xff] %v13813_v48  ;;  %v13815_v40 = vpop.f32.mrb[81].mxu1  ;;  %v13817_v34 = vpop.f32.mrb[181].mxu0 }
 0x2df   :  { %18343 = vst [vmem:[#allocation181_spill] sm:$0xff] %v13815_v40  ;;  %18344 = vst [vmem:[#allocation182_spill] sm:$0xff] %v13817_v34  ;;  %v13819_v27 = vpop.f32.mrb[82].mxu1  ;;  %v13821_v43 = vpop.f32.mrb[182].mxu0 }
 0x2e0   :  { %18345 = vst [vmem:[#allocation183_spill] sm:$0xff] %v13819_v27  ;;  %18346 = vst [vmem:[#allocation184_spill] sm:$0xff] %v13821_v43  ;;  %v13823_v56 = vpop.f32.mrb[83].mxu1  ;;  %v13825_v62 = vpop.f32.mrb[183].mxu0 }
 0x2e1   :  { %18347 = vst [vmem:[#allocation185_spill] sm:$0xff] %v13823_v56  ;;  %18348 = vst [vmem:[#allocation186_spill] sm:$0xff] %v13825_v62 }
 0x2e2   :  { %11911 = vmatmul.mubr.msk.bf16.gmra.mrb[32].mxu0 %vm1731_vm13, %v13153_v30 }
 0x2e3   :  { %11914 = vmatprep.mubr.msk.bf16.mxu0 %vm1731_vm13, %v13167_v39 }
 0x2e4   :  { %11533 = vmatmul.mubr.msk.bf16.gmra.mrb[188].mxu1 %vm1731_vm13, %v13189_v63 }
 0x2e5   :  { %v13833_v48 = vpop.f32.mrb[84].mxu1  ;;  %11536 = vmatprep.mubr.msk.bf16.mxu1 %vm1731_vm13, %v13203_v61  ;;  %v13837_v34 = vpop.f32.mrb[184].mxu0 }
 0x2e6   :  { %18349 = vst [vmem:[#allocation187_spill] sm:$0xff] %v13833_v48  ;;  %18350 = vst [vmem:[#allocation188_spill] sm:$0xff] %v13837_v34  ;;  %v13839_v43 = vpop.f32.mrb[85].mxu1  ;;  %v13841_v56 = vpop.f32.mrb[185].mxu0 }
 0x2e7   :  { %18351 = vst [vmem:[#allocation189_spill] sm:$0xff] %v13839_v43  ;;  %18352 = vst [vmem:[#allocation190_spill] sm:$0xff] %v13841_v56  ;;  %v13843_v62 = vpop.f32.mrb[86].mxu1  ;;  %v13845_v27 = vpop.f32.mrb[186].mxu0 }
 0x2e8   :  { %18353 = vst [vmem:[#allocation191_spill] sm:$0xff] %v13843_v62  ;;  %18354 = vst [vmem:[#allocation192_spill] sm:$0xff] %v13845_v27  ;;  %v13847_v40 = vpop.f32.mrb[87].mxu1  ;;  %v13849_v33 = vpop.f32.mrb[187].mxu0 }
 0x2e9   :  { %18355 = vst [vmem:[#allocation193_spill] sm:$0xff] %v13847_v40  ;;  %18356 = vst [vmem:[#allocation194_spill] sm:$0xff] %v13849_v33 }
 0x2ea   :  { %11915 = vmatmul.mubr.msk.bf16.gmra.mrb[36].mxu0 %vm1731_vm13, %v13165_v37 }
 0x2eb   :  { %11918 = vmatprep.mubr.msk.bf16.mxu0 %vm1731_vm13, %v13179_v46 }
 0x2ec   :  { %11537 = vmatmul.mubr.msk.bf16.gmra.mrb[192].mxu1 %vm1731_vm13, %v13201_v58 }
 0x2ed   :  { %v13857_v34 = vpop.f32.mrb[88].mxu1  ;;  %11540 = vmatprep.mubr.msk.bf16.mxu1 %vm1731_vm13, %v13215_v10  ;;  %v13861_v56 = vpop.f32.mrb[188].mxu0 }
 0x2ee   :  { %18357 = vst [vmem:[#allocation195_spill] sm:$0xff] %v13857_v34  ;;  %18358 = vst [vmem:[#allocation196_spill] sm:$0xff] %v13861_v56  ;;  %v13863_v27 = vpop.f32.mrb[89].mxu1  ;;  %v13865_v40 = vpop.f32.mrb[189].mxu0 }
 0x2ef   :  { %18359 = vst [vmem:[#allocation197_spill] sm:$0xff] %v13863_v27  ;;  %18360 = vst [vmem:[#allocation198_spill] sm:$0xff] %v13865_v40  ;;  %v13867_v33 = vpop.f32.mrb[90].mxu1  ;;  %v13869_v62 = vpop.f32.mrb[190].mxu0 }
 0x2f0   :  { %18361 = vst [vmem:[#allocation199_spill] sm:$0xff] %v13867_v33  ;;  %18362 = vst [vmem:[#allocation200_spill] sm:$0xff] %v13869_v62  ;;  %v13871_v43 = vpop.f32.mrb[91].mxu1  ;;  %v13873_v48 = vpop.f32.mrb[191].mxu0 }
 0x2f1   :  { %18363 = vst [vmem:[#allocation201_spill] sm:$0xff] %v13871_v43  ;;  %18364 = vst [vmem:[#allocation202_spill] sm:$0xff] %v13873_v48 }
 0x2f2   :  { %11919 = vmatmul.mubr.msk.bf16.gmra.mrb[40].mxu0 %vm1731_vm13, %v13177_v44  ;;  %v18480_v44 = vld [vmem:[#allocation52_spill] sm:$0xff] }
 0x2f3   :  { %11922 = vmatprep.mubr.msk.bf16.mxu0 %vm1731_vm13, %v13191_v53 }
 0x2f4   :  { %11541 = vmatmul.mubr.msk.bf16.gmra.mrb[196].mxu1 %vm1731_vm13, %v13213_v5 }
 0x2f5   :  { %v13881_v56 = vpop.f32.mrb[92].mxu1  ;;  %11544 = vmatprep.mubr.msk.bf16.mxu1 %vm1731_vm13, %v13227_v20  ;;  %v13885_v40 = vpop.f32.mrb[192].mxu0 }
 0x2f6   :  { %18365 = vst [vmem:[#allocation203_spill] sm:$0xff] %v13881_v56  ;;  %18366 = vst [vmem:[#allocation204_spill] sm:$0xff] %v13885_v40  ;;  %v13887_v62 = vpop.f32.mrb[93].mxu1  ;;  %v13889_v43 = vpop.f32.mrb[193].mxu0 }
 0x2f7   :  { %18367 = vst [vmem:[#allocation205_spill] sm:$0xff] %v13887_v62  ;;  %18368 = vst [vmem:[#allocation206_spill] sm:$0xff] %v13889_v43  ;;  %v13891_v48 = vpop.f32.mrb[94].mxu1  ;;  %v13893_v33 = vpop.f32.mrb[194].mxu0 }
 0x2f8   :  { %18369 = vst [vmem:[#allocation207_spill] sm:$0xff] %v13891_v48  ;;  %18370 = vst [vmem:[#allocation208_spill] sm:$0xff] %v13893_v33  ;;  %v13895_v27 = vpop.f32.mrb[95].mxu1  ;;  %v13897_v34 = vpop.f32.mrb[195].mxu0 }
 0x2f9   :  { %18371 = vst [vmem:[#allocation209_spill] sm:$0xff] %v13895_v27  ;;  %18372 = vst [vmem:[#allocation210_spill] sm:$0xff] %v13897_v34 }
 0x2fa   :  { %11923 = vmatmul.mubr.msk.bf16.gmra.mrb[44].mxu0 %vm1731_vm13, %v13189_v63 }
 0x2fb   :  { %11926 = vmatprep.mubr.msk.bf16.mxu0 %vm1731_vm13, %v13203_v61 }
 0x2fc   :  { %11545 = vmatmul.mubr.msk.bf16.gmra.mrb[200].mxu1 %vm1731_vm13, %v13225_v17 }
 0x2fd   :  { %v13905_v40 = vpop.f32.mrb[96].mxu1  ;;  %11548 = vmatprep.mubr.msk.bf16.mxu1 %vm1731_vm13, %v13239_v31  ;;  %v13909_v43 = vpop.f32.mrb[196].mxu0 }
 0x2fe   :  { %18373 = vst [vmem:[#allocation211_spill] sm:$0xff] %v13905_v40  ;;  %18374 = vst [vmem:[#allocation212_spill] sm:$0xff] %v13909_v43  ;;  %v13911_v33 = vpop.f32.mrb[97].mxu1  ;;  %v13913_v27 = vpop.f32.mrb[197].mxu0 }
 0x2ff   :  { %18375 = vst [vmem:[#allocation213_spill] sm:$0xff] %v13911_v33  ;;  %18376 = vst [vmem:[#allocation214_spill] sm:$0xff] %v13913_v27  ;;  %v13915_v34 = vpop.f32.mrb[98].mxu1  ;;  %v13917_v48 = vpop.f32.mrb[198].mxu0 }
 0x300   :  { %18377 = vst [vmem:[#allocation215_spill] sm:$0xff] %v13915_v34  ;;  %18378 = vst [vmem:[#allocation216_spill] sm:$0xff] %v13917_v48  ;;  %v13919_v62 = vpop.f32.mrb[99].mxu1  ;;  %v13921_v56 = vpop.f32.mrb[199].mxu0 }
 0x301   :  { %18379 = vst [vmem:[#allocation217_spill] sm:$0xff] %v13919_v62  ;;  %18380 = vst [vmem:[#allocation218_spill] sm:$0xff] %v13921_v56 }
 0x302   :  { %11927 = vmatmul.mubr.msk.bf16.gmra.mrb[48].mxu0 %vm1731_vm13, %v13201_v58 }
 0x303   :  { %11930 = vmatprep.mubr.msk.bf16.mxu0 %vm1731_vm13, %v13215_v10 }
 0x304   :  { %11549 = vmatmul.mubr.msk.bf16.gmra.mrb[204].mxu1 %vm1731_vm13, %v13237_v28 }
 0x305   :  { %v13929_v43 = vpop.f32.mrb[100].mxu1  ;;  %11552 = vmatprep.mubr.msk.bf16.mxu1 %vm1731_vm13, %v13251_v42  ;;  %v13933_v27 = vpop.f32.mrb[200].mxu0 }
 0x306   :  { %18381 = vst [vmem:[#allocation219_spill] sm:$0xff] %v13929_v43  ;;  %18382 = vst [vmem:[#allocation220_spill] sm:$0xff] %v13933_v27  ;;  %v13935_v48 = vpop.f32.mrb[101].mxu1  ;;  %v13937_v62 = vpop.f32.mrb[201].mxu0 }
 0x307   :  { %18383 = vst [vmem:[#allocation221_spill] sm:$0xff] %v13935_v48  ;;  %18384 = vst [vmem:[#allocation222_spill] sm:$0xff] %v13937_v62  ;;  %v13939_v56 = vpop.f32.mrb[102].mxu1  ;;  %v13941_v34 = vpop.f32.mrb[202].mxu0 }
 0x308   :  { %18385 = vst [vmem:[#allocation223_spill] sm:$0xff] %v13939_v56  ;;  %18386 = vst [vmem:[#allocation224_spill] sm:$0xff] %v13941_v34  ;;  %v13943_v33 = vpop.f32.mrb[103].mxu1  ;;  %v13945_v40 = vpop.f32.mrb[203].mxu0 }
 0x309   :  { %18387 = vst [vmem:[#allocation225_spill] sm:$0xff] %v13943_v33  ;;  %18388 = vst [vmem:[#allocation226_spill] sm:$0xff] %v13945_v40 }
 0x30a   :  { %11931 = vmatmul.mubr.msk.bf16.gmra.mrb[52].mxu0 %vm1731_vm13, %v13213_v5 }
 0x30b   :  { %11934 = vmatprep.mubr.msk.bf16.mxu0 %vm1731_vm13, %v13227_v20 }
 0x30c   :  { %11553 = vmatmul.mubr.msk.bf16.gmra.mrb[208].mxu1 %vm1731_vm13, %v13249_v36 }
 0x30d   :  { %v13953_v27 = vpop.f32.mrb[104].mxu1  ;;  %11556 = vmatprep.mubr.msk.bf16.mxu1 %vm1731_vm13, %v13272_v15  ;;  %v13957_v62 = vpop.f32.mrb[204].mxu0 }
 0x30e   :  { %18389 = vst [vmem:[#allocation227_spill] sm:$0xff] %v13953_v27  ;;  %18390 = vst [vmem:[#allocation228_spill] sm:$0xff] %v13957_v62  ;;  %v13959_v34 = vpop.f32.mrb[105].mxu1  ;;  %v13961_v33 = vpop.f32.mrb[205].mxu0 }
 0x30f   :  { %18391 = vst [vmem:[#allocation229_spill] sm:$0xff] %v13959_v34  ;;  %18392 = vst [vmem:[#allocation230_spill] sm:$0xff] %v13961_v33  ;;  %v13963_v40 = vpop.f32.mrb[106].mxu1  ;;  %v13965_v56 = vpop.f32.mrb[206].mxu0 }
 0x310   :  { %18393 = vst [vmem:[#allocation231_spill] sm:$0xff] %v13963_v40  ;;  %18394 = vst [vmem:[#allocation232_spill] sm:$0xff] %v13965_v56  ;;  %v13967_v48 = vpop.f32.mrb[107].mxu1  ;;  %v13969_v43 = vpop.f32.mrb[207].mxu0 }
 0x311   :  { %18395 = vst [vmem:[#allocation233_spill] sm:$0xff] %v13967_v48  ;;  %18396 = vst [vmem:[#allocation234_spill] sm:$0xff] %v13969_v43 }
 0x312   :  { %11935 = vmatmul.mubr.msk.bf16.gmra.mrb[56].mxu0 %vm1731_vm13, %v13225_v17 }
 0x313   :  { %11938 = vmatprep.mubr.msk.bf16.mxu0 %vm1731_vm13, %v13239_v31 }
 0x314   :  { %11557 = vmatmul.mubr.msk.bf16.gmra.mrb[212].mxu1 %vm1731_vm13, %v13270_v51 }
 0x315   :  { %v13977_v62 = vpop.f32.mrb[108].mxu1  ;;  %11560 = vmatprep.mubr.msk.bf16.mxu1 %vm1731_vm13, %v13284_v6  ;;  %v13981_v33 = vpop.f32.mrb[208].mxu0 }
 0x316   :  { %18397 = vst [vmem:[#allocation235_spill] sm:$0xff] %v13977_v62  ;;  %18398 = vst [vmem:[#allocation236_spill] sm:$0xff] %v13981_v33  ;;  %v13983_v56 = vpop.f32.mrb[109].mxu1  ;;  %v13985_v48 = vpop.f32.mrb[209].mxu0 }
 0x317   :  { %18399 = vst [vmem:[#allocation237_spill] sm:$0xff] %v13983_v56  ;;  %18400 = vst [vmem:[#allocation238_spill] sm:$0xff] %v13985_v48  ;;  %v13987_v43 = vpop.f32.mrb[110].mxu1  ;;  %v13989_v40 = vpop.f32.mrb[210].mxu0  ;;  %v18406_v48 = vld [vmem:[#allocation27_spill] sm:$0xff] }
 0x318   :  { %18401 = vst [vmem:[#allocation239_spill] sm:$0xff] %v13987_v43  ;;  %18402 = vst [vmem:[#allocation240_spill] sm:$0xff] %v13989_v40  ;;  %v13991_v34 = vpop.f32.mrb[111].mxu1  ;;  %v13993_v27 = vpop.f32.mrb[211].mxu0 }
 0x319   :  { %18403 = vst [vmem:[#allocation241_spill] sm:$0xff] %v13991_v34  ;;  %18404 = vst [vmem:[#allocation242_spill] sm:$0xff] %v13993_v27 }
 0x31a   :  { %11939 = vmatmul.mubr.msk.bf16.gmra.mrb[60].mxu0 %vm1731_vm13, %v13237_v28 }
 0x31b   :  { %11942 = vmatprep.mubr.msk.bf16.mxu0 %vm1731_vm13, %v13251_v42 }
 0x31c   :  { %11561 = vmatmul.mubr.msk.bf16.gmra.mrb[216].mxu1 %vm1731_vm13, %v13282_v1 }
 0x31d   :  { %v14001_v33 = vpop.f32.mrb[112].mxu1  ;;  %11564 = vmatprep.mubr.msk.bf16.mxu1 %vm1731_vm13, %v18406_v48  ;;  %v14005_v43 = vpop.f32.mrb[212].mxu0 }
 0x31e   :  { %18405 = vst [vmem:[#allocation243_spill] sm:$0xff] %v14001_v33  ;;  %18407 = vst [vmem:[#allocation244_spill] sm:$0xff] %v14005_v43  ;;  %v14007_v40 = vpop.f32.mrb[113].mxu1  ;;  %v14009_v34 = vpop.f32.mrb[213].mxu0  ;;  %v18414_v33 = vld [vmem:[#allocation26_spill] sm:$0xff]  ;;  %v18415_v43 = vld [vmem:[#allocation29_spill] sm:$0xff] }
 0x31f   :  { %18408 = vst [vmem:[#allocation245_spill] sm:$0xff] %v14007_v40  ;;  %18409 = vst [vmem:[#allocation246_spill] sm:$0xff] %v14009_v34  ;;  %v14011_v27 = vpop.f32.mrb[114].mxu1  ;;  %v14013_v56 = vpop.f32.mrb[214].mxu0 }
 0x320   :  { %18410 = vst [vmem:[#allocation247_spill] sm:$0xff] %v14011_v27  ;;  %18411 = vst [vmem:[#allocation248_spill] sm:$0xff] %v14013_v56  ;;  %v14015_v62 = vpop.f32.mrb[115].mxu1  ;;  %v14017_v42 = vpop.f32.mrb[215].mxu0 }
 0x321   :  { %18412 = vst [vmem:[#allocation249_spill] sm:$0xff] %v14015_v62  ;;  %18413 = vst [vmem:[#allocation250_spill] sm:$0xff] %v14017_v42 }
 0x322   :  { %11943 = vmatmul.mubr.msk.bf16.gmra.mrb[64].mxu0 %vm1731_vm13, %v13249_v36 }
 0x323   :  { %11946 = vmatprep.mubr.msk.bf16.mxu0 %vm1731_vm13, %v13272_v15 }
 0x324   :  { %11565 = vmatmul.mubr.msk.bf16.gmra.mrb[220].mxu1 %vm1731_vm13, %v18414_v33 }
 0x325   :  { %11568 = vmatprep.mubr.msk.bf16.mxu1 %vm1731_vm13, %v18415_v43  ;;  %v14027_v34 = vpop.f32.mrb[216].mxu0 }
 0x326   :  { %18416 = vst [vmem:[#allocation251_spill] sm:$0xff] %v14027_v34  ;;  %v14029_v27 = vpop.f32.mrb[217].mxu0  ;;  %v18424_v34 = vld [vmem:[#allocation28_spill] sm:$0xff] }
 0x327   :  { %18417 = vst [vmem:[#allocation252_spill] sm:$0xff] %v14029_v27  ;;  %v14031_v56 = vpop.f32.mrb[116].mxu1  ;;  %v14033_v62 = vpop.f32.mrb[218].mxu0  ;;  %v18425_v27 = vld [vmem:[#allocation31_spill] sm:$0xff] }
 0x328   :  { %18418 = vst [vmem:[#allocation253_spill] sm:$0xff] %v14031_v56  ;;  %18419 = vst [vmem:[#allocation254_spill] sm:$0xff] %v14033_v62  ;;  %v14035_v42 = vpop.f32.mrb[117].mxu1  ;;  %v14037_v40 = vpop.f32.mrb[219].mxu0 }
 0x329   :  { %18420 = vst [vmem:[#allocation255_spill] sm:$0xff] %v14035_v42  ;;  %18421 = vst [vmem:[#allocation256_spill] sm:$0xff] %v14037_v40  ;;  %v14039_v36 = vpop.f32.mrb[118].mxu1 }
 0x32a   :  { %18422 = vst [vmem:[#allocation257_spill] sm:$0xff] %v14039_v36  ;;  %v14041_v15 = vpop.f32.mrb[119].mxu1  ;;  %11947 = vmatmul.mubr.msk.bf16.gmra.mrb[68].mxu0 %vm1731_vm13, %v13270_v51 }
 0x32b   :  { %18423 = vst [vmem:[#allocation258_spill] sm:$0xff] %v14041_v15  ;;  %11950 = vmatprep.mubr.msk.bf16.mxu0 %vm1731_vm13, %v13284_v6 }
 0x32c   :  { %11569 = vmatmul.mubr.msk.bf16.gmra.mrb[224].mxu1 %vm1731_vm13, %v18424_v34 }
 0x32d   :  { %11572 = vmatprep.mubr.msk.bf16.mxu1 %vm1731_vm13, %v18425_v27  ;;  %v14051_v62 = vpop.f32.mrb[220].mxu0 }
 0x32e   :  { %18426 = vst [vmem:[#allocation259_spill] sm:$0xff] %v14051_v62  ;;  %v14053_v42 = vpop.f32.mrb[221].mxu0 }
 0x32f   :  { %18427 = vst [vmem:[#allocation260_spill] sm:$0xff] %v14053_v42  ;;  %v14055_v40 = vpop.f32.mrb[120].mxu1  ;;  %v14057_v36 = vpop.f32.mrb[222].mxu0  ;;  %v18434_v42 = vld [vmem:[#allocation33_spill] sm:$0xff] }
 0x330   :  { %18428 = vst [vmem:[#allocation261_spill] sm:$0xff] %v14055_v40  ;;  %18429 = vst [vmem:[#allocation262_spill] sm:$0xff] %v14057_v36  ;;  %v14059_v15 = vpop.f32.mrb[121].mxu1  ;;  %v14061_v56 = vpop.f32.mrb[223].mxu0 }
 0x331   :  { %18430 = vst [vmem:[#allocation263_spill] sm:$0xff] %v14059_v15  ;;  %18431 = vst [vmem:[#allocation264_spill] sm:$0xff] %v14061_v56  ;;  %v14063_v51 = vpop.f32.mrb[122].mxu1 }
 0x332   :  { %18432 = vst [vmem:[#allocation265_spill] sm:$0xff] %v14063_v51  ;;  %v14065_v6 = vpop.f32.mrb[123].mxu1  ;;  %11951 = vmatmul.mubr.msk.bf16.gmra.mrb[72].mxu0 %vm1731_vm13, %v13282_v1 }
 0x333   :  { %18433 = vst [vmem:[#allocation266_spill] sm:$0xff] %v14065_v6  ;;  %11954 = vmatprep.mubr.msk.bf16.mxu0 %vm1731_vm13, %v18406_v48 }
 0x334   :  { %11573 = vmatmul.mubr.msk.bf16.gmra.mrb[228].mxu1 %vm1731_vm13, %v13318_v49 }
 0x335   :  { %11576 = vmatprep.mubr.msk.bf16.mxu1 %vm1731_vm13, %v18434_v42  ;;  %v14075_v36 = vpop.f32.mrb[224].mxu0 }
 0x336   :  { %18435 = vst [vmem:[#allocation267_spill] sm:$0xff] %v14075_v36  ;;  %v14077_v62 = vpop.f32.mrb[225].mxu0  ;;  %v18443_v36 = vld [vmem:[#allocation32_spill] sm:$0xff] }
 0x337   :  { %18436 = vst [vmem:[#allocation268_spill] sm:$0xff] %v14077_v62  ;;  %v14079_v56 = vpop.f32.mrb[124].mxu1  ;;  %v14081_v51 = vpop.f32.mrb[226].mxu0  ;;  %v18444_v62 = vld [vmem:[#allocation35_spill] sm:$0xff] }
 0x338   :  { %18437 = vst [vmem:[#allocation269_spill] sm:$0xff] %v14079_v56  ;;  %18438 = vst [vmem:[#allocation270_spill] sm:$0xff] %v14081_v51  ;;  %v14083_v6 = vpop.f32.mrb[125].mxu1  ;;  %v14085_v15 = vpop.f32.mrb[227].mxu0 }
 0x339   :  { %18439 = vst [vmem:[#allocation271_spill] sm:$0xff] %v14083_v6  ;;  %18440 = vst [vmem:[#allocation272_spill] sm:$0xff] %v14085_v15  ;;  %v14087_v40 = vpop.f32.mrb[126].mxu1 }
 0x33a   :  { %18441 = vst [vmem:[#allocation273_spill] sm:$0xff] %v14087_v40  ;;  %v14089_v48 = vpop.f32.mrb[127].mxu1  ;;  %11955 = vmatmul.mubr.msk.bf16.gmra.mrb[76].mxu0 %vm1731_vm13, %v18414_v33 }
 0x33b   :  { %18442 = vst [vmem:[#allocation274_spill] sm:$0xff] %v14089_v48  ;;  %11958 = vmatprep.mubr.msk.bf16.mxu0 %vm1731_vm13, %v18415_v43 }
 0x33c   :  { %11577 = vmatmul.mubr.msk.bf16.gmra.mrb[232].mxu1 %vm1731_vm13, %v18443_v36 }
 0x33d   :  { %11580 = vmatprep.mubr.msk.bf16.mxu1 %vm1731_vm13, %v18444_v62  ;;  %v14099_v51 = vpop.f32.mrb[228].mxu0 }
 0x33e   :  { %18445 = vst [vmem:[#allocation275_spill] sm:$0xff] %v14099_v51  ;;  %v14101_v6 = vpop.f32.mrb[229].mxu0  ;;  %v18453_v51 = vld [vmem:[#allocation34_spill] sm:$0xff] }
 0x33f   :  { %18446 = vst [vmem:[#allocation276_spill] sm:$0xff] %v14101_v6  ;;  %v14103_v15 = vpop.f32.mrb[128].mxu1  ;;  %v14105_v40 = vpop.f32.mrb[230].mxu0 }
 0x340   :  { %18447 = vst [vmem:[#allocation277_spill] sm:$0xff] %v14103_v15  ;;  %18448 = vst [vmem:[#allocation278_spill] sm:$0xff] %v14105_v40  ;;  %v14107_v48 = vpop.f32.mrb[129].mxu1  ;;  %v14109_v56 = vpop.f32.mrb[231].mxu0 }
 0x341   :  { %18449 = vst [vmem:[#allocation279_spill] sm:$0xff] %v14107_v48  ;;  %18450 = vst [vmem:[#allocation280_spill] sm:$0xff] %v14109_v56  ;;  %v14111_v33 = vpop.f32.mrb[130].mxu1 }
 0x342   :  { %18451 = vst [vmem:[#allocation281_spill] sm:$0xff] %v14111_v33  ;;  %v14113_v43 = vpop.f32.mrb[131].mxu1  ;;  %11959 = vmatmul.mubr.msk.bf16.gmra.mrb[80].mxu0 %vm1731_vm13, %v18424_v34 }
 0x343   :  { %18452 = vst [vmem:[#allocation282_spill] sm:$0xff] %v14113_v43  ;;  %11962 = vmatprep.mubr.msk.bf16.mxu0 %vm1731_vm13, %v18425_v27 }
 0x344   :  { %11581 = vmatmul.mubr.msk.bf16.gmra.mrb[236].mxu1 %vm1731_vm13, %v18453_v51 }
 0x345   :  { %11584 = vmatprep.mubr.msk.bf16.mxu1 %vm1731_vm13, %v13368_v47  ;;  %v14123_v40 = vpop.f32.mrb[232].mxu0 }
 0x346   :  { %18454 = vst [vmem:[#allocation283_spill] sm:$0xff] %v14123_v40  ;;  %v14125_v6 = vpop.f32.mrb[233].mxu0 }
 0x347   :  { %18455 = vst [vmem:[#allocation284_spill] sm:$0xff] %v14125_v6  ;;  %v14127_v56 = vpop.f32.mrb[132].mxu1  ;;  %v14129_v33 = vpop.f32.mrb[234].mxu0 }
 0x348   :  { %18456 = vst [vmem:[#allocation285_spill] sm:$0xff] %v14127_v56  ;;  %18457 = vst [vmem:[#allocation286_spill] sm:$0xff] %v14129_v33  ;;  %v14131_v43 = vpop.f32.mrb[133].mxu1  ;;  %v14133_v48 = vpop.f32.mrb[235].mxu0 }
 0x349   :  { %18458 = vst [vmem:[#allocation287_spill] sm:$0xff] %v14131_v43  ;;  %18459 = vst [vmem:[#allocation288_spill] sm:$0xff] %v14133_v48  ;;  %v14135_v15 = vpop.f32.mrb[134].mxu1 }
 0x34a   :  { %18460 = vst [vmem:[#allocation289_spill] sm:$0xff] %v14135_v15  ;;  %v14137_v27 = vpop.f32.mrb[135].mxu1  ;;  %11963 = vmatmul.mubr.msk.bf16.gmra.mrb[84].mxu0 %vm1731_vm13, %v13318_v49  ;;  %v18466_v49 = vld [vmem:[#allocation42_spill] sm:$0xff] }
 0x34b   :  { %18461 = vst [vmem:[#allocation290_spill] sm:$0xff] %v14137_v27  ;;  %11966 = vmatprep.mubr.msk.bf16.mxu0 %vm1731_vm13, %v18434_v42 }
 0x34c   :  { %11585 = vmatmul.mubr.msk.bf16.gmra.mrb[240].mxu1 %vm1731_vm13, %v13366_v29 }
 0x34d   :  { %11588 = vmatprep.mubr.msk.bf16.mxu1 %vm1731_vm13, %v13398_v24  ;;  %v14147_v33 = vpop.f32.mrb[236].mxu0 }
 0x34e   :  { %18462 = vst [vmem:[#allocation291_spill] sm:$0xff] %v14147_v33  ;;  %v14149_v6 = vpop.f32.mrb[237].mxu0  ;;  %v18467_v33 = vld [vmem:[#allocation43_spill] sm:$0xff] }
 0x34f   :  { %18463 = vst [vmem:[#allocation292_spill] sm:$0xff] %v14149_v6  ;;  %v11482_v48 = vpop.f32.mrb[136].mxu1  ;;  %v14151_v40 = vpop.f32.mrb[238].mxu0 }
 0x350   :  { %18464 = vst [vmem:[#allocation293_spill] sm:$0xff] %v14151_v40  ;;  %v3152_v27 = vrot.slane %v11482_v48, 1  ;;  %v2511_v15 = vpop.f32.mrb[137].mxu1  ;;  %v14153_v43 = vpop.f32.mrb[239].mxu0  ;;  %v18468_v40 = vld [vmem:[#allocation44_spill] sm:$0xff] }
 0x351   :  { %18465 = vst [vmem:[#allocation294_spill] sm:$0xff] %v14153_v43  ;;  %v3150_v56 = vrot.slane %v2511_v15, 1  ;;  %v11483_v42 = vpop.f32.mrb[138].mxu1 }
 0x352   :  { %v3408_v34 = vadd.f32 %v18466_v49, %v3152_v27  ;;  %v3153_v1 = vrot.slane %v11483_v42, 1  ;;  %v2514_v28 = vpop.f32.mrb[139].mxu1  ;;  %11967 = vmatmul.mubr.msk.bf16.gmra.mrb[88].mxu0 %vm1731_vm13, %v18443_v36  ;;  %v18469_v49 = vld [vmem:[#allocation46_spill] sm:$0xff] }
 0x353   :  { %v3406_v31 = vadd.f32 %v3150_v56, %v18467_v33  ;;  %v3151_v6 = vrot.slane %v2514_v28, 1  ;;  %11970 = vmatprep.mubr.msk.bf16.mxu0 %vm1731_vm13, %v18444_v62 }
 0x354   :  { %v3549_v48 = vsel %vm3534_vm5, %v3408_v34, -inf  ;;  %v3409_v43 = vadd.f32 %v18468_v40, %v3153_v1  ;;  %11589 = vmatmul.mubr.msk.bf16.gmra.mrb[244].mxu1 %vm1731_vm13, %v13394_v8 }
 0x355   :  { %v3550_v15 = vrot.slane %v3549_v48, 4  ;;  %v3535_v42 = vsel %vm3534_vm5, %v3406_v31, -inf  ;;  %v3407_v27 = vadd.f32 %v3151_v6, %v18469_v49  ;;  %11592 = vmatprep.mubr.msk.bf16.mxu1 %vm1731_vm13, %v13418_v14  ;;  %v14169_v33 = vpop.f32.mrb[240].mxu0 }
 0x356   :  { %18470 = vst [vmem:[#allocation42_spill] sm:$0xff] %v14169_v33  ;;  %v3536_v28 = vrot.slane %v3535_v42, 4  ;;  %v3556_v56 = vsel %vm3534_vm5, %v3409_v43, -inf  ;;  %v14172_v62 = vpop.f32.mrb[241].mxu0 }
 0x357   :  { %18471 = vst [vmem:[#allocation43_spill] sm:$0xff] %v14172_v62  ;;  %v3551_v34 = vmax.f32 %v3549_v48, %v3550_v15  ;;  %v3557_v1 = vrot.slane %v3556_v56, 4  ;;  %v3542_v40 = vsel %vm3534_vm5, %v3407_v27, -inf  ;;  %v11486_v36 = vpop.f32.mrb[140].mxu1  ;;  %v14175_v17 = vpop.f32.mrb[242].mxu0  ;;  %v18474_v62 = vld [vmem:[#allocation48_spill] sm:$0xff] }
 0x358   :  { %18472 = vst [vmem:[#allocation44_spill] sm:$0xff] %v14175_v17  ;;  %v3537_v31 = vmax.f32 %v3535_v42, %v3536_v28  ;;  %v3543_v20 = vrot.slane %v3542_v40, 4  ;;  %v3156_v6 = vrot.slane %v11486_v36, 1  ;;  %v2527_v49 = vpop.f32.mrb[141].mxu1  ;;  %v14177_v5 = vpop.f32.mrb[243].mxu0  ;;  %v18475_v28 = vld [vmem:[#allocation49_spill] sm:$0xff] }
 0x359   :  { %18473 = vst [vmem:[#allocation46_spill] sm:$0xff] %v14177_v5  ;;  %v3552_v10 = vrot.slane %v3551_v34, 2  ;;  %v3558_v33 = vmax.f32 %v3556_v56, %v3557_v1  ;;  %v3154_v58 = vrot.slane %v2527_v49, 1  ;;  %v11487_v61 = vpop.f32.mrb[142].mxu1 }
 0x35a   :  { %v3538_v43 = vrot.slane %v3537_v31, 2  ;;  %v3544_v63 = vmax.f32 %v3542_v40, %v3543_v20  ;;  %v3412_v48 = vadd.f32 %v18474_v62, %v3156_v6  ;;  %v3157_v15 = vrot.slane %v11487_v61, 1  ;;  %v2530_v53 = vpop.f32.mrb[143].mxu1  ;;  %11971 = vmatmul.mubr.msk.bf16.gmra.mrb[92].mxu0 %vm1731_vm13, %v18453_v51  ;;  %v18476_v20 = vld [vmem:[#allocation50_spill] sm:$0xff] }
 0x35b   :  { %v3553_v27 = vmax.f32 %v3551_v34, %v3552_v10  ;;  %v3559_v42 = vrot.slane %v3558_v33, 2  ;;  %v3410_v36 = vadd.f32 %v3154_v58, %v18475_v28  ;;  %v3155_v17 = vrot.slane %v2530_v53, 1  ;;  %11974 = vmatprep.mubr.msk.bf16.mxu0 %vm1731_vm13, %v13368_v47  ;;  %v14197_v58 = vld [vmem:[%s17931_s5] ss:$0 sm:$0xff] }
 0x35c   :  { %v3539_v56 = vmax.f32 %v3537_v31, %v3538_v43  ;;  %v3545_v1 = vrot.slane %v3544_v63, 2  ;;  %v3577_v49 = vsel %vm3534_vm5, %v3412_v48, -inf  ;;  %v3413_v40 = vadd.f32 %v18476_v20, %v3157_v15  ;;  %11593 = vmatmul.mubr.msk.bf16.gmra.mrb[248].mxu1 %vm1731_vm13, %v13414_v19 }
 0x35d   :  { %v3554_v61 = vrot.slane %v3553_v27, 1  ;;  %v3560_v62 = vmax.f32 %v3558_v33, %v3559_v42  ;;  %v3578_v6 = vrot.slane %v3577_v49, 4  ;;  %v3563_v10 = vsel %vm3534_vm5, %v3410_v36, -inf  ;;  %11596 = vmatprep.mubr.msk.bf16.mxu1 %vm1731_vm13, %v13438_v45  ;;  %v14192_v53 = vpop.f32.mrb[244].mxu0 }
 0x35e   :  { %18477 = vst [vmem:[#allocation48_spill] sm:$0xff] %v14192_v53  ;;  %v3540_v34 = vrot.slane %v3539_v56, 1  ;;  %v3546_v31 = vmax.f32 %v3544_v63, %v3545_v1  ;;  %v3564_v43 = vrot.slane %v3563_v10, 4  ;;  %v3584_v48 = vsel %vm3534_vm5, %v3413_v40, -inf  ;;  %v14200_v15 = vpop.f32.mrb[245].mxu0 }
 0x35f   :  { %18478 = vst [vmem:[#allocation49_spill] sm:$0xff] %v14200_v15  ;;  %v3555_v33 = vmax.f32 %v3553_v27, %v3554_v61  ;;  %v3561_v42 = vrot.slane %v3560_v62, 1  ;;  %v3579_v28 = vmax.f32 %v3577_v49, %v3578_v6  ;;  %v3585_v36 = vrot.slane %v3584_v48, 4  ;;  %v11490_v20 = vpop.f32.mrb[144].mxu1  ;;  %v14202_v5 = vpop.f32.mrb[246].mxu0 }
 0x360   :  { %18479 = vst [vmem:[#allocation50_spill] sm:$0xff] %v14202_v5  ;;  %v3541_v53 = vmax.f32 %v3539_v56, %v3540_v34  ;;  %v3547_v47 = vrot.slane %v3546_v31, 1  ;;  %v3565_v51 = vmax.f32 %v3563_v10, %v3564_v43  ;;  %v3411_v46 = vadd.f32 %v3155_v17, %v18480_v44  ;;  %v2543_v37 = vpop.f32.mrb[145].mxu1  ;;  %v14205_v39 = vpop.f32.mrb[247].mxu0 }
 0x361   :  { %18481 = vst [vmem:[#allocation52_spill] sm:$0xff] %v14205_v39  ;;  %v4440_v63 = vadd.f32 %v14197_v58, %v3555_v33  ;;  %v3562_v1 = vmax.f32 %v3560_v62, %v3561_v42  ;;  %v3580_v40 = vrot.slane %v3579_v28, 2  ;;  %v3586_v15 = vmax.f32 %v3584_v48, %v3585_v36  ;;  %v11491_v27 = vpop.f32.mrb[146].mxu1 }
 0x362   :  { %v14209_v49 = vadd.f32 %v14197_v58, %v3541_v53  ;;  %v3548_v61 = vmax.f32 %v3546_v31, %v3547_v47  ;;  %v3566_v6 = vrot.slane %v3565_v51, 2  ;;  %v3570_v56 = vsel %vm3534_vm5, %v3411_v46, -inf  ;;  %v2546_v34 = vpop.f32.mrb[147].mxu1  ;;  %11975 = vmatmul.mubr.msk.bf16.gmra.mrb[96].mxu0 %vm1731_vm13, %v13366_v29 }
 0x363   :  { %v4568_v44 = vmax.f32 %v4440_v63, 0.0  ;;  %v4441_v17 = vadd.f32 %v14197_v58, %v3562_v1  ;;  %v3581_v10 = vmax.f32 %v3579_v28, %v3580_v40  ;;  %v3587_v43 = vrot.slane %v3586_v15, 2  ;;  %11978 = vmatprep.mubr.msk.bf16.mxu0 %vm1731_vm13, %v13398_v24 }
 0x364   :  { %18482 = vst [vmem:[#allocation295_spill] sm:$0xff] %v14209_v49  ;;  %v4439_v62 = vadd.f32 %v14197_v58, %v3548_v61  ;;  %v3567_v53 = vmax.f32 %v3565_v51, %v3566_v6  ;;  %v3571_v48 = vrot.slane %v3570_v56, 4  ;;  %11597 = vmatmul.mubr.msk.bf16.gmra.mrb[252].mxu1 %vm1731_vm13, %v13434_v12  ;;  %v3160_v63 = vrot.slane %v11490_v20, 1 }
 0x365   :  { %v4569_v46 = vmax.f32 %v4441_v17, 0.0  ;;  %v3582_v47 = vrot.slane %v3581_v10, 1  ;;  %v14220_v31 = vmax.f32 %v3586_v15, %v3587_v43  ;;  %11600 = vmatprep.mubr.msk.bf16.mxu1 %vm1731_vm13, %v13356_v4  ;;  %v14224_v33 = vpop.f32.mrb[248].mxu0  ;;  %v14228_v51 = vrot.slane %v4568_v44, 6 }
 0x366   :  { %18484 = vst [vmem:[#allocation297_spill] sm:$0xff] %v14224_v33  ;;  %v4567_v42 = vmax.f32 %v4439_v62, 0.0  ;;  %v3568_v28 = vrot.slane %v3567_v53, 1  ;;  %v3572_v36 = vmax.f32 %v3570_v56, %v3571_v48  ;;  %v14226_v1 = vpop.f32.mrb[249].mxu0  ;;  %v3158_v6 = vrot.slane %v2543_v37, 1  ;;  %v18490_v62 = vld [vmem:[#allocation54_spill] sm:$0xff] }
 0x367   :  { %18483 = vst [vmem:[#allocation296_spill] sm:$0xff] %v14220_v31  ;;  %18485 = vst [vmem:[#allocation298_spill] sm:$0xff] %v14226_v1  ;;  %v14231_v61 = vrot.slane %v4569_v46, 5  ;;  %v11494_v15 = vpop.f32.mrb[148].mxu1  ;;  %v14233_v17 = vpop.f32.mrb[250].mxu0  ;;  %v14235_v43 = vmax.f32 %v3581_v10, %v3582_v47  ;;  %v3416_v24 = vadd.f32 %v18490_v62, %v3160_v63  ;;  %v18492_v48 = vld [vmem:[#allocation55_spill] sm:$0xff] }
 0x368   :  { %18486 = vst [vmem:[#allocation299_spill] sm:$0xff] %v14228_v51  ;;  %18488 = vst [vmem:[#allocation301_spill] sm:$0xff] %v14233_v17  ;;  %v3569_v39 = vmax.f32 %v3567_v53, %v3568_v28  ;;  %v3573_v5 = vrot.slane %v3572_v36, 2  ;;  %v2559_v56 = vpop.f32.mrb[149].mxu1  ;;  %v14238_v20 = vpop.f32.mrb[251].mxu0  ;;  %v3414_v51 = vadd.f32 %v3158_v6, %v18492_v48  ;;  %v3161_v40 = vrot.slane %v11491_v27, 1 }
 0x369   :  { %18487 = vst [vmem:[#allocation300_spill] sm:$0xff] %v14231_v61  ;;  %18489 = vst [vmem:[#allocation302_spill] sm:$0xff] %v14235_v43  ;;  %v3159_v46 = vrot.slane %v2546_v34, 1  ;;  %v11495_v61 = vpop.f32.mrb[150].mxu1  ;;  %v14242_v37 = vrot.slane %v4567_v42, 7  ;;  %v3605_v53 = vsel %vm3534_vm5, %v3416_v24, -inf }
 0x36a   :  { %18491 = vst [vmem:[#allocation54_spill] sm:$0xff] %v14238_v20  ;;  %v14245_v49 = vadd.f32 %v14197_v58, %v3569_v39  ;;  %v14247_v10 = vmax.f32 %v3572_v36, %v3573_v5  ;;  %v2562_v47 = vpop.f32.mrb[151].mxu1  ;;  %11979 = vmatmul.mubr.msk.bf16.gmra.mrb[100].mxu0 %vm1731_vm13, %v13394_v8  ;;  %v3606_v28 = vrot.slane %v3605_v53, 4  ;;  %v3591_v63 = vsel %vm3534_vm5, %v3414_v51, -inf  ;;  %v18495_v6 = vld [vmem:[#allocation56_spill] sm:$0xff]  ;;  %v18496_v34 = vld [vmem:[#allocation58_spill] sm:$0xff] }
 0x36b   :  { %18493 = vst [vmem:[#allocation55_spill] sm:$0xff] %v14242_v37  ;;  %v3417_v27 = vadd.f32 %v18495_v6, %v3161_v40  ;;  %v3415_v62 = vadd.f32 %v3159_v46, %v18496_v34  ;;  %11982 = vmatprep.mubr.msk.bf16.mxu0 %vm1731_vm13, %v13418_v14  ;;  %v3592_v39 = vrot.slane %v3591_v63, 4  ;;  %v3164_v24 = vrot.slane %v11494_v15, 1  ;;  %v18499_v37 = vld [vmem:[#allocation60_spill] sm:$0xff]  ;;  %v18502_v14 = vld [vmem:[#allocation62_spill] sm:$0xff] }
 0x36c   :  { %18494 = vst [vmem:[#allocation303_spill] sm:$0xff] %v14245_v49  ;;  %11601 = vmatmul.mubr.msk.bf16.gmra.mrb[0].mxu1 %vm1731_vm13, %v13354_v60  ;;  %v3607_v48 = vmax.f32 %v3605_v53, %v3606_v28  ;;  %v3162_v28 = vrot.slane %v2559_v56, 1  ;;  %v3165_v1 = vrot.slane %v11495_v61, 1  ;;  %v18510_v23 = vrot.slane %v14247_v10, 1 }
 0x36d   :  { %v3612_v51 = vsel %vm3534_vm5, %v3417_v27, -inf  ;;  %v3598_v40 = vsel %vm3534_vm5, %v3415_v62, -inf  ;;  %11604 = vmatprep.mubr.msk.bf16.mxu1 %vm1731_vm13, %v13380_v22  ;;  %v14266_v46 = vpop.f32.mrb[252].mxu0  ;;  %v3593_v34 = vmax.f32 %v3591_v63, %v3592_v39  ;;  %v3420_v36 = vadd.f32 %v18499_v37, %v3164_v24 }
 0x36e   :  { %18497 = vst [vmem:[#allocation56_spill] sm:$0xff] %v14266_v46  ;;  %v3613_v44 = vrot.slane %v3612_v51, 4  ;;  %v3599_v15 = vrot.slane %v3598_v40, 4  ;;  %v14269_v42 = vpop.f32.mrb[253].mxu0  ;;  %v3608_v5 = vrot.slane %v3607_v48, 2  ;;  %v3418_v37 = vadd.f32 %v3162_v28, %v18502_v14 }
 0x36f   :  { %18498 = vst [vmem:[#allocation58_spill] sm:$0xff] %v14269_v42  ;;  %v14273_v27 = vpop.f32.mrb[152].mxu1  ;;  %v14275_v62 = vpop.f32.mrb[254].mxu0  ;;  %v3594_v49 = vrot.slane %v3593_v34, 2  ;;  %v3633_v33 = vsel %vm3534_vm5, %v3420_v36, -inf  ;;  %v3163_v24 = vrot.slane %v2562_v47, 1  ;;  %v14321_v26 = vmax.f32 %v14247_v10, %v18510_v23 }
 0x370   :  { %18500 = vst [vmem:[#allocation60_spill] sm:$0xff] %v14275_v62  ;;  %v3614_v43 = vmax.f32 %v3612_v51, %v3613_v44  ;;  %v3600_v31 = vmax.f32 %v3598_v40, %v3599_v15  ;;  %v14277_v6 = vpop.f32.mrb[153].mxu1  ;;  %v14279_v63 = vpop.f32.mrb[255].mxu0  ;;  %v3609_v39 = vmax.f32 %v3607_v48, %v3608_v5  ;;  %v3634_v29 = vrot.slane %v3633_v33, 4  ;;  %v18503_v5 = vld [vmem:[#allocation64_spill] sm:$0xff]  ;;  %v18504_v36 = vld [vmem:[#allocation66_spill] sm:$0xff] }
 0x371   :  { %18501 = vst [vmem:[#allocation304_spill] sm:$0xff] %v14279_v63  ;;  %v14283_v53 = vpop.f32.mrb[154].mxu1  ;;  %v3595_v56 = vmax.f32 %v3593_v34, %v3594_v49  ;;  %v3619_v44 = vsel %vm3534_vm5, %v3418_v37, -inf  ;;  %v3421_v48 = vadd.f32 %v18503_v5, %v3165_v1  ;;  %v3419_v51 = vadd.f32 %v3163_v24, %v18504_v36  ;;  %18511 = vst [vmem:[#allocation307_spill] sm:$0xff] %v14321_v26  ;;  %v18531_v26 = vld [vmem:[#allocation78_spill] sm:$0xff] }
 0x372   :  { %v3615_v17 = vrot.slane %v3614_v43, 2  ;;  %v3601_v8 = vrot.slane %v3600_v31, 2  ;;  %v14285_v30 = vpop.f32.mrb[155].mxu1  ;;  %11983 = vmatmul.mubr.msk.bf16.gmra.mrb[104].mxu0 %vm1731_vm13, %v13414_v19  ;;  %v3610_v61 = vrot.slane %v3609_v39, 1  ;;  %v3635_v40 = vmax.f32 %v3633_v33, %v3634_v29  ;;  %v18534_v42 = vld [vmem:[#allocation82_spill] sm:$0xff] }
 0x373   :  { %11986 = vmatprep.mubr.msk.bf16.mxu0 %vm1731_vm13, %v13438_v45  ;;  %v3596_v14 = vrot.slane %v3595_v56, 1  ;;  %v3620_v15 = vrot.slane %v3619_v44, 4  ;;  %v3640_v28 = vsel %vm3534_vm5, %v3421_v48, -inf  ;;  %v3626_v37 = vsel %vm3534_vm5, %v3419_v51, -inf }
 0x374   :  { %v3616_v49 = vmax.f32 %v3614_v43, %v3615_v17  ;;  %v3602_v47 = vmax.f32 %v3600_v31, %v3601_v8  ;;  %11605 = vmatmul.mubr.msk.bf16.gmra.mrb[4].mxu1 %vm1731_vm13, %v13378_v13  ;;  %v3611_v34 = vmax.f32 %v3609_v39, %v3610_v61  ;;  %v3636_v17 = vrot.slane %v3635_v40, 2 }
 0x375   :  { %11740 = vmatprep.mubr.msk.bf16.mxu1 %vm1731_vm13, %v13020_v54  ;;  %v14300_v1 = vpop.f32.mrb[0].mxu0  ;;  %v3597_v24 = vmax.f32 %v3595_v56, %v3596_v14  ;;  %v3621_v31 = vmax.f32 %v3619_v44, %v3620_v15  ;;  %v3641_v33 = vrot.slane %v3640_v28, 4  ;;  %v3627_v43 = vrot.slane %v3626_v37, 4 }
 0x376   :  { %18505 = vst [vmem:[#allocation62_spill] sm:$0xff] %v14300_v1  ;;  %v3617_v5 = vrot.slane %v3616_v49, 1  ;;  %v3603_v36 = vrot.slane %v3602_v47, 1  ;;  %v14302_v8 = vpop.f32.mrb[1].mxu0  ;;  %v4448_v29 = vadd.f32 %v14197_v58, %v3611_v34  ;;  %v3637_v56 = vmax.f32 %v3635_v40, %v3636_v17 }
 0x377   :  { %18506 = vst [vmem:[#allocation64_spill] sm:$0xff] %v14302_v8  ;;  %v14305_v39 = vpop.f32.mrb[156].mxu1  ;;  %v14307_v61 = vpop.f32.mrb[2].mxu0  ;;  %v14310_v48 = vadd.f32 %v14197_v58, %v3597_v24  ;;  %v3622_v32 = vrot.slane %v3621_v31, 2  ;;  %v3642_v34 = vmax.f32 %v3640_v28, %v3641_v33  ;;  %v3628_v44 = vmax.f32 %v3626_v37, %v3627_v43 }
 0x378   :  { %18507 = vst [vmem:[#allocation66_spill] sm:$0xff] %v14307_v61  ;;  %v3618_v54 = vmax.f32 %v3616_v49, %v3617_v5  ;;  %v3604_v51 = vmax.f32 %v3602_v47, %v3603_v36  ;;  %v14312_v14 = vpop.f32.mrb[157].mxu1  ;;  %v14314_v45 = vpop.f32.mrb[3].mxu0  ;;  %v4576_v19 = vmax.f32 %v4448_v29, 0.0  ;;  %v3638_v47 = vrot.slane %v3637_v56, 1 }
 0x379   :  { %18508 = vst [vmem:[#allocation305_spill] sm:$0xff] %v14310_v48  ;;  %18509 = vst [vmem:[#allocation306_spill] sm:$0xff] %v14314_v45  ;;  %v14316_v15 = vpop.f32.mrb[158].mxu1  ;;  %v3623_v5 = vmax.f32 %v3621_v31, %v3622_v32  ;;  %v3643_v37 = vrot.slane %v3642_v34, 2  ;;  %v3629_v36 = vrot.slane %v3628_v44, 2 }
 0x37a   :  { %v4449_v24 = vadd.f32 %v14197_v58, %v3618_v54  ;;  %v4447_v49 = vadd.f32 %v14197_v58, %v3604_v51  ;;  %v14325_v40 = vpop.f32.mrb[159].mxu1  ;;  %11987 = vmatmul.mubr.msk.bf16.gmra.mrb[108].mxu0 %vm1731_vm13, %v13434_v12  ;;  %v14332_v23 = vrot.slane %v4576_v19, 6  ;;  %v14337_v33 = vmax.f32 %v3637_v56, %v3638_v47 }
 0x37b   :  { %11990 = vmatprep.mubr.msk.bf16.mxu0 %vm1731_vm13, %v13356_v4  ;;  %v3624_v43 = vrot.slane %v3623_v5, 1  ;;  %v14339_v32 = vmax.f32 %v3642_v34, %v3643_v37  ;;  %v3630_v31 = vmax.f32 %v3628_v44, %v3629_v36  ;;  %v3166_v44 = vrot.slane %v14277_v6, 1  ;;  %v18520_v36 = vld [vmem:[#allocation68_spill] sm:$0xff] }
 0x37c   :  { %18512 = vst [vmem:[#allocation308_spill] sm:$0xff] %v14332_v23  ;;  %v4577_v17 = vmax.f32 %v4449_v24, 0.0  ;;  %v4575_v29 = vmax.f32 %v4447_v49, 0.0  ;;  %11741 = vmatmul.mubr.msk.bf16.vlgmr.msra.gmra.mrb[8].mxu1 %vm1731_vm13, %v13015_v50  ;;  %18513 = vst [vmem:[#allocation309_spill] sm:$0xff] %v14337_v33  ;;  %v3168_v49 = vrot.slane %v14273_v27, 1  ;;  %v3169_v24 = vrot.slane %v14283_v53, 1 }
 0x37d   :  { %18514 = vst [vmem:[#allocation310_spill] sm:$0xff] %v14339_v32  ;;  %11744 = vmatprep.mubr.msk.bf16.mxu1 %vm1731_vm13, %v13033_v7  ;;  %v14343_v54 = vpop.f32.mrb[4].mxu0  ;;  %v3625_v34 = vmax.f32 %v3623_v5, %v3624_v43  ;;  %v3631_v47 = vrot.slane %v3630_v31, 1  ;;  %v3167_v27 = vrot.slane %v14285_v30, 1  ;;  %v18523_v43 = vld [vmem:[#allocation70_spill] sm:$0xff]  ;;  %v18525_v30 = vld [vmem:[#allocation72_spill] sm:$0xff] }
 0x37e   :  { %18515 = vst [vmem:[#allocation311_spill] sm:$0xff] %v14343_v54  ;;  %v14345_v19 = vrot.slane %v4577_v17, 5  ;;  %v14350_v50 = vpop.f32.mrb[5].mxu0  ;;  %v14352_v56 = vrot.slane %v4575_v29, 7  ;;  %v3424_v17 = vadd.f32 %v18520_v36, %v3168_v49  ;;  %v3422_v28 = vadd.f32 %v3166_v44, %v18523_v43  ;;  %v18526_v23 = vld [vmem:[#allocation74_spill] sm:$0xff] }
 0x37f   :  { %18517 = vst [vmem:[#allocation313_spill] sm:$0xff] %v14350_v50  ;;  %v14355_v37 = vpop.f32.mrb[160].mxu1  ;;  %v14357_v7 = vpop.f32.mrb[6].mxu0  ;;  %v14368_v5 = vadd.f32 %v14197_v58, %v3625_v34  ;;  %v14375_v36 = vmax.f32 %v3630_v31, %v3631_v47  ;;  %v3425_v10 = vadd.f32 %v18525_v30, %v3169_v24  ;;  %v3172_v6 = vrot.slane %v14305_v39, 1  ;;  %v18527_v30 = vld [vmem:[#allocation76_spill] sm:$0xff] }
 0x380   :  { %18516 = vst [vmem:[#allocation312_spill] sm:$0xff] %v14345_v19  ;;  %18518 = vst [vmem:[#allocation314_spill] sm:$0xff] %v14352_v56  ;;  %v14363_v51 = vpop.f32.mrb[161].mxu1  ;;  %v14365_v29 = vpop.f32.mrb[7].mxu0  ;;  %v3661_v53 = vsel %vm3534_vm5, %v3424_v17, -inf  ;;  %v3423_v56 = vadd.f32 %v3167_v27, %v18526_v23  ;;  %v3647_v44 = vsel %vm3534_vm5, %v3422_v28, -inf }
 0x381   :  { %18519 = vst [vmem:[#allocation315_spill] sm:$0xff] %v14357_v7  ;;  %18521 = vst [vmem:[#allocation68_spill] sm:$0xff] %v14365_v29  ;;  %v14373_v49 = vpop.f32.mrb[162].mxu1  ;;  %v3662_v34 = vrot.slane %v3661_v53, 4  ;;  %v3648_v31 = vrot.slane %v3647_v44, 4  ;;  %v3668_v24 = vsel %vm3534_vm5, %v3425_v10, -inf  ;;  %v3428_v43 = vadd.f32 %v18527_v30, %v3172_v6 }
 0x382   :  { %18522 = vst [vmem:[#allocation316_spill] sm:$0xff] %v14368_v5  ;;  %18524 = vst [vmem:[#allocation70_spill] sm:$0xff] %v14375_v36  ;;  %v14380_v48 = vpop.f32.mrb[163].mxu1  ;;  %11991 = vmatmul.mubr.msk.bf16.gmra.mrb[112].mxu0 %vm1731_vm13, %v13354_v60  ;;  %v3654_v23 = vsel %vm3534_vm5, %v3423_v56, -inf  ;;  %v3669_v27 = vrot.slane %v3668_v24, 4  ;;  %v3170_v56 = vrot.slane %v14312_v14, 1 }
 0x383   :  { %11994 = vmatprep.mubr.msk.bf16.mxu0 %vm1731_vm13, %v13380_v22  ;;  %v3663_v17 = vmax.f32 %v3661_v53, %v3662_v34  ;;  %v3655_v28 = vrot.slane %v3654_v23, 4  ;;  %v3649_v10 = vmax.f32 %v3647_v44, %v3648_v31  ;;  %v3173_v47 = vrot.slane %v14316_v15, 1  ;;  %v18532_v44 = vld [vmem:[#allocation80_spill] sm:$0xff]  ;;  %v18561_v7 = vld [vmem:[#allocation97_spill] sm:$0xff] }
 0x384   :  { %11745 = vmatmul.mubr.msk.bf16.gmra.mrb[12].mxu1 %vm1731_vm13, %v13029_v3  ;;  %v3670_v53 = vmax.f32 %v3668_v24, %v3669_v27  ;;  %v3689_v36 = vsel %vm3534_vm5, %v3428_v43, -inf  ;;  %v3426_v19 = vadd.f32 %v3170_v56, %v18531_v26 }
 0x385   :  { %11748 = vmatprep.mubr.msk.bf16.mxu1 %vm1731_vm13, %v13049_v25  ;;  %v14397_v39 = vpop.f32.mrb[8].mxu0  ;;  %v3664_v3 = vrot.slane %v3663_v17, 2  ;;  %v3656_v34 = vmax.f32 %v3654_v23, %v3655_v28  ;;  %v3650_v25 = vrot.slane %v3649_v10, 2  ;;  %v3690_v32 = vrot.slane %v3689_v36, 4 }
 0x386   :  { %18528 = vst [vmem:[#allocation72_spill] sm:$0xff] %v14397_v39  ;;  %v14402_v33 = vpop.f32.mrb[9].mxu0  ;;  %v3429_v31 = vadd.f32 %v18532_v44, %v3173_v47  ;;  %v3671_v8 = vrot.slane %v3670_v53, 2  ;;  %v3171_v23 = vrot.slane %v14325_v40, 1  ;;  %v3675_v1 = vsel %vm3534_vm5, %v3426_v19, -inf }
 0x387   :  { %18529 = vst [vmem:[#allocation74_spill] sm:$0xff] %v14402_v33  ;;  %v14405_v6 = vpop.f32.mrb[164].mxu1  ;;  %v14407_v30 = vpop.f32.mrb[10].mxu0  ;;  %v3665_v5 = vmax.f32 %v3663_v17, %v3664_v3  ;;  %v3657_v24 = vrot.slane %v3656_v34, 2  ;;  %v3651_v27 = vmax.f32 %v3649_v10, %v3650_v25  ;;  %v3691_v28 = vmax.f32 %v3689_v36, %v3690_v32 }
 0x388   :  { %18530 = vst [vmem:[#allocation76_spill] sm:$0xff] %v14407_v30  ;;  %v14411_v14 = vpop.f32.mrb[165].mxu1  ;;  %v14413_v15 = vpop.f32.mrb[11].mxu0  ;;  %v3696_v63 = vsel %vm3534_vm5, %v3429_v31, -inf  ;;  %v3672_v56 = vmax.f32 %v3670_v53, %v3671_v8  ;;  %v3676_v3 = vrot.slane %v3675_v1, 4  ;;  %v3427_v46 = vadd.f32 %v3171_v23, %v18534_v42 }
 0x389   :  { %18533 = vst [vmem:[#allocation78_spill] sm:$0xff] %v14413_v15  ;;  %v14416_v43 = vpop.f32.mrb[166].mxu1  ;;  %v3666_v47 = vrot.slane %v3665_v5, 1  ;;  %v3658_v17 = vmax.f32 %v3656_v34, %v3657_v24  ;;  %v3652_v44 = vrot.slane %v3651_v27, 1  ;;  %v3692_v62 = vrot.slane %v3691_v28, 2 }
 0x38a   :  { %v14420_v26 = vpop.f32.mrb[167].mxu1  ;;  %11995 = vmatmul.mubr.msk.bf16.gmra.mrb[116].mxu0 %vm1731_vm13, %v13378_v13  ;;  %v3697_v40 = vrot.slane %v3696_v63, 4  ;;  %v3673_v19 = vrot.slane %v3672_v56, 1  ;;  %v3677_v10 = vmax.f32 %v3675_v1, %v3676_v3  ;;  %v3682_v31 = vsel %vm3534_vm5, %v3427_v46, -inf }
 0x38b   :  { %v3667_v32 = vmax.f32 %v3665_v5, %v3666_v47  ;;  %v3659_v36 = vrot.slane %v3658_v17, 1  ;;  %v3653_v8 = vmax.f32 %v3651_v27, %v3652_v44  ;;  %v3693_v53 = vmax.f32 %v3691_v28, %v3692_v62 }
 0x38c   :  { %11749 = vmatmul.mubr.msk.bf16.gmra.mrb[16].mxu1 %vm1731_vm13, %v13045_v21  ;;  %v3698_v34 = vmax.f32 %v3696_v63, %v3697_v40  ;;  %v3674_v23 = vmax.f32 %v3672_v56, %v3673_v19  ;;  %v3678_v5 = vrot.slane %v3677_v10, 2  ;;  %v3683_v62 = vrot.slane %v3682_v31, 4 }
 0x38d   :  { %11752 = vmatprep.mubr.msk.bf16.mxu1 %vm1731_vm13, %v13068_v41  ;;  %v14429_v25 = vpop.f32.mrb[12].mxu0  ;;  %v4456_v42 = vadd.f32 %v14197_v58, %v3667_v32  ;;  %v3660_v21 = vmax.f32 %v3658_v17, %v3659_v36  ;;  %v14440_v41 = vadd.f32 %v14197_v58, %v3653_v8  ;;  %v3694_v3 = vrot.slane %v3693_v53, 1 }
 0x38e   :  { %18535 = vst [vmem:[#allocation80_spill] sm:$0xff] %v14429_v25  ;;  %v14432_v24 = vpop.f32.mrb[13].mxu0  ;;  %v3699_v27 = vrot.slane %v3698_v34, 2  ;;  %v4457_v44 = vadd.f32 %v14197_v58, %v3674_v23  ;;  %v3679_v17 = vmax.f32 %v3677_v10, %v3678_v5  ;;  %v3684_v8 = vmax.f32 %v3682_v31, %v3683_v62 }
 0x38f   :  { %18536 = vst [vmem:[#allocation82_spill] sm:$0xff] %v14432_v24  ;;  %v14435_v47 = vpop.f32.mrb[168].mxu1  ;;  %v14437_v1 = vpop.f32.mrb[14].mxu0  ;;  %18538 = vst [vmem:[#allocation318_spill] sm:$0xff] %v14440_v41  ;;  %v4584_v28 = vmax.f32 %v4456_v42, 0.0  ;;  %v4455_v56 = vadd.f32 %v14197_v58, %v3660_v21  ;;  %v14459_v21 = vmax.f32 %v3693_v53, %v3694_v3  ;;  %v3176_v62 = vrot.slane %v14355_v37, 1 }
 0x390   :  { %18537 = vst [vmem:[#allocation317_spill] sm:$0xff] %v14437_v1  ;;  %v14442_v63 = vpop.f32.mrb[169].mxu1  ;;  %v14444_v46 = vpop.f32.mrb[15].mxu0  ;;  %v14452_v36 = vmax.f32 %v3698_v34, %v3699_v27  ;;  %v4585_v22 = vmax.f32 %v4457_v44, 0.0  ;;  %v3680_v60 = vrot.slane %v3679_v17, 1  ;;  %v3685_v5 = vrot.slane %v3684_v8, 2 }
 0x391   :  { %18539 = vst [vmem:[#allocation319_spill] sm:$0xff] %v14444_v46  ;;  %v14448_v40 = vpop.f32.mrb[170].mxu1  ;;  %v4583_v42 = vmax.f32 %v4455_v56, 0.0  ;;  %v14457_v23 = vrot.slane %v4584_v28, 6  ;;  %18542 = vst [vmem:[#allocation322_spill] sm:$0xff] %v14459_v21  ;;  %v3174_v56 = vrot.slane %v14363_v51, 1 }
 0x392   :  { %18540 = vst [vmem:[#allocation320_spill] sm:$0xff] %v14452_v36  ;;  %v14454_v20 = vpop.f32.mrb[171].mxu1  ;;  %v3681_v34 = vmax.f32 %v3679_v17, %v3680_v60  ;;  %v14471_v53 = vrot.slane %v4585_v22, 5  ;;  %v3686_v44 = vmax.f32 %v3684_v8, %v3685_v5  ;;  %v3432_v17 = vadd.f32 %v13521_v35, %v3176_v62  ;;  %v18549_v5 = vld [vmem:[#allocation85_spill] sm:$0xff] }
 0x393   :  { %18541 = vst [vmem:[#allocation321_spill] sm:$0xff] %v14457_v23  ;;  %v14473_v3 = vrot.slane %v4583_v42, 7  ;;  %v3177_v37 = vrot.slane %v14373_v49, 1  ;;  %v3430_v51 = vadd.f32 %v3174_v56, %v18549_v5  ;;  %v18551_v49 = vld [vmem:[#allocation87_spill] sm:$0xff]  ;;  %v3180_v5 = vrot.slane %v14405_v6, 1  ;;  %v18589_v24 = vld [vmem:[#allocation113_spill] sm:$0xff] }
 0x394   :  { %11753 = vmatmul.mubr.msk.bf16.gmra.mrb[20].mxu1 %vm1731_vm13, %v13064_v38  ;;  %18544 = vst [vmem:[#allocation324_spill] sm:$0xff] %v14471_v53  ;;  %v14479_v60 = vadd.f32 %v14197_v58, %v3681_v34  ;;  %v3687_v42 = vrot.slane %v3686_v44, 1  ;;  %v3717_v35 = vsel %vm3534_vm5, %v3432_v17, -inf  ;;  %v3178_v56 = vrot.slane %v14411_v14, 1 }
 0x395   :  { %11756 = vmatprep.mubr.msk.bf16.mxu1 %vm1731_vm13, %v13084_v55  ;;  %v14469_v28 = vpop.f32.mrb[16].mxu0  ;;  %18545 = vst [vmem:[#allocation325_spill] sm:$0xff] %v14473_v3  ;;  %v3175_v55 = vrot.slane %v14380_v48, 1  ;;  %v3433_v62 = vadd.f32 %v18551_v49, %v3177_v37  ;;  %v18552_v48 = vld [vmem:[#allocation89_spill] sm:$0xff]  ;;  %v3718_v53 = vrot.slane %v3717_v35, 4  ;;  %v3703_v8 = vsel %vm3534_vm5, %v3430_v51, -inf }
 0x396   :  { %18543 = vst [vmem:[#allocation323_spill] sm:$0xff] %v14469_v28  ;;  %v14476_v38 = vpop.f32.mrb[17].mxu0  ;;  %18547 = vst [vmem:[#allocation327_spill] sm:$0xff] %v14479_v60  ;;  %v3704_v17 = vrot.slane %v3703_v8, 4  ;;  %v18553_v3 = vld [vmem:[#allocation91_spill] sm:$0xff]  ;;  %v14512_v51 = vmax.f32 %v3686_v44, %v3687_v42  ;;  %v3181_v23 = vrot.slane %v14416_v43, 1 }
 0x397   :  { %18546 = vst [vmem:[#allocation326_spill] sm:$0xff] %v14476_v38  ;;  %v14484_v13 = vpop.f32.mrb[172].mxu1  ;;  %v14486_v22 = vpop.f32.mrb[18].mxu0  ;;  %v3431_v31 = vadd.f32 %v3175_v55, %v18552_v48  ;;  %v3724_v37 = vsel %vm3534_vm5, %v3433_v62, -inf  ;;  %v3719_v49 = vmax.f32 %v3717_v35, %v3718_v53  ;;  %v3436_v41 = vadd.f32 %v18553_v3, %v3180_v5  ;;  %v18557_v42 = vld [vmem:[#allocation93_spill] sm:$0xff] }
 0x398   :  { %18548 = vst [vmem:[#allocation328_spill] sm:$0xff] %v14486_v22  ;;  %v14491_v27 = vpop.f32.mrb[173].mxu1  ;;  %v14493_v34 = vpop.f32.mrb[19].mxu0  ;;  %v3725_v48 = vrot.slane %v3724_v37, 4  ;;  %18554 = vst [vmem:[#allocation87_spill] sm:$0xff] %v14512_v51  ;;  %v3705_v6 = vmax.f32 %v3703_v8, %v3704_v17  ;;  %v3434_v8 = vadd.f32 %v3178_v56, %v18557_v42  ;;  %v18558_v17 = vld [vmem:[#allocation95_spill] sm:$0xff] }
 0x399   :  { %18550 = vst [vmem:[#allocation85_spill] sm:$0xff] %v14493_v34  ;;  %v14499_v32 = vpop.f32.mrb[174].mxu1  ;;  %v3710_v55 = vsel %vm3534_vm5, %v3431_v31, -inf  ;;  %v3720_v31 = vrot.slane %v3719_v49, 2  ;;  %v3745_v3 = vsel %vm3534_vm5, %v3436_v41, -inf  ;;  %v3437_v14 = vadd.f32 %v18558_v17, %v3181_v23 }
 0x39a   :  { %v14504_v10 = vpop.f32.mrb[175].mxu1  ;;  %v3711_v19 = vrot.slane %v3710_v55, 4  ;;  %v3726_v53 = vmax.f32 %v3724_v37, %v3725_v48  ;;  %v3746_v44 = vrot.slane %v3745_v3, 4  ;;  %v3179_v37 = vrot.slane %v14420_v26, 1 }
 0x39b   :  { %v3731_v36 = vsel %vm3534_vm5, %v3434_v8, -inf  ;;  %v3752_v56 = vsel %vm3534_vm5, %v3437_v14, -inf  ;;  %v3189_v38 = vrot.slane %v14499_v32, 1 }
 0x39c   :  { %11757 = vmatmul.mubr.msk.bf16.gmra.mrb[24].mxu1 %vm1731_vm13, %v13082_v52  ;;  %v3712_v35 = vmax.f32 %v3710_v55, %v3711_v19  ;;  %v3706_v52 = vrot.slane %v3705_v6, 2  ;;  %v3727_v21 = vrot.slane %v3726_v53, 2  ;;  %v3747_v48 = vmax.f32 %v3745_v3, %v3746_v44 }
 0x39d   :  { %11760 = vmatprep.mubr.msk.bf16.mxu1 %vm1731_vm13, %v13095_v59  ;;  %v14518_v62 = vpop.f32.mrb[20].mxu0  ;;  %v3721_v59 = vmax.f32 %v3719_v49, %v3720_v31  ;;  %v3732_v49 = vrot.slane %v3731_v36, 4  ;;  %v3753_v29 = vrot.slane %v3752_v56, 4  ;;  %v3435_v50 = vadd.f32 %v3179_v37, %v18561_v7 }
 0x39e   :  { %18555 = vst [vmem:[#allocation89_spill] sm:$0xff] %v14518_v62  ;;  %v14521_v5 = vpop.f32.mrb[21].mxu0  ;;  %v3713_v51 = vrot.slane %v3712_v35, 2  ;;  %v3707_v55 = vmax.f32 %v3705_v6, %v3706_v52  ;;  %v3728_v17 = vmax.f32 %v3726_v53, %v3727_v21  ;;  %v3748_v26 = vrot.slane %v3747_v48, 2 }
 0x39f   :  { %18556 = vst [vmem:[#allocation91_spill] sm:$0xff] %v14521_v5  ;;  %v14525_v60 = vpop.f32.mrb[176].mxu1  ;;  %v14527_v43 = vpop.f32.mrb[22].mxu0  ;;  %v3722_v42 = vrot.slane %v3721_v59, 1  ;;  %v3733_v52 = vmax.f32 %v3731_v36, %v3732_v49  ;;  %v3754_v14 = vmax.f32 %v3752_v56, %v3753_v29  ;;  %v3738_v21 = vsel %vm3534_vm5, %v3435_v50, -inf }
 0x3a0   :  { %18559 = vst [vmem:[#allocation93_spill] sm:$0xff] %v14527_v43  ;;  %v14530_v19 = vpop.f32.mrb[177].mxu1  ;;  %v14532_v41 = vpop.f32.mrb[23].mxu0  ;;  %v3714_v33 = vmax.f32 %v3712_v35, %v3713_v51  ;;  %v3708_v39 = vrot.slane %v3707_v55, 1  ;;  %v3729_v6 = vrot.slane %v3728_v17, 1  ;;  %v3749_v8 = vmax.f32 %v3747_v48, %v3748_v26  ;;  %v18612_v43 = vld [vmem:[#allocation4_spill] sm:$0xff] }
 0x3a1   :  { %18560 = vst [vmem:[#allocation95_spill] sm:$0xff] %v14532_v41  ;;  %v14536_v23 = vpop.f32.mrb[178].mxu1  ;;  %v3723_v54 = vmax.f32 %v3721_v59, %v3722_v42  ;;  %v3734_v59 = vrot.slane %v3733_v52, 2  ;;  %v3739_v29 = vrot.slane %v3738_v21, 4 }
 0x3a2   :  { %v14538_v31 = vpop.f32.mrb[179].mxu1  ;;  %v3715_v3 = vrot.slane %v3714_v33, 1  ;;  %v3709_v44 = vmax.f32 %v3707_v55, %v3708_v39  ;;  %v3730_v7 = vmax.f32 %v3728_v17, %v3729_v6  ;;  %v3755_v39 = vrot.slane %v3754_v14, 2 }
 0x3a3   :  { %v4464_v53 = vadd.f32 %v14197_v58, %v3723_v54  ;;  %v3735_v56 = vmax.f32 %v3733_v52, %v3734_v59  ;;  %v3740_v6 = vmax.f32 %v3738_v21, %v3739_v29 }
 0x3a4   :  { %11761 = vmatmul.mubr.msk.bf16.gmra.mrb[28].mxu1 %vm1731_vm13, %v13093_v57  ;;  %v3716_v35 = vmax.f32 %v3714_v33, %v3715_v3  ;;  %v14552_v36 = vadd.f32 %v14197_v58, %v3709_v44  ;;  %v3750_v57 = vrot.slane %v3749_v8, 1  ;;  %v4465_v48 = vadd.f32 %v14197_v58, %v3730_v7 }
 0x3a5   :  { %11764 = vmatprep.mubr.msk.bf16.mxu1 %vm1731_vm13, %v13107_v2  ;;  %v14546_v51 = vpop.f32.mrb[24].mxu0  ;;  %v4592_v2 = vmax.f32 %v4464_v53, 0.0  ;;  %v14566_v26 = vmax.f32 %v3754_v14, %v3755_v39  ;;  %v3736_v45 = vrot.slane %v3735_v56, 1  ;;  %v3741_v30 = vrot.slane %v3740_v6, 2 }
 0x3a6   :  { %18562 = vst [vmem:[#allocation97_spill] sm:$0xff] %v14546_v51  ;;  %v14549_v37 = vpop.f32.mrb[25].mxu0  ;;  %18564 = vst [vmem:[#allocation330_spill] sm:$0xff] %v14552_v36  ;;  %v4463_v54 = vadd.f32 %v14197_v58, %v3716_v35  ;;  %v4593_v53 = vmax.f32 %v4465_v48, 0.0  ;;  %v14575_v59 = vmax.f32 %v3749_v8, %v3750_v57  ;;  %v3184_v39 = vrot.slane %v14435_v47, 1 }
 0x3a7   :  { %18563 = vst [vmem:[#allocation329_spill] sm:$0xff] %v14549_v37  ;;  %v14554_v55 = vpop.f32.mrb[180].mxu1  ;;  %v14556_v50 = vpop.f32.mrb[26].mxu0  ;;  %18567 = vst [vmem:[#allocation333_spill] sm:$0xff] %v14566_v26  ;;  %v14573_v52 = vrot.slane %v4592_v2, 6  ;;  %v3737_v49 = vmax.f32 %v3735_v56, %v3736_v45  ;;  %v3742_v2 = vmax.f32 %v3740_v6, %v3741_v30  ;;  %v3182_v8 = vrot.slane %v14442_v63, 1 }
 0x3a8   :  { %18565 = vst [vmem:[#allocation331_spill] sm:$0xff] %v14556_v50  ;;  %v14560_v33 = vpop.f32.mrb[181].mxu1  ;;  %v14562_v42 = vpop.f32.mrb[27].mxu0  ;;  %v4591_v7 = vmax.f32 %v4463_v54, 0.0  ;;  %18569 = vst [vmem:[#allocation335_spill] sm:$0xff] %v14575_v59  ;;  %v14583_v29 = vrot.slane %v4593_v53, 5 }
 0x3a9   :  { %18566 = vst [vmem:[#allocation332_spill] sm:$0xff] %v14562_v42  ;;  %v14568_v3 = vpop.f32.mrb[182].mxu1  ;;  %18568 = vst [vmem:[#allocation334_spill] sm:$0xff] %v14573_v52  ;;  %v14593_v57 = vadd.f32 %v14197_v58, %v3737_v49  ;;  %v18574_v54 = vld [vmem:[#allocation99_spill] sm:$0xff]  ;;  %v3185_v56 = vrot.slane %v14448_v40, 1  ;;  %v18576_v63 = vld [vmem:[#allocation101_spill] sm:$0xff] }
 0x3aa   :  { %v14571_v35 = vpop.f32.mrb[183].mxu1  ;;  %18570 = vst [vmem:[#allocation336_spill] sm:$0xff] %v14583_v29  ;;  %v14585_v48 = vrot.slane %v4591_v7, 7  ;;  %v3440_v47 = vadd.f32 %v18574_v54, %v3184_v39  ;;  %v3743_v7 = vrot.slane %v3742_v2, 1  ;;  %v3438_v6 = vadd.f32 %v3182_v8, %v18576_v63  ;;  %v18578_v39 = vld [vmem:[#allocation103_spill] sm:$0xff]  ;;  %v18579_v40 = vld [vmem:[#allocation105_spill] sm:$0xff] }
 0x3ab   :  { %18573 = vst [vmem:[#allocation339_spill] sm:$0xff] %v14593_v57  ;;  %v3441_v54 = vadd.f32 %v18578_v39, %v3185_v56  ;;  %v18581_v59 = vld [vmem:[#allocation107_spill] sm:$0xff] }
 0x3ac   :  { %11765 = vmatmul.mubr.msk.bf16.gmra.mrb[32].mxu1 %vm1731_vm13, %v13105_v0  ;;  %18571 = vst [vmem:[#allocation337_spill] sm:$0xff] %v14585_v48  ;;  %v3183_v0 = vrot.slane %v14454_v20, 1  ;;  %v3773_v49 = vsel %vm3534_vm5, %v3440_v47, -inf  ;;  %v3759_v8 = vsel %vm3534_vm5, %v3438_v6, -inf  ;;  %v14626_v26 = vmax.f32 %v3742_v2, %v3743_v7  ;;  %v18584_v7 = vld [vmem:[#allocation109_spill] sm:$0xff] }
 0x3ad   :  { %11768 = vmatprep.mubr.msk.bf16.mxu1 %vm1731_vm13, %v13119_v11  ;;  %v14590_v45 = vpop.f32.mrb[28].mxu0  ;;  %v3774_v30 = vrot.slane %v3773_v49, 4  ;;  %v3188_v11 = vrot.slane %v14484_v13, 1  ;;  %v3760_v56 = vrot.slane %v3759_v8, 4  ;;  %v3186_v13 = vrot.slane %v14491_v27, 1  ;;  %v18585_v27 = vld [vmem:[#allocation111_spill] sm:$0xff] }
 0x3ae   :  { %18572 = vst [vmem:[#allocation338_spill] sm:$0xff] %v14590_v45  ;;  %v14598_v53 = vpop.f32.mrb[29].mxu0  ;;  %v3439_v21 = vadd.f32 %v3183_v0, %v18579_v40  ;;  %v3780_v0 = vsel %vm3534_vm5, %v3441_v54, -inf  ;;  %18582 = vst [vmem:[#allocation105_spill] sm:$0xff] %v14626_v26 }
 0x3af   :  { %18575 = vst [vmem:[#allocation99_spill] sm:$0xff] %v14598_v53  ;;  %v14603_v44 = vpop.f32.mrb[184].mxu1  ;;  %v14605_v17 = vpop.f32.mrb[30].mxu0  ;;  %v3775_v20 = vmax.f32 %v3773_v49, %v3774_v30  ;;  %v3781_v48 = vrot.slane %v3780_v0, 4  ;;  %v3444_v6 = vadd.f32 %v18581_v59, %v3188_v11  ;;  %v3761_v63 = vmax.f32 %v3759_v8, %v3760_v56 }
 0x3b0   :  { %18577 = vst [vmem:[#allocation101_spill] sm:$0xff] %v14605_v17  ;;  %v14611_v14 = vpop.f32.mrb[185].mxu1  ;;  %v14613_v29 = vpop.f32.mrb[31].mxu0  ;;  %v3766_v39 = vsel %vm3534_vm5, %v3439_v21, -inf  ;;  %v3442_v11 = vadd.f32 %v3186_v13, %v18584_v7  ;;  %v3445_v49 = vadd.f32 %v18585_v27, %v3189_v38  ;;  %v3200_v42 = vrot.slane %v14603_v44, 1  ;;  %v18637_v44 = vld [vmem:[#allocation131_spill] sm:$0xff] }
 0x3b1   :  { %18580 = vst [vmem:[#allocation103_spill] sm:$0xff] %v14613_v29  ;;  %v14618_v52 = vpop.f32.mrb[186].mxu1  ;;  %v3767_v36 = vrot.slane %v3766_v39, 4  ;;  %v3776_v54 = vrot.slane %v3775_v20, 2  ;;  %v3782_v47 = vmax.f32 %v3780_v0, %v3781_v48  ;;  %v3801_v57 = vsel %vm3534_vm5, %v3444_v6, -inf }
 0x3b2   :  { %v14623_v40 = vpop.f32.mrb[187].mxu1  ;;  %v3762_v59 = vrot.slane %v3761_v63, 2  ;;  %v3802_v2 = vrot.slane %v3801_v57, 4  ;;  %v3787_v6 = vsel %vm3534_vm5, %v3442_v11, -inf  ;;  %v3808_v26 = vsel %vm3534_vm5, %v3445_v49, -inf }
 0x3b3   :  { %v3768_v21 = vmax.f32 %v3766_v39, %v3767_v36  ;;  %v3777_v8 = vmax.f32 %v3775_v20, %v3776_v54  ;;  %v3187_v36 = vrot.slane %v14504_v10, 1  ;;  %v3788_v27 = vrot.slane %v3787_v6, 4 }
 0x3b4   :  { %11769 = vmatmul.mubr.msk.bf16.gmra.mrb[36].mxu1 %vm1731_vm13, %v13117_v9  ;;  %v3783_v9 = vrot.slane %v3782_v47, 2  ;;  %v3803_v39 = vmax.f32 %v3801_v57, %v3802_v2  ;;  %v3809_v1 = vrot.slane %v3808_v26, 4 }
 0x3b5   :  { %11772 = vmatprep.mubr.msk.bf16.mxu1 %vm1731_vm13, %v13131_v18  ;;  %v14635_v30 = vpop.f32.mrb[32].mxu0  ;;  %v3769_v56 = vrot.slane %v3768_v21, 2  ;;  %v3763_v18 = vmax.f32 %v3761_v63, %v3762_v59  ;;  %v3778_v7 = vrot.slane %v3777_v8, 1  ;;  %v3443_v63 = vadd.f32 %v3187_v36, %v18589_v24  ;;  %v18590_v36 = vld [vmem:[#allocation3_spill] sm:$0xff] }
 0x3b6   :  { %18583 = vst [vmem:[#allocation107_spill] sm:$0xff] %v14635_v30  ;;  %v14639_v32 = vpop.f32.mrb[33].mxu0  ;;  %v3784_v20 = vmax.f32 %v3782_v47, %v3783_v9  ;;  %v3804_v46 = vrot.slane %v3803_v39, 2  ;;  %v3789_v49 = vmax.f32 %v3787_v6, %v3788_v27  ;;  %v3810_v61 = vmax.f32 %v3808_v26, %v3809_v1 }
 0x3b7   :  { %18586 = vst [vmem:[#allocation109_spill] sm:$0xff] %v14639_v32  ;;  %v14642_v48 = vpop.f32.mrb[188].mxu1  ;;  %v14644_v0 = vpop.f32.mrb[34].mxu0  ;;  %v3770_v54 = vmax.f32 %v3768_v21, %v3769_v56  ;;  %v3764_v10 = vrot.slane %v3763_v18, 1  ;;  %v3779_v59 = vmax.f32 %v3777_v8, %v3778_v7  ;;  %v3794_v47 = vsel %vm3534_vm5, %v3443_v63, -inf  ;;  %v18598_v63 = vld [vmem:[#allocation2_spill] sm:$0xff] }
 0x3b8   :  { %18587 = vst [vmem:[#allocation111_spill] sm:$0xff] %v14644_v0  ;;  %v14648_v13 = vpop.f32.mrb[189].mxu1  ;;  %v14650_v38 = vpop.f32.mrb[35].mxu0  ;;  %v3785_v2 = vrot.slane %v3784_v20, 1  ;;  %v3805_v15 = vmax.f32 %v3803_v39, %v3804_v46  ;;  %v3790_v24 = vrot.slane %v3789_v49, 2 }
 0x3b9   :  { %18588 = vst [vmem:[#allocation340_spill] sm:$0xff] %v14650_v38  ;;  %v14652_v28 = vpop.f32.mrb[190].mxu1  ;;  %v3771_v11 = vrot.slane %v3770_v54, 1  ;;  %v3765_v25 = vmax.f32 %v3763_v18, %v3764_v10  ;;  %v4472_v21 = vadd.f32 %v14197_v58, %v3779_v59  ;;  %v14668_v46 = vld [vmem:[%s17931_s5] ss:$0 sm:$0xff]  ;;  %v3811_v18 = vrot.slane %v3810_v61, 2 }
 0x3ba   :  { %v14655_v57 = vpop.f32.mrb[191].mxu1  ;;  %v3786_v9 = vmax.f32 %v3784_v20, %v3785_v2  ;;  %v3806_v26 = vrot.slane %v3805_v15, 1  ;;  %v3791_v20 = vmax.f32 %v3789_v49, %v3790_v24 }
 0x3bb   :  { %v3772_v56 = vmax.f32 %v3770_v54, %v3771_v11  ;;  %v4470_v1 = vadd.f32 %v14668_v46, %v3765_v25  ;;  %v4600_v58 = vmax.f32 %v4472_v21, 0.0  ;;  %v3812_v59 = vmax.f32 %v3810_v61, %v3811_v18 }
 0x3bc   :  { %11773 = vmatmul.mubr.msk.bf16.gmra.mrb[40].mxu1 %vm1731_vm13, %v13129_v16  ;;  %v3795_v16 = vrot.slane %v3794_v47, 4  ;;  %v4473_v6 = vadd.f32 %v14668_v46, %v3786_v9  ;;  %v3807_v10 = vmax.f32 %v3805_v15, %v3806_v26  ;;  %v3792_v4 = vrot.slane %v3791_v20, 1 }
 0x3bd   :  { %11776 = vmatprep.mubr.msk.bf16.mxu1 %vm1731_vm13, %v18590_v36  ;;  %v14663_v8 = vpop.f32.mrb[36].mxu0  ;;  %v4471_v7 = vadd.f32 %v14668_v46, %v3772_v56  ;;  %v14687_v49 = vrot.slane %v4600_v58, 6  ;;  %v4598_v24 = vmax.f32 %v4470_v1, 0.0  ;;  %v3813_v12 = vrot.slane %v3812_v59, 1 }
 0x3be   :  { %18591 = vst [vmem:[#allocation113_spill] sm:$0xff] %v14663_v8  ;;  %v14671_v39 = vpop.f32.mrb[37].mxu0  ;;  %v3796_v25 = vmax.f32 %v3794_v47, %v3795_v16  ;;  %v4601_v36 = vmax.f32 %v4473_v6, 0.0  ;;  %v14692_v47 = vadd.f32 %v14668_v46, %v3807_v10  ;;  %v3793_v18 = vmax.f32 %v3791_v20, %v3792_v4  ;;  %v18601_v20 = vld [vmem:[#allocation5_spill] sm:$0xff] }
 0x3bf   :  { %18592 = vst [vmem:[#allocation3_spill] sm:$0xff] %v14671_v39  ;;  %v14675_v54 = vpop.f32.mrb[192].mxu1  ;;  %v14677_v27 = vpop.f32.mrb[38].mxu0  ;;  %v4599_v21 = vmax.f32 %v4471_v7, 0.0  ;;  %18595 = vst [vmem:[#allocation343_spill] sm:$0xff] %v14687_v49  ;;  %v3192_v58 = vrot.slane %v14525_v60, 1  ;;  %v14705_v10 = vmax.f32 %v3812_v59, %v3813_v12 }
 0x3c0   :  { %18593 = vst [vmem:[#allocation341_spill] sm:$0xff] %v14677_v27  ;;  %v14680_v2 = vpop.f32.mrb[193].mxu1  ;;  %v14682_v11 = vpop.f32.mrb[39].mxu0  ;;  %v3797_v15 = vrot.slane %v3796_v25, 2  ;;  %18596 = vst [vmem:[#allocation344_spill] sm:$0xff] %v14692_v47  ;;  %v14695_v6 = vrot.slane %v4601_v36, 5 }
 0x3c1   :  { %18594 = vst [vmem:[#allocation342_spill] sm:$0xff] %v14682_v11  ;;  %v14685_v56 = vpop.f32.mrb[194].mxu1  ;;  %v8728_v61 = vrot.slane %v4599_v21, 7  ;;  %v4474_v21 = vadd.f32 %v14668_v46, %v3793_v18  ;;  %18600 = vst [vmem:[#allocation346_spill] sm:$0xff] %v14705_v10  ;;  %v3190_v4 = vrot.slane %v14530_v19, 1  ;;  %v3193_v9 = vrot.slane %v14536_v23, 1 }
 0x3c2   :  { %v14689_v26 = vpop.f32.mrb[195].mxu1  ;;  %18597 = vst [vmem:[#allocation345_spill] sm:$0xff] %v14695_v6  ;;  %v3798_v7 = vmax.f32 %v3796_v25, %v3797_v15  ;;  %v18603_v15 = vld [vmem:[#allocation115_spill] sm:$0xff]  ;;  %v18605_v59 = vld [vmem:[#allocation117_spill] sm:$0xff]  ;;  %v3196_v19 = vrot.slane %v14554_v55, 1 }
 0x3c3   :  { %v14702_v1 = vsel %vm8666_vm11, %v8728_v61, %v4598_v24  ;;  %v3448_v60 = vadd.f32 %v18603_v15, %v3192_v58  ;;  %v4602_v61 = vmax.f32 %v4474_v21, 0.0  ;;  %v3446_v18 = vadd.f32 %v3190_v4, %v18605_v59  ;;  %v18607_v15 = vld [vmem:[#allocation119_spill] sm:$0xff]  ;;  %v18608_v49 = vld [vmem:[#allocation121_spill] sm:$0xff] }
 0x3c4   :  { %11777 = vmatmul.mubr.msk.bf16.gmra.mrb[44].mxu1 %vm1731_vm13, %v18598_v63  ;;  %18599 = vst [vmem:[#allocation2_spill] sm:$0xff] %v14702_v1  ;;  %v3799_v36 = vrot.slane %v3798_v7, 1  ;;  %v3191_v63 = vrot.slane %v14538_v31, 1  ;;  %v3449_v23 = vadd.f32 %v18607_v15, %v3193_v9 }
 0x3c5   :  { %11780 = vmatprep.mubr.msk.bf16.mxu1 %vm1731_vm13, %v18601_v20  ;;  %v14710_v25 = vpop.f32.mrb[40].mxu0  ;;  %v3829_v58 = vsel %vm3534_vm5, %v3448_v60, -inf  ;;  %v3815_v4 = vsel %vm3534_vm5, %v3446_v18, -inf  ;;  %v18610_v18 = vld [vmem:[#allocation123_spill] sm:$0xff]  ;;  %v14744_v59 = vrot.slane %v4602_v61, 4 }
 0x3c6   :  { %18602 = vst [vmem:[#allocation5_spill] sm:$0xff] %v14710_v25  ;;  %v14715_v24 = vpop.f32.mrb[41].mxu0  ;;  %v3800_v6 = vmax.f32 %v3798_v7, %v3799_v36  ;;  %v3447_v31 = vadd.f32 %v3191_v63, %v18608_v49  ;;  %v3830_v12 = vrot.slane %v3829_v58, 4  ;;  %v3816_v36 = vrot.slane %v3815_v4, 4 }
 0x3c7   :  { %18604 = vst [vmem:[#allocation115_spill] sm:$0xff] %v14715_v24  ;;  %v14720_v16 = vpop.f32.mrb[196].mxu1  ;;  %v14722_v20 = vpop.f32.mrb[42].mxu0  ;;  %v3836_v9 = vsel %vm3534_vm5, %v3449_v23, -inf  ;;  %v3452_v41 = vadd.f32 %v18610_v18, %v3196_v19  ;;  %18611 = vst [vmem:[#allocation121_spill] sm:$0xff] %v14744_v59 }
 0x3c8   :  { %18606 = vst [vmem:[#allocation117_spill] sm:$0xff] %v14722_v20  ;;  %v14727_v1 = vpop.f32.mrb[197].mxu1  ;;  %v14729_v21 = vpop.f32.mrb[43].mxu0  ;;  %v14737_v7 = vadd.f32 %v14668_v46, %v3800_v6  ;;  %v3822_v49 = vsel %vm3534_vm5, %v3447_v31, -inf  ;;  %v3831_v63 = vmax.f32 %v3829_v58, %v3830_v12  ;;  %v3837_v15 = vrot.slane %v3836_v9, 4  ;;  %v18613_v12 = vld [vmem:[#allocation7_spill] sm:$0xff] }
 0x3c9   :  { %18609 = vst [vmem:[#allocation119_spill] sm:$0xff] %v14729_v21  ;;  %v14734_v47 = vpop.f32.mrb[198].mxu1  ;;  %v3823_v10 = vrot.slane %v3822_v49, 4  ;;  %v3817_v55 = vmax.f32 %v3815_v4, %v3816_v36  ;;  %v3194_v6 = vrot.slane %v14560_v33, 1  ;;  %v3857_v62 = vsel %vm3534_vm5, %v3452_v41, -inf  ;;  %v18615_v36 = vld [vmem:[#allocation125_spill] sm:$0xff] }
 0x3ca   :  { %v14741_v60 = vpop.f32.mrb[199].mxu1  ;;  %v3832_v23 = vrot.slane %v3831_v63, 2  ;;  %v3838_v5 = vmax.f32 %v3836_v9, %v3837_v15  ;;  %v4603_v61 = vmax.f32 %v14737_v7, 0.0  ;;  %v3858_v4 = vrot.slane %v3857_v62, 4 }
 0x3cb   :  { %v3824_v31 = vmax.f32 %v3822_v49, %v3823_v10  ;;  %v3818_v19 = vrot.slane %v3817_v55, 2  ;;  %v3450_v18 = vadd.f32 %v3194_v6, %v18615_v36  ;;  %v3197_v7 = vrot.slane %v14568_v3, 1 }
 0x3cc   :  { %11781 = vmatmul.mubr.msk.bf16.gmra.mrb[48].mxu1 %vm1731_vm13, %v18612_v43  ;;  %v3833_v51 = vmax.f32 %v3831_v63, %v3832_v23  ;;  %v3839_v43 = vrot.slane %v3838_v5, 2  ;;  %v3859_v15 = vmax.f32 %v3857_v62, %v3858_v4  ;;  %v3195_v62 = vrot.slane %v14571_v35, 1 }
 0x3cd   :  { %11784 = vmatprep.mubr.msk.bf16.mxu1 %vm1731_vm13, %v18613_v12  ;;  %v14753_v58 = vpop.f32.mrb[44].mxu0  ;;  %v3825_v59 = vrot.slane %v3824_v31, 2  ;;  %v3819_v49 = vmax.f32 %v3817_v55, %v3818_v19  ;;  %v3843_v12 = vsel %vm3534_vm5, %v3450_v18, -inf  ;;  %v3212_v39 = vrot.slane %v14720_v16, 1 }
 0x3ce   :  { %18614 = vst [vmem:[#allocation123_spill] sm:$0xff] %v14753_v58  ;;  %v14757_v33 = vpop.f32.mrb[45].mxu0  ;;  %v3834_v36 = vrot.slane %v3833_v51, 1  ;;  %v3840_v63 = vmax.f32 %v3838_v5, %v3839_v43  ;;  %v3844_v34 = vrot.slane %v3843_v12, 4  ;;  %v3860_v50 = vrot.slane %v3859_v15, 2  ;;  %v18623_v43 = vld [vmem:[#allocation6_spill] sm:$0xff] }
 0x3cf   :  { %18616 = vst [vmem:[#allocation4_spill] sm:$0xff] %v14757_v33  ;;  %v14760_v9 = vpop.f32.mrb[200].mxu1  ;;  %v14762_v41 = vpop.f32.mrb[46].mxu0  ;;  %v3826_v23 = vmax.f32 %v3824_v31, %v3825_v59  ;;  %v3820_v10 = vrot.slane %v3819_v49, 1  ;;  %v18621_v33 = vld [vmem:[#allocation127_spill] sm:$0xff]  ;;  %v18622_v59 = vld [vmem:[#allocation129_spill] sm:$0xff] }
 0x3d0   :  { %18617 = vst [vmem:[#allocation7_spill] sm:$0xff] %v14762_v41  ;;  %v14766_v37 = vpop.f32.mrb[201].mxu1  ;;  %v14768_v6 = vpop.f32.mrb[47].mxu0  ;;  %v3453_v41 = vadd.f32 %v18621_v33, %v3197_v7  ;;  %v3835_v19 = vmax.f32 %v3833_v51, %v3834_v36  ;;  %v3841_v3 = vrot.slane %v3840_v63, 1  ;;  %v3845_v18 = vmax.f32 %v3843_v12, %v3844_v34  ;;  %v18624_v58 = vld [vmem:[#allocation9_spill] sm:$0xff] }
 0x3d1   :  { %18618 = vst [vmem:[#allocation125_spill] sm:$0xff] %v14766_v37  ;;  %18619 = vst [vmem:[#allocation347_spill] sm:$0xff] %v14768_v6  ;;  %v14770_v22 = vpop.f32.mrb[202].mxu1  ;;  %v3827_v4 = vrot.slane %v3826_v23, 1  ;;  %v3821_v37 = vmax.f32 %v3819_v49, %v3820_v10  ;;  %v3861_v6 = vmax.f32 %v3859_v15, %v3860_v50  ;;  %v3451_v31 = vadd.f32 %v3195_v62, %v18622_v59 }
 0x3d2   :  { %18620 = vst [vmem:[#allocation348_spill] sm:$0xff] %v14770_v22  ;;  %v14774_v55 = vpop.f32.mrb[203].mxu1  ;;  %v3864_v5 = vsel %vm3534_vm5, %v3453_v41, -inf  ;;  %v4480_v22 = vadd.f32 %v14668_v46, %v3835_v19  ;;  %v3842_v33 = vmax.f32 %v3840_v63, %v3841_v3  ;;  %v3846_v35 = vrot.slane %v3845_v18, 2 }
 0x3d3   :  { %v3828_v7 = vmax.f32 %v3826_v23, %v3827_v4  ;;  %v4478_v34 = vadd.f32 %v14668_v46, %v3821_v37  ;;  %v3862_v50 = vrot.slane %v3861_v6, 1  ;;  %v3865_v10 = vrot.slane %v3864_v5, 4 }
 0x3d4   :  { %11785 = vmatmul.mubr.msk.bf16.gmra.mrb[52].mxu1 %vm1731_vm13, %v18623_v43  ;;  %v3850_v41 = vsel %vm3534_vm5, %v3451_v31, -inf  ;;  %v4608_v15 = vmax.f32 %v4480_v22, 0.0  ;;  %v4481_v12 = vadd.f32 %v14668_v46, %v3842_v33  ;;  %v3847_v63 = vmax.f32 %v3845_v18, %v3846_v35 }
 0x3d5   :  { %11788 = vmatprep.mubr.msk.bf16.mxu1 %vm1731_vm13, %v18624_v58  ;;  %v14783_v51 = vpop.f32.mrb[48].mxu0  ;;  %v4479_v36 = vadd.f32 %v14668_v46, %v3828_v7  ;;  %v14795_v58 = vrot.slane %v4603_v61, 3  ;;  %v3863_v19 = vmax.f32 %v3861_v6, %v3862_v50  ;;  %v3866_v37 = vmax.f32 %v3864_v5, %v3865_v10 }
 0x3d6   :  { %18625 = vst [vmem:[#allocation127_spill] sm:$0xff] %v14783_v51  ;;  %v14787_v49 = vpop.f32.mrb[49].mxu0  ;;  %v3851_v3 = vrot.slane %v3850_v41, 4  ;;  %v4609_v31 = vmax.f32 %v4481_v12, 0.0  ;;  %v3848_v43 = vrot.slane %v3847_v63, 1  ;;  %v14804_v18 = vrot.slane %v4608_v15, 6 }
 0x3d7   :  { %18626 = vst [vmem:[#allocation129_spill] sm:$0xff] %v14787_v49  ;;  %v14791_v23 = vpop.f32.mrb[204].mxu1  ;;  %v14793_v62 = vpop.f32.mrb[50].mxu0  ;;  %18628 = vst [vmem:[#allocation9_spill] sm:$0xff] %v14795_v58  ;;  %v4607_v22 = vmax.f32 %v4479_v36, 0.0  ;;  %v4606_v35 = vmax.f32 %v4478_v34, 0.0  ;;  %v14809_v5 = vadd.f32 %v14668_v46, %v3863_v19 }
 0x3d8   :  { %18627 = vst [vmem:[#allocation6_spill] sm:$0xff] %v14793_v62  ;;  %v14797_v4 = vpop.f32.mrb[205].mxu1  ;;  %v14799_v59 = vpop.f32.mrb[51].mxu0  ;;  %18630 = vst [vmem:[#allocation350_spill] sm:$0xff] %v14804_v18  ;;  %v3867_v62 = vrot.slane %v3866_v37, 2  ;;  %v3852_v61 = vmax.f32 %v3850_v41, %v3851_v3  ;;  %v3849_v50 = vmax.f32 %v3847_v63, %v3848_v43  ;;  %v14812_v12 = vrot.slane %v4609_v31, 5 }
 0x3d9   :  { %18629 = vst [vmem:[#allocation349_spill] sm:$0xff] %v14799_v59  ;;  %v14802_v7 = vpop.f32.mrb[206].mxu1  ;;  %v8742_v6 = vrot.slane %v4607_v22, 7  ;;  %18631 = vst [vmem:[#allocation351_spill] sm:$0xff] %v14809_v5  ;;  %v18633_v15 = vld [vmem:[#allocation8_spill] sm:$0xff]  ;;  %v3198_v63 = vrot.slane %v14611_v14, 1  ;;  %v3456_v22 = vadd.f32 %v18637_v44, %v3200_v42 }
 0x3da   :  { %v14806_v58 = vpop.f32.mrb[207].mxu1  ;;  %18632 = vst [vmem:[#allocation352_spill] sm:$0xff] %v14812_v12  ;;  %v3868_v36 = vmax.f32 %v3866_v37, %v3867_v62  ;;  %v3853_v33 = vrot.slane %v3852_v61, 2  ;;  %v4482_v41 = vadd.f32 %v14668_v46, %v3849_v50  ;;  %v18635_v3 = vld [vmem:[#allocation11_spill] sm:$0xff]  ;;  %v3201_v43 = vrot.slane %v14618_v52, 1 }
 0x3db   :  { %v14818_v34 = vsel %vm8666_vm11, %v8742_v6, %v4606_v35  ;;  %v18639_v6 = vld [vmem:[#allocation133_spill] sm:$0xff]  ;;  %v3199_v14 = vrot.slane %v14623_v40, 1  ;;  %v3885_v42 = vsel %vm3534_vm5, %v3456_v22, -inf }
 0x3dc   :  { %11789 = vmatmul.mubr.msk.bf16.gmra.mrb[56].mxu1 %vm1731_vm13, %v18633_v15  ;;  %18634 = vst [vmem:[#allocation8_spill] sm:$0xff] %v14818_v34  ;;  %v3869_v62 = vrot.slane %v3868_v36, 1  ;;  %v3854_v37 = vmax.f32 %v3852_v61, %v3853_v33  ;;  %v3454_v50 = vadd.f32 %v3198_v63, %v18639_v6  ;;  %v4610_v12 = vmax.f32 %v4482_v41, 0.0  ;;  %v18641_v61 = vld [vmem:[#allocation135_spill] sm:$0xff]  ;;  %v18643_v6 = vld [vmem:[#allocation137_spill] sm:$0xff] }
 0x3dd   :  { %11792 = vmatprep.mubr.msk.bf16.mxu1 %vm1731_vm13, %v18635_v3  ;;  %v14825_v31 = vpop.f32.mrb[52].mxu0  ;;  %v3457_v52 = vadd.f32 %v18641_v61, %v3201_v43  ;;  %v3886_v35 = vrot.slane %v3885_v42, 4  ;;  %v3455_v19 = vadd.f32 %v3199_v14, %v18643_v6 }
 0x3de   :  { %18636 = vst [vmem:[#allocation11_spill] sm:$0xff] %v14825_v31  ;;  %v14829_v15 = vpop.f32.mrb[53].mxu0  ;;  %v3855_v33 = vrot.slane %v3854_v37, 1  ;;  %v3871_v63 = vsel %vm3534_vm5, %v3454_v50, -inf  ;;  %v14850_v5 = vmax.f32 %v3868_v36, %v3869_v62  ;;  %v3204_v50 = vrot.slane %v14642_v48, 1  ;;  %v18646_v62 = vld [vmem:[#allocation10_spill] sm:$0xff] }
 0x3df   :  { %18638 = vst [vmem:[#allocation131_spill] sm:$0xff] %v14829_v15  ;;  %v14835_v10 = vpop.f32.mrb[208].mxu1  ;;  %v14837_v3 = vpop.f32.mrb[54].mxu0  ;;  %v3872_v29 = vrot.slane %v3871_v63, 4  ;;  %v3892_v22 = vsel %vm3534_vm5, %v3457_v52, -inf  ;;  %v3887_v61 = vmax.f32 %v3885_v42, %v3886_v35  ;;  %v3878_v53 = vsel %vm3534_vm5, %v3455_v19, -inf }
 0x3e0   :  { %18640 = vst [vmem:[#allocation133_spill] sm:$0xff] %v14837_v3  ;;  %v14841_v44 = vpop.f32.mrb[209].mxu1  ;;  %v14843_v18 = vpop.f32.mrb[55].mxu0  ;;  %18644 = vst [vmem:[#allocation137_spill] sm:$0xff] %v14850_v5  ;;  %v3856_v41 = vmax.f32 %v3854_v37, %v3855_v33  ;;  %v3893_v17 = vrot.slane %v3892_v22, 4  ;;  %v14857_v45 = vrot.slane %v4610_v12, 4 }
 0x3e1   :  { %18642 = vst [vmem:[#allocation135_spill] sm:$0xff] %v14843_v18  ;;  %v14848_v34 = vpop.f32.mrb[210].mxu1  ;;  %v3873_v6 = vmax.f32 %v3871_v63, %v3872_v29  ;;  %v3879_v36 = vrot.slane %v3878_v53, 4  ;;  %v3888_v37 = vrot.slane %v3887_v61, 2  ;;  %v18647_v52 = vld [vmem:[#allocation139_spill] sm:$0xff]  ;;  %v3202_v35 = vrot.slane %v14648_v13, 1 }
 0x3e2   :  { %v14853_v43 = vpop.f32.mrb[211].mxu1  ;;  %18645 = vst [vmem:[#allocation353_spill] sm:$0xff] %v14857_v45  ;;  %v14860_v14 = vadd.f32 %v14668_v46, %v3856_v41  ;;  %v3894_v33 = vmax.f32 %v3892_v22, %v3893_v17  ;;  %v3460_v40 = vadd.f32 %v18647_v52, %v3204_v50  ;;  %v18648_v42 = vld [vmem:[#allocation13_spill] sm:$0xff]  ;;  %v18768_v31 = vld [vmem:[#allocation31_spill] sm:$0xff] }
 0x3e3   :  { %v3874_v12 = vrot.slane %v3873_v6, 2  ;;  %v3880_v19 = vmax.f32 %v3878_v53, %v3879_v36  ;;  %v18651_v22 = vld [vmem:[#allocation141_spill] sm:$0xff] }
 0x3e4   :  { %11793 = vmatmul.mubr.msk.bf16.gmra.mrb[60].mxu1 %vm1731_vm13, %v18646_v62  ;;  %v3889_v62 = vmax.f32 %v3887_v61, %v3888_v37  ;;  %v3895_v45 = vrot.slane %v3894_v33, 2  ;;  %v3913_v17 = vsel %vm3534_vm5, %v3460_v40, -inf  ;;  %v3458_v50 = vadd.f32 %v3202_v35, %v18651_v22 }
 0x3e5   :  { %11796 = vmatprep.mubr.msk.bf16.mxu1 %vm1731_vm13, %v18648_v42  ;;  %v14868_v48 = vpop.f32.mrb[56].mxu0  ;;  %v4611_v42 = vmax.f32 %v14860_v14, 0.0  ;;  %v3875_v5 = vmax.f32 %v3873_v6, %v3874_v12  ;;  %v3881_v53 = vrot.slane %v3880_v19, 2  ;;  %v3914_v36 = vrot.slane %v3913_v17, 4 }
 0x3e6   :  { %18649 = vst [vmem:[#allocation10_spill] sm:$0xff] %v14868_v48  ;;  %v14872_v63 = vpop.f32.mrb[57].mxu0  ;;  %v3890_v0 = vrot.slane %v3889_v62, 1  ;;  %v3896_v61 = vmax.f32 %v3894_v33, %v3895_v45  ;;  %v3899_v37 = vsel %vm3534_vm5, %v3458_v50, -inf  ;;  %v3205_v40 = vrot.slane %v14652_v28, 1  ;;  %v18657_v48 = vld [vmem:[#allocation12_spill] sm:$0xff] }
 0x3e7   :  { %18650 = vst [vmem:[#allocation139_spill] sm:$0xff] %v14872_v63  ;;  %v14876_v13 = vpop.f32.mrb[212].mxu1  ;;  %v14878_v52 = vpop.f32.mrb[58].mxu0  ;;  %v3876_v22 = vrot.slane %v3875_v5, 1  ;;  %v3882_v32 = vmax.f32 %v3880_v19, %v3881_v53  ;;  %v3915_v30 = vmax.f32 %v3913_v17, %v3914_v36  ;;  %v18656_v63 = vld [vmem:[#allocation143_spill] sm:$0xff]  ;;  %v18658_v53 = vld [vmem:[#allocation145_spill] sm:$0xff] }
 0x3e8   :  { %18652 = vst [vmem:[#allocation13_spill] sm:$0xff] %v14876_v13  ;;  %18653 = vst [vmem:[#allocation141_spill] sm:$0xff] %v14878_v52  ;;  %v14881_v41 = vpop.f32.mrb[213].mxu1  ;;  %v14883_v29 = vpop.f32.mrb[59].mxu0  ;;  %v3900_v52 = vrot.slane %v3899_v37, 4  ;;  %v3891_v6 = vmax.f32 %v3889_v62, %v3890_v0  ;;  %v3897_v12 = vrot.slane %v3896_v61, 1 }
 0x3e9   :  { %18654 = vst [vmem:[#allocation354_spill] sm:$0xff] %v14881_v41  ;;  %18655 = vst [vmem:[#allocation355_spill] sm:$0xff] %v14883_v29  ;;  %v14887_v35 = vpop.f32.mrb[214].mxu1  ;;  %v3461_v41 = vadd.f32 %v18656_v63, %v3205_v40  ;;  %v3203_v29 = vrot.slane %v14655_v57, 1  ;;  %v3877_v13 = vmax.f32 %v3875_v5, %v3876_v22  ;;  %v3883_v45 = vrot.slane %v3882_v32, 1  ;;  %v18659_v0 = vld [vmem:[#allocation15_spill] sm:$0xff] }
 0x3ea   :  { %v14889_v14 = vpop.f32.mrb[215].mxu1  ;;  %v3916_v33 = vrot.slane %v3915_v30, 2  ;;  %v3901_v50 = vmax.f32 %v3899_v37, %v3900_v52  ;;  %v4488_v28 = vadd.f32 %v14668_v46, %v3891_v6  ;;  %v3898_v19 = vmax.f32 %v3896_v61, %v3897_v12 }
 0x3eb   :  { %v3920_v17 = vsel %vm3534_vm5, %v3461_v41, -inf  ;;  %v3459_v36 = vadd.f32 %v3203_v29, %v18658_v53  ;;  %v4486_v57 = vadd.f32 %v14668_v46, %v3877_v13  ;;  %v3884_v5 = vmax.f32 %v3882_v32, %v3883_v45 }
 0x3ec   :  { %11797 = vmatmul.mubr.msk.bf16.gmra.mrb[64].mxu1 %vm1731_vm13, %v18657_v48  ;;  %v3917_v62 = vmax.f32 %v3915_v30, %v3916_v33  ;;  %v3902_v52 = vrot.slane %v3901_v50, 2  ;;  %v4616_v48 = vmax.f32 %v4488_v28, 0.0  ;;  %v4489_v40 = vadd.f32 %v14668_v46, %v3898_v19 }
 0x3ed   :  { %11800 = vmatprep.mubr.msk.bf16.mxu1 %vm1731_vm13, %v18659_v0  ;;  %v14900_v63 = vpop.f32.mrb[60].mxu0  ;;  %v3921_v61 = vrot.slane %v3920_v17, 4  ;;  %v3906_v41 = vsel %vm3534_vm5, %v3459_v36, -inf  ;;  %v4487_v6 = vadd.f32 %v14668_v46, %v3884_v5  ;;  %v14917_v45 = vrot.slane %v4611_v42, 3 }
 0x3ee   :  { %18660 = vst [vmem:[#allocation143_spill] sm:$0xff] %v14900_v63  ;;  %v14903_v37 = vpop.f32.mrb[61].mxu0  ;;  %v3918_v12 = vrot.slane %v3917_v62, 1  ;;  %v3903_v53 = vmax.f32 %v3901_v50, %v3902_v52  ;;  %v4617_v33 = vmax.f32 %v4489_v40, 0.0  ;;  %v3907_v19 = vrot.slane %v3906_v41, 4  ;;  %v18811_v63 = vld [vmem:[#allocation199_spill] sm:$0xff] }
 0x3ef   :  { %18661 = vst [vmem:[#allocation12_spill] sm:$0xff] %v14903_v37  ;;  %v14907_v22 = vpop.f32.mrb[216].mxu1  ;;  %v14909_v29 = vpop.f32.mrb[62].mxu0  ;;  %18665 = vst [vmem:[#allocation357_spill] sm:$0xff] %v14917_v45  ;;  %v3922_v28 = vmax.f32 %v3920_v17, %v3921_v61  ;;  %v4614_v0 = vmax.f32 %v4486_v57, 0.0  ;;  %v4615_v37 = vmax.f32 %v4487_v6, 0.0 }
 0x3f0   :  { %18662 = vst [vmem:[#allocation145_spill] sm:$0xff] %v14907_v22  ;;  %18663 = vst [vmem:[#allocation15_spill] sm:$0xff] %v14909_v29  ;;  %v14913_v30 = vpop.f32.mrb[217].mxu1  ;;  %v14915_v13 = vpop.f32.mrb[63].mxu0  ;;  %v3919_v29 = vmax.f32 %v3917_v62, %v3918_v12  ;;  %v3904_v22 = vrot.slane %v3903_v53, 1  ;;  %v14923_v50 = vrot.slane %v4616_v48, 6  ;;  %v3908_v32 = vmax.f32 %v3906_v41, %v3907_v19 }
 0x3f1   :  { %18664 = vst [vmem:[#allocation356_spill] sm:$0xff] %v14915_v13  ;;  %v14919_v36 = vpop.f32.mrb[218].mxu1  ;;  %v3923_v52 = vrot.slane %v3922_v28, 2  ;;  %v14926_v13 = vrot.slane %v4617_v33, 5  ;;  %v8756_v42 = vrot.slane %v4615_v37, 7  ;;  %v3208_v17 = vrot.slane %v14675_v54, 1 }
 0x3f2   :  { %v14921_v5 = vpop.f32.mrb[219].mxu1  ;;  %18666 = vst [vmem:[#allocation358_spill] sm:$0xff] %v14923_v50  ;;  %v3905_v40 = vmax.f32 %v3903_v53, %v3904_v22  ;;  %v18668_v61 = vld [vmem:[#allocation14_spill] sm:$0xff]  ;;  %v3909_v62 = vrot.slane %v3908_v32, 2  ;;  %v3206_v48 = vrot.slane %v14680_v2, 1  ;;  %v18669_v12 = vld [vmem:[#allocation17_spill] sm:$0xff]  ;;  %v14941_v37 = vadd.f32 %v14668_v46, %v3919_v29 }
 0x3f3   :  { %18667 = vst [vmem:[#allocation359_spill] sm:$0xff] %v14926_v13  ;;  %v3924_v57 = vmax.f32 %v3922_v28, %v3923_v52  ;;  %v14938_v33 = vsel %vm8666_vm11, %v8756_v42, %v4614_v0  ;;  %v18673_v22 = vld [vmem:[#allocation147_spill] sm:$0xff]  ;;  %v18675_v2 = vld [vmem:[#allocation149_spill] sm:$0xff] }
 0x3f4   :  { %11801 = vmatmul.mubr.msk.bf16.gmra.mrb[68].mxu1 %vm1731_vm13, %v18668_v61  ;;  %18671 = vst [vmem:[#allocation17_spill] sm:$0xff] %v14938_v33  ;;  %18672 = vst [vmem:[#allocation360_spill] sm:$0xff] %v14941_v37  ;;  %v4490_v54 = vadd.f32 %v14668_v46, %v3905_v40  ;;  %v3464_v53 = vadd.f32 %v18673_v22, %v3208_v17  ;;  %v3910_v52 = vmax.f32 %v3908_v32, %v3909_v62 }
 0x3f5   :  { %11804 = vmatprep.mubr.msk.bf16.mxu1 %vm1731_vm13, %v18669_v12  ;;  %v14935_v41 = vpop.f32.mrb[64].mxu0  ;;  %v3925_v19 = vrot.slane %v3924_v57, 1  ;;  %v3462_v61 = vadd.f32 %v3206_v48, %v18675_v2  ;;  %v3209_v12 = vrot.slane %v14685_v56, 1  ;;  %v3207_v40 = vrot.slane %v14689_v26, 1 }
 0x3f6   :  { %18670 = vst [vmem:[#allocation14_spill] sm:$0xff] %v14935_v41  ;;  %v14945_v28 = vpop.f32.mrb[65].mxu0  ;;  %v4618_v0 = vmax.f32 %v4490_v54, 0.0  ;;  %v3941_v29 = vsel %vm3534_vm5, %v3464_v53, -inf  ;;  %v3911_v32 = vrot.slane %v3910_v52, 1  ;;  %v18678_v54 = vld [vmem:[#allocation151_spill] sm:$0xff] }
 0x3f7   :  { %18674 = vst [vmem:[#allocation147_spill] sm:$0xff] %v14945_v28  ;;  %v14949_v6 = vpop.f32.mrb[220].mxu1  ;;  %v14951_v38 = vpop.f32.mrb[66].mxu0  ;;  %v3942_v62 = vrot.slane %v3941_v29, 4  ;;  %v3927_v48 = vsel %vm3534_vm5, %v3462_v61, -inf  ;;  %v3465_v50 = vadd.f32 %v18678_v54, %v3209_v12  ;;  %v18679_v53 = vld [vmem:[#allocation153_spill] sm:$0xff]  ;;  %v14969_v37 = vmax.f32 %v3924_v57, %v3925_v19 }
 0x3f8   :  { %18676 = vst [vmem:[#allocation149_spill] sm:$0xff] %v14951_v38  ;;  %v14956_v17 = vpop.f32.mrb[221].mxu1  ;;  %v14958_v22 = vpop.f32.mrb[67].mxu0  ;;  %v3928_v13 = vrot.slane %v3927_v48, 4  ;;  %v3463_v33 = vadd.f32 %v3207_v40, %v18679_v53  ;;  %v3912_v45 = vmax.f32 %v3910_v52, %v3911_v32  ;;  %v14972_v61 = vrot.slane %v4618_v0, 4  ;;  %v18682_v12 = vld [vmem:[#allocation16_spill] sm:$0xff] }
 0x3f9   :  { %18677 = vst [vmem:[#allocation361_spill] sm:$0xff] %v14958_v22  ;;  %v14962_v2 = vpop.f32.mrb[222].mxu1  ;;  %18680 = vst [vmem:[#allocation151_spill] sm:$0xff] %v14969_v37  ;;  %v3943_v27 = vmax.f32 %v3941_v29, %v3942_v62  ;;  %v3948_v11 = vsel %vm3534_vm5, %v3465_v50, -inf  ;;  %v18683_v52 = vld [vmem:[#allocation19_spill] sm:$0xff]  ;;  %v18689_v37 = vld [vmem:[#allocation157_spill] sm:$0xff] }
 0x3fa   :  { %v14967_v26 = vpop.f32.mrb[223].mxu1  ;;  %18681 = vst [vmem:[#allocation153_spill] sm:$0xff] %v14972_v61  ;;  %v3929_v56 = vmax.f32 %v3927_v48, %v3928_v13  ;;  %v3934_v8 = vsel %vm3534_vm5, %v3463_v33, -inf  ;;  %v14979_v40 = vadd.f32 %v14668_v46, %v3912_v45  ;;  %v3949_v57 = vrot.slane %v3948_v11, 4  ;;  %v18685_v50 = vld [vmem:[#allocation155_spill] sm:$0xff] }
 0x3fb   :  { %v3944_v54 = vrot.slane %v3943_v27, 2  ;;  %v3935_v19 = vrot.slane %v3934_v8, 4  ;;  %v3468_v29 = vadd.f32 %v18685_v50, %v3212_v39  ;;  %v3210_v33 = vrot.slane %v14727_v1, 1 }
 0x3fc   :  { %11805 = vmatmul.mubr.msk.bf16.gmra.mrb[72].mxu1 %vm1731_vm13, %v18682_v12  ;;  %v3930_v0 = vrot.slane %v3929_v56, 2  ;;  %v3950_v45 = vmax.f32 %v3948_v11, %v3949_v57  ;;  %v3213_v39 = vrot.slane %v14734_v47, 1 }
 0x3fd   :  { %11808 = vmatprep.mubr.msk.bf16.mxu1 %vm1731_vm13, %v18683_v52  ;;  %v14983_v16 = vpop.f32.mrb[68].mxu0  ;;  %v3945_v62 = vmax.f32 %v3943_v27, %v3944_v54  ;;  %v3936_v48 = vmax.f32 %v3934_v8, %v3935_v19  ;;  %v3969_v61 = vsel %vm3534_vm5, %v3468_v29, -inf  ;;  %v3466_v13 = vadd.f32 %v3210_v33, %v18689_v37 }
 0x3fe   :  { %18684 = vst [vmem:[#allocation16_spill] sm:$0xff] %v14983_v16  ;;  %v14988_v32 = vpop.f32.mrb[69].mxu0  ;;  %v3931_v52 = vmax.f32 %v3929_v56, %v3930_v0  ;;  %v4619_v27 = vmax.f32 %v14979_v40, 0.0  ;;  %v3951_v11 = vrot.slane %v3950_v45, 2  ;;  %v3970_v53 = vrot.slane %v3969_v61, 4  ;;  %v18693_v0 = vld [vmem:[#allocation159_spill] sm:$0xff] }
 0x3ff   :  { %18686 = vst [vmem:[#allocation19_spill] sm:$0xff] %v14988_v32  ;;  %v14991_v12 = vpop.f32.mrb[224].mxu1  ;;  %v14993_v42 = vpop.f32.mrb[70].mxu0  ;;  %v3946_v8 = vrot.slane %v3945_v62, 1  ;;  %v3937_v54 = vrot.slane %v3936_v48, 2  ;;  %v3955_v56 = vsel %vm3534_vm5, %v3466_v13, -inf  ;;  %v3469_v29 = vadd.f32 %v18693_v0, %v3213_v39 }
 0x400   :  { %18687 = vst [vmem:[#allocation155_spill] sm:$0xff] %v14991_v12  ;;  %18688 = vst [vmem:[#allocation362_spill] sm:$0xff] %v14993_v42  ;;  %v14998_v50 = vpop.f32.mrb[225].mxu1  ;;  %v15000_v1 = vpop.f32.mrb[71].mxu0  ;;  %v3932_v19 = vrot.slane %v3931_v52, 1  ;;  %v3952_v33 = vmax.f32 %v3950_v45, %v3951_v11  ;;  %v3956_v24 = vrot.slane %v3955_v56, 4 }
 0x401   :  { %18690 = vst [vmem:[#allocation157_spill] sm:$0xff] %v14998_v50  ;;  %18691 = vst [vmem:[#allocation363_spill] sm:$0xff] %v15000_v1  ;;  %v15003_v57 = vpop.f32.mrb[226].mxu1  ;;  %v3947_v47 = vmax.f32 %v3945_v62, %v3946_v8  ;;  %v3938_v20 = vmax.f32 %v3936_v48, %v3937_v54  ;;  %v3971_v1 = vmax.f32 %v3969_v61, %v3970_v53  ;;  %v3976_v40 = vsel %vm3534_vm5, %v3469_v29, -inf  ;;  %v18694_v50 = vld [vmem:[#allocation18_spill] sm:$0xff]  ;;  %v18695_v0 = vld [vmem:[#allocation21_spill] sm:$0xff] }
 0x402   :  { %18692 = vst [vmem:[#allocation364_spill] sm:$0xff] %v15003_v57  ;;  %v15007_v37 = vpop.f32.mrb[227].mxu1  ;;  %v3933_v25 = vmax.f32 %v3931_v52, %v3932_v19  ;;  %v3211_v42 = vrot.slane %v14741_v60, 1  ;;  %v3953_v13 = vrot.slane %v3952_v33, 1  ;;  %v3957_v39 = vmax.f32 %v3955_v56, %v3956_v24  ;;  %v18697_v53 = vld [vmem:[#allocation161_spill] sm:$0xff] }
 0x403   :  { %v4496_v57 = vadd.f32 %v14668_v46, %v3947_v47  ;;  %v3939_v12 = vrot.slane %v3938_v20, 1  ;;  %v3972_v61 = vrot.slane %v3971_v1, 2  ;;  %v3977_v48 = vrot.slane %v3976_v40, 4 }
 0x404   :  { %11809 = vmatmul.mubr.msk.bf16.gmra.mrb[76].mxu1 %vm1731_vm13, %v18694_v50  ;;  %v4494_v45 = vadd.f32 %v14668_v46, %v3933_v25  ;;  %v3467_v52 = vadd.f32 %v3211_v42, %v18697_v53  ;;  %v3954_v50 = vmax.f32 %v3952_v33, %v3953_v13  ;;  %v3958_v54 = vrot.slane %v3957_v39, 2 }
 0x405   :  { %11812 = vmatprep.mubr.msk.bf16.mxu1 %vm1731_vm13, %v18695_v0  ;;  %v15016_v62 = vpop.f32.mrb[72].mxu0  ;;  %v4624_v8 = vmax.f32 %v4496_v57, 0.0  ;;  %v3940_v11 = vmax.f32 %v3938_v20, %v3939_v12  ;;  %v3973_v56 = vmax.f32 %v3971_v1, %v3972_v61  ;;  %v3978_v47 = vmax.f32 %v3976_v40, %v3977_v48 }
 0x406   :  { %18696 = vst [vmem:[#allocation159_spill] sm:$0xff] %v15016_v62  ;;  %v15020_v60 = vpop.f32.mrb[73].mxu0  ;;  %v3962_v25 = vsel %vm3534_vm5, %v3467_v52, -inf  ;;  %v15032_v42 = vrot.slane %v4619_v27, 3  ;;  %v4497_v57 = vadd.f32 %v14668_v46, %v3954_v50  ;;  %v3959_v12 = vmax.f32 %v3957_v39, %v3958_v54 }
 0x407   :  { %18698 = vst [vmem:[#allocation18_spill] sm:$0xff] %v15020_v60  ;;  %v15022_v19 = vpop.f32.mrb[228].mxu1  ;;  %v15024_v24 = vpop.f32.mrb[74].mxu0  ;;  %v4495_v20 = vadd.f32 %v14668_v46, %v3940_v11  ;;  %v4622_v13 = vmax.f32 %v4494_v45, 0.0  ;;  %v3974_v1 = vrot.slane %v3973_v56, 1  ;;  %v3979_v61 = vrot.slane %v3978_v47, 2 }
 0x408   :  { %18699 = vst [vmem:[#allocation21_spill] sm:$0xff] %v15024_v24  ;;  %v15028_v0 = vpop.f32.mrb[229].mxu1  ;;  %v15030_v62 = vpop.f32.mrb[75].mxu0  ;;  %18702 = vst [vmem:[#allocation366_spill] sm:$0xff] %v15032_v42  ;;  %v3963_v53 = vrot.slane %v3962_v25, 4  ;;  %v15040_v48 = vrot.slane %v4624_v8, 6 }
 0x409   :  { %18700 = vst [vmem:[#allocation161_spill] sm:$0xff] %v15028_v0  ;;  %18701 = vst [vmem:[#allocation365_spill] sm:$0xff] %v15030_v62  ;;  %v15036_v33 = vpop.f32.mrb[230].mxu1  ;;  %v4625_v52 = vmax.f32 %v4497_v57, 0.0  ;;  %v4623_v29 = vmax.f32 %v4495_v20, 0.0  ;;  %v3960_v21 = vrot.slane %v3959_v12, 1  ;;  %v3975_v27 = vmax.f32 %v3973_v56, %v3974_v1 }
 0x40a   :  { %18703 = vst [vmem:[#allocation367_spill] sm:$0xff] %v15036_v33  ;;  %v15038_v40 = vpop.f32.mrb[231].mxu1  ;;  %18705 = vst [vmem:[#allocation369_spill] sm:$0xff] %v15040_v48  ;;  %v3980_v42 = vmax.f32 %v3978_v47, %v3979_v61  ;;  %v3964_v62 = vmax.f32 %v3962_v25, %v3963_v53  ;;  %v3216_v50 = vrot.slane %v14760_v9, 1  ;;  %v18706_v11 = vld [vmem:[#allocation20_spill] sm:$0xff]  ;;  %v18712_v25 = vld [vmem:[#allocation163_spill] sm:$0xff] }
 0x40b   :  { %18704 = vst [vmem:[#allocation368_spill] sm:$0xff] %v15038_v40  ;;  %v8770_v39 = vrot.slane %v4623_v29, 7  ;;  %v3961_v45 = vmax.f32 %v3959_v12, %v3960_v21  ;;  %v18709_v40 = vld [vmem:[#allocation23_spill] sm:$0xff]  ;;  %v15051_v57 = vrot.slane %v4625_v52, 5  ;;  %v18716_v61 = vld [vmem:[#allocation125_spill] sm:$0xff]  ;;  %v15067_v52 = vadd.f32 %v14668_v46, %v3975_v27 }
 0x40c   :  { %11813 = vmatmul.mubr.msk.bf16.gmra.mrb[80].mxu1 %vm1731_vm13, %v18706_v11  ;;  %v3981_v56 = vrot.slane %v3980_v42, 1  ;;  %v3965_v47 = vrot.slane %v3964_v62, 2  ;;  %v3472_v9 = vadd.f32 %v18712_v25, %v3216_v50  ;;  %v3214_v53 = vrot.slane %v18716_v61, 1  ;;  %v18719_v25 = vld [vmem:[#allocation348_spill] sm:$0xff]  ;;  %v18722_v1 = vld [vmem:[#allocation165_spill] sm:$0xff] }
 0x40d   :  { %11816 = vmatprep.mubr.msk.bf16.mxu1 %vm1731_vm13, %v18709_v40  ;;  %v15049_v8 = vpop.f32.mrb[76].mxu0  ;;  %18711 = vst [vmem:[#allocation23_spill] sm:$0xff] %v15051_v57  ;;  %v15057_v29 = vsel %vm8666_vm11, %v8770_v39, %v4622_v13  ;;  %v4498_v21 = vadd.f32 %v14668_v46, %v3961_v45  ;;  %18718 = vst [vmem:[#allocation371_spill] sm:$0xff] %v15067_v52  ;;  %v3217_v33 = vrot.slane %v18719_v25, 1  ;;  %v3244_v16 = vrot.slane %v15022_v19, 1  ;;  %v18866_v60 = vld [vmem:[#allocation221_spill] sm:$0xff] }
 0x40e   :  { %18710 = vst [vmem:[#allocation20_spill] sm:$0xff] %v15049_v8  ;;  %v15054_v20 = vpop.f32.mrb[77].mxu0  ;;  %18714 = vst [vmem:[#allocation370_spill] sm:$0xff] %v15057_v29  ;;  %v3966_v0 = vmax.f32 %v3964_v62, %v3965_v47  ;;  %v3997_v50 = vsel %vm3534_vm5, %v3472_v9, -inf  ;;  %v3470_v57 = vadd.f32 %v3214_v53, %v18722_v1  ;;  %v3215_v29 = vrot.slane %v14774_v55, 1  ;;  %v18725_v47 = vld [vmem:[#allocation167_spill] sm:$0xff] }
 0x40f   :  { %18713 = vst [vmem:[#allocation163_spill] sm:$0xff] %v15054_v20  ;;  %v15062_v40 = vpop.f32.mrb[232].mxu1  ;;  %v15064_v11 = vpop.f32.mrb[78].mxu0  ;;  %v3998_v45 = vrot.slane %v3997_v50, 4  ;;  %v4626_v27 = vmax.f32 %v4498_v21, 0.0  ;;  %v15080_v52 = vmax.f32 %v3980_v42, %v3981_v56  ;;  %v3473_v9 = vadd.f32 %v18725_v47, %v3217_v33  ;;  %v18727_v42 = vld [vmem:[#allocation22_spill] sm:$0xff] }
 0x410   :  { %18717 = vst [vmem:[#allocation125_spill] sm:$0xff] %v15064_v11  ;;  %v15071_v13 = vpop.f32.mrb[233].mxu1  ;;  %v15073_v39 = vpop.f32.mrb[79].mxu0  ;;  %v3967_v62 = vrot.slane %v3966_v0, 1  ;;  %v3983_v54 = vsel %vm3534_vm5, %v3470_v57, -inf  ;;  %v3220_v21 = vrot.slane %v14791_v23, 1 }
 0x411   :  { %18720 = vst [vmem:[#allocation348_spill] sm:$0xff] %v15071_v13  ;;  %18721 = vst [vmem:[#allocation372_spill] sm:$0xff] %v15073_v39  ;;  %v15078_v12 = vpop.f32.mrb[234].mxu1  ;;  %v3999_v24 = vmax.f32 %v3997_v50, %v3998_v45  ;;  %v18726_v39 = vld [vmem:[#allocation169_spill] sm:$0xff]  ;;  %v3984_v48 = vrot.slane %v3983_v54, 4  ;;  %v4004_v55 = vsel %vm3534_vm5, %v3473_v9, -inf }
 0x412   :  { %18724 = vst [vmem:[#allocation165_spill] sm:$0xff] %v15080_v52  ;;  %v15083_v25 = vpop.f32.mrb[235].mxu1  ;;  %v3471_v13 = vadd.f32 %v3215_v29, %v18726_v39  ;;  %v3968_v53 = vmax.f32 %v3966_v0, %v3967_v62  ;;  %v4005_v33 = vrot.slane %v4004_v55, 4  ;;  %v18728_v57 = vld [vmem:[#allocation25_spill] sm:$0xff]  ;;  %v18730_v23 = vld [vmem:[#allocation171_spill] sm:$0xff]  ;;  %v3218_v50 = vrot.slane %v14797_v4, 1 }
 0x413   :  { %v4000_v56 = vrot.slane %v3999_v24, 2  ;;  %v3985_v39 = vmax.f32 %v3983_v54, %v3984_v48  ;;  %v3476_v62 = vadd.f32 %v18730_v23, %v3220_v21  ;;  %v18863_v19 = vld [vmem:[#allocation161_spill] sm:$0xff] }
 0x414   :  { %11817 = vmatmul.mubr.msk.bf16.gmra.mrb[84].mxu1 %vm1731_vm13, %v18727_v42  ;;  %v3990_v47 = vsel %vm3534_vm5, %v3471_v13, -inf  ;;  %v15099_v0 = vadd.f32 %v14668_v46, %v3968_v53  ;;  %v15104_v42 = vrot.slane %v4626_v27, 4  ;;  %v4006_v13 = vmax.f32 %v4004_v55, %v4005_v33  ;;  %v18738_v55 = vld [vmem:[#allocation173_spill] sm:$0xff] }
 0x415   :  { %11820 = vmatprep.mubr.msk.bf16.mxu1 %vm1731_vm13, %v18728_v57  ;;  %v15096_v29 = vpop.f32.mrb[80].mxu0  ;;  %v3991_v45 = vrot.slane %v3990_v47, 4  ;;  %v4001_v1 = vmax.f32 %v3999_v24, %v4000_v56  ;;  %v3986_v49 = vrot.slane %v3985_v39, 2  ;;  %v4025_v53 = vsel %vm3534_vm5, %v3476_v62, -inf }
 0x416   :  { %18729 = vst [vmem:[#allocation167_spill] sm:$0xff] %v15096_v29  ;;  %v15102_v9 = vpop.f32.mrb[81].mxu0  ;;  %18732 = vst [vmem:[#allocation22_spill] sm:$0xff] %v15104_v42  ;;  %v4007_v23 = vrot.slane %v4006_v13, 2  ;;  %v4026_v24 = vrot.slane %v4025_v53, 4  ;;  %v3474_v56 = vadd.f32 %v3218_v50, %v18738_v55  ;;  %v4627_v33 = vmax.f32 %v15099_v0, 0.0 }
 0x417   :  { %18731 = vst [vmem:[#allocation169_spill] sm:$0xff] %v15102_v9  ;;  %v15107_v52 = vpop.f32.mrb[236].mxu1  ;;  %v15109_v57 = vpop.f32.mrb[82].mxu0  ;;  %v3992_v51 = vmax.f32 %v3990_v47, %v3991_v45  ;;  %v4002_v27 = vrot.slane %v4001_v1, 1  ;;  %v3987_v42 = vmax.f32 %v3985_v39, %v3986_v49  ;;  %v3221_v47 = vrot.slane %v14802_v7, 1  ;;  %v18740_v29 = vld [vmem:[#allocation175_spill] sm:$0xff] }
 0x418   :  { %18733 = vst [vmem:[#allocation25_spill] sm:$0xff] %v15107_v52  ;;  %18734 = vst [vmem:[#allocation171_spill] sm:$0xff] %v15109_v57  ;;  %v15113_v61 = vpop.f32.mrb[237].mxu1  ;;  %v15115_v21 = vpop.f32.mrb[83].mxu0  ;;  %v4008_v54 = vmax.f32 %v4006_v13, %v4007_v23  ;;  %v4027_v48 = vmax.f32 %v4025_v53, %v4026_v24  ;;  %v18741_v55 = vld [vmem:[#allocation24_spill] sm:$0xff]  ;;  %v3219_v7 = vrot.slane %v14806_v58, 1 }
 0x419   :  { %18736 = vst [vmem:[#allocation373_spill] sm:$0xff] %v15113_v61  ;;  %18737 = vst [vmem:[#allocation374_spill] sm:$0xff] %v15115_v21  ;;  %v15118_v4 = vpop.f32.mrb[238].mxu1  ;;  %v3993_v57 = vrot.slane %v3992_v51, 2  ;;  %v4003_v62 = vmax.f32 %v4001_v1, %v4002_v27  ;;  %v4011_v21 = vsel %vm3534_vm5, %v3474_v56, -inf  ;;  %v3988_v61 = vrot.slane %v3987_v42, 1 }
 0x41a   :  { %v15122_v45 = vpop.f32.mrb[239].mxu1  ;;  %v4012_v52 = vrot.slane %v4011_v21, 4  ;;  %v3477_v50 = vadd.f32 %v18740_v29, %v3221_v47  ;;  %v4009_v0 = vrot.slane %v4008_v54, 1  ;;  %v4028_v39 = vrot.slane %v4027_v48, 2  ;;  %v15144_v58 = vld [vmem:[%s17931_s5] ss:$0 sm:$0xff] }
 0x41b   :  { %18739 = vst [vmem:[#allocation173_spill] sm:$0xff] %v15122_v45  ;;  %v3994_v9 = vmax.f32 %v3992_v51, %v3993_v57  ;;  %v4504_v49 = vadd.f32 %v14668_v46, %v4003_v62  ;;  %v18742_v45 = vld [vmem:[#allocation27_spill] sm:$0xff]  ;;  %v3989_v13 = vmax.f32 %v3987_v42, %v3988_v61  ;;  %v3242_v32 = vrot.slane %v18863_v19, 1 }
 0x41c   :  { %11821 = vmatmul.mubr.msk.bf16.gmra.mrb[88].mxu1 %vm1731_vm13, %v18741_v55  ;;  %v4013_v51 = vmax.f32 %v4011_v21, %v4012_v52  ;;  %v4032_v57 = vsel %vm3534_vm5, %v3477_v50, -inf  ;;  %v4010_v23 = vmax.f32 %v4008_v54, %v4009_v0  ;;  %v4029_v24 = vmax.f32 %v4027_v48, %v4028_v39  ;;  %v18747_v21 = vld [vmem:[#allocation177_spill] sm:$0xff] }
 0x41d   :  { %11824 = vmatprep.mubr.msk.bf16.mxu1 %vm1731_vm13, %v18742_v45  ;;  %v15132_v1 = vpop.f32.mrb[84].mxu0  ;;  %v3995_v53 = vrot.slane %v3994_v9, 1  ;;  %v4632_v27 = vmax.f32 %v4504_v49, 0.0  ;;  %v4033_v46 = vrot.slane %v4032_v57, 4  ;;  %v4502_v61 = vadd.f32 %v15144_v58, %v3989_v13 }
 0x41e   :  { %18743 = vst [vmem:[#allocation175_spill] sm:$0xff] %v15132_v1  ;;  %v15135_v29 = vpop.f32.mrb[85].mxu0  ;;  %v4014_v42 = vrot.slane %v4013_v51, 2  ;;  %v3475_v45 = vadd.f32 %v3219_v7, %v18747_v21  ;;  %v4505_v48 = vadd.f32 %v15144_v58, %v4010_v23  ;;  %v4030_v50 = vrot.slane %v4029_v24, 1 }
 0x41f   :  { %18744 = vst [vmem:[#allocation24_spill] sm:$0xff] %v15135_v29  ;;  %v15137_v56 = vpop.f32.mrb[240].mxu1  ;;  %v15139_v47 = vpop.f32.mrb[86].mxu0  ;;  %v3996_v52 = vmax.f32 %v3994_v9, %v3995_v53  ;;  %v4034_v49 = vmax.f32 %v4032_v57, %v4033_v46  ;;  %v15156_v39 = vrot.slane %v4627_v33, 3  ;;  %v15162_v23 = vrot.slane %v4632_v27, 6  ;;  %v18752_v46 = vld [vmem:[#allocation26_spill] sm:$0xff] }
 0x420   :  { %18745 = vst [vmem:[#allocation27_spill] sm:$0xff] %v15137_v56  ;;  %18746 = vst [vmem:[#allocation375_spill] sm:$0xff] %v15139_v47  ;;  %v15148_v62 = vpop.f32.mrb[241].mxu1  ;;  %v15150_v54 = vpop.f32.mrb[87].mxu0  ;;  %v4015_v9 = vmax.f32 %v4013_v51, %v4014_v42  ;;  %v4018_v53 = vsel %vm3534_vm5, %v3475_v45, -inf  ;;  %v4633_v21 = vmax.f32 %v4505_v48, 0.0  ;;  %v4031_v47 = vmax.f32 %v4029_v24, %v4030_v50 }
 0x421   :  { %18748 = vst [vmem:[#allocation177_spill] sm:$0xff] %v15148_v62  ;;  %18749 = vst [vmem:[#allocation376_spill] sm:$0xff] %v15150_v54  ;;  %v15154_v0 = vpop.f32.mrb[242].mxu1  ;;  %v4503_v13 = vadd.f32 %v15144_v58, %v3996_v52  ;;  %v4035_v54 = vrot.slane %v4034_v49, 2  ;;  %v4019_v62 = vrot.slane %v4018_v53, 4  ;;  %v4630_v56 = vmax.f32 %v4502_v61, 0.0 }
 0x422   :  { %18750 = vst [vmem:[#allocation377_spill] sm:$0xff] %v15156_v39  ;;  %v15160_v7 = vpop.f32.mrb[243].mxu1  ;;  %18751 = vst [vmem:[#allocation378_spill] sm:$0xff] %v15162_v23  ;;  %v4016_v57 = vrot.slane %v4015_v9, 1  ;;  %v18753_v42 = vld [vmem:[#allocation29_spill] sm:$0xff]  ;;  %v15172_v45 = vrot.slane %v4633_v21, 5 }
 0x423   :  { %v4631_v55 = vmax.f32 %v4503_v13, 0.0  ;;  %v4036_v33 = vmax.f32 %v4034_v49, %v4035_v54  ;;  %v4020_v39 = vmax.f32 %v4018_v53, %v4019_v62  ;;  %v3224_v48 = vrot.slane %v14835_v10, 1  ;;  %v18762_v51 = vld [vmem:[#allocation181_spill] sm:$0xff]  ;;  %v19044_v29 = vld [vmem:[#allocation86_spill] sm:$0xff] }
 0x424   :  { %11825 = vmatmul.mubr.msk.bf16.gmra.mrb[92].mxu1 %vm1731_vm13, %v18752_v46  ;;  %18755 = vst [vmem:[#allocation29_spill] sm:$0xff] %v15172_v45  ;;  %v4017_v61 = vmax.f32 %v4015_v9, %v4016_v57  ;;  %v15178_v54 = vadd.f32 %v15144_v58, %v4031_v47  ;;  %v3222_v13 = vrot.slane %v14841_v44, 1  ;;  %v18760_v9 = vld [vmem:[#allocation179_spill] sm:$0xff]  ;;  %v3225_v57 = vrot.slane %v14848_v34, 1 }
 0x425   :  { %11828 = vmatprep.mubr.msk.bf16.mxu1 %vm1731_vm13, %v18753_v42  ;;  %v15170_v24 = vpop.f32.mrb[88].mxu0  ;;  %v8784_v27 = vrot.slane %v4631_v55, 7  ;;  %v4037_v62 = vrot.slane %v4036_v33, 1  ;;  %v4021_v49 = vrot.slane %v4020_v39, 2  ;;  %v3480_v10 = vadd.f32 %v18760_v9, %v3224_v48  ;;  %v18763_v48 = vld [vmem:[#allocation183_spill] sm:$0xff] }
 0x426   :  { %18754 = vst [vmem:[#allocation26_spill] sm:$0xff] %v15170_v24  ;;  %v15175_v50 = vpop.f32.mrb[89].mxu0  ;;  %18757 = vst [vmem:[#allocation380_spill] sm:$0xff] %v15178_v54  ;;  %v4506_v55 = vadd.f32 %v15144_v58, %v4017_v61  ;;  %v3478_v45 = vadd.f32 %v3222_v13, %v18762_v51  ;;  %v3223_v23 = vrot.slane %v14853_v43, 1  ;;  %v3481_v34 = vadd.f32 %v18763_v48, %v3225_v57 }
 0x427   :  { %18756 = vst [vmem:[#allocation379_spill] sm:$0xff] %v15175_v50  ;;  %v15181_v53 = vpop.f32.mrb[244].mxu1  ;;  %v15183_v46 = vpop.f32.mrb[90].mxu0  ;;  %v15186_v21 = vsel %vm8666_vm11, %v8784_v27, %v4630_v56  ;;  %v4022_v52 = vmax.f32 %v4020_v39, %v4021_v49  ;;  %v4053_v27 = vsel %vm3534_vm5, %v3480_v10, -inf  ;;  %v18764_v49 = vld [vmem:[#allocation185_spill] sm:$0xff]  ;;  %v15207_v51 = vmax.f32 %v4036_v33, %v4037_v62  ;;  %v18767_v10 = vld [vmem:[#allocation28_spill] sm:$0xff] }
 0x428   :  { %18758 = vst [vmem:[#allocation381_spill] sm:$0xff] %v15183_v46  ;;  %18759 = vst [vmem:[#allocation382_spill] sm:$0xff] %v15186_v21  ;;  %v15191_v42 = vpop.f32.mrb[245].mxu1  ;;  %v15193_v47 = vpop.f32.mrb[91].mxu0  ;;  %v4634_v56 = vmax.f32 %v4506_v55, 0.0  ;;  %v4054_v15 = vrot.slane %v4053_v27, 4  ;;  %v3479_v44 = vadd.f32 %v3223_v23, %v18764_v49 }
 0x429   :  { %18761 = vst [vmem:[#allocation179_spill] sm:$0xff] %v15193_v47  ;;  %v15198_v54 = vpop.f32.mrb[246].mxu1  ;;  %v4023_v21 = vrot.slane %v4022_v52, 1  ;;  %v4039_v39 = vsel %vm3534_vm5, %v3478_v45, -inf  ;;  %18765 = vst [vmem:[#allocation181_spill] sm:$0xff] %v15207_v51  ;;  %v4060_v13 = vsel %vm3534_vm5, %v3481_v34, -inf }
 0x42a   :  { %v15203_v9 = vpop.f32.mrb[247].mxu1  ;;  %v4040_v43 = vrot.slane %v4039_v39, 4  ;;  %v4055_v57 = vmax.f32 %v4053_v27, %v4054_v15  ;;  %v4061_v48 = vrot.slane %v4060_v13, 4  ;;  %v4046_v18 = vsel %vm3534_vm5, %v3479_v44, -inf  ;;  %v18771_v34 = vld [vmem:[#allocation13_spill] sm:$0xff] }
 0x42b   :  { %v4024_v61 = vmax.f32 %v4022_v52, %v4023_v21  ;;  %v15218_v23 = vrot.slane %v4634_v56, 4  ;;  %v4047_v62 = vrot.slane %v4046_v18, 4  ;;  %v3228_v49 = vrot.slane %v18771_v34, 1  ;;  %v18773_v21 = vld [vmem:[#allocation354_spill] sm:$0xff] }
 0x42c   :  { %11829 = vmatmul.mubr.msk.bf16.gmra.mrb[96].mxu1 %vm1731_vm13, %v18767_v10  ;;  %v4041_v33 = vmax.f32 %v4039_v39, %v4040_v43  ;;  %v4056_v15 = vrot.slane %v4055_v57, 2  ;;  %v4062_v52 = vmax.f32 %v4060_v13, %v4061_v48  ;;  %v3226_v44 = vrot.slane %v18773_v21, 1  ;;  %v18777_v43 = vld [vmem:[#allocation187_spill] sm:$0xff]  ;;  %v18780_v48 = vld [vmem:[#allocation189_spill] sm:$0xff] }
 0x42d   :  { %11832 = vmatprep.mubr.msk.bf16.mxu1 %vm1731_vm13, %v18768_v31  ;;  %v15216_v45 = vpop.f32.mrb[92].mxu0  ;;  %18770 = vst [vmem:[#allocation185_spill] sm:$0xff] %v15218_v23  ;;  %v15224_v10 = vadd.f32 %v15144_v58, %v4024_v61  ;;  %v4048_v56 = vmax.f32 %v4046_v18, %v4047_v62  ;;  %v3484_v55 = vadd.f32 %v18777_v43, %v3228_v49  ;;  %v3229_v62 = vrot.slane %v14887_v35, 1 }
 0x42e   :  { %18769 = vst [vmem:[#allocation183_spill] sm:$0xff] %v15216_v45  ;;  %v15221_v3 = vpop.f32.mrb[93].mxu0  ;;  %v4042_v51 = vrot.slane %v4041_v33, 2  ;;  %v4057_v61 = vmax.f32 %v4055_v57, %v4056_v15  ;;  %v3482_v21 = vadd.f32 %v3226_v44, %v18780_v48  ;;  %v18783_v44 = vld [vmem:[#allocation191_spill] sm:$0xff]  ;;  %v18784_v45 = vld [vmem:[#allocation30_spill] sm:$0xff] }
 0x42f   :  { %18772 = vst [vmem:[#allocation28_spill] sm:$0xff] %v15221_v3  ;;  %v15227_v27 = vpop.f32.mrb[248].mxu1  ;;  %v15229_v31 = vpop.f32.mrb[94].mxu0  ;;  %v4063_v3 = vrot.slane %v4062_v52, 2  ;;  %v4081_v18 = vsel %vm3534_vm5, %v3484_v55, -inf  ;;  %v4635_v49 = vmax.f32 %v15224_v10, 0.0  ;;  %v3485_v48 = vadd.f32 %v18783_v44, %v3229_v62 }
 0x430   :  { %18774 = vst [vmem:[#allocation31_spill] sm:$0xff] %v15227_v27  ;;  %18775 = vst [vmem:[#allocation13_spill] sm:$0xff] %v15229_v31  ;;  %v15233_v34 = vpop.f32.mrb[249].mxu1  ;;  %v15235_v59 = vpop.f32.mrb[95].mxu0  ;;  %v4043_v27 = vmax.f32 %v4041_v33, %v4042_v51  ;;  %v4049_v31 = vrot.slane %v4048_v56, 2  ;;  %v4058_v43 = vrot.slane %v4057_v61, 1 }
 0x431   :  { %18778 = vst [vmem:[#allocation354_spill] sm:$0xff] %v15235_v59  ;;  %v15239_v47 = vpop.f32.mrb[250].mxu1  ;;  %v4064_v23 = vmax.f32 %v4062_v52, %v4063_v3  ;;  %v4082_v57 = vrot.slane %v4081_v18, 4  ;;  %v4067_v13 = vsel %vm3534_vm5, %v3482_v21, -inf }
 0x432   :  { %18781 = vst [vmem:[#allocation187_spill] sm:$0xff] %v15239_v47  ;;  %v15243_v39 = vpop.f32.mrb[251].mxu1  ;;  %v4044_v15 = vrot.slane %v4043_v27, 1  ;;  %v4050_v59 = vmax.f32 %v4048_v56, %v4049_v31  ;;  %v4059_v51 = vmax.f32 %v4057_v61, %v4058_v43  ;;  %v4068_v35 = vrot.slane %v4067_v13, 4  ;;  %v18785_v47 = vld [vmem:[#allocation33_spill] sm:$0xff] }
 0x433   :  { %18782 = vst [vmem:[#allocation189_spill] sm:$0xff] %v15243_v39  ;;  %v4065_v55 = vrot.slane %v4064_v23, 1  ;;  %v4083_v33 = vmax.f32 %v4081_v18, %v4082_v57  ;;  %v4088_v31 = vsel %vm3534_vm5, %v3485_v48, -inf  ;;  %v3227_v56 = vrot.slane %v14889_v14, 1  ;;  %v18795_v39 = vld [vmem:[#allocation32_spill] sm:$0xff] }
 0x434   :  { %11833 = vmatmul.mubr.msk.bf16.gmra.mrb[100].mxu1 %vm1731_vm13, %v18784_v45  ;;  %v4045_v3 = vmax.f32 %v4043_v27, %v4044_v15  ;;  %v4051_v52 = vrot.slane %v4050_v59, 1  ;;  %v4512_v62 = vadd.f32 %v15144_v58, %v4059_v51  ;;  %v4069_v43 = vmax.f32 %v4067_v13, %v4068_v35  ;;  %v18790_v15 = vld [vmem:[#allocation193_spill] sm:$0xff] }
 0x435   :  { %11836 = vmatprep.mubr.msk.bf16.mxu1 %vm1731_vm13, %v18785_v47  ;;  %v15252_v10 = vpop.f32.mrb[96].mxu0  ;;  %v4066_v45 = vmax.f32 %v4064_v23, %v4065_v55  ;;  %v4084_v61 = vrot.slane %v4083_v33, 2  ;;  %v4089_v27 = vrot.slane %v4088_v31, 4 }
 0x436   :  { %18786 = vst [vmem:[#allocation191_spill] sm:$0xff] %v15252_v10  ;;  %v15256_v21 = vpop.f32.mrb[97].mxu0  ;;  %v4510_v47 = vadd.f32 %v15144_v58, %v4045_v3  ;;  %v4052_v44 = vmax.f32 %v4050_v59, %v4051_v52  ;;  %v3483_v10 = vadd.f32 %v3227_v56, %v18790_v15  ;;  %v4070_v55 = vrot.slane %v4069_v43, 2 }
 0x437   :  { %18787 = vst [vmem:[#allocation30_spill] sm:$0xff] %v15256_v21  ;;  %v15259_v18 = vpop.f32.mrb[252].mxu1  ;;  %v15261_v57 = vpop.f32.mrb[98].mxu0  ;;  %v4640_v21 = vmax.f32 %v4512_v62, 0.0  ;;  %v4513_v51 = vadd.f32 %v15144_v58, %v4066_v45  ;;  %v4085_v23 = vmax.f32 %v4083_v33, %v4084_v61  ;;  %v4090_v3 = vmax.f32 %v4088_v31, %v4089_v27  ;;  %v18797_v27 = vld [vmem:[#allocation35_spill] sm:$0xff] }
 0x438   :  { %18788 = vst [vmem:[#allocation33_spill] sm:$0xff] %v15259_v18  ;;  %18789 = vst [vmem:[#allocation383_spill] sm:$0xff] %v15261_v57  ;;  %v15265_v48 = vpop.f32.mrb[253].mxu1  ;;  %v15267_v14 = vpop.f32.mrb[99].mxu0  ;;  %v4511_v35 = vadd.f32 %v15144_v58, %v4052_v44  ;;  %v4074_v59 = vsel %vm3534_vm5, %v3483_v10, -inf  ;;  %v15277_v56 = vrot.slane %v4635_v49, 3  ;;  %v4071_v62 = vmax.f32 %v4069_v43, %v4070_v55 }
 0x439   :  { %18791 = vst [vmem:[#allocation193_spill] sm:$0xff] %v15265_v48  ;;  %18792 = vst [vmem:[#allocation384_spill] sm:$0xff] %v15267_v14  ;;  %v15270_v13 = vpop.f32.mrb[254].mxu1  ;;  %v4641_v15 = vmax.f32 %v4513_v51, 0.0  ;;  %v4086_v14 = vrot.slane %v4085_v23, 1  ;;  %v4638_v48 = vmax.f32 %v4510_v47, 0.0 }
 0x43a   :  { %v15275_v52 = vpop.f32.mrb[255].mxu1  ;;  %18794 = vst [vmem:[#allocation385_spill] sm:$0xff] %v15277_v56  ;;  %v4639_v45 = vmax.f32 %v4511_v35, 0.0  ;;  %v4091_v33 = vrot.slane %v4090_v3, 2  ;;  %v4075_v61 = vrot.slane %v4074_v59, 4  ;;  %v15281_v44 = vrot.slane %v4640_v21, 6 }
 0x43b   :  { %v4087_v18 = vmax.f32 %v4085_v23, %v4086_v14  ;;  %v4072_v31 = vrot.slane %v4071_v62, 1  ;;  %v18799_v55 = vld [vmem:[#allocation145_spill] sm:$0xff]  ;;  %v15291_v57 = vrot.slane %v4641_v15, 5  ;;  %v3230_v23 = vrot.slane %v14913_v30, 1 }
 0x43c   :  { %11837 = vmatmul.mubr.msk.bf16.gmra.mrb[104].mxu1 %vm1731_vm13, %v18795_v39  ;;  %18796 = vst [vmem:[#allocation32_spill] sm:$0xff] %v15281_v44  ;;  %v8798_v51 = vrot.slane %v4639_v45, 7  ;;  %v4092_v43 = vmax.f32 %v4090_v3, %v4091_v33  ;;  %v4076_v47 = vmax.f32 %v4074_v59, %v4075_v61  ;;  %v3232_v35 = vrot.slane %v18799_v55, 1  ;;  %v18806_v45 = vld [vmem:[#allocation195_spill] sm:$0xff] }
 0x43d   :  { %11840 = vmatprep.mubr.msk.bf16.mxu1 %vm1731_vm13, %v18797_v27  ;;  %v15286_v49 = vpop.f32.mrb[100].mxu0  ;;  %18801 = vst [vmem:[#allocation386_spill] sm:$0xff] %v15291_v57  ;;  %v4073_v39 = vmax.f32 %v4071_v62, %v4072_v31  ;;  %v15303_v3 = vadd.f32 %v15144_v58, %v4087_v18  ;;  %v18808_v31 = vld [vmem:[#allocation197_spill] sm:$0xff]  ;;  %v3233_v14 = vrot.slane %v14919_v36, 1 }
 0x43e   :  { %18798 = vst [vmem:[#allocation35_spill] sm:$0xff] %v15286_v49  ;;  %v15289_v56 = vpop.f32.mrb[101].mxu0  ;;  %v15300_v27 = vsel %vm8666_vm11, %v8798_v51, %v4638_v48  ;;  %v4077_v59 = vrot.slane %v4076_v47, 2  ;;  %v3488_v33 = vadd.f32 %v18806_v45, %v3232_v35  ;;  %v4093_v30 = vrot.slane %v4092_v43, 1  ;;  %v18816_v51 = vld [vmem:[#allocation39_spill] sm:$0xff] }
 0x43f   :  { %18800 = vst [vmem:[#allocation145_spill] sm:$0xff] %v15289_v56  ;;  %v15295_v10 = vpop.f32.mrb[0].mxu1  ;;  %v15297_v44 = vpop.f32.mrb[102].mxu0  ;;  %18804 = vst [vmem:[#allocation388_spill] sm:$0xff] %v15300_v27  ;;  %v4514_v61 = vadd.f32 %v15144_v58, %v4073_v39  ;;  %v3486_v55 = vadd.f32 %v3230_v23, %v18808_v31  ;;  %v3231_v35 = vrot.slane %v14921_v5, 1 }
 0x440   :  { %18803 = vst [vmem:[#allocation387_spill] sm:$0xff] %v15297_v44  ;;  %18805 = vst [vmem:[#allocation389_spill] sm:$0xff] %v15303_v3  ;;  %v15306_v15 = vpop.f32.mrb[1].mxu1  ;;  %v15308_v62 = vpop.f32.mrb[103].mxu0  ;;  %v4078_v48 = vmax.f32 %v4076_v47, %v4077_v59  ;;  %v4109_v18 = vsel %vm3534_vm5, %v3488_v33, -inf  ;;  %v18814_v59 = vld [vmem:[#allocation34_spill] sm:$0xff]  ;;  %v15326_v33 = vmax.f32 %v4092_v43, %v4093_v30 }
 0x441   :  { %18807 = vst [vmem:[#allocation195_spill] sm:$0xff] %v15308_v62  ;;  %v15313_v57 = vpop.f32.mrb[2].mxu1  ;;  %v4642_v3 = vmax.f32 %v4514_v61, 0.0  ;;  %v4110_v21 = vrot.slane %v4109_v18, 4  ;;  %v4095_v39 = vsel %vm3534_vm5, %v3486_v55, -inf  ;;  %v3489_v62 = vadd.f32 %v18811_v63, %v3233_v14 }
 0x442   :  { %18809 = vst [vmem:[#allocation197_spill] sm:$0xff] %v15313_v57  ;;  %v15318_v45 = vpop.f32.mrb[3].mxu1  ;;  %v4079_v23 = vrot.slane %v4078_v48, 1  ;;  %v4096_v31 = vrot.slane %v4095_v39, 4  ;;  %v18813_v57 = vld [vmem:[#allocation201_spill] sm:$0xff]  ;;  %18815 = vst [vmem:[#allocation199_spill] sm:$0xff] %v15326_v33 }
 0x443   :  { %v3487_v47 = vadd.f32 %v3231_v35, %v18813_v57  ;;  %v4111_v5 = vmax.f32 %v4109_v18, %v4110_v21  ;;  %v4116_v27 = vsel %vm3534_vm5, %v3489_v62, -inf  ;;  %v3236_v62 = vrot.slane %v14949_v6, 1  ;;  %v18823_v33 = vld [vmem:[#allocation203_spill] sm:$0xff] }
 0x444   :  { %11841 = vmatmul.mubr.msk.bf16.gmra.mrb[108].mxu1 %vm1731_vm13, %v18814_v59  ;;  %v4080_v14 = vmax.f32 %v4078_v48, %v4079_v23  ;;  %v4097_v55 = vmax.f32 %v4095_v39, %v4096_v31  ;;  %v4117_v44 = vrot.slane %v4116_v27, 4  ;;  %v15337_v59 = vrot.slane %v4642_v3, 4 }
 0x445   :  { %11844 = vmatprep.mubr.msk.bf16.mxu1 %vm1731_vm13, %v18816_v51  ;;  %v15332_v63 = vpop.f32.mrb[104].mxu0  ;;  %v4102_v57 = vsel %vm3534_vm5, %v3487_v47, -inf  ;;  %v4112_v43 = vrot.slane %v4111_v5, 2  ;;  %v3234_v39 = vrot.slane %v14956_v17, 1  ;;  %v3492_v6 = vadd.f32 %v18823_v33, %v3236_v62  ;;  %v18825_v62 = vld [vmem:[#allocation38_spill] sm:$0xff] }
 0x446   :  { %18817 = vst [vmem:[#allocation201_spill] sm:$0xff] %v15332_v63  ;;  %v15335_v35 = vpop.f32.mrb[105].mxu0  ;;  %18819 = vst [vmem:[#allocation39_spill] sm:$0xff] %v15337_v59  ;;  %v4103_v21 = vrot.slane %v4102_v57, 4  ;;  %v4515_v51 = vadd.f32 %v15144_v58, %v4080_v14  ;;  %v4098_v61 = vrot.slane %v4097_v55, 2  ;;  %v4118_v48 = vmax.f32 %v4116_v27, %v4117_v44  ;;  %v18827_v59 = vld [vmem:[#allocation47_spill] sm:$0xff] }
 0x447   :  { %18818 = vst [vmem:[#allocation34_spill] sm:$0xff] %v15335_v35  ;;  %v15340_v30 = vpop.f32.mrb[4].mxu1  ;;  %v15342_v18 = vpop.f32.mrb[106].mxu0  ;;  %v4113_v3 = vmax.f32 %v4111_v5, %v4112_v43  ;;  %v18824_v35 = vld [vmem:[#allocation205_spill] sm:$0xff]  ;;  %v3237_v5 = vrot.slane %v14962_v2, 1 }
 0x448   :  { %18820 = vst [vmem:[#allocation390_spill] sm:$0xff] %v15342_v18  ;;  %v15346_v23 = vpop.f32.mrb[5].mxu1  ;;  %v15348_v31 = vpop.f32.mrb[107].mxu0  ;;  %v4104_v47 = vmax.f32 %v4102_v57, %v4103_v21  ;;  %v4099_v36 = vmax.f32 %v4097_v55, %v4098_v61  ;;  %v4119_v18 = vrot.slane %v4118_v48, 2  ;;  %v3490_v44 = vadd.f32 %v3234_v39, %v18824_v35  ;;  %v18826_v35 = vld [vmem:[#allocation207_spill] sm:$0xff] }
 0x449   :  { %18821 = vst [vmem:[#allocation391_spill] sm:$0xff] %v15346_v23  ;;  %18822 = vst [vmem:[#allocation392_spill] sm:$0xff] %v15348_v31  ;;  %v15352_v41 = vpop.f32.mrb[6].mxu1  ;;  %v4114_v17 = vrot.slane %v4113_v3, 1  ;;  %v4137_v31 = vsel %vm3534_vm5, %v3492_v6, -inf  ;;  %v4643_v57 = vmax.f32 %v4515_v51, 0.0  ;;  %v3493_v39 = vadd.f32 %v18826_v35, %v3237_v5 }
 0x44a   :  { %v15356_v27 = vpop.f32.mrb[7].mxu1  ;;  %v4105_v23 = vrot.slane %v4104_v47, 2  ;;  %v4100_v43 = vrot.slane %v4099_v36, 1  ;;  %v4120_v21 = vmax.f32 %v4118_v48, %v4119_v18  ;;  %v4138_v33 = vrot.slane %v4137_v31, 4 }
 0x44b   :  { %v4115_v61 = vmax.f32 %v4113_v3, %v4114_v17  ;;  %v4123_v14 = vsel %vm3534_vm5, %v3490_v44, -inf }
 0x44c   :  { %11845 = vmatmul.mubr.msk.bf16.gmra.mrb[112].mxu1 %vm1731_vm13, %v18825_v62  ;;  %v4106_v55 = vmax.f32 %v4104_v47, %v4105_v23  ;;  %v4101_v6 = vmax.f32 %v4099_v36, %v4100_v43  ;;  %v4121_v2 = vrot.slane %v4120_v21, 1  ;;  %v4139_v51 = vmax.f32 %v4137_v31, %v4138_v33  ;;  %v18830_v43 = vld [vmem:[#allocation209_spill] sm:$0xff] }
 0x44d   :  { %11848 = vmatprep.mubr.msk.bf16.mxu1 %vm1731_vm13, %v18827_v59  ;;  %v15366_v38 = vpop.f32.mrb[108].mxu0  ;;  %v4124_v28 = vrot.slane %v4123_v14, 4  ;;  %v4520_v18 = vadd.f32 %v15144_v58, %v4115_v61  ;;  %v4144_v62 = vsel %vm3534_vm5, %v3493_v39, -inf  ;;  %v3235_v23 = vrot.slane %v14967_v26, 1 }
 0x44e   :  { %18828 = vst [vmem:[#allocation203_spill] sm:$0xff] %v15366_v38  ;;  %v4107_v48 = vrot.slane %v4106_v55, 1  ;;  %v4518_v3 = vadd.f32 %v15144_v58, %v4101_v6  ;;  %v4122_v47 = vmax.f32 %v4120_v21, %v4121_v2  ;;  %v4140_v44 = vrot.slane %v4139_v51, 2  ;;  %v15372_v5 = vpop.f32.mrb[109].mxu0 }
 0x44f   :  { %v4125_v17 = vmax.f32 %v4123_v14, %v4124_v28  ;;  %18829 = vst [vmem:[#allocation205_spill] sm:$0xff] %v15372_v5  ;;  %v4648_v59 = vmax.f32 %v4520_v18, 0.0  ;;  %v4145_v36 = vrot.slane %v4144_v62, 4  ;;  %v3491_v31 = vadd.f32 %v3235_v23, %v18830_v43  ;;  %v15375_v33 = vpop.f32.mrb[8].mxu1  ;;  %v15377_v61 = vpop.f32.mrb[110].mxu0  ;;  %v18833_v43 = vld [vmem:[#allocation45_spill] sm:$0xff] }
 0x450   :  { %v4108_v35 = vmax.f32 %v4106_v55, %v4107_v48  ;;  %18831 = vst [vmem:[#allocation38_spill] sm:$0xff] %v15377_v61  ;;  %v4521_v39 = vadd.f32 %v15144_v58, %v4122_v47  ;;  %v4141_v38 = vmax.f32 %v4139_v51, %v4140_v44  ;;  %v15381_v21 = vrot.slane %v4643_v57, 3  ;;  %v15389_v6 = vpop.f32.mrb[9].mxu1  ;;  %v15391_v57 = vpop.f32.mrb[111].mxu0 }
 0x451   :  { %v4126_v26 = vrot.slane %v4125_v17, 2  ;;  %v4146_v14 = vmax.f32 %v4144_v62, %v4145_v36  ;;  %v4130_v55 = vsel %vm3534_vm5, %v3491_v31, -inf  ;;  %v15387_v61 = vrot.slane %v4648_v59, 6  ;;  %18835 = vst [vmem:[#allocation209_spill] sm:$0xff] %v15389_v6  ;;  %18836 = vst [vmem:[#allocation45_spill] sm:$0xff] %v15391_v57  ;;  %v18842_v31 = vld [vmem:[#allocation211_spill] sm:$0xff] }
 0x452   :  { %18832 = vst [vmem:[#allocation207_spill] sm:$0xff] %v15381_v21  ;;  %v4519_v28 = vadd.f32 %v15144_v58, %v4108_v35  ;;  %v4649_v2 = vmax.f32 %v4521_v39, 0.0  ;;  %v4142_v18 = vrot.slane %v4141_v38, 1  ;;  %v4131_v23 = vrot.slane %v4130_v55, 4  ;;  %v18837_v35 = vld [vmem:[#allocation53_spill] sm:$0xff]  ;;  %v15397_v39 = vpop.f32.mrb[10].mxu1 }
 0x453   :  { %v4127_v48 = vmax.f32 %v4125_v17, %v4126_v26  ;;  %18834 = vst [vmem:[#allocation47_spill] sm:$0xff] %v15387_v61  ;;  %v4646_v51 = vmax.f32 %v4518_v3, 0.0  ;;  %v4147_v44 = vrot.slane %v4146_v14, 2  ;;  %v15400_v61 = vpop.f32.mrb[11].mxu1 }
 0x454   :  { %11849 = vmatmul.mubr.msk.bf16.gmra.mrb[116].mxu1 %vm1731_vm13, %v18833_v43  ;;  %v4647_v47 = vmax.f32 %v4519_v28, 0.0  ;;  %v4132_v36 = vmax.f32 %v4130_v55, %v4131_v23  ;;  %v4143_v26 = vmax.f32 %v4141_v38, %v4142_v18  ;;  %v18838_v28 = vld [vmem:[#allocation155_spill] sm:$0xff]  ;;  %v15402_v21 = vrot.slane %v4649_v2, 5  ;;  %v18844_v18 = vld [vmem:[#allocation213_spill] sm:$0xff] }
 0x455   :  { %11852 = vmatprep.mubr.msk.bf16.mxu1 %vm1731_vm13, %v18837_v35  ;;  %v4128_v62 = vrot.slane %v4127_v48, 1  ;;  %v4148_v3 = vmax.f32 %v4146_v14, %v4147_v44  ;;  %v3240_v43 = vrot.slane %v18838_v28, 1  ;;  %v18840_v35 = vld [vmem:[#allocation157_spill] sm:$0xff]  ;;  %v18845_v28 = vld [vmem:[#allocation364_spill] sm:$0xff] }
 0x456   :  { %v8812_v59 = vrot.slane %v4647_v47, 7  ;;  %18839 = vst [vmem:[#allocation53_spill] sm:$0xff] %v15402_v21  ;;  %v4133_v57 = vrot.slane %v4132_v36, 2  ;;  %v3238_v6 = vrot.slane %v18840_v35, 1  ;;  %v3241_v2 = vrot.slane %v18845_v28, 1  ;;  %v15413_v21 = vpop.f32.mrb[112].mxu0 }
 0x457   :  { %v4129_v22 = vmax.f32 %v4127_v48, %v4128_v62  ;;  %v4149_v23 = vrot.slane %v4148_v3, 1  ;;  %v3496_v17 = vadd.f32 %v18842_v31, %v3240_v43  ;;  %18846 = vst [vmem:[#allocation157_spill] sm:$0xff] %v15413_v21  ;;  %v15416_v48 = vadd.f32 %v15144_v58, %v4143_v26  ;;  %v15421_v43 = vpop.f32.mrb[113].mxu0  ;;  %v18853_v26 = vld [vmem:[#allocation51_spill] sm:$0xff] }
 0x458   :  { %v15406_v55 = vsel %vm8666_vm11, %v8812_v59, %v4646_v51  ;;  %v4134_v14 = vmax.f32 %v4132_v36, %v4133_v57  ;;  %v3494_v44 = vadd.f32 %v3238_v6, %v18844_v18  ;;  %v3239_v31 = vrot.slane %v15007_v37, 1  ;;  %18849 = vst [vmem:[#allocation213_spill] sm:$0xff] %v15421_v43  ;;  %v15426_v36 = vpop.f32.mrb[12].mxu1  ;;  %v15428_v18 = vpop.f32.mrb[114].mxu0  ;;  %v18854_v59 = vld [vmem:[#allocation215_spill] sm:$0xff]  ;;  %v18855_v37 = vld [vmem:[#allocation217_spill] sm:$0xff] }
 0x459   :  { %18841 = vst [vmem:[#allocation155_spill] sm:$0xff] %v15406_v55  ;;  %v4522_v38 = vadd.f32 %v15144_v58, %v4129_v22  ;;  %18847 = vst [vmem:[#allocation211_spill] sm:$0xff] %v15416_v48  ;;  %v4165_v51 = vsel %vm3534_vm5, %v3496_v17, -inf  ;;  %v15423_v35 = vmax.f32 %v4148_v3, %v4149_v23  ;;  %v3497_v47 = vadd.f32 %v18854_v59, %v3241_v2  ;;  %v15434_v48 = vpop.f32.mrb[13].mxu1  ;;  %v15436_v3 = vpop.f32.mrb[115].mxu0  ;;  %v18858_v23 = vld [vmem:[#allocation59_spill] sm:$0xff] }
 0x45a   :  { %v4135_v22 = vrot.slane %v4134_v14, 1  ;;  %v4166_v57 = vrot.slane %v4165_v51, 4  ;;  %v4151_v6 = vsel %vm3534_vm5, %v3494_v44, -inf  ;;  %18851 = vst [vmem:[#allocation393_spill] sm:$0xff] %v15426_v36  ;;  %18852 = vst [vmem:[#allocation394_spill] sm:$0xff] %v15428_v18  ;;  %v3495_v55 = vadd.f32 %v3239_v31, %v18855_v37  ;;  %v18867_v36 = vld [vmem:[#allocation367_spill] sm:$0xff] }
 0x45b   :  { %18850 = vst [vmem:[#allocation364_spill] sm:$0xff] %v15423_v35  ;;  %v4650_v17 = vmax.f32 %v4522_v38, 0.0  ;;  %v4152_v28 = vrot.slane %v4151_v6, 4  ;;  %18856 = vst [vmem:[#allocation51_spill] sm:$0xff] %v15434_v48  ;;  %v4172_v2 = vsel %vm3534_vm5, %v3497_v47, -inf  ;;  %v3498_v48 = vadd.f32 %v3242_v32, %v18866_v60 }
 0x45c   :  { %11853 = vmatmul.mubr.msk.bf16.gmra.mrb[120].mxu1 %vm1731_vm13, %v18853_v26  ;;  %18857 = vst [vmem:[#allocation215_spill] sm:$0xff] %v15436_v3  ;;  %v4136_v44 = vmax.f32 %v4134_v14, %v4135_v22  ;;  %v4167_v35 = vmax.f32 %v4165_v51, %v4166_v57  ;;  %v15442_v26 = vpop.f32.mrb[14].mxu1  ;;  %v4158_v59 = vsel %vm3534_vm5, %v3495_v55, -inf  ;;  %v4173_v18 = vrot.slane %v4172_v2, 4  ;;  %v18862_v22 = vld [vmem:[#allocation219_spill] sm:$0xff] }
 0x45d   :  { %11856 = vmatprep.mubr.msk.bf16.mxu1 %vm1731_vm13, %v18858_v23  ;;  %18860 = vst [vmem:[#allocation217_spill] sm:$0xff] %v15442_v26  ;;  %v4153_v38 = vmax.f32 %v4151_v6, %v4152_v28  ;;  %v4159_v23 = vrot.slane %v4158_v59, 4  ;;  %v15448_v14 = vrot.slane %v4650_v17, 4  ;;  %v3500_v57 = vadd.f32 %v18862_v22, %v3244_v16  ;;  %v15453_v55 = vpop.f32.mrb[15].mxu1  ;;  %v18868_v22 = vld [vmem:[#allocation57_spill] sm:$0xff] }
 0x45e   :  { %v4523_v37 = vadd.f32 %v15144_v58, %v4136_v44  ;;  %v4168_v3 = vrot.slane %v4167_v35, 2  ;;  %v4174_v6 = vmax.f32 %v4172_v2, %v4173_v18  ;;  %18865 = vst [vmem:[#allocation219_spill] sm:$0xff] %v15453_v55  ;;  %v3245_v17 = vrot.slane %v18867_v36, 1  ;;  %v18869_v2 = vld [vmem:[#allocation223_spill] sm:$0xff] }
 0x45f   :  { %18861 = vst [vmem:[#allocation59_spill] sm:$0xff] %v15448_v14  ;;  %v4154_v51 = vrot.slane %v4153_v38, 2  ;;  %v4160_v28 = vmax.f32 %v4158_v59, %v4159_v23  ;;  %v4193_v44 = vsel %vm3534_vm5, %v3500_v57, -inf }
 0x460   :  { %v4169_v62 = vmax.f32 %v4167_v35, %v4168_v3  ;;  %v4651_v14 = vmax.f32 %v4523_v37, 0.0  ;;  %v4175_v21 = vrot.slane %v4174_v6, 2  ;;  %v4194_v18 = vrot.slane %v4193_v44, 4  ;;  %v15464_v37 = vpop.f32.mrb[116].mxu0 }
 0x461   :  { %v4155_v31 = vmax.f32 %v4153_v38, %v4154_v51  ;;  %v4161_v16 = vrot.slane %v4160_v28, 2  ;;  %v4179_v3 = vsel %vm3534_vm5, %v3498_v48, -inf  ;;  %v3501_v59 = vadd.f32 %v18869_v2, %v3245_v17  ;;  %v18870_v38 = vld [vmem:[#allocation37_spill] sm:$0xff]  ;;  %18871 = vst [vmem:[#allocation161_spill] sm:$0xff] %v15464_v37 }
 0x462   :  { %v4170_v43 = vrot.slane %v4169_v62, 1  ;;  %v4176_v32 = vmax.f32 %v4174_v6, %v4175_v21  ;;  %v4180_v36 = vrot.slane %v4179_v3, 4  ;;  %v4195_v57 = vmax.f32 %v4193_v44, %v4194_v18  ;;  %v18873_v21 = vld [vmem:[#allocation225_spill] sm:$0xff]  ;;  %v19002_v5 = vld [vmem:[#allocation51_spill] sm:$0xff] }
 0x463   :  { %v4156_v35 = vrot.slane %v4155_v31, 1  ;;  %v4162_v60 = vmax.f32 %v4160_v28, %v4161_v16  ;;  %v4200_v19 = vsel %vm3534_vm5, %v3501_v59, -inf  ;;  %v15475_v37 = vrot.slane %v4651_v14, 3 }
 0x464   :  { %11857 = vmatmul.mubr.msk.bf16.gmra.mrb[124].mxu1 %vm1731_vm13, %v18868_v22  ;;  %v4171_v23 = vmax.f32 %v4169_v62, %v4170_v43  ;;  %v18872_v22 = vld [vmem:[#allocation368_spill] sm:$0xff]  ;;  %v4177_v48 = vrot.slane %v4176_v32, 1  ;;  %v4181_v17 = vmax.f32 %v4179_v3, %v4180_v36  ;;  %v4201_v62 = vrot.slane %v4200_v19, 4 }
 0x465   :  { %11860 = vmatprep.mubr.msk.bf16.mxu1 %vm1731_vm13, %v18870_v38  ;;  %v4157_v51 = vmax.f32 %v4155_v31, %v4156_v35  ;;  %v3243_v26 = vrot.slane %v18872_v22, 1  ;;  %v4163_v55 = vrot.slane %v4162_v60, 1  ;;  %v4196_v38 = vrot.slane %v4195_v57, 2  ;;  %18876 = vst [vmem:[#allocation367_spill] sm:$0xff] %v15475_v37  ;;  %v18884_v35 = vld [vmem:[#allocation227_spill] sm:$0xff] }
 0x466   :  { %v4528_v47 = vadd.f32 %v15144_v58, %v4171_v23  ;;  %v4178_v28 = vmax.f32 %v4176_v32, %v4177_v48  ;;  %v4182_v31 = vrot.slane %v4181_v17, 2  ;;  %v4202_v59 = vmax.f32 %v4200_v19, %v4201_v62  ;;  %v15473_v23 = vpop.f32.mrb[117].mxu0  ;;  %v18879_v48 = vld [vmem:[#allocation41_spill] sm:$0xff] }
 0x467   :  { %v4526_v2 = vadd.f32 %v15144_v58, %v4157_v51  ;;  %v3499_v43 = vadd.f32 %v3243_v26, %v18873_v21  ;;  %v4164_v16 = vmax.f32 %v4162_v60, %v4163_v55  ;;  %v4197_v44 = vmax.f32 %v4195_v57, %v4196_v38  ;;  %18875 = vst [vmem:[#allocation221_spill] sm:$0xff] %v15473_v23  ;;  %v15479_v26 = vpop.f32.mrb[16].mxu1  ;;  %v18878_v55 = vld [vmem:[#allocation36_spill] sm:$0xff] }
 0x468   :  { %v4656_v6 = vmax.f32 %v4528_v47, 0.0  ;;  %v4529_v3 = vadd.f32 %v15144_v58, %v4178_v28  ;;  %v4183_v51 = vmax.f32 %v4181_v17, %v4182_v31  ;;  %v15481_v47 = vpop.f32.mrb[118].mxu0  ;;  %v4203_v57 = vrot.slane %v4202_v59, 2  ;;  %v15489_v17 = vpop.f32.mrb[17].mxu1 }
 0x469   :  { %v4186_v22 = vsel %vm3534_vm5, %v3499_v43, -inf  ;;  %v4527_v36 = vadd.f32 %v15144_v58, %v4164_v16  ;;  %18877 = vst [vmem:[#allocation57_spill] sm:$0xff] %v15481_v47  ;;  %v4654_v32 = vmax.f32 %v4526_v2, 0.0  ;;  %v4198_v60 = vrot.slane %v4197_v44, 1  ;;  %18881 = vst [vmem:[#allocation37_spill] sm:$0xff] %v15489_v17  ;;  %v15491_v43 = vpop.f32.mrb[119].mxu0 }
 0x46a   :  { %v4187_v19 = vrot.slane %v4186_v22, 4  ;;  %v15487_v14 = vrot.slane %v4656_v6, 6  ;;  %v4657_v38 = vmax.f32 %v4529_v3, 0.0  ;;  %v4184_v21 = vrot.slane %v4183_v51, 1  ;;  %18882 = vst [vmem:[#allocation368_spill] sm:$0xff] %v15491_v43  ;;  %v15496_v6 = vpop.f32.mrb[18].mxu1 }
 0x46b   :  { %v4655_v62 = vmax.f32 %v4527_v36, 0.0  ;;  %v4199_v28 = vmax.f32 %v4197_v44, %v4198_v60  ;;  %v4204_v16 = vmax.f32 %v4202_v59, %v4203_v57  ;;  %v3248_v2 = vrot.slane %v15062_v40, 1  ;;  %v15501_v43 = vpop.f32.mrb[19].mxu1 }
 0x46c   :  { %11861 = vmatmul.mubr.msk.bf16.gmra.mrb[128].mxu1 %vm1731_vm13, %v18878_v55  ;;  %18880 = vst [vmem:[#allocation223_spill] sm:$0xff] %v15487_v14  ;;  %v4188_v31 = vmax.f32 %v4186_v22, %v4187_v19  ;;  %v4185_v18 = vmax.f32 %v4183_v51, %v4184_v21  ;;  %v15498_v3 = vrot.slane %v4657_v38, 5  ;;  %v18886_v22 = vld [vmem:[#allocation348_spill] sm:$0xff]  ;;  %v3249_v38 = vrot.slane %v15078_v12, 1  ;;  %v18893_v12 = vld [vmem:[#allocation233_spill] sm:$0xff] }
 0x46d   :  { %11864 = vmatprep.mubr.msk.bf16.mxu1 %vm1731_vm13, %v18879_v48  ;;  %v8826_v55 = vrot.slane %v4655_v62, 7  ;;  %v4205_v36 = vrot.slane %v4204_v16, 1  ;;  %v3504_v17 = vadd.f32 %v18884_v35, %v3248_v2  ;;  %v3246_v51 = vrot.slane %v18886_v22, 1  ;;  %v18888_v62 = vld [vmem:[#allocation229_spill] sm:$0xff]  ;;  %v18892_v48 = vld [vmem:[#allocation231_spill] sm:$0xff] }
 0x46e   :  { %18883 = vst [vmem:[#allocation225_spill] sm:$0xff] %v15498_v3  ;;  %v4189_v14 = vrot.slane %v4188_v31, 2  ;;  %v4530_v40 = vadd.f32 %v15144_v58, %v4185_v18  ;;  %v15510_v60 = vadd.f32 %v15144_v58, %v4199_v28  ;;  %v18890_v18 = vld [vmem:[#allocation40_spill] sm:$0xff]  ;;  %v18902_v3 = vld [vmem:[#allocation373_spill] sm:$0xff] }
 0x46f   :  { %v15504_v44 = vsel %vm8666_vm11, %v8826_v55, %v4654_v32  ;;  %v4221_v19 = vsel %vm3534_vm5, %v3504_v17, -inf  ;;  %v3502_v21 = vadd.f32 %v3246_v51, %v18888_v62  ;;  %v3247_v55 = vrot.slane %v15083_v25, 1  ;;  %v15525_v62 = vpop.f32.mrb[20].mxu1 }
 0x470   :  { %18885 = vst [vmem:[#allocation36_spill] sm:$0xff] %v15504_v44  ;;  %18887 = vst [vmem:[#allocation41_spill] sm:$0xff] %v15510_v60  ;;  %v4190_v57 = vmax.f32 %v4188_v31, %v4189_v14  ;;  %v4222_v35 = vrot.slane %v4221_v19, 4  ;;  %v4658_v59 = vmax.f32 %v4530_v40, 0.0  ;;  %v15519_v22 = vmax.f32 %v4204_v16, %v4205_v36  ;;  %v15529_v16 = vpop.f32.mrb[21].mxu1 }
 0x471   :  { %v3505_v14 = vadd.f32 %v18892_v48, %v3249_v38  ;;  %v4207_v17 = vsel %vm3534_vm5, %v3502_v21, -inf  ;;  %v3503_v37 = vadd.f32 %v3247_v55, %v18893_v12  ;;  %18896 = vst [vmem:[#allocation348_spill] sm:$0xff] %v15529_v16  ;;  %v3250_v2 = vrot.slane %v18902_v3, 1 }
 0x472   :  { %18891 = vst [vmem:[#allocation227_spill] sm:$0xff] %v15519_v22  ;;  %v4191_v28 = vrot.slane %v4190_v57, 1  ;;  %v4223_v31 = vmax.f32 %v4221_v19, %v4222_v35  ;;  %v4208_v25 = vrot.slane %v4207_v17, 4  ;;  %v15533_v35 = vpop.f32.mrb[22].mxu1 }
 0x473   :  { %v4228_v44 = vsel %vm3534_vm5, %v3505_v14, -inf  ;;  %v4214_v48 = vsel %vm3534_vm5, %v3503_v37, -inf  ;;  %18898 = vst [vmem:[#allocation229_spill] sm:$0xff] %v15533_v35  ;;  %v15537_v51 = vpop.f32.mrb[23].mxu1  ;;  %v15539_v14 = vrot.slane %v4658_v59, 4  ;;  %v3253_v59 = vrot.slane %v15118_v4, 1 }
 0x474   :  { %11865 = vmatmul.mubr.msk.bf16.gmra.mrb[132].mxu1 %vm1731_vm13, %v18890_v18  ;;  %v4192_v32 = vmax.f32 %v4190_v57, %v4191_v28  ;;  %v18895_v18 = vld [vmem:[#allocation25_spill] sm:$0xff]  ;;  %v4224_v36 = vrot.slane %v4223_v31, 2  ;;  %v4229_v60 = vrot.slane %v4228_v44, 4  ;;  %v4209_v55 = vmax.f32 %v4207_v17, %v4208_v25  ;;  %v18899_v57 = vld [vmem:[#allocation235_spill] sm:$0xff]  ;;  %18900 = vst [vmem:[#allocation40_spill] sm:$0xff] %v15537_v51  ;;  %v15551_v4 = vpop.f32.mrb[24].mxu1 }
 0x475   :  { %v3252_v40 = vrot.slane %v18895_v18, 1  ;;  %v4215_v12 = vrot.slane %v4214_v48, 4  ;;  %18901 = vst [vmem:[#allocation231_spill] sm:$0xff] %v15539_v14  ;;  %v18904_v25 = vld [vmem:[#allocation237_spill] sm:$0xff] }
 0x476   :  { %v4531_v21 = vadd.f32 %v15144_v58, %v4192_v32  ;;  %v4225_v18 = vmax.f32 %v4223_v31, %v4224_v36  ;;  %v4230_v22 = vmax.f32 %v4228_v44, %v4229_v60  ;;  %v4210_v11 = vrot.slane %v4209_v55, 2 }
 0x477   :  { %v3508_v28 = vadd.f32 %v18899_v57, %v3252_v40  ;;  %v4216_v37 = vmax.f32 %v4214_v48, %v4215_v12  ;;  %v3506_v35 = vadd.f32 %v3250_v2, %v18904_v25  ;;  %v18906_v2 = vld [vmem:[#allocation173_spill] sm:$0xff] }
 0x478   :  { %v4226_v8 = vrot.slane %v4225_v18, 1  ;;  %v4231_v32 = vrot.slane %v4230_v22, 2  ;;  %v4659_v40 = vmax.f32 %v4531_v21, 0.0  ;;  %v4211_v57 = vmax.f32 %v4209_v55, %v4210_v11 }
 0x479   :  { %v4249_v38 = vsel %vm3534_vm5, %v3508_v28, -inf  ;;  %v4217_v51 = vrot.slane %v4216_v37, 2  ;;  %v4235_v3 = vsel %vm3534_vm5, %v3506_v35, -inf  ;;  %v18905_v28 = vld [vmem:[#allocation239_spill] sm:$0xff]  ;;  %v3251_v21 = vrot.slane %v18906_v2, 1 }
 0x47a   :  { %v4250_v17 = vrot.slane %v4249_v38, 4  ;;  %v4227_v31 = vmax.f32 %v4225_v18, %v4226_v8  ;;  %v4232_v44 = vmax.f32 %v4230_v22, %v4231_v32  ;;  %v4212_v36 = vrot.slane %v4211_v57, 1 }
 0x47b   :  { %v4218_v48 = vmax.f32 %v4216_v37, %v4217_v51  ;;  %v4236_v12 = vrot.slane %v4235_v3, 4  ;;  %v3509_v20 = vadd.f32 %v18905_v28, %v3253_v59 }
 0x47c   :  { %v4251_v60 = vmax.f32 %v4249_v38, %v4250_v17  ;;  %v4536_v14 = vadd.f32 %v15144_v58, %v4227_v31  ;;  %v4233_v19 = vrot.slane %v4232_v44, 1  ;;  %v4213_v11 = vmax.f32 %v4211_v57, %v4212_v36  ;;  %v18907_v17 = vld [vmem:[#allocation241_spill] sm:$0xff] }
 0x47d   :  { %v4219_v55 = vrot.slane %v4218_v48, 1  ;;  %v4237_v25 = vmax.f32 %v4235_v3, %v4236_v12  ;;  %v4256_v8 = vsel %vm3534_vm5, %v3509_v20, -inf  ;;  %v3507_v59 = vadd.f32 %v3251_v21, %v18907_v17 }
 0x47e   :  { %v4252_v16 = vrot.slane %v4251_v60, 2  ;;  %v4664_v22 = vmax.f32 %v4536_v14, 0.0  ;;  %v4234_v38 = vmax.f32 %v4232_v44, %v4233_v19  ;;  %v4257_v51 = vrot.slane %v4256_v8, 4  ;;  %v15561_v19 = vpop.f32.mrb[25].mxu1 }
 0x47f   :  { %v4534_v18 = vadd.f32 %v15144_v58, %v4213_v11  ;;  %v4220_v37 = vmax.f32 %v4218_v48, %v4219_v55  ;;  %v4238_v32 = vrot.slane %v4237_v25, 2  ;;  %v15557_v12 = vrot.slane %v4659_v40, 3  ;;  %v15563_v21 = vpop.f32.mrb[26].mxu1 }
 0x480   :  { %v4253_v35 = vmax.f32 %v4251_v60, %v4252_v16  ;;  %v4537_v31 = vadd.f32 %v15144_v58, %v4234_v38  ;;  %v4258_v3 = vmax.f32 %v4256_v8, %v4257_v51  ;;  %v4242_v16 = vsel %vm3534_vm5, %v3507_v59, -inf  ;;  %v15567_v40 = vpop.f32.mrb[27].mxu1  ;;  %v18912_v59 = vld [vmem:[#allocation27_spill] sm:$0xff] }
 0x481   :  { %18909 = vst [vmem:[#allocation233_spill] sm:$0xff] %v15557_v12  ;;  %v4535_v20 = vadd.f32 %v15144_v58, %v4220_v37  ;;  %v4239_v14 = vmax.f32 %v4237_v25, %v4238_v32  ;;  %v4243_v2 = vrot.slane %v4242_v16, 4  ;;  %v15565_v11 = vrot.slane %v4664_v22, 6  ;;  %v15577_v22 = vld [vmem:[%s17931_s5] ss:$0 sm:$0xff]  ;;  %v18918_v25 = vld [vmem:[#allocation245_spill] sm:$0xff] }
 0x482   :  { %v4254_v28 = vrot.slane %v4253_v35, 1  ;;  %v4665_v44 = vmax.f32 %v4537_v31, 0.0  ;;  %v4259_v48 = vrot.slane %v4258_v3, 2  ;;  %v4662_v55 = vmax.f32 %v4534_v18, 0.0 }
 0x483   :  { %18910 = vst [vmem:[#allocation25_spill] sm:$0xff] %v15565_v11  ;;  %v4663_v38 = vmax.f32 %v4535_v20, 0.0  ;;  %v4240_v8 = vrot.slane %v4239_v14, 1  ;;  %v4244_v58 = vmax.f32 %v4242_v16, %v4243_v2  ;;  %v3256_v31 = vrot.slane %v18912_v59, 1  ;;  %v18914_v20 = vld [vmem:[#allocation177_spill] sm:$0xff] }
 0x484   :  { %v4255_v60 = vmax.f32 %v4253_v35, %v4254_v28  ;;  %v4260_v51 = vmax.f32 %v4258_v3, %v4259_v48  ;;  %v15571_v32 = vrot.slane %v4665_v44, 5  ;;  %v3254_v16 = vrot.slane %v18914_v20, 1 }
 0x485   :  { %v8840_v35 = vrot.slane %v4663_v38, 7  ;;  %v4241_v17 = vmax.f32 %v4239_v14, %v4240_v8  ;;  %v4245_v3 = vrot.slane %v4244_v58, 2  ;;  %v18916_v14 = vld [vmem:[#allocation243_spill] sm:$0xff]  ;;  %v3257_v38 = vrot.slane %v15154_v0, 1 }
 0x486   :  { %18911 = vst [vmem:[#allocation235_spill] sm:$0xff] %v15571_v32  ;;  %v15580_v18 = vadd.f32 %v15577_v22, %v4255_v60  ;;  %v4261_v28 = vrot.slane %v4260_v51, 1  ;;  %v3512_v2 = vadd.f32 %v18916_v14, %v3256_v31  ;;  %v3510_v36 = vadd.f32 %v3254_v16, %v18918_v25  ;;  %v18921_v14 = vld [vmem:[#allocation249_spill] sm:$0xff] }
 0x487   :  { %v15584_v48 = vsel %vm8666_vm11, %v8840_v35, %v4662_v55  ;;  %v4538_v44 = vadd.f32 %v15577_v22, %v4241_v17  ;;  %v4246_v8 = vmax.f32 %v4244_v58, %v4245_v3  ;;  %v3255_v60 = vrot.slane %v15160_v7, 1  ;;  %v18920_v55 = vld [vmem:[#allocation247_spill] sm:$0xff] }
 0x488   :  { %18913 = vst [vmem:[#allocation373_spill] sm:$0xff] %v15580_v18  ;;  %18915 = vst [vmem:[#allocation237_spill] sm:$0xff] %v15584_v48  ;;  %v4277_v11 = vsel %vm3534_vm5, %v3512_v2, -inf  ;;  %v3513_v35 = vadd.f32 %v18920_v55, %v3257_v38  ;;  %v4263_v31 = vsel %vm3534_vm5, %v3510_v36, -inf  ;;  %v15597_v58 = vmax.f32 %v4260_v51, %v4261_v28 }
 0x489   :  { %v4666_v32 = vmax.f32 %v4538_v44, 0.0  ;;  %v4247_v48 = vrot.slane %v4246_v8, 1  ;;  %v4278_v17 = vrot.slane %v4277_v11, 4  ;;  %v3511_v0 = vadd.f32 %v3255_v60, %v18921_v14 }
 0x48a   :  { %18922 = vst [vmem:[#allocation239_spill] sm:$0xff] %v15597_v58  ;;  %v4264_v3 = vrot.slane %v4263_v31, 4  ;;  %v4284_v25 = vsel %vm3534_vm5, %v3513_v35, -inf  ;;  %v3260_v36 = vrot.slane %v15181_v53, 1  ;;  %v3258_v14 = vrot.slane %v15191_v42, 1 }
 0x48b   :  { %v4248_v16 = vmax.f32 %v4246_v8, %v4247_v48  ;;  %v4279_v44 = vmax.f32 %v4277_v11, %v4278_v17  ;;  %v4285_v2 = vrot.slane %v4284_v25, 4  ;;  %v4270_v12 = vsel %vm3534_vm5, %v3511_v0, -inf  ;;  %v18924_v11 = vld [vmem:[#allocation253_spill] sm:$0xff] }
 0x48c   :  { %v15602_v37 = vrot.slane %v4666_v32, 4  ;;  %v4265_v38 = vmax.f32 %v4263_v31, %v4264_v3  ;;  %v4271_v55 = vrot.slane %v4270_v12, 4  ;;  %v3516_v8 = vadd.f32 %v18924_v11, %v3260_v36  ;;  %v18925_v31 = vld [vmem:[#allocation255_spill] sm:$0xff] }
 0x48d   :  { %v4539_v60 = vadd.f32 %v15577_v22, %v4248_v16  ;;  %v4280_v51 = vrot.slane %v4279_v44, 2  ;;  %v4286_v28 = vmax.f32 %v4284_v25, %v4285_v2  ;;  %v3514_v3 = vadd.f32 %v3258_v14, %v18925_v31 }
 0x48e   :  { %18923 = vst [vmem:[#allocation173_spill] sm:$0xff] %v15602_v37  ;;  %v4266_v35 = vrot.slane %v4265_v38, 2  ;;  %v4272_v18 = vmax.f32 %v4270_v12, %v4271_v55  ;;  %v4305_v16 = vsel %vm3534_vm5, %v3516_v8, -inf  ;;  %v3261_v25 = vrot.slane %v15198_v54, 1 }
 0x48f   :  { %v4281_v17 = vmax.f32 %v4279_v44, %v4280_v51  ;;  %v4287_v0 = vrot.slane %v4286_v28, 2  ;;  %v4667_v2 = vmax.f32 %v4539_v60, 0.0  ;;  %v4306_v12 = vrot.slane %v4305_v16, 4  ;;  %v18926_v44 = vld [vmem:[#allocation257_spill] sm:$0xff] }
 0x490   :  { %v4267_v7 = vmax.f32 %v4265_v38, %v4266_v35  ;;  %v4273_v53 = vrot.slane %v4272_v18, 2  ;;  %v4291_v36 = vsel %vm3534_vm5, %v3514_v3, -inf  ;;  %v3517_v51 = vadd.f32 %v18926_v44, %v3261_v25  ;;  %v18927_v25 = vld [vmem:[#allocation258_spill] sm:$0xff]  ;;  %v18948_v44 = vld [vmem:[#allocation33_spill] sm:$0xff] }
 0x491   :  { %v4282_v42 = vrot.slane %v4281_v17, 1  ;;  %v4288_v37 = vmax.f32 %v4286_v28, %v4287_v0  ;;  %v4307_v58 = vmax.f32 %v4305_v16, %v4306_v12  ;;  %v4292_v14 = vrot.slane %v4291_v36, 4 }
 0x492   :  { %v4268_v55 = vrot.slane %v4267_v7, 1  ;;  %v4274_v48 = vmax.f32 %v4272_v18, %v4273_v53  ;;  %v4312_v8 = vsel %vm3534_vm5, %v3517_v51, -inf  ;;  %v3259_v54 = vrot.slane %v15203_v9, 1 }
 0x493   :  { %v4283_v11 = vmax.f32 %v4281_v17, %v4282_v42  ;;  %v4289_v32 = vrot.slane %v4288_v37, 1  ;;  %v4308_v0 = vrot.slane %v4307_v58, 2  ;;  %v4293_v31 = vmax.f32 %v4291_v36, %v4292_v14  ;;  %v15626_v14 = vpop.f32.mrb[28].mxu1 }
 0x494   :  { %v4269_v38 = vmax.f32 %v4267_v7, %v4268_v55  ;;  %v4275_v35 = vrot.slane %v4274_v48, 1  ;;  %v4313_v53 = vrot.slane %v4312_v8, 4  ;;  %v3515_v17 = vadd.f32 %v3259_v54, %v18927_v25 }
 0x495   :  { %v4544_v60 = vadd.f32 %v15577_v22, %v4283_v11  ;;  %v4290_v28 = vmax.f32 %v4288_v37, %v4289_v32  ;;  %v4309_v7 = vmax.f32 %v4307_v58, %v4308_v0  ;;  %v4294_v12 = vrot.slane %v4293_v31, 2 }
 0x496   :  { %v4542_v18 = vadd.f32 %v15577_v22, %v4269_v38  ;;  %v4276_v3 = vmax.f32 %v4274_v48, %v4275_v35  ;;  %v4314_v51 = vmax.f32 %v4312_v8, %v4313_v53  ;;  %v4298_v37 = vsel %vm3534_vm5, %v3515_v17, -inf }
 0x497   :  { %v4672_v42 = vmax.f32 %v4544_v60, 0.0  ;;  %v4545_v16 = vadd.f32 %v15577_v22, %v4290_v28  ;;  %v15624_v32 = vrot.slane %v4667_v2, 3  ;;  %v4310_v11 = vrot.slane %v4309_v7, 1  ;;  %v18932_v2 = vld [vmem:[#allocation31_spill] sm:$0xff] }
 0x498   :  { %v4543_v55 = vadd.f32 %v15577_v22, %v4276_v3  ;;  %v4295_v48 = vmax.f32 %v4293_v31, %v4294_v12  ;;  %v4670_v38 = vmax.f32 %v4542_v18, 0.0  ;;  %v4315_v54 = vrot.slane %v4314_v51, 2 }
 0x499   :  { %18929 = vst [vmem:[#allocation241_spill] sm:$0xff] %v15624_v32  ;;  %v4673_v36 = vmax.f32 %v4545_v16, 0.0  ;;  %v4299_v60 = vrot.slane %v4298_v37, 4  ;;  %v15628_v58 = vrot.slane %v4672_v42, 6  ;;  %v4311_v28 = vmax.f32 %v4309_v7, %v4310_v11  ;;  %v18937_v11 = vld [vmem:[#allocation261_spill] sm:$0xff] }
 0x49a   :  { %v4671_v35 = vmax.f32 %v4543_v55, 0.0  ;;  %v4296_v0 = vrot.slane %v4295_v48, 1  ;;  %v4316_v53 = vmax.f32 %v4314_v51, %v4315_v54  ;;  %v3264_v9 = vrot.slane %v18932_v2, 1  ;;  %v18938_v54 = vld [vmem:[#allocation263_spill] sm:$0xff] }
 0x49b   :  { %18930 = vst [vmem:[#allocation27_spill] sm:$0xff] %v15628_v58  ;;  %v4300_v17 = vmax.f32 %v4298_v37, %v4299_v60  ;;  %v15632_v16 = vrot.slane %v4673_v36, 5  ;;  %v3262_v18 = vrot.slane %v15233_v34, 1  ;;  %v15640_v42 = vadd.f32 %v15577_v22, %v4311_v28  ;;  %v18939_v60 = vld [vmem:[#allocation187_spill] sm:$0xff]  ;;  %v18942_v58 = vld [vmem:[#allocation265_spill] sm:$0xff] }
 0x49c   :  { %v8854_v8 = vrot.slane %v4671_v35, 7  ;;  %v4297_v31 = vmax.f32 %v4295_v48, %v4296_v0  ;;  %v3520_v35 = vadd.f32 %v18937_v11, %v3264_v9  ;;  %v4317_v37 = vrot.slane %v4316_v53, 1  ;;  %v15651_v11 = vpop.f32.mrb[29].mxu1 }
 0x49d   :  { %18933 = vst [vmem:[#allocation177_spill] sm:$0xff] %v15632_v16  ;;  %18936 = vst [vmem:[#allocation245_spill] sm:$0xff] %v15640_v42  ;;  %v4301_v7 = vrot.slane %v4300_v17, 2  ;;  %v3518_v36 = vadd.f32 %v3262_v18, %v18938_v54  ;;  %v3265_v48 = vrot.slane %v18939_v60, 1  ;;  %v18944_v60 = vld [vmem:[#allocation266_spill] sm:$0xff]  ;;  %v3268_v54 = vrot.slane %v18948_v44, 1 }
 0x49e   :  { %v15637_v55 = vsel %vm8666_vm11, %v8854_v8, %v4670_v38  ;;  %v4546_v51 = vadd.f32 %v15577_v22, %v4297_v31  ;;  %v4333_v2 = vsel %vm3534_vm5, %v3520_v35, -inf  ;;  %v18941_v38 = vld [vmem:[#allocation189_spill] sm:$0xff] }
 0x49f   :  { %18935 = vst [vmem:[#allocation243_spill] sm:$0xff] %v15637_v55  ;;  %v4302_v0 = vmax.f32 %v4300_v17, %v4301_v7  ;;  %v3263_v8 = vrot.slane %v18941_v38, 1  ;;  %v4334_v28 = vrot.slane %v4333_v2, 4  ;;  %v4319_v16 = vsel %vm3534_vm5, %v3518_v36, -inf }
 0x4a0   :  { %v4674_v25 = vmax.f32 %v4546_v51, 0.0  ;;  %v3521_v9 = vadd.f32 %v18942_v58, %v3265_v48  ;;  %v4320_v55 = vrot.slane %v4319_v16, 4  ;;  %v15655_v7 = vmax.f32 %v4316_v53, %v4317_v37  ;;  %v18955_v51 = vld [vmem:[#allocation274_spill] sm:$0xff] }
 0x4a1   :  { %v4303_v31 = vrot.slane %v4302_v0, 1  ;;  %v3519_v17 = vadd.f32 %v3263_v8, %v18944_v60  ;;  %v4335_v35 = vmax.f32 %v4333_v2, %v4334_v28  ;;  %v18949_v2 = vld [vmem:[#allocation193_spill] sm:$0xff] }
 0x4a2   :  { %18945 = vst [vmem:[#allocation247_spill] sm:$0xff] %v15655_v7  ;;  %v4340_v32 = vsel %vm3534_vm5, %v3521_v9, -inf  ;;  %v4321_v34 = vmax.f32 %v4319_v16, %v4320_v55  ;;  %v15660_v48 = vrot.slane %v4674_v25, 4  ;;  %v3266_v28 = vrot.slane %v18949_v2, 1  ;;  %v18951_v16 = vld [vmem:[#allocation269_spill] sm:$0xff]  ;;  %v18953_v7 = vld [vmem:[#allocation271_spill] sm:$0xff] }
 0x4a3   :  { %v4304_v42 = vmax.f32 %v4302_v0, %v4303_v31  ;;  %v4341_v36 = vrot.slane %v4340_v32, 4  ;;  %v4326_v58 = vsel %vm3534_vm5, %v3519_v17, -inf  ;;  %v4336_v12 = vrot.slane %v4335_v35, 2 }
 0x4a4   :  { %18947 = vst [vmem:[#allocation249_spill] sm:$0xff] %v15660_v48  ;;  %v4327_v3 = vrot.slane %v4326_v58, 4  ;;  %v4322_v53 = vrot.slane %v4321_v34, 2  ;;  %v3524_v55 = vadd.f32 %v18951_v16, %v3268_v54  ;;  %v3522_v38 = vadd.f32 %v3266_v28, %v18953_v7  ;;  %v18954_v16 = vld [vmem:[#allocation273_spill] sm:$0xff] }
 0x4a5   :  { %v4547_v8 = vadd.f32 %v15577_v22, %v4304_v42  ;;  %v4342_v37 = vmax.f32 %v4340_v32, %v4341_v36  ;;  %v4337_v9 = vmax.f32 %v4335_v35, %v4336_v12  ;;  %v3269_v32 = vrot.slane %v15270_v13, 1  ;;  %v15671_v36 = vpop.f32.mrb[30].mxu1 }
 0x4a6   :  { %v4328_v60 = vmax.f32 %v4326_v58, %v4327_v3  ;;  %v4323_v31 = vmax.f32 %v4321_v34, %v4322_v53  ;;  %v4361_v42 = vsel %vm3534_vm5, %v3524_v55, -inf  ;;  %v15673_v2 = vpop.f32.mrb[31].mxu1  ;;  %v4347_v53 = vsel %vm3534_vm5, %v3522_v38, -inf }
 0x4a7   :  { %v4343_v17 = vrot.slane %v4342_v37, 2  ;;  %v4338_v18 = vrot.slane %v4337_v9, 1  ;;  %v4675_v12 = vmax.f32 %v4547_v8, 0.0  ;;  %v4362_v58 = vrot.slane %v4361_v42, 4  ;;  %v15677_v28 = vpop.f32.mrb[32].mxu1 }
 0x4a8   :  { %v4329_v44 = vrot.slane %v4328_v60, 2  ;;  %v4324_v3 = vrot.slane %v4323_v31, 1  ;;  %v3525_v7 = vadd.f32 %v18954_v16, %v3269_v32  ;;  %v4348_v13 = vrot.slane %v4347_v53, 4 }
 0x4a9   :  { %v4344_v35 = vmax.f32 %v4342_v37, %v4343_v17  ;;  %v4339_v34 = vmax.f32 %v4337_v9, %v4338_v18  ;;  %v4363_v0 = vmax.f32 %v4361_v42, %v4362_v58  ;;  %v3267_v17 = vrot.slane %v15275_v52, 1 }
 0x4aa   :  { %v4330_v54 = vmax.f32 %v4328_v60, %v4329_v44  ;;  %v4325_v48 = vmax.f32 %v4323_v31, %v4324_v3  ;;  %v4368_v37 = vsel %vm3534_vm5, %v3525_v7, -inf  ;;  %v4349_v38 = vmax.f32 %v4347_v53, %v4348_v13  ;;  %v15684_v3 = vpop.f32.mrb[33].mxu1 }
 0x4ab   :  { %v4345_v55 = vrot.slane %v4344_v35, 1  ;;  %v4552_v25 = vadd.f32 %v15577_v22, %v4339_v34  ;;  %v4364_v60 = vrot.slane %v4363_v0, 2  ;;  %v4369_v16 = vrot.slane %v4368_v37, 4  ;;  %v15688_v50 = vpop.f32.mrb[34].mxu1 }
 0x4ac   :  { %v4331_v8 = vrot.slane %v4330_v54, 1  ;;  %v4550_v18 = vadd.f32 %v15577_v22, %v4325_v48  ;;  %v3523_v31 = vadd.f32 %v3267_v17, %v18955_v51  ;;  %v4350_v34 = vrot.slane %v4349_v38, 2 }
 0x4ad   :  { %v4346_v9 = vmax.f32 %v4344_v35, %v4345_v55  ;;  %v4680_v44 = vmax.f32 %v4552_v25, 0.0  ;;  %v4365_v58 = vmax.f32 %v4363_v0, %v4364_v60  ;;  %v15690_v52 = vrot.slane %v4675_v12, 3 }
 0x4ae   :  { %v4332_v32 = vmax.f32 %v4330_v54, %v4331_v8  ;;  %v4370_v35 = vmax.f32 %v4368_v37, %v4369_v16  ;;  %v4354_v25 = vsel %vm3534_vm5, %v3523_v31, -inf  ;;  %v4351_v51 = vmax.f32 %v4349_v38, %v4350_v34 }
 0x4af   :  { %v4553_v42 = vadd.f32 %v15577_v22, %v4346_v9  ;;  %18957 = vst [vmem:[#allocation253_spill] sm:$0xff] %v15690_v52  ;;  %v4366_v53 = vrot.slane %v4365_v58, 1  ;;  %v4355_v55 = vrot.slane %v4354_v25, 4  ;;  %v15694_v13 = vrot.slane %v4680_v44, 6  ;;  %v15696_v9 = vpop.f32.mrb[35].mxu1 }
 0x4b0   :  { %v4551_v48 = vadd.f32 %v15577_v22, %v4332_v32  ;;  %v4678_v8 = vmax.f32 %v4550_v18, 0.0  ;;  %v4371_v17 = vrot.slane %v4370_v35, 2  ;;  %v4352_v60 = vrot.slane %v4351_v51, 1  ;;  %v15700_v37 = vpop.f32.mrb[36].mxu1 }
 0x4b1   :  { %v4681_v54 = vmax.f32 %v4553_v42, 0.0  ;;  %18958 = vst [vmem:[#allocation255_spill] sm:$0xff] %v15694_v13  ;;  %v4356_v7 = vmax.f32 %v4354_v25, %v4355_v55  ;;  %v4367_v31 = vmax.f32 %v4365_v58, %v4366_v53  ;;  %v3272_v38 = vrot.slane %v15295_v10, 1  ;;  %v18961_v55 = vld [vmem:[#allocation277_spill] sm:$0xff] }
 0x4b2   :  { %v4679_v0 = vmax.f32 %v4551_v48, 0.0  ;;  %v4372_v42 = vmax.f32 %v4370_v35, %v4371_v17  ;;  %v4353_v18 = vmax.f32 %v4351_v51, %v4352_v60  ;;  %v3270_v48 = vrot.slane %v15306_v15, 1  ;;  %v18963_v35 = vld [vmem:[#allocation279_spill] sm:$0xff]  ;;  %v18964_v10 = vld [vmem:[#allocation197_spill] sm:$0xff] }
 0x4b3   :  { %v15703_v44 = vrot.slane %v4681_v54, 5  ;;  %v4357_v34 = vrot.slane %v4356_v7, 2  ;;  %v3528_v12 = vadd.f32 %v18961_v55, %v3272_v38  ;;  %v3273_v54 = vrot.slane %v18964_v10, 1  ;;  %v18969_v10 = vld [vmem:[#allocation282_spill] sm:$0xff] }
 0x4b4   :  { %v8868_v16 = vrot.slane %v4679_v0, 7  ;;  %v4373_v25 = vrot.slane %v4372_v42, 1  ;;  %v4554_v0 = vadd.f32 %v15577_v22, %v4353_v18  ;;  %v3526_v53 = vadd.f32 %v3270_v48, %v18963_v35  ;;  %v18968_v48 = vld [vmem:[#allocation281_spill] sm:$0xff] }
 0x4b5   :  { %18959 = vst [vmem:[#allocation257_spill] sm:$0xff] %v15703_v44  ;;  %v4358_v58 = vmax.f32 %v4356_v7, %v4357_v34  ;;  %v15715_v51 = vadd.f32 %v15577_v22, %v4367_v31  ;;  %v4389_v15 = vsel %vm3534_vm5, %v3528_v12, -inf  ;;  %v3271_v60 = vrot.slane %v15318_v45, 1  ;;  %v18975_v12 = vld [vmem:[#allocation287_spill] sm:$0xff] }
 0x4b6   :  { %v15707_v13 = vsel %vm8666_vm11, %v8868_v16, %v4678_v8  ;;  %v15720_v16 = vmax.f32 %v4372_v42, %v4373_v25  ;;  %v4390_v55 = vrot.slane %v4389_v15, 4  ;;  %v4375_v18 = vsel %vm3534_vm5, %v3526_v53, -inf }
 0x4b7   :  { %18960 = vst [vmem:[#allocation258_spill] sm:$0xff] %v15707_v13  ;;  %18965 = vst [vmem:[#allocation31_spill] sm:$0xff] %v15715_v51  ;;  %v4359_v38 = vrot.slane %v4358_v58, 1  ;;  %v4682_v7 = vmax.f32 %v4554_v0, 0.0  ;;  %v4376_v34 = vrot.slane %v4375_v18, 4  ;;  %v3529_v35 = vadd.f32 %v18968_v48, %v3273_v54 }
 0x4b8   :  { %18967 = vst [vmem:[#allocation261_spill] sm:$0xff] %v15720_v16  ;;  %v3527_v52 = vadd.f32 %v3271_v60, %v18969_v10  ;;  %v4391_v44 = vmax.f32 %v4389_v15, %v4390_v55  ;;  %v3276_v8 = vrot.slane %v15340_v30, 1  ;;  %v18972_v15 = vld [vmem:[#allocation285_spill] sm:$0xff]  ;;  %v15735_v30 = vpop.f32.mrb[37].mxu1 }
 0x4b9   :  { %v4360_v31 = vmax.f32 %v4358_v58, %v4359_v38  ;;  %v4377_v13 = vmax.f32 %v4375_v18, %v4376_v34  ;;  %v4396_v45 = vsel %vm3534_vm5, %v3529_v35, -inf  ;;  %v15731_v48 = vrot.slane %v4682_v7, 4  ;;  %v18973_v38 = vld [vmem:[#allocation391_spill] sm:$0xff] }
 0x4ba   :  { %v4382_v42 = vsel %vm3534_vm5, %v3527_v52, -inf  ;;  %v4392_v53 = vrot.slane %v4391_v44, 2  ;;  %v4397_v16 = vrot.slane %v4396_v45, 4  ;;  %v3532_v60 = vadd.f32 %v18972_v15, %v3276_v8  ;;  %v15746_v52 = vpop.f32.mrb[38].mxu1 }
 0x4bb   :  { %v4555_v0 = vadd.f32 %v15577_v22, %v4360_v31  ;;  %v4383_v54 = vrot.slane %v4382_v42, 4  ;;  %18971 = vst [vmem:[#allocation263_spill] sm:$0xff] %v15731_v48  ;;  %v4378_v58 = vrot.slane %v4377_v13, 2  ;;  %v3274_v55 = vrot.slane %v18973_v38, 1 }
 0x4bc   :  { %v4393_v18 = vmax.f32 %v4391_v44, %v4392_v53  ;;  %v4398_v34 = vmax.f32 %v4396_v45, %v4397_v16  ;;  %v4417_v31 = vsel %vm3534_vm5, %v3532_v60, -inf  ;;  %v3277_v7 = vrot.slane %v15352_v41, 1  ;;  %v18976_v44 = vld [vmem:[#allocation289_spill] sm:$0xff] }
 0x4bd   :  { %v4384_v35 = vmax.f32 %v4382_v42, %v4383_v54  ;;  %v4379_v51 = vmax.f32 %v4377_v13, %v4378_v58  ;;  %v3530_v25 = vadd.f32 %v3274_v55, %v18975_v12  ;;  %v4683_v48 = vmax.f32 %v4555_v0, 0.0 }
 0x4be   :  { %v4394_v63 = vrot.slane %v4393_v18, 1  ;;  %v4399_v17 = vrot.slane %v4398_v34, 2  ;;  %v4418_v38 = vrot.slane %v4417_v31, 4  ;;  %v3533_v16 = vadd.f32 %v18976_v44, %v3277_v7 }
 0x4bf   :  { %v4385_v8 = vrot.slane %v4384_v35, 2  ;;  %v4380_v15 = vrot.slane %v4379_v51, 1  ;;  %v4403_v32 = vsel %vm3534_vm5, %v3530_v25, -inf  ;;  %v3275_v41 = vrot.slane %v15356_v27, 1 }
 0x4c0   :  { %v4395_v45 = vmax.f32 %v4393_v18, %v4394_v63  ;;  %v4400_v42 = vmax.f32 %v4398_v34, %v4399_v17  ;;  %v4404_v13 = vrot.slane %v4403_v32, 4  ;;  %v4419_v58 = vmax.f32 %v4417_v31, %v4418_v38  ;;  %v18977_v17 = vld [vmem:[#allocation290_spill] sm:$0xff]  ;;  %v15750_v34 = vpop.f32.mrb[39].mxu1 }
 0x4c1   :  { %v4386_v53 = vmax.f32 %v4384_v35, %v4385_v8  ;;  %v4381_v54 = vmax.f32 %v4379_v51, %v4380_v15  ;;  %v4424_v12 = vsel %vm3534_vm5, %v3533_v16, -inf  ;;  %v3531_v18 = vadd.f32 %v3275_v41, %v18977_v17  ;;  %v15752_v27 = vpop.f32.mrb[40].mxu1 }
 0x4c2   :  { %v4560_v0 = vadd.f32 %v15577_v22, %v4395_v45  ;;  %v4401_v60 = vrot.slane %v4400_v42, 1  ;;  %v4405_v10 = vmax.f32 %v4403_v32, %v4404_v13  ;;  %v4420_v7 = vrot.slane %v4419_v58, 2  ;;  %v15756_v45 = vpop.f32.mrb[41].mxu1 }
 0x4c3   :  { %v4387_v55 = vrot.slane %v4386_v53, 1  ;;  %v4558_v25 = vadd.f32 %v15577_v22, %v4381_v54  ;;  %v4425_v63 = vrot.slane %v4424_v12, 4  ;;  %v4410_v16 = vsel %vm3534_vm5, %v3531_v18, -inf }
 0x4c4   :  { %v4688_v51 = vmax.f32 %v4560_v0, 0.0  ;;  %v4402_v35 = vmax.f32 %v4400_v42, %v4401_v60  ;;  %v4406_v8 = vrot.slane %v4405_v10, 2  ;;  %v4421_v15 = vmax.f32 %v4419_v58, %v4420_v7  ;;  %v15762_v42 = vpop.f32.mrb[42].mxu1 }
 0x4c5   :  { %v4388_v31 = vmax.f32 %v4386_v53, %v4387_v55  ;;  %v4426_v32 = vmax.f32 %v4424_v12, %v4425_v63  ;;  %v15758_v13 = vrot.slane %v4683_v48, 3  ;;  %v4686_v53 = vmax.f32 %v4558_v25, 0.0 }
 0x4c6   :  { %v4561_v54 = vadd.f32 %v15577_v22, %v4402_v35  ;;  %v4407_v0 = vmax.f32 %v4405_v10, %v4406_v8  ;;  %v4422_v60 = vrot.slane %v4421_v15, 1  ;;  %v4411_v58 = vrot.slane %v4410_v16, 4  ;;  %v18995_v10 = vld [vmem:[#allocation65_spill] sm:$0xff] }
 0x4c7   :  { %18979 = vst [vmem:[#allocation187_spill] sm:$0xff] %v15758_v13  ;;  %v4559_v41 = vadd.f32 %v15577_v22, %v4388_v31  ;;  %v4427_v55 = vrot.slane %v4426_v32, 2  ;;  %v15764_v7 = vrot.slane %v4688_v51, 6  ;;  %v6483_v13 = vrot.slane %v15375_v33, 1  ;;  %v18983_v51 = vld [vmem:[#allocation61_spill] sm:$0xff] }
 0x4c8   :  { %v4689_v12 = vmax.f32 %v4561_v54, 0.0  ;;  %v4408_v17 = vrot.slane %v4407_v0, 1  ;;  %v4423_v18 = vmax.f32 %v4421_v15, %v4422_v60  ;;  %v4412_v48 = vmax.f32 %v4410_v16, %v4411_v58  ;;  %v15772_v54 = vpop.f32.mrb[43].mxu1  ;;  %v18985_v33 = vld [vmem:[#allocation209_spill] sm:$0xff] }
 0x4c9   :  { %18980 = vst [vmem:[#allocation189_spill] sm:$0xff] %v15764_v7  ;;  %v4687_v63 = vmax.f32 %v4559_v41, 0.0  ;;  %v4428_v44 = vmax.f32 %v4426_v32, %v4427_v55  ;;  %v6739_v7 = vadd.f32 %v18983_v51, %v6483_v13  ;;  %v6481_v16 = vrot.slane %v18985_v33, 1  ;;  %v18987_v60 = vld [vmem:[#allocation297_spill] sm:$0xff]  ;;  %v15785_v13 = vpop.f32.mrb[44].mxu1 }
 0x4ca   :  { %v4409_v38 = vmax.f32 %v4407_v0, %v4408_v17  ;;  %v15769_v25 = vrot.slane %v4689_v12, 5  ;;  %v4413_v49 = vrot.slane %v4412_v48, 2  ;;  %v15780_v41 = vadd.f32 %v15577_v22, %v4423_v18  ;;  %v19000_v12 = vld [vmem:[#allocation301_spill] sm:$0xff] }
 0x4cb   :  { %v8882_v35 = vrot.slane %v4687_v63, 7  ;;  %v4429_v56 = vrot.slane %v4428_v44, 1  ;;  %v18988_v55 = vrot.slane %v18987_v60, 2  ;;  %v6482_v51 = vrot.slane %v15400_v61, 1  ;;  %v18999_v61 = vld [vmem:[#allocation393_spill] sm:$0xff] }
 0x4cc   :  { %18982 = vst [vmem:[#allocation265_spill] sm:$0xff] %v15769_v25  ;;  %v4562_v32 = vadd.f32 %v15577_v22, %v4409_v38  ;;  %18986 = vst [vmem:[#allocation33_spill] sm:$0xff] %v15780_v41  ;;  %v4414_v0 = vmax.f32 %v4412_v48, %v4413_v49  ;;  %v6484_v38 = vrot.slane %v15397_v39, 1  ;;  %v19001_v48 = vrot.slane %v19000_v12, 2 }
 0x4cd   :  { %v15775_v15 = vsel %vm8666_vm11, %v8882_v35, %v4686_v53  ;;  %v7251_v58 = vadd.f32 %v18988_v55, %v6739_v7  ;;  %v15787_v17 = vmax.f32 %v4428_v44, %v4429_v56  ;;  %v18991_v53 = vld [vmem:[#allocation63_spill] sm:$0xff]  ;;  %v18993_v7 = vld [vmem:[#allocation298_spill] sm:$0xff] }
 0x4ce   :  { %18984 = vst [vmem:[#allocation266_spill] sm:$0xff] %v15775_v15  ;;  %v6737_v35 = vadd.f32 %v6481_v16, %v18991_v53  ;;  %v4690_v33 = vmax.f32 %v4562_v32, 0.0  ;;  %v4415_v8 = vrot.slane %v4414_v0, 1  ;;  %v18994_v55 = vrot.slane %v18993_v7, 2  ;;  %v18997_v16 = vld [vmem:[#allocation67_spill] sm:$0xff] }
 0x4cf   :  { %18990 = vst [vmem:[#allocation193_spill] sm:$0xff] %v15787_v17  ;;  %v7392_v18 = vsel %vm7377_vm12, %v7251_v58, -inf  ;;  %v6740_v25 = vadd.f32 %v18995_v10, %v6484_v38  ;;  %v6738_v53 = vadd.f32 %v6482_v51, %v18997_v16  ;;  %v6487_v32 = vrot.slane %v18999_v61, 1  ;;  %v19004_v38 = vld [vmem:[#allocation54_spill] sm:$0xff] }
 0x4d0   :  { %v7393_v60 = vrot.slane %v7392_v18, 4  ;;  %v7249_v63 = vadd.f32 %v18994_v55, %v6737_v35  ;;  %v4416_v15 = vmax.f32 %v4414_v0, %v4415_v8  ;;  %v6485_v7 = vrot.slane %v19002_v5, 1  ;;  %v19006_v0 = vld [vmem:[#allocation69_spill] sm:$0xff] }
 0x4d1   :  { %v7252_v49 = vadd.f32 %v19001_v48, %v6740_v25  ;;  %v15805_v35 = vrot.slane %v4690_v33, 4  ;;  %v19005_v55 = vrot.slane %v19004_v38, 2  ;;  %v6743_v51 = vadd.f32 %v19006_v0, %v6487_v32  ;;  %v19010_v38 = vld [vmem:[#allocation56_spill] sm:$0xff]  ;;  %v19012_v32 = vld [vmem:[#allocation58_spill] sm:$0xff] }
 0x4d2   :  { %v7394_v17 = vmax.f32 %v7392_v18, %v7393_v60  ;;  %v7378_v58 = vsel %vm7377_vm12, %v7249_v63, -inf  ;;  %v19008_v60 = vld [vmem:[#allocation71_spill] sm:$0xff]  ;;  %v15814_v12 = vadd.f32 %v15577_v22, %v4416_v15  ;;  %v19013_v0 = vrot.slane %v19012_v32, 2  ;;  %v15823_v22 = vpop.f32.mrb[45].mxu1  ;;  %v19018_v18 = vld [vmem:[#allocation60_spill] sm:$0xff] }
 0x4d3   :  { %19003 = vst [vmem:[#allocation269_spill] sm:$0xff] %v15805_v35  ;;  %v7379_v10 = vrot.slane %v7378_v58, 4  ;;  %v7250_v8 = vadd.f32 %v19005_v55, %v6738_v53  ;;  %v7399_v41 = vsel %vm7377_vm12, %v7252_v49, -inf  ;;  %v6741_v63 = vadd.f32 %v6485_v7, %v19008_v60  ;;  %v19015_v7 = vld [vmem:[#allocation217_spill] sm:$0xff]  ;;  %v15838_v20 = vpop.f32.mrb[46].mxu1 }
 0x4d4   :  { %v7395_v16 = vrot.slane %v7394_v17, 2  ;;  %19009 = vst [vmem:[#allocation271_spill] sm:$0xff] %v15814_v12  ;;  %v7400_v5 = vrot.slane %v7399_v41, 4  ;;  %v19011_v53 = vrot.slane %v19010_v38, 2  ;;  %v6488_v60 = vrot.slane %v19015_v7, 1 }
 0x4d5   :  { %v7380_v25 = vmax.f32 %v7378_v58, %v7379_v10  ;;  %v7385_v33 = vsel %vm7377_vm12, %v7250_v8, -inf  ;;  %v7253_v35 = vadd.f32 %v19013_v0, %v6741_v63  ;;  %v15830_v8 = vld [vmem:[%s17932_s9] ss:$0 sm:$0xff]  ;;  %v19017_v0 = vld [vmem:[#allocation219_spill] sm:$0xff]  ;;  %v19019_v56 = vrot.slane %v19018_v18, 2 }
 0x4d6   :  { %v7396_v48 = vmax.f32 %v7394_v17, %v7395_v16  ;;  %v7386_v44 = vrot.slane %v7385_v33, 4  ;;  %v7255_v55 = vadd.f32 %v19011_v53, %v6743_v51  ;;  %v7401_v39 = vmax.f32 %v7399_v41, %v7400_v5  ;;  %v19016_v53 = vld [vmem:[#allocation73_spill] sm:$0xff] }
 0x4d7   :  { %v7381_v49 = vrot.slane %v7380_v25, 2  ;;  %v7406_v17 = vsel %vm7377_vm12, %v7253_v35, -inf  ;;  %v6744_v32 = vadd.f32 %v19016_v53, %v6488_v60  ;;  %v6486_v7 = vrot.slane %v19017_v0, 1 }
 0x4d8   :  { %v7397_v15 = vrot.slane %v7396_v48, 1  ;;  %v7387_v58 = vmax.f32 %v7385_v33, %v7386_v44  ;;  %v7420_v10 = vsel %vm7377_vm12, %v7255_v55, -inf  ;;  %v7402_v16 = vrot.slane %v7401_v39, 2 }
 0x4d9   :  { %v7382_v51 = vmax.f32 %v7380_v25, %v7381_v49  ;;  %v7421_v41 = vrot.slane %v7420_v10, 4  ;;  %v7407_v63 = vrot.slane %v7406_v17, 4  ;;  %v7256_v31 = vadd.f32 %v19019_v56, %v6744_v32  ;;  %v19020_v25 = vld [vmem:[#allocation75_spill] sm:$0xff] }
 0x4da   :  { %v7398_v5 = vmax.f32 %v7396_v48, %v7397_v15  ;;  %v7388_v38 = vrot.slane %v7387_v58, 2  ;;  %v7403_v33 = vmax.f32 %v7401_v39, %v7402_v16  ;;  %v6742_v49 = vadd.f32 %v6486_v7, %v19020_v25 }
 0x4db   :  { %v7383_v44 = vrot.slane %v7382_v51, 1  ;;  %v7422_v55 = vmax.f32 %v7420_v10, %v7421_v41  ;;  %v7408_v61 = vmax.f32 %v7406_v17, %v7407_v63  ;;  %v7427_v39 = vsel %vm7377_vm12, %v7256_v31, -inf  ;;  %v19021_v10 = vld [vmem:[#allocation304_spill] sm:$0xff]  ;;  %v15843_v41 = vpop.f32.mrb[47].mxu1 }
 0x4dc   :  { %v8283_v35 = vadd.f32 %v15830_v8, %v7398_v5  ;;  %v7389_v12 = vmax.f32 %v7387_v58, %v7388_v38  ;;  %v7404_v24 = vrot.slane %v7403_v33, 1  ;;  %v19022_v17 = vrot.slane %v19021_v10, 2  ;;  %v15848_v63 = vpop.f32.mrb[48].mxu1 }
 0x4dd   :  { %v7384_v46 = vmax.f32 %v7382_v51, %v7383_v44  ;;  %v7423_v48 = vrot.slane %v7422_v55, 2  ;;  %v7409_v15 = vrot.slane %v7408_v61, 2  ;;  %v7428_v32 = vrot.slane %v7427_v39, 4  ;;  %v15855_v25 = vpop.f32.mrb[49].mxu1 }
 0x4de   :  { %v8411_v60 = vmax.f32 %v8283_v35, 0.0  ;;  %v7390_v53 = vrot.slane %v7389_v12, 1  ;;  %v7254_v16 = vadd.f32 %v19022_v17, %v6742_v49  ;;  %v7405_v56 = vmax.f32 %v7403_v33, %v7404_v24  ;;  %19023 = vst [vmem:[#allocation273_spill] sm:$0xff] %v15855_v25  ;;  %v15859_v49 = vpop.f32.mrb[50].mxu1 }
 0x4df   :  { %v15846_v18 = vadd.f32 %v15830_v8, %v7384_v46  ;;  %v7424_v58 = vmax.f32 %v7422_v55, %v7423_v48  ;;  %v7410_v51 = vmax.f32 %v7408_v61, %v7409_v15  ;;  %v7429_v46 = vmax.f32 %v7427_v39, %v7428_v32  ;;  %19025 = vst [vmem:[#allocation274_spill] sm:$0xff] %v15859_v49  ;;  %v19026_v32 = vld [vmem:[#allocation37_spill] sm:$0xff] }
 0x4e0   :  { %v15850_v5 = vrot.slane %v8411_v60, 6  ;;  %v7391_v38 = vmax.f32 %v7389_v12, %v7390_v53  ;;  %v7413_v0 = vsel %vm7377_vm12, %v7254_v16, -inf  ;;  %v8284_v7 = vadd.f32 %v15830_v8, %v7405_v56 }
 0x4e1   :  { %v7425_v44 = vrot.slane %v7424_v58, 1  ;;  %v7411_v35 = vrot.slane %v7410_v51, 1  ;;  %v7414_v61 = vrot.slane %v7413_v0, 4  ;;  %v7430_v10 = vrot.slane %v7429_v46, 2 }
 0x4e2   :  { %v8282_v24 = vadd.f32 %v15830_v8, %v7391_v38  ;;  %v8412_v12 = vmax.f32 %v8284_v7, 0.0  ;;  %v6491_v16 = vrot.slane %v15479_v26, 1  ;;  %v6489_v55 = vrot.slane %v19026_v32, 1  ;;  %v19027_v7 = vld [vmem:[#allocation77_spill] sm:$0xff]  ;;  %v19030_v38 = vld [vmem:[#allocation62_spill] sm:$0xff] }
 0x4e3   :  { %v15861_v48 = vmax.f32 %v7424_v58, %v7425_v44  ;;  %v7412_v15 = vmax.f32 %v7410_v51, %v7411_v35  ;;  %v7415_v17 = vmax.f32 %v7413_v0, %v7414_v61  ;;  %v15872_v58 = vmax.f32 %v7429_v46, %v7430_v10  ;;  %v15882_v46 = vpop.f32.mrb[51].mxu1  ;;  %v19039_v61 = vld [vmem:[#allocation66_spill] sm:$0xff] }
 0x4e4   :  { %v8410_v53 = vmax.f32 %v8282_v24, 0.0  ;;  %v15865_v56 = vrot.slane %v8412_v12, 5  ;;  %v6747_v44 = vadd.f32 %v19027_v7, %v6491_v16  ;;  %v19028_v24 = vld [vmem:[#allocation79_spill] sm:$0xff]  ;;  %v6492_v12 = vrot.slane %v15496_v6, 1  ;;  %19032 = vst [vmem:[#allocation277_spill] sm:$0xff] %v15882_v46  ;;  %v19033_v16 = vld [vmem:[#allocation64_spill] sm:$0xff] }
 0x4e5   :  { %v8285_v39 = vadd.f32 %v15830_v8, %v7412_v15  ;;  %v7416_v51 = vrot.slane %v7415_v17, 2  ;;  %v6745_v0 = vadd.f32 %v6489_v55, %v19028_v24  ;;  %v19031_v47 = vrot.slane %v19030_v38, 2  ;;  %v19035_v55 = vld [vmem:[#allocation81_spill] sm:$0xff]  ;;  %v15890_v6 = vpop.f32.mrb[52].mxu1  ;;  %v19037_v38 = vld [vmem:[#allocation83_spill] sm:$0xff] }
 0x4e6   :  { %v15870_v31 = vrot.slane %v8410_v53, 7  ;;  %v6490_v53 = vrot.slane %v15501_v43, 1  ;;  %v6748_v24 = vadd.f32 %v19035_v55, %v6492_v12  ;;  %v6495_v26 = vrot.slane %v15525_v62, 1  ;;  %19036 = vst [vmem:[#allocation279_spill] sm:$0xff] %v15890_v6  ;;  %v19042_v55 = vld [vmem:[#allocation306_spill] sm:$0xff]  ;;  %v15917_v49 = vpop.f32.mrb[53].mxu1 }
 0x4e7   :  { %v8413_v35 = vmax.f32 %v8285_v39, 0.0  ;;  %v7417_v60 = vmax.f32 %v7415_v17, %v7416_v51  ;;  %v7259_v32 = vadd.f32 %v19031_v47, %v6747_v44  ;;  %v19034_v39 = vrot.slane %v19033_v16, 2  ;;  %v19038_v51 = vld [vmem:[#allocation348_spill] sm:$0xff]  ;;  %19054 = vst [vmem:[#allocation197_spill] sm:$0xff] %v15917_v49 }
 0x4e8   :  { %v6746_v47 = vadd.f32 %v6490_v53, %v19037_v38  ;;  %v6493_v43 = vrot.slane %v19038_v51, 1  ;;  %v19040_v23 = vrot.slane %v19039_v61, 2  ;;  %v19043_v33 = vrot.slane %v19042_v55, 2  ;;  %v19045_v38 = vld [vmem:[#allocation311_spill] sm:$0xff] }
 0x4e9   :  { %v15884_v10 = vrot.slane %v8413_v35, 4  ;;  %v7257_v7 = vadd.f32 %v19034_v39, %v6745_v0  ;;  %v7418_v15 = vrot.slane %v7417_v60, 1  ;;  %v7448_v17 = vsel %vm7377_vm12, %v7259_v32, -inf  ;;  %v19041_v0 = vld [vmem:[#allocation84_spill] sm:$0xff] }
 0x4ea   :  { %v7449_v44 = vrot.slane %v7448_v17, 4  ;;  %v7260_v16 = vadd.f32 %v19040_v23, %v6748_v24  ;;  %v6751_v39 = vadd.f32 %v19041_v0, %v6495_v26  ;;  %v7258_v59 = vadd.f32 %v19043_v33, %v6746_v47 }
 0x4eb   :  { %v7434_v35 = vsel %vm7377_vm12, %v7257_v7, -inf  ;;  %v15899_v12 = vmax.f32 %v7417_v60, %v7418_v15  ;;  %v6749_v32 = vadd.f32 %v6493_v43, %v19044_v29  ;;  %v19046_v51 = vrot.slane %v19045_v38, 2  ;;  %v19047_v7 = vld [vmem:[#allocation229_spill] sm:$0xff]  ;;  %v19050_v29 = vld [vmem:[#allocation88_spill] sm:$0xff] }
 0x4ec   :  { %v7435_v62 = vrot.slane %v7434_v35, 4  ;;  %v7450_v1 = vmax.f32 %v7448_v17, %v7449_v44  ;;  %v7455_v53 = vsel %vm7377_vm12, %v7260_v16, -inf  ;;  %v6496_v6 = vrot.slane %v19047_v7, 1  ;;  %v19048_v60 = vld [vmem:[#allocation313_spill] sm:$0xff] }
 0x4ed   :  { %v7263_v57 = vadd.f32 %v19046_v51, %v6751_v39  ;;  %v7456_v23 = vrot.slane %v7455_v53, 4  ;;  %v7441_v26 = vsel %vm7377_vm12, %v7258_v59, -inf  ;;  %v19049_v15 = vrot.slane %v19048_v60, 2 }
 0x4ee   :  { %v7436_v61 = vmax.f32 %v7434_v35, %v7435_v62  ;;  %v7451_v0 = vrot.slane %v7450_v1, 2  ;;  %v7442_v55 = vrot.slane %v7441_v26, 4  ;;  %v6752_v17 = vadd.f32 %v19050_v29, %v6496_v6  ;;  %v19051_v62 = vld [vmem:[#allocation315_spill] sm:$0xff] }
 0x4ef   :  { %v7261_v24 = vadd.f32 %v19049_v15, %v6749_v32  ;;  %v7476_v33 = vsel %vm7377_vm12, %v7263_v57, -inf  ;;  %v7457_v43 = vmax.f32 %v7455_v53, %v7456_v23  ;;  %v19052_v51 = vrot.slane %v19051_v62, 2  ;;  %v19053_v15 = vld [vmem:[#allocation40_spill] sm:$0xff] }
 0x4f0   :  { %v7437_v47 = vrot.slane %v7436_v61, 2  ;;  %v7477_v44 = vrot.slane %v7476_v33, 4  ;;  %v7452_v39 = vmax.f32 %v7450_v1, %v7451_v0  ;;  %v7443_v38 = vmax.f32 %v7441_v26, %v7442_v55 }
 0x4f1   :  { %v7462_v16 = vsel %vm7377_vm12, %v7261_v24, -inf  ;;  %v7264_v59 = vadd.f32 %v19052_v51, %v6752_v17  ;;  %v7458_v60 = vrot.slane %v7457_v43, 2  ;;  %v6494_v46 = vrot.slane %v19053_v15, 1  ;;  %v19055_v17 = vld [vmem:[#allocation90_spill] sm:$0xff] }
 0x4f2   :  { %v7463_v35 = vrot.slane %v7462_v16, 4  ;;  %v7438_v7 = vmax.f32 %v7436_v61, %v7437_v47  ;;  %v7478_v32 = vmax.f32 %v7476_v33, %v7477_v44  ;;  %v7453_v57 = vrot.slane %v7452_v39, 1 }
 0x4f3   :  { %v7444_v6 = vrot.slane %v7443_v38, 2  ;;  %v7483_v53 = vsel %vm7377_vm12, %v7264_v59, -inf  ;;  %v7459_v24 = vmax.f32 %v7457_v43, %v7458_v60  ;;  %v6750_v61 = vadd.f32 %v6494_v46, %v19055_v17 }
 0x4f4   :  { %v7464_v29 = vmax.f32 %v7462_v16, %v7463_v35  ;;  %v7439_v23 = vrot.slane %v7438_v7, 1  ;;  %v7479_v1 = vrot.slane %v7478_v32, 2  ;;  %v7484_v26 = vrot.slane %v7483_v53, 4  ;;  %v19056_v16 = vld [vmem:[#allocation68_spill] sm:$0xff] }
 0x4f5   :  { %v7454_v0 = vmax.f32 %v7452_v39, %v7453_v57  ;;  %v7445_v55 = vmax.f32 %v7443_v38, %v7444_v6  ;;  %v7460_v33 = vrot.slane %v7459_v24, 1  ;;  %v19057_v35 = vrot.slane %v19056_v16, 2 }
 0x4f6   :  { %v7465_v62 = vrot.slane %v7464_v29, 2  ;;  %v7440_v47 = vmax.f32 %v7438_v7, %v7439_v23  ;;  %v7480_v44 = vmax.f32 %v7478_v32, %v7479_v1  ;;  %v7485_v51 = vmax.f32 %v7483_v53, %v7484_v26  ;;  %v15928_v32 = vpop.f32.mrb[54].mxu1 }
 0x4f7   :  { %v8291_v15 = vadd.f32 %v15830_v8, %v7454_v0  ;;  %v7446_v49 = vrot.slane %v7445_v55, 1  ;;  %v7262_v59 = vadd.f32 %v19057_v35, %v6750_v61  ;;  %v7461_v60 = vmax.f32 %v7459_v24, %v7460_v33  ;;  %v15936_v26 = vpop.f32.mrb[55].mxu1 }
 0x4f8   :  { %v7466_v25 = vmax.f32 %v7464_v29, %v7465_v62  ;;  %v15925_v43 = vadd.f32 %v15830_v8, %v7440_v47  ;;  %v7481_v39 = vrot.slane %v7480_v44, 1  ;;  %v7486_v38 = vrot.slane %v7485_v51, 2  ;;  %v15941_v62 = vpop.f32.mrb[56].mxu1 }
 0x4f9   :  { %v8419_v57 = vmax.f32 %v8291_v15, 0.0  ;;  %v7447_v6 = vmax.f32 %v7445_v55, %v7446_v49  ;;  %v7469_v7 = vsel %vm7377_vm12, %v7262_v59, -inf  ;;  %v8292_v29 = vadd.f32 %v15830_v8, %v7461_v60  ;;  %v19060_v60 = vld [vmem:[#allocation92_spill] sm:$0xff] }
 0x4fa   :  { %v7467_v46 = vrot.slane %v7466_v25, 1  ;;  %v15932_v23 = vmax.f32 %v7480_v44, %v7481_v39  ;;  %v15934_v1 = vmax.f32 %v7485_v51, %v7486_v38  ;;  %v7470_v55 = vrot.slane %v7469_v7, 4  ;;  %v15946_v44 = vpop.f32.mrb[57].mxu1  ;;  %v19061_v38 = vld [vmem:[#allocation94_spill] sm:$0xff] }
 0x4fb   :  { %v15938_v24 = vrot.slane %v8419_v57, 6  ;;  %v8290_v0 = vadd.f32 %v15830_v8, %v7447_v6  ;;  %v8420_v17 = vmax.f32 %v8292_v29, 0.0  ;;  %v6499_v47 = vrot.slane %v15551_v4, 1  ;;  %19058 = vst [vmem:[#allocation281_spill] sm:$0xff] %v15946_v44  ;;  %v15950_v59 = vpop.f32.mrb[58].mxu1  ;;  %v19062_v29 = vld [vmem:[#allocation96_spill] sm:$0xff] }
 0x4fc   :  { %v7468_v49 = vmax.f32 %v7466_v25, %v7467_v46  ;;  %v6497_v33 = vrot.slane %v15561_v19, 1  ;;  %v7471_v16 = vmax.f32 %v7469_v7, %v7470_v55  ;;  %v6500_v35 = vrot.slane %v15563_v21, 1  ;;  %19059 = vst [vmem:[#allocation282_spill] sm:$0xff] %v15950_v59  ;;  %v19065_v21 = vld [vmem:[#allocation74_spill] sm:$0xff] }
 0x4fd   :  { %v8418_v51 = vmax.f32 %v8290_v0, 0.0  ;;  %v15952_v25 = vrot.slane %v8420_v17, 5  ;;  %v6755_v39 = vadd.f32 %v19060_v60, %v6499_v47  ;;  %v6498_v4 = vrot.slane %v15567_v40, 1  ;;  %v19067_v17 = vld [vmem:[#allocation98_spill] sm:$0xff] }
 0x4fe   :  { %v8293_v15 = vadd.f32 %v15830_v8, %v7468_v49  ;;  %v6753_v57 = vadd.f32 %v6497_v33, %v19061_v38  ;;  %v7472_v46 = vrot.slane %v7471_v16, 2  ;;  %v6756_v0 = vadd.f32 %v19062_v29, %v6500_v35  ;;  %v19063_v49 = vld [vmem:[#allocation72_spill] sm:$0xff] }
 0x4ff   :  { %v15957_v6 = vrot.slane %v8418_v51, 7  ;;  %v19064_v7 = vrot.slane %v19063_v49, 2  ;;  %v19066_v53 = vrot.slane %v19065_v21, 2  ;;  %v6754_v59 = vadd.f32 %v6498_v4, %v19067_v17  ;;  %v19069_v51 = vld [vmem:[#allocation76_spill] sm:$0xff] }
 0x500   :  { %v8421_v19 = vmax.f32 %v8293_v15, 0.0  ;;  %v19068_v47 = vrot.slane %v15872_v58, 1  ;;  %v7473_v40 = vmax.f32 %v7471_v16, %v7472_v46  ;;  %v19070_v15 = vrot.slane %v19069_v51, 2  ;;  %v15981_v46 = vpop.f32.mrb[59].mxu1 }
 0x501   :  { %v7267_v55 = vadd.f32 %v19064_v7, %v6755_v39  ;;  %v7265_v61 = vadd.f32 %v19066_v53, %v6753_v57  ;;  %v8286_v35 = vadd.f32 %v15830_v8, %v15899_v12  ;;  %v19071_v53 = vld [vmem:[#allocation78_spill] sm:$0xff]  ;;  %v8287_v49 = vadd.f32 %v15830_v8, %v15861_v48  ;;  %19073 = vst [vmem:[#allocation285_spill] sm:$0xff] %v15981_v46 }
 0x502   :  { %v7433_v33 = vmax.f32 %v15872_v58, %v19068_v47  ;;  %v15968_v60 = vrot.slane %v8421_v19, 4  ;;  %v7268_v38 = vadd.f32 %v19070_v15, %v6756_v0  ;;  %v19072_v57 = vrot.slane %v19071_v53, 2 }
 0x503   :  { %v7504_v39 = vsel %vm7377_vm12, %v7267_v55, -inf  ;;  %v7490_v29 = vsel %vm7377_vm12, %v7265_v61, -inf  ;;  %v7474_v58 = vrot.slane %v7473_v40, 1  ;;  %v8414_v21 = vmax.f32 %v8286_v35, 0.0  ;;  %v15985_v61 = vpop.f32.mrb[60].mxu1 }
 0x504   :  { %v7266_v4 = vadd.f32 %v19072_v57, %v6754_v59  ;;  %v7505_v19 = vrot.slane %v7504_v39, 4  ;;  %v7491_v7 = vrot.slane %v7490_v29, 4  ;;  %v7511_v16 = vsel %vm7377_vm12, %v7268_v38, -inf }
 0x505   :  { %v7512_v0 = vrot.slane %v7511_v16, 4  ;;  %v8288_v55 = vadd.f32 %v15830_v8, %v7433_v33  ;;  %v15987_v17 = vmax.f32 %v7473_v40, %v7474_v58  ;;  %v8415_v15 = vmax.f32 %v8287_v49, 0.0 }
 0x506   :  { %v7497_v12 = vsel %vm7377_vm12, %v7266_v4, -inf  ;;  %v7506_v59 = vmax.f32 %v7504_v39, %v7505_v19  ;;  %v7492_v47 = vmax.f32 %v7490_v29, %v7491_v7  ;;  %v19074_v39 = vmax.f32 %v15846_v18, 0.0 }
 0x507   :  { %v7498_v48 = vrot.slane %v7497_v12, 4  ;;  %v7513_v51 = vmax.f32 %v7511_v16, %v7512_v0  ;;  %v8416_v53 = vmax.f32 %v8288_v55, 0.0  ;;  %v9048_v49 = vrot.slane %v8414_v21, 3  ;;  %v16000_v21 = vpop.f32.mrb[61].mxu1 }
 0x508   :  { %v7507_v38 = vrot.slane %v7506_v59, 2  ;;  %v7493_v57 = vrot.slane %v7492_v47, 2  ;;  %v9041_v29 = vsel %vm8666_vm11, %v15870_v31, %v19074_v39  ;;  %v9050_v58 = vrot.slane %v8415_v15, 2  ;;  %v19075_v15 = vld [vmem:[#allocation100_spill] sm:$0xff]  ;;  %v19078_v39 = vld [vmem:[#allocation102_spill] sm:$0xff] }
 0x509   :  { %v7499_v46 = vmax.f32 %v7497_v12, %v7498_v48  ;;  %v7514_v44 = vrot.slane %v7513_v51, 2  ;;  %v9043_v0 = vsel %vm8669_vm14, %v15850_v5, %v9041_v29 }
 0x50a   :  { %v7508_v33 = vmax.f32 %v7506_v59, %v7507_v38  ;;  %v7494_v35 = vmax.f32 %v7492_v47, %v7493_v57  ;;  %v9045_v55 = vsel %vm8672_vm15, %v15865_v56, %v9043_v0  ;;  %v9052_v59 = vrot.slane %v8416_v53, 1  ;;  %v19079_v0 = vld [vmem:[#allocation82_spill] sm:$0xff] }
 0x50b   :  { %v7500_v4 = vrot.slane %v7499_v46, 2  ;;  %v7515_v40 = vmax.f32 %v7513_v51, %v7514_v44  ;;  %v6503_v44 = vrot.slane %v15626_v14, 1  ;;  %v9047_v31 = vsel %vm8675_vm0, %v15884_v10, %v9045_v55 }
 0x50c   :  { %v7509_v19 = vrot.slane %v7508_v33, 1  ;;  %v7495_v7 = vrot.slane %v7494_v35, 1  ;;  %v6501_v38 = vrot.slane %v15651_v11, 1 }
 0x50d   :  { %v7501_v16 = vmax.f32 %v7499_v46, %v7500_v4  ;;  %v7516_v12 = vrot.slane %v7515_v40, 1  ;;  %v9049_v46 = vsel %vm8678_vm1, %v9048_v49, %v9047_v31  ;;  %v6759_v5 = vadd.f32 %v19075_v15, %v6503_v44  ;;  %v19082_v15 = vld [vmem:[#allocation106_spill] sm:$0xff] }
 0x50e   :  { %v7510_v47 = vmax.f32 %v7508_v33, %v7509_v19  ;;  %v7496_v18 = vmax.f32 %v7494_v35, %v7495_v7  ;;  %v9051_v57 = vsel %vm8681_vm2, %v9050_v58, %v9049_v46  ;;  %v19076_v35 = vld [vmem:[#allocation80_spill] sm:$0xff]  ;;  %v6757_v29 = vadd.f32 %v6501_v38, %v19078_v39 }
 0x50f   :  { %v7502_v48 = vrot.slane %v7501_v16, 1  ;;  %v7517_v51 = vmax.f32 %v7515_v40, %v7516_v12  ;;  %v9053_v10 = vsel %vm8684_vm3, %v9052_v59, %v9051_v57  ;;  %v19077_v4 = vrot.slane %v19076_v35, 2  ;;  %v19083_v57 = vld [vmem:[#allocation317_spill] sm:$0xff]  ;;  %v19085_v35 = vld [vmem:[#allocation319_spill] sm:$0xff]  ;;  %v19087_v39 = vld [vmem:[#allocation108_spill] sm:$0xff] }
 0x510   :  { %v8299_v56 = vadd.f32 %v15830_v8, %v7510_v47  ;;  %v16007_v53 = vadd.f32 %v15830_v8, %v7496_v18  ;;  %9264 = vrot.lane.b32.xlu0 %v9053_v10, %s12224_s0  ;;  %v6504_v7 = vrot.slane %v15671_v36, 1  ;;  %v19080_v12 = vrot.slane %v19079_v0, 2  ;;  %v16035_v10 = vpop.f32.mrb[62].mxu1 }
 0x511   :  { %v7503_v14 = vmax.f32 %v7501_v16, %v7502_v48  ;;  %v8300_v33 = vadd.f32 %v15830_v8, %v7517_v51  ;;  %v7271_v40 = vadd.f32 %v19077_v4, %v6759_v5  ;;  %v6502_v59 = vrot.slane %v15673_v2, 1  ;;  %v19081_v48 = vld [vmem:[#allocation104_spill] sm:$0xff] }
 0x512   :  { %v8427_v49 = vmax.f32 %v8299_v56, 0.0  ;;  %v7269_v55 = vadd.f32 %v19080_v12, %v6757_v29  ;;  %v6760_v31 = vadd.f32 %v19081_v48, %v6504_v7  ;;  %v6507_v5 = vrot.slane %v15677_v28, 1  ;;  %v16042_v7 = vpop.f32.mrb[63].mxu1 }
 0x513   :  { %v8298_v19 = vadd.f32 %v15830_v8, %v7503_v14  ;;  %v8428_v58 = vmax.f32 %v8300_v33, 0.0  ;;  %v7532_v16 = vsel %vm7377_vm12, %v7271_v40, -inf  ;;  %v6758_v36 = vadd.f32 %v6502_v59, %v19082_v15  ;;  %v16046_v12 = vpop.f32.mrb[64].mxu1 }
 0x514   :  { %v16023_v44 = vrot.slane %v8427_v49, 6  ;;  %v7533_v18 = vrot.slane %v7532_v16, 4  ;;  %v7518_v46 = vsel %vm7377_vm12, %v7269_v55, -inf  ;;  %v19084_v2 = vrot.slane %v19083_v57, 2  ;;  %v16052_v15 = vpop.f32.mrb[65].mxu1 }
 0x515   :  { %v8426_v47 = vmax.f32 %v8298_v19, 0.0  ;;  %v16026_v51 = vrot.slane %v8428_v58, 5  ;;  %v7519_v14 = vrot.slane %v7518_v46, 4  ;;  %v19086_v4 = vrot.slane %v19085_v35, 2  ;;  %v16055_v57 = vpop.f32.mrb[66].mxu1 }
 0x516   :  { %v7534_v56 = vmax.f32 %v7532_v16, %v7533_v18  ;;  %v7272_v33 = vadd.f32 %v19084_v2, %v6760_v31  ;;  %v6763_v29 = vadd.f32 %v19087_v39, %v6507_v5  ;;  %v6505_v49 = vrot.slane %v15684_v3, 1  ;;  %v19090_v31 = vld [vmem:[#allocation110_spill] sm:$0xff]  ;;  %19092 = vst [vmem:[#allocation391_spill] sm:$0xff] %v16055_v57 }
 0x517   :  { %v16031_v38 = vrot.slane %v8426_v47, 7  ;;  %v7270_v40 = vadd.f32 %v19086_v4, %v6758_v36  ;;  %v6508_v19 = vrot.slane %v15688_v50, 1  ;;  %v7520_v58 = vmax.f32 %v7518_v46, %v7519_v14  ;;  %v19088_v47 = vld [vmem:[#allocation323_spill] sm:$0xff]  ;;  %v19091_v46 = vld [vmem:[#allocation112_spill] sm:$0xff] }
 0x518   :  { %v7535_v28 = vrot.slane %v7534_v56, 2  ;;  %v7539_v16 = vsel %vm7377_vm12, %v7272_v33, -inf  ;;  %v6506_v0 = vrot.slane %v15696_v9, 1  ;;  %v19089_v18 = vrot.slane %v19088_v47, 2  ;;  %v19093_v33 = vld [vmem:[#allocation326_spill] sm:$0xff] }
 0x519   :  { %v7540_v55 = vrot.slane %v7539_v16, 4  ;;  %v7525_v59 = vsel %vm7377_vm12, %v7270_v40, -inf  ;;  %v6761_v3 = vadd.f32 %v6505_v49, %v19090_v31  ;;  %v7521_v36 = vrot.slane %v7520_v58, 2  ;;  %v19095_v40 = vld [vmem:[#allocation114_spill] sm:$0xff] }
 0x51a   :  { %v7275_v48 = vadd.f32 %v19089_v18, %v6763_v29  ;;  %v7536_v50 = vmax.f32 %v7534_v56, %v7535_v28  ;;  %v7526_v5 = vrot.slane %v7525_v59, 4  ;;  %v6764_v14 = vadd.f32 %v19091_v46, %v6508_v19  ;;  %v19096_v28 = vld [vmem:[#allocation328_spill] sm:$0xff]  ;;  %v19098_v46 = vld [vmem:[#allocation85_spill] sm:$0xff] }
 0x51b   :  { %v7541_v9 = vmax.f32 %v7539_v16, %v7540_v55  ;;  %v19094_v35 = vrot.slane %v19093_v33, 2  ;;  %v6762_v39 = vadd.f32 %v6506_v0, %v19095_v40  ;;  %v7522_v47 = vmax.f32 %v7520_v58, %v7521_v36  ;;  %v16072_v36 = vpop.f32.mrb[67].mxu1 }
 0x51c   :  { %v7560_v2 = vsel %vm7377_vm12, %v7275_v48, -inf  ;;  %v7537_v29 = vrot.slane %v7536_v50, 1  ;;  %v7527_v49 = vmax.f32 %v7525_v59, %v7526_v5  ;;  %v19097_v11 = vrot.slane %v19096_v28, 2  ;;  %v16074_v40 = vpop.f32.mrb[68].mxu1 }
 0x51d   :  { %v7273_v4 = vadd.f32 %v19094_v35, %v6761_v3  ;;  %v7561_v18 = vrot.slane %v7560_v2, 4  ;;  %v7542_v31 = vrot.slane %v7541_v9, 2  ;;  %v19099_v57 = vrot.slane %v19098_v46, 2 }
 0x51e   :  { %v7276_v19 = vadd.f32 %v19097_v11, %v6764_v14  ;;  %v16066_v55 = vmax.f32 %v7536_v50, %v7537_v29  ;;  %v7523_v48 = vrot.slane %v7522_v47, 1  ;;  %v7528_v33 = vrot.slane %v7527_v49, 2 }
 0x51f   :  { %v7546_v56 = vsel %vm7377_vm12, %v7273_v4, -inf  ;;  %v7274_v16 = vadd.f32 %v19099_v57, %v6762_v39  ;;  %v7562_v3 = vmax.f32 %v7560_v2, %v7561_v18  ;;  %v16068_v35 = vmax.f32 %v7541_v9, %v7542_v31 }
 0x520   :  { %v7547_v0 = vrot.slane %v7546_v56, 4  ;;  %v7567_v58 = vsel %vm7377_vm12, %v7276_v19, -inf  ;;  %v7524_v5 = vmax.f32 %v7522_v47, %v7523_v48  ;;  %v7529_v4 = vmax.f32 %v7527_v49, %v7528_v33  ;;  %v12133_v47 = vld [vmem:[%s17933_s11] sm:$0xff]  }
 0x521   :  { %v7553_v59 = vsel %vm7377_vm12, %v7274_v16, -inf  ;;  %v7563_v11 = vrot.slane %v7562_v3, 2  ;;  %v7568_v14 = vrot.slane %v7567_v58, 4  ;;  %v19100_v9 = vrot.slane %v15934_v1, 1  ;;  %12018 = vmatprep.subr.bf16.mxu0 %v12133_v47 }
 0x522   :  { %v7548_v57 = vmax.f32 %v7546_v56, %v7547_v0  ;;  %v7554_v39 = vrot.slane %v7553_v59, 4  ;;  %v8301_v29 = vadd.f32 %v15830_v8, %v7524_v5  ;;  %v7530_v18 = vrot.slane %v7529_v4, 1  ;;  %12019 = vmatpush3.bf16.msra.mxu0 %v12133_v47 }
 0x523   :  { %v7489_v2 = vmax.f32 %v15934_v1, %v19100_v9  ;;  %v7564_v31 = vmax.f32 %v7562_v3, %v7563_v11  ;;  %v7569_v28 = vmax.f32 %v7567_v58, %v7568_v14  ;;  %v8294_v46 = vadd.f32 %v15830_v8, %v15987_v17 }
 0x524   :  { %v7549_v49 = vrot.slane %v7548_v57, 2  ;;  %v7555_v19 = vmax.f32 %v7553_v59, %v7554_v39  ;;  %v8295_v56 = vadd.f32 %v15830_v8, %v15932_v23  ;;  %v8429_v16 = vmax.f32 %v8301_v29, 0.0 }
 0x525   :  { %v16088_v48 = vmax.f32 %v7529_v4, %v7530_v18  ;;  %v7565_v1 = vrot.slane %v7564_v31, 1  ;;  %v7570_v33 = vrot.slane %v7569_v28, 2  ;;  %v8296_v58 = vadd.f32 %v15830_v8, %v7489_v2 }
 0x526   :  { %v7550_v3 = vmax.f32 %v7548_v57, %v7549_v49  ;;  %v7556_v0 = vrot.slane %v7555_v19, 2  ;;  %v8422_v5 = vmax.f32 %v8294_v46, 0.0  ;;  %v16091_v11 = vrot.slane %v8429_v16, 4 }
 0x527   :  { %v7566_v59 = vmax.f32 %v7564_v31, %v7565_v1  ;;  %v7571_v14 = vmax.f32 %v7569_v28, %v7570_v33  ;;  %v8423_v17 = vmax.f32 %v8295_v56, 0.0  ;;  %v8424_v23 = vmax.f32 %v8296_v58, 0.0 }
 0x528   :  { %v7551_v39 = vrot.slane %v7550_v3, 1  ;;  %v7557_v9 = vmax.f32 %v7555_v19, %v7556_v0  ;;  %v19101_v4 = vmax.f32 %v15925_v43, 0.0  ;;  %v9062_v47 = vrot.slane %v8422_v5, 3 }
 0x529   :  { %v8307_v57 = vadd.f32 %v15830_v8, %v7566_v59  ;;  %v7572_v18 = vrot.slane %v7571_v14, 1  ;;  %v9064_v28 = vrot.slane %v8423_v17, 2  ;;  %v9066_v16 = vrot.slane %v8424_v23, 1  ;;  %v19102_v17 = vld [vmem:[#allocation116_spill] sm:$0xff] }
 0x52a   :  { %v9055_v29 = vsel %vm8666_vm11, %v15957_v6, %v19101_v4  ;;  %v7552_v49 = vmax.f32 %v7550_v3, %v7551_v39  ;;  %v7558_v46 = vrot.slane %v7557_v9, 1  ;;  %v16109_v3 = vpop.f32.mrb[69].mxu1  ;;  %v6509_v5 = vrot.slane %v15735_v30, 1 }
 0x52b   :  { %v9057_v2 = vsel %vm8669_vm14, %v15938_v24, %v9055_v29  ;;  %v8435_v19 = vmax.f32 %v8307_v57, 0.0  ;;  %v7573_v56 = vmax.f32 %v7571_v14, %v7572_v18  ;;  %v6511_v24 = vrot.slane %v15700_v37, 1  ;;  %v19103_v37 = vld [vmem:[#allocation118_spill] sm:$0xff]  ;;  %v19104_v18 = vld [vmem:[#allocation89_spill] sm:$0xff] }
 0x52c   :  { %v9059_v31 = vsel %vm8672_vm15, %v15952_v25, %v9057_v2  ;;  %v16105_v6 = vadd.f32 %v15830_v8, %v7552_v49  ;;  %v7559_v1 = vmax.f32 %v7557_v9, %v7558_v46  ;;  %v6765_v23 = vadd.f32 %v6509_v5, %v19103_v37 }
 0x52d   :  { %v9061_v43 = vsel %vm8675_vm0, %v15968_v60, %v9059_v31  ;;  %v16111_v0 = vrot.slane %v8435_v19, 6  ;;  %v8308_v25 = vadd.f32 %v15830_v8, %v7573_v56  ;;  %v6767_v39 = vadd.f32 %v19102_v17, %v6511_v24  ;;  %v19106_v31 = vld [vmem:[#allocation91_spill] sm:$0xff]  ;;  %v19108_v56 = vld [vmem:[#allocation120_spill] sm:$0xff] }
 0x52e   :  { %v9063_v33 = vsel %vm8678_vm1, %v9062_v47, %v9061_v43  ;;  %v8306_v59 = vadd.f32 %v15830_v8, %v7559_v1  ;;  %v6512_v4 = vrot.slane %v15746_v52, 1  ;;  %v6510_v29 = vrot.slane %v15750_v34, 1 }
 0x52f   :  { %v9065_v58 = vsel %vm8681_vm2, %v9064_v28, %v9063_v33  ;;  %v8436_v9 = vmax.f32 %v8308_v25, 0.0  ;;  %v19105_v30 = vrot.slane %v19104_v18, 2  ;;  %v6515_v47 = vrot.slane %v15752_v27, 1  ;;  %v19110_v33 = vld [vmem:[#allocation124_spill] sm:$0xff]  ;;  %v19111_v25 = vld [vmem:[#allocation126_spill] sm:$0xff]  ;;  %v16139_v27 = vpop.f32.mrb[70].mxu1 }
 0x530   :  { %v9067_v14 = vsel %vm8684_vm3, %v9066_v16, %v9065_v58  ;;  %v8434_v57 = vmax.f32 %v8306_v59, 0.0  ;;  %v6513_v49 = vrot.slane %v15756_v45, 1  ;;  %v19107_v28 = vrot.slane %v19106_v31, 2  ;;  %v19109_v16 = vld [vmem:[#allocation122_spill] sm:$0xff]  ;;  %v19112_v59 = vld [vmem:[#allocation93_spill] sm:$0xff] }
 0x531   :  { %9266 = vrot.lane.b32.xlu1 %v9067_v14, %s12224_s0  ;;  %v7279_v2 = vadd.f32 %v19105_v30, %v6767_v39  ;;  %v16128_v46 = vrot.slane %v8436_v9, 5  ;;  %v6768_v43 = vadd.f32 %v19108_v56, %v6512_v4  ;;  %v6766_v1 = vadd.f32 %v6510_v29, %v19109_v16  ;;  %v19114_v39 = vld [vmem:[#allocation95_spill] sm:$0xff]  ;;  %v19116_v29 = vld [vmem:[#allocation97_spill] sm:$0xff] }
 0x532   :  { %v7277_v19 = vadd.f32 %v19107_v28, %v6765_v23  ;;  %v16134_v52 = vrot.slane %v8434_v57, 7  ;;  %v6771_v24 = vadd.f32 %v19110_v33, %v6515_v47  ;;  %v6769_v58 = vadd.f32 %v6513_v49, %v19111_v25  ;;  %v16146_v23 = vpop.f32.mrb[71].mxu1  ;;  %v19118_v30 = vld [vmem:[#allocation329_spill] sm:$0xff] }
 0x533   :  { %v7588_v34 = vsel %vm7377_vm12, %v7279_v2, -inf  ;;  %v19113_v14 = vrot.slane %v19112_v59, 2  ;;  %v19115_v9 = vrot.slane %v19114_v39, 2  ;;  %v19117_v57 = vrot.slane %v19116_v29, 2  ;;  %v16153_v31 = vpop.f32.mrb[72].mxu1 }
 0x534   :  { %v7589_v45 = vrot.slane %v7588_v34, 4  ;;  %v7574_v5 = vsel %vm7377_vm12, %v7277_v19, -inf  ;;  %v19119_v2 = vrot.slane %v19118_v30, 2  ;;  %v6516_v49 = vrot.slane %v15762_v42, 1  ;;  %19120 = vst [vmem:[#allocation287_spill] sm:$0xff] %v16153_v31  ;;  %v16158_v16 = vpop.f32.mrb[73].mxu1 }
 0x535   :  { %v7280_v17 = vadd.f32 %v19113_v14, %v6768_v43  ;;  %v7278_v37 = vadd.f32 %v19115_v9, %v6766_v1  ;;  %v7575_v4 = vrot.slane %v7574_v5, 4  ;;  %v7283_v18 = vadd.f32 %v19117_v57, %v6771_v24  ;;  %19121 = vst [vmem:[#allocation289_spill] sm:$0xff] %v16158_v16  ;;  %v16161_v59 = vpop.f32.mrb[74].mxu1  ;;  %v19124_v57 = vld [vmem:[#allocation331_spill] sm:$0xff]  ;;  %v19126_v30 = vld [vmem:[#allocation130_spill] sm:$0xff] }
 0x536   :  { %v7281_v47 = vadd.f32 %v19119_v2, %v6769_v58  ;;  %v7590_v28 = vmax.f32 %v7588_v34, %v7589_v45  ;;  %v6514_v43 = vrot.slane %v15772_v54, 1  ;;  %19122 = vst [vmem:[#allocation290_spill] sm:$0xff] %v16161_v59  ;;  %v19123_v34 = vld [vmem:[#allocation128_spill] sm:$0xff] }
 0x537   :  { %v7595_v19 = vsel %vm7377_vm12, %v7280_v17, -inf  ;;  %v7581_v56 = vsel %vm7377_vm12, %v7278_v37, -inf  ;;  %v7576_v1 = vmax.f32 %v7574_v5, %v7575_v4  ;;  %v7616_v24 = vsel %vm7377_vm12, %v7283_v18, -inf }
 0x538   :  { %v7596_v33 = vrot.slane %v7595_v19, 4  ;;  %v7582_v25 = vrot.slane %v7581_v56, 4  ;;  %v7591_v58 = vrot.slane %v7590_v28, 2  ;;  %v7617_v42 = vrot.slane %v7616_v24, 4 }
 0x539   :  { %v7602_v14 = vsel %vm7377_vm12, %v7281_v47, -inf  ;;  %v6772_v45 = vadd.f32 %v19123_v34, %v6516_v49  ;;  %v7577_v17 = vrot.slane %v7576_v1, 2  ;;  %v19125_v5 = vrot.slane %v19124_v57, 2  ;;  %v19127_v49 = vld [vmem:[#allocation332_spill] sm:$0xff] }
 0x53a   :  { %v7597_v39 = vmax.f32 %v7595_v19, %v7596_v33  ;;  %v7583_v9 = vmax.f32 %v7581_v56, %v7582_v25  ;;  %v7603_v37 = vrot.slane %v7602_v14, 4  ;;  %v7592_v54 = vmax.f32 %v7590_v28, %v7591_v58 }
 0x53b   :  { %v7618_v29 = vmax.f32 %v7616_v24, %v7617_v42  ;;  %v7284_v4 = vadd.f32 %v19125_v5, %v6772_v45  ;;  %v6770_v2 = vadd.f32 %v6514_v43, %v19126_v30  ;;  %v7578_v18 = vmax.f32 %v7576_v1, %v7577_v17  ;;  %v16176_v42 = vpop.f32.mrb[75].mxu1 }
 0x53c   :  { %v7598_v60 = vrot.slane %v7597_v39, 2  ;;  %v7584_v50 = vrot.slane %v7583_v9, 2  ;;  %v7604_v59 = vmax.f32 %v7602_v14, %v7603_v37  ;;  %v7593_v16 = vrot.slane %v7592_v54, 1  ;;  %v16179_v57 = vpop.f32.mrb[76].mxu1 }
 0x53d   :  { %v7619_v31 = vrot.slane %v7618_v29, 2  ;;  %v7623_v47 = vsel %vm7377_vm12, %v7284_v4, -inf  ;;  %v19128_v34 = vrot.slane %v19127_v49, 2  ;;  %v7579_v56 = vrot.slane %v7578_v18, 1 }
 0x53e   :  { %v16171_v33 = vmax.f32 %v7597_v39, %v7598_v60  ;;  %v7585_v28 = vmax.f32 %v7583_v9, %v7584_v50  ;;  %v7605_v25 = vrot.slane %v7604_v59, 2  ;;  %v16173_v24 = vmax.f32 %v7592_v54, %v7593_v16 }
 0x53f   :  { %v7282_v19 = vadd.f32 %v19128_v34, %v6770_v2  ;;  %v7620_v58 = vmax.f32 %v7618_v29, %v7619_v31  ;;  %v7624_v43 = vrot.slane %v7623_v47, 4  ;;  %v7580_v14 = vmax.f32 %v7578_v18, %v7579_v56 }
 0x540   :  { %v7586_v17 = vrot.slane %v7585_v28, 1  ;;  %v7606_v37 = vmax.f32 %v7604_v59, %v7605_v25  ;;  %v19129_v50 = vrot.slane %v16068_v35, 1  ;;  %v8302_v29 = vadd.f32 %v15830_v8, %v16088_v48 }
 0x541   :  { %v7609_v1 = vsel %vm7377_vm12, %v7282_v19, -inf  ;;  %v7621_v5 = vrot.slane %v7620_v58, 1  ;;  %v7625_v60 = vmax.f32 %v7623_v47, %v7624_v43  ;;  %v8309_v31 = vadd.f32 %v15830_v8, %v7580_v14 }
 0x542   :  { %v7610_v39 = vrot.slane %v7609_v1, 4  ;;  %v7545_v16 = vmax.f32 %v16068_v35, %v19129_v50  ;;  %v16185_v9 = vmax.f32 %v7585_v28, %v7586_v17  ;;  %v7607_v54 = vrot.slane %v7606_v37, 1 }
 0x543   :  { %v7622_v4 = vmax.f32 %v7620_v58, %v7621_v5  ;;  %v7626_v30 = vrot.slane %v7625_v60, 2  ;;  %v8303_v2 = vadd.f32 %v15830_v8, %v16066_v55  ;;  %v8437_v18 = vmax.f32 %v8309_v31, 0.0  ;;  %v19159_v5 = vld [vmem:[#allocation340_spill] sm:$0xff] }
 0x544   :  { %v7611_v59 = vmax.f32 %v7609_v1, %v7610_v39  ;;  %v7608_v47 = vmax.f32 %v7606_v37, %v7607_v54  ;;  %v8304_v49 = vadd.f32 %v15830_v8, %v7545_v16  ;;  %v8430_v34 = vmax.f32 %v8302_v29, 0.0  ;;  %v16211_v54 = vpop.f32.mrb[77].mxu1 }
 0x545   :  { %v8315_v35 = vadd.f32 %v15830_v8, %v7622_v4  ;;  %v7627_v19 = vmax.f32 %v7625_v60, %v7626_v30  ;;  %v8431_v28 = vmax.f32 %v8303_v2, 0.0  ;;  %v16193_v25 = vrot.slane %v8437_v18, 4 }
 0x546   :  { %v7612_v56 = vrot.slane %v7611_v59, 2  ;;  %v16196_v48 = vadd.f32 %v15830_v8, %v7608_v47  ;;  %v8432_v58 = vmax.f32 %v8304_v49, 0.0  ;;  %v19130_v43 = vmax.f32 %v16007_v53, 0.0  ;;  %v19131_v49 = vld [vmem:[#allocation132_spill] sm:$0xff] }
 0x547   :  { %v8443_v1 = vmax.f32 %v8315_v35, 0.0  ;;  %v7628_v14 = vrot.slane %v7627_v19, 1  ;;  %v9076_v39 = vrot.slane %v8430_v34, 3  ;;  %v9078_v50 = vrot.slane %v8431_v28, 2  ;;  %v19132_v34 = vld [vmem:[#allocation134_spill] sm:$0xff] }
 0x548   :  { %v9069_v55 = vsel %vm8666_vm11, %v16031_v38, %v19130_v43  ;;  %v7613_v17 = vmax.f32 %v7611_v59, %v7612_v56  ;;  %v9080_v4 = vrot.slane %v8432_v58, 1  ;;  %v6517_v30 = vrot.slane %v15823_v22, 1  ;;  %v19133_v22 = vld [vmem:[#allocation136_spill] sm:$0xff]  ;;  %v19134_v43 = vld [vmem:[#allocation338_spill] sm:$0xff] }
 0x549   :  { %v9071_v37 = vsel %vm8669_vm14, %v16023_v44, %v9069_v55  ;;  %v16207_v16 = vrot.slane %v8443_v1, 6  ;;  %v7629_v31 = vmax.f32 %v7627_v19, %v7628_v14  ;;  %v6519_v44 = vrot.slane %v15785_v13, 1  ;;  %v19136_v1 = vld [vmem:[#allocation99_spill] sm:$0xff] }
 0x54a   :  { %v9073_v60 = vsel %vm8672_vm15, %v16026_v51, %v9071_v37  ;;  %v7614_v53 = vrot.slane %v7613_v17, 1  ;;  %v6520_v18 = vrot.slane %v15838_v20, 1  ;;  %v6773_v35 = vadd.f32 %v6517_v30, %v19132_v34  ;;  %v19138_v37 = vld [vmem:[#allocation138_spill] sm:$0xff] }
 0x54b   :  { %v9075_v38 = vsel %vm8675_vm0, %v16091_v11, %v9073_v60  ;;  %v8316_v51 = vadd.f32 %v15830_v8, %v7629_v31  ;;  %v6775_v11 = vadd.f32 %v19131_v49, %v6519_v44  ;;  %v6518_v19 = vrot.slane %v15843_v41, 1  ;;  %v16238_v44 = vpop.f32.mrb[78].mxu1 }
 0x54c   :  { %v9077_v29 = vsel %vm8678_vm1, %v9076_v39, %v9075_v38  ;;  %v7615_v59 = vmax.f32 %v7613_v17, %v7614_v53  ;;  %v6776_v28 = vadd.f32 %v19133_v22, %v6520_v18  ;;  %v6523_v58 = vrot.slane %v15848_v63, 1  ;;  %v19139_v39 = vld [vmem:[#allocation273_spill] sm:$0xff]  ;;  %v19145_v18 = vld [vmem:[#allocation142_spill] sm:$0xff]  ;;  %v16245_v49 = vpop.f32.mrb[79].mxu1 }
 0x54d   :  { %v9079_v2 = vsel %vm8681_vm2, %v9078_v50, %v9077_v29  ;;  %v8444_v56 = vmax.f32 %v8316_v51, 0.0  ;;  %v19135_v55 = vrot.slane %v19134_v43, 2  ;;  %v19137_v14 = vrot.slane %v19136_v1, 2  ;;  %v19142_v29 = vld [vmem:[#allocation140_spill] sm:$0xff]  ;;  %v19143_v51 = vld [vmem:[#allocation103_spill] sm:$0xff] }
 0x54e   :  { %v9081_v47 = vsel %vm8684_vm3, %v9080_v4, %v9079_v2  ;;  %v8314_v13 = vadd.f32 %v15830_v8, %v7615_v59  ;;  %v6774_v60 = vadd.f32 %v6518_v19, %v19138_v37  ;;  %v6521_v50 = vrot.slane %v19139_v39, 1  ;;  %v19140_v8 = vld [vmem:[#allocation101_spill] sm:$0xff]  ;;  %v19151_v39 = vld [vmem:[#allocation274_spill] sm:$0xff] }
 0x54f   :  { %9268 = vrot.lane.b32.xlu0 %v9081_v47, %s12224_s0  ;;  %v7287_v20 = vadd.f32 %v19135_v55, %v6775_v11  ;;  %v7285_v17 = vadd.f32 %v19137_v14, %v6773_v35  ;;  %v16233_v41 = vrot.slane %v8444_v56, 5  ;;  %v19141_v53 = vrot.slane %v19140_v8, 2  ;;  %v12134_v11 = vld [vmem:[%s17934_s10] sm:$0xff]   ;;  %v19148_v55 = vld [vmem:[#allocation109_spill] sm:$0xff]  ;;  %v16258_v14 = vpop.f32.mrb[80].mxu1 }
 0x550   :  { %v8442_v31 = vmax.f32 %v8314_v13, 0.0  ;;  %v6779_v4 = vadd.f32 %v19142_v29, %v6523_v58  ;;  %v19144_v59 = vrot.slane %v19143_v51, 2  ;;  %v6777_v47 = vadd.f32 %v6521_v50, %v19145_v18  ;;  %11998 = vmatprep.subr.bf16.mxu1 %v12134_v11  ;;  %19150 = vst [vmem:[#allocation61_spill] sm:$0xff] %v16258_v14  ;;  %v19153_v29 = vld [vmem:[#allocation277_spill] sm:$0xff] }
 0x551   :  { %v7288_v38 = vadd.f32 %v19141_v53, %v6776_v28  ;;  %v7644_v63 = vsel %vm7377_vm12, %v7287_v20, -inf  ;;  %v7630_v30 = vsel %vm7377_vm12, %v7285_v17, -inf  ;;  %v19146_v28 = vld [vmem:[#allocation107_spill] sm:$0xff]  ;;  %v19149_v20 = vrot.slane %v19148_v55, 2  ;;  %11999 = vmatpush3.bf16.msra.mxu1 %v12134_v11  ;;  %v19156_v11 = vld [vmem:[#allocation146_spill] sm:$0xff] }
 0x552   :  { %v7286_v2 = vadd.f32 %v19144_v59, %v6774_v60  ;;  %v16250_v34 = vrot.slane %v8442_v31, 7  ;;  %v7645_v35 = vrot.slane %v7644_v63, 4  ;;  %v7631_v19 = vrot.slane %v7630_v30, 4  ;;  %v16261_v31 = vpop.f32.mrb[81].mxu1 }
 0x553   :  { %v7651_v56 = vsel %vm7377_vm12, %v7288_v38, -inf  ;;  %v19147_v58 = vrot.slane %v19146_v28, 2  ;;  %v7289_v1 = vadd.f32 %v19149_v20, %v6777_v47  ;;  %v6524_v50 = vrot.slane %v19151_v39, 1  ;;  %19152 = vst [vmem:[#allocation209_spill] sm:$0xff] %v16261_v31  ;;  %v16266_v51 = vpop.f32.mrb[82].mxu1 }
 0x554   :  { %v7652_v13 = vrot.slane %v7651_v56, 4  ;;  %v7637_v22 = vsel %vm7377_vm12, %v7286_v2, -inf  ;;  %v7646_v17 = vmax.f32 %v7644_v63, %v7645_v35  ;;  %v7632_v37 = vmax.f32 %v7630_v30, %v7631_v19  ;;  %19154 = vst [vmem:[#allocation297_spill] sm:$0xff] %v16266_v51  ;;  %v19155_v35 = vld [vmem:[#allocation144_spill] sm:$0xff] }
 0x555   :  { %v7291_v43 = vadd.f32 %v19147_v58, %v6779_v4  ;;  %v7638_v60 = vrot.slane %v7637_v22, 4  ;;  %v7658_v38 = vsel %vm7377_vm12, %v7289_v1, -inf  ;;  %v6522_v4 = vrot.slane %v19153_v29, 1  ;;  %v19157_v1 = vld [vmem:[#allocation111_spill] sm:$0xff] }
 0x556   :  { %v7653_v8 = vmax.f32 %v7651_v56, %v7652_v13  ;;  %v7647_v59 = vrot.slane %v7646_v17, 2  ;;  %v7633_v2 = vrot.slane %v7632_v37, 2  ;;  %v7659_v47 = vrot.slane %v7658_v38, 4 }
 0x557   :  { %v7672_v53 = vsel %vm7377_vm12, %v7291_v43, -inf  ;;  %v7639_v18 = vmax.f32 %v7637_v22, %v7638_v60  ;;  %v6780_v19 = vadd.f32 %v19155_v35, %v6524_v50  ;;  %v6778_v28 = vadd.f32 %v6522_v4, %v19156_v11  ;;  %v16291_v35 = vld [vmem:[%s17932_s9] ss:$0 sm:$0xff] }
 0x558   :  { %v7673_v63 = vrot.slane %v7672_v53, 4  ;;  %v7654_v30 = vrot.slane %v7653_v8, 2  ;;  %v7648_v58 = vmax.f32 %v7646_v17, %v7647_v59  ;;  %v7634_v56 = vmax.f32 %v7632_v37, %v7633_v2 }
 0x559   :  { %v7640_v13 = vrot.slane %v7639_v18, 2  ;;  %v7660_v20 = vmax.f32 %v7658_v38, %v7659_v47  ;;  %v19158_v39 = vrot.slane %v19157_v1, 2  ;;  %v19160_v45 = vrot.slane %v19159_v5, 2 }
 0x55a   :  { %v7674_v43 = vmax.f32 %v7672_v53, %v7673_v63  ;;  %v16270_v55 = vmax.f32 %v7653_v8, %v7654_v30  ;;  %v7649_v60 = vrot.slane %v7648_v58, 1  ;;  %v7635_v51 = vrot.slane %v7634_v56, 1  ;;  %v16279_v8 = vpop.f32.mrb[83].mxu1 }
 0x55b   :  { %v7292_v29 = vadd.f32 %v19158_v39, %v6780_v19  ;;  %v7290_v22 = vadd.f32 %v19160_v45, %v6778_v28  ;;  %v7641_v31 = vmax.f32 %v7639_v18, %v7640_v13  ;;  %v7661_v4 = vrot.slane %v7660_v20, 2  ;;  %v16283_v5 = vpop.f32.mrb[84].mxu1 }
 0x55c   :  { %v7675_v14 = vrot.slane %v7674_v43, 2  ;;  %v16281_v53 = vmax.f32 %v7648_v58, %v7649_v60  ;;  %v7636_v38 = vmax.f32 %v7634_v56, %v7635_v51  ;;  %v19161_v30 = vrot.slane %v16171_v33, 1 }
 0x55d   :  { %v7679_v17 = vsel %vm7377_vm12, %v7292_v29, -inf  ;;  %v7665_v37 = vsel %vm7377_vm12, %v7290_v22, -inf  ;;  %v7642_v59 = vrot.slane %v7641_v31, 1  ;;  %v7662_v45 = vmax.f32 %v7660_v20, %v7661_v4 }
 0x55e   :  { %v7676_v2 = vmax.f32 %v7674_v43, %v7675_v14  ;;  %v7680_v63 = vrot.slane %v7679_v17, 4  ;;  %v7666_v18 = vrot.slane %v7665_v37, 4  ;;  %v7601_v47 = vmax.f32 %v16171_v33, %v19161_v30 }
 0x55f   :  { %v8317_v19 = vadd.f32 %v16291_v35, %v7636_v38  ;;  %v16294_v11 = vmax.f32 %v7641_v31, %v7642_v59  ;;  %v8310_v14 = vadd.f32 %v16291_v35, %v16185_v9  ;;  %v7663_v28 = vrot.slane %v7662_v45, 1 }
 0x560   :  { %v7677_v51 = vrot.slane %v7676_v2, 1  ;;  %v7681_v58 = vmax.f32 %v7679_v17, %v7680_v63  ;;  %v7667_v56 = vmax.f32 %v7665_v37, %v7666_v18  ;;  %v8311_v13 = vadd.f32 %v16291_v35, %v16173_v24 }
 0x561   :  { %v8445_v33 = vmax.f32 %v8317_v19, 0.0  ;;  %v8312_v20 = vadd.f32 %v16291_v35, %v7601_v47  ;;  %v8438_v1 = vmax.f32 %v8310_v14, 0.0  ;;  %v7664_v39 = vmax.f32 %v7662_v45, %v7663_v28 }
 0x562   :  { %v7678_v43 = vmax.f32 %v7676_v2, %v7677_v51  ;;  %v7682_v29 = vrot.slane %v7681_v58, 2  ;;  %v7668_v22 = vrot.slane %v7667_v56, 2  ;;  %v8439_v31 = vmax.f32 %v8311_v13, 0.0  ;;  %v16318_v51 = vpop.f32.mrb[85].mxu1 }
 0x563   :  { %v16301_v60 = vrot.slane %v8445_v33, 4  ;;  %v8440_v9 = vmax.f32 %v8312_v20, 0.0  ;;  %v19162_v17 = vmax.f32 %v16105_v6, 0.0  ;;  %v16309_v24 = vadd.f32 %v16291_v35, %v7664_v39  ;;  %v19165_v39 = vld [vmem:[#allocation148_spill] sm:$0xff] }
 0x564   :  { %v8323_v4 = vadd.f32 %v16291_v35, %v7678_v43  ;;  %v7683_v38 = vmax.f32 %v7681_v58, %v7682_v29  ;;  %v7669_v59 = vmax.f32 %v7667_v56, %v7668_v22  ;;  %v9090_v18 = vrot.slane %v8438_v1, 3  ;;  %v19163_v58 = vld [vmem:[#allocation279_spill] sm:$0xff]  ;;  %v19164_v43 = vld [vmem:[#allocation197_spill] sm:$0xff] }
 0x565   :  { %v9083_v37 = vsel %vm8666_vm11, %v16134_v52, %v19162_v17  ;;  %v9092_v30 = vrot.slane %v8439_v31, 2  ;;  %v6527_v56 = vrot.slane %v19163_v58, 1  ;;  %v6525_v20 = vrot.slane %v19164_v43, 1  ;;  %v19174_v58 = vld [vmem:[#allocation156_spill] sm:$0xff]  ;;  %v19177_v43 = vld [vmem:[#allocation342_spill] sm:$0xff] }
 0x566   :  { %v9085_v2 = vsel %vm8669_vm14, %v16111_v0, %v9083_v37  ;;  %v8451_v45 = vmax.f32 %v8323_v4, 0.0  ;;  %v7684_v6 = vrot.slane %v7683_v38, 1  ;;  %v7670_v19 = vrot.slane %v7669_v59, 1 }
 0x567   :  { %v9087_v63 = vsel %vm8672_vm15, %v16128_v46, %v9085_v2  ;;  %v9094_v0 = vrot.slane %v8440_v9, 1  ;;  %v6783_v29 = vadd.f32 %v19165_v39, %v6527_v56  ;;  %v6526_v22 = vrot.slane %v15936_v26, 1  ;;  %v19166_v9 = vld [vmem:[#allocation150_spill] sm:$0xff] }
 0x568   :  { %v9089_v52 = vsel %vm8675_vm0, %v16193_v25, %v9087_v63  ;;  %v16320_v14 = vrot.slane %v8451_v45, 6  ;;  %v7685_v13 = vmax.f32 %v7683_v38, %v7684_v6  ;;  %v7671_v46 = vmax.f32 %v7669_v59, %v7670_v19  ;;  %v19167_v38 = vld [vmem:[#allocation113_spill] sm:$0xff]  ;;  %v19169_v45 = vld [vmem:[#allocation152_spill] sm:$0xff]  ;;  %v19179_v39 = vld [vmem:[#allocation158_spill] sm:$0xff] }
 0x569   :  { %v9091_v28 = vsel %vm8678_vm1, %v9090_v18, %v9089_v52  ;;  %v6528_v25 = vrot.slane %v15928_v32, 1  ;;  %v6781_v17 = vadd.f32 %v6525_v20, %v19166_v9  ;;  %v6531_v37 = vrot.slane %v15941_v62, 1  ;;  %v19170_v18 = vld [vmem:[#allocation154_spill] sm:$0xff]  ;;  %v19171_v32 = vld [vmem:[#allocation281_spill] sm:$0xff]  ;;  %v19172_v52 = vld [vmem:[#allocation3_spill] sm:$0xff] }
 0x56a   :  { %v9093_v33 = vsel %vm8681_vm2, %v9092_v30, %v9091_v28  ;;  %v8324_v31 = vadd.f32 %v16291_v35, %v7685_v13  ;;  %v8322_v4 = vadd.f32 %v16291_v35, %v7671_v46  ;;  %v19168_v59 = vrot.slane %v19167_v38, 2  ;;  %v19175_v46 = vld [vmem:[#allocation341_spill] sm:$0xff] }
 0x56b   :  { %v9095_v1 = vsel %vm8684_vm3, %v9094_v0, %v9093_v33  ;;  %v6784_v63 = vadd.f32 %v19169_v45, %v6528_v25  ;;  %v6782_v30 = vadd.f32 %v6526_v22, %v19170_v18  ;;  %v6529_v6 = vrot.slane %v19171_v32, 1  ;;  %v16349_v25 = vpop.f32.mrb[86].mxu1 }
 0x56c   :  { %9270 = vrot.lane.b32.xlu1 %v9095_v1, %s12224_s0  ;;  %v7295_v2 = vadd.f32 %v19168_v59, %v6783_v29  ;;  %v8452_v26 = vmax.f32 %v8324_v31, 0.0  ;;  %v8450_v19 = vmax.f32 %v8322_v4, 0.0  ;;  %v19173_v28 = vrot.slane %v19172_v52, 2 }
 0x56d   :  { %v6787_v56 = vadd.f32 %v19174_v58, %v6531_v37  ;;  %v19176_v62 = vrot.slane %v19175_v46, 2  ;;  %v19178_v20 = vrot.slane %v19177_v43, 2  ;;  %v6785_v29 = vadd.f32 %v6529_v6, %v19179_v39  ;;  %v19183_v6 = vld [vmem:[#allocation115_spill] sm:$0xff]  ;;  %v19186_v58 = vld [vmem:[#allocation282_spill] sm:$0xff] }
 0x56e   :  { %v7293_v0 = vadd.f32 %v19173_v28, %v6781_v17  ;;  %v7700_v13 = vsel %vm7377_vm12, %v7295_v2, -inf  ;;  %v16351_v22 = vrot.slane %v8452_v26, 5  ;;  %v16353_v31 = vrot.slane %v8450_v19, 7  ;;  %v16356_v17 = vpop.f32.mrb[87].mxu1  ;;  %v19181_v2 = vld [vmem:[#allocation5_spill] sm:$0xff] }
 0x56f   :  { %v7296_v33 = vadd.f32 %v19176_v62, %v6784_v63  ;;  %v7294_v1 = vadd.f32 %v19178_v20, %v6782_v30  ;;  %v7701_v4 = vrot.slane %v7700_v13, 4  ;;  %19180 = vst [vmem:[#allocation63_spill] sm:$0xff] %v16356_v17  ;;  %v19182_v45 = vrot.slane %v19181_v2, 2  ;;  %v16364_v52 = vpop.f32.mrb[88].mxu1  ;;  %v19187_v62 = vld [vmem:[#allocation285_spill] sm:$0xff] }
 0x570   :  { %v7686_v9 = vsel %vm7377_vm12, %v7293_v0, -inf  ;;  %v19184_v26 = vrot.slane %v19183_v6, 2  ;;  %19185 = vst [vmem:[#allocation298_spill] sm:$0xff] %v16364_v52  ;;  %v6532_v46 = vrot.slane %v19186_v58, 1  ;;  %v19190_v58 = vld [vmem:[#allocation117_spill] sm:$0xff]  ;;  %v19192_v52 = vld [vmem:[#allocation119_spill] sm:$0xff] }
 0x571   :  { %v7687_v37 = vrot.slane %v7686_v9, 4  ;;  %v7707_v38 = vsel %vm7377_vm12, %v7296_v33, -inf  ;;  %v7693_v59 = vsel %vm7377_vm12, %v7294_v1, -inf  ;;  %v7299_v63 = vadd.f32 %v19182_v45, %v6787_v56  ;;  %v19189_v45 = vld [vmem:[#allocation162_spill] sm:$0xff] }
 0x572   :  { %v7702_v18 = vmax.f32 %v7700_v13, %v7701_v4  ;;  %v7708_v30 = vrot.slane %v7707_v38, 4  ;;  %v7694_v32 = vrot.slane %v7693_v59, 4  ;;  %v7297_v19 = vadd.f32 %v19184_v26, %v6785_v29  ;;  %v19188_v4 = vld [vmem:[#allocation160_spill] sm:$0xff] }
 0x573   :  { %v7688_v28 = vmax.f32 %v7686_v9, %v7687_v37  ;;  %v7728_v0 = vsel %vm7377_vm12, %v7299_v63, -inf  ;;  %v6530_v33 = vrot.slane %v19187_v62, 1  ;;  %v6788_v2 = vadd.f32 %v19188_v4, %v6532_v46  ;;  %v16378_v46 = vpop.f32.mrb[89].mxu1 }
 0x574   :  { %v7703_v43 = vrot.slane %v7702_v18, 2  ;;  %v7709_v20 = vmax.f32 %v7707_v38, %v7708_v30  ;;  %v7695_v1 = vmax.f32 %v7693_v59, %v7694_v32  ;;  %v7729_v39 = vrot.slane %v7728_v0, 4 }
 0x575   :  { %v7689_v56 = vrot.slane %v7688_v28, 2  ;;  %v7714_v13 = vsel %vm7377_vm12, %v7297_v19, -inf  ;;  %v6786_v29 = vadd.f32 %v6530_v33, %v19189_v45  ;;  %v19191_v50 = vrot.slane %v19190_v58, 2 }
 0x576   :  { %v7704_v6 = vmax.f32 %v7702_v18, %v7703_v43  ;;  %v7710_v26 = vrot.slane %v7709_v20, 2  ;;  %v7696_v9 = vrot.slane %v7695_v1, 2  ;;  %v7730_v37 = vmax.f32 %v7728_v0, %v7729_v39  ;;  %v16382_v0 = vpop.f32.mrb[90].mxu1 }
 0x577   :  { %v7690_v63 = vmax.f32 %v7688_v28, %v7689_v56  ;;  %v7715_v47 = vrot.slane %v7714_v13, 4  ;;  %v7300_v62 = vadd.f32 %v19191_v50, %v6788_v2  ;;  %v19193_v38 = vrot.slane %v19192_v52, 2 }
 0x578   :  { %v7705_v30 = vrot.slane %v7704_v6, 1  ;;  %v16376_v32 = vmax.f32 %v7709_v20, %v7710_v26  ;;  %v7697_v19 = vmax.f32 %v7695_v1, %v7696_v9  ;;  %v7731_v17 = vrot.slane %v7730_v37, 2 }
 0x579   :  { %v7298_v59 = vadd.f32 %v19193_v38, %v6786_v29  ;;  %v7691_v33 = vrot.slane %v7690_v63, 1  ;;  %v7716_v18 = vmax.f32 %v7714_v13, %v7715_v47  ;;  %v7735_v43 = vsel %vm7377_vm12, %v7300_v62, -inf }
 0x57a   :  { %v16384_v39 = vmax.f32 %v7704_v6, %v7705_v30  ;;  %v7712_v50 = vrot.slane %v16376_v32, 1  ;;  %v7698_v52 = vrot.slane %v7697_v19, 1  ;;  %v7732_v56 = vmax.f32 %v7730_v37, %v7731_v17 }
 0x57b   :  { %v7721_v28 = vsel %vm7377_vm12, %v7298_v59, -inf  ;;  %v7692_v20 = vmax.f32 %v7690_v63, %v7691_v33  ;;  %v7717_v4 = vrot.slane %v7716_v18, 2  ;;  %v7736_v1 = vrot.slane %v7735_v43, 4  ;;  %v16398_v59 = vpop.f32.mrb[91].mxu1 }
 0x57c   :  { %v7722_v2 = vrot.slane %v7721_v28, 4  ;;  %v16387_v45 = vmax.f32 %v7697_v19, %v7698_v52  ;;  %v7733_v29 = vrot.slane %v7732_v56, 1  ;;  %v19194_v47 = vrot.slane %v16270_v55, 1  ;;  %v16400_v52 = vpop.f32.mrb[92].mxu1 }
 0x57d   :  { %v8318_v26 = vadd.f32 %v16291_v35, %v16294_v11  ;;  %v8325_v6 = vadd.f32 %v16291_v35, %v7692_v20  ;;  %v7718_v9 = vmax.f32 %v7716_v18, %v7717_v4  ;;  %v7737_v58 = vmax.f32 %v7735_v43, %v7736_v1 }
 0x57e   :  { %v7657_v13 = vmax.f32 %v16270_v55, %v19194_v47  ;;  %v7723_v62 = vmax.f32 %v7721_v28, %v7722_v2  ;;  %v7734_v17 = vmax.f32 %v7732_v56, %v7733_v29  ;;  %v8319_v37 = vadd.f32 %v16291_v35, %v16281_v53 }
 0x57f   :  { %v8446_v38 = vmax.f32 %v8318_v26, 0.0  ;;  %v8453_v30 = vmax.f32 %v8325_v6, 0.0  ;;  %v7719_v19 = vrot.slane %v7718_v9, 1  ;;  %v7738_v55 = vrot.slane %v7737_v58, 2 }
 0x580   :  { %v8320_v63 = vadd.f32 %v16291_v35, %v7657_v13  ;;  %v7724_v33 = vrot.slane %v7723_v62, 2  ;;  %v8331_v11 = vadd.f32 %v16291_v35, %v7734_v17  ;;  %v8447_v18 = vmax.f32 %v8319_v37, 0.0 }
 0x581   :  { %v19195_v28 = vmax.f32 %v16196_v48, 0.0  ;;  %v16407_v56 = vrot.slane %v8453_v30, 4  ;;  %v7720_v20 = vmax.f32 %v7718_v9, %v7719_v19  ;;  %v7739_v4 = vmax.f32 %v7737_v58, %v7738_v55  ;;  %v19196_v19 = vld [vmem:[#allocation164_spill] sm:$0xff] }
 0x582   :  { %v8448_v43 = vmax.f32 %v8320_v63, 0.0  ;;  %v7725_v1 = vmax.f32 %v7723_v62, %v7724_v33  ;;  %v8459_v2 = vmax.f32 %v8331_v11, 0.0  ;;  %v9104_v47 = vrot.slane %v8446_v38, 3 }
 0x583   :  { %v9097_v53 = vsel %vm8666_vm11, %v16250_v34, %v19195_v28  ;;  %v9106_v13 = vrot.slane %v8447_v18, 2  ;;  %v16412_v26 = vadd.f32 %v16291_v35, %v7720_v20  ;;  %v7740_v6 = vrot.slane %v7739_v4, 1  ;;  %v19199_v20 = vld [vmem:[#allocation166_spill] sm:$0xff] }
 0x584   :  { %v9099_v29 = vsel %vm8669_vm14, %v16207_v16, %v9097_v53  ;;  %v7726_v17 = vrot.slane %v7725_v1, 1  ;;  %v16416_v34 = vrot.slane %v8459_v2, 6  ;;  %v9108_v58 = vrot.slane %v8448_v43, 1  ;;  %v19197_v43 = vld [vmem:[#allocation123_spill] sm:$0xff] }
 0x585   :  { %v9101_v48 = vsel %vm8672_vm15, %v16233_v41, %v9099_v29  ;;  %v6535_v62 = vrot.slane %v15985_v61, 1  ;;  %v7741_v37 = vmax.f32 %v7739_v4, %v7740_v6  ;;  %v6533_v41 = vrot.slane %v16000_v21, 1 }
 0x586   :  { %v9103_v9 = vsel %vm8675_vm0, %v16301_v60, %v9101_v48  ;;  %v7727_v63 = vmax.f32 %v7725_v1, %v7726_v17  ;;  %v6536_v33 = vrot.slane %v16035_v10, 1  ;;  %v6534_v18 = vrot.slane %v16042_v7, 1  ;;  %v19200_v1 = vld [vmem:[#allocation168_spill] sm:$0xff]  ;;  %v16437_v10 = vpop.f32.mrb[93].mxu1 }
 0x587   :  { %v9105_v38 = vsel %vm8678_vm1, %v9104_v47, %v9103_v9  ;;  %v6791_v55 = vadd.f32 %v19196_v19, %v6535_v62  ;;  %v8332_v11 = vadd.f32 %v16291_v35, %v7741_v37  ;;  %v19198_v28 = vrot.slane %v19197_v43, 2  ;;  %v19202_v48 = vld [vmem:[#allocation4_spill] sm:$0xff]  ;;  %v19204_v62 = vld [vmem:[#allocation7_spill] sm:$0xff] }
 0x588   :  { %v9107_v30 = vsel %vm8681_vm2, %v9106_v13, %v9105_v38  ;;  %v8330_v60 = vadd.f32 %v16291_v35, %v7727_v63  ;;  %v6789_v4 = vadd.f32 %v6533_v41, %v19199_v20  ;;  %v6792_v2 = vadd.f32 %v19200_v1, %v6536_v33  ;;  %v19201_v13 = vld [vmem:[#allocation170_spill] sm:$0xff]  ;;  %v19206_v38 = vld [vmem:[#allocation172_spill] sm:$0xff]  ;;  %v19207_v41 = vld [vmem:[#allocation347_spill] sm:$0xff] }
 0x589   :  { %v9109_v61 = vsel %vm8684_vm3, %v9108_v58, %v9107_v30  ;;  %v7303_v53 = vadd.f32 %v19198_v28, %v6791_v55  ;;  %v6539_v21 = vrot.slane %v16046_v12, 1  ;;  %v8460_v29 = vmax.f32 %v8332_v11, 0.0  ;;  %v19211_v28 = vld [vmem:[#allocation174_spill] sm:$0xff] }
 0x58a   :  { %9272 = vrot.lane.b32.xlu0 %v9109_v61, %s12224_s0  ;;  %v8458_v47 = vmax.f32 %v8330_v60, 0.0  ;;  %v6790_v6 = vadd.f32 %v6534_v18, %v19201_v13  ;;  %v6537_v17 = vrot.slane %v16052_v15, 1  ;;  %v19203_v9 = vrot.slane %v19202_v48, 2  ;;  %v19209_v61 = vld [vmem:[#allocation127_spill] sm:$0xff] }
 0x58b   :  { %v7756_v7 = vsel %vm7377_vm12, %v7303_v53, -inf  ;;  %v19205_v37 = vrot.slane %v19204_v62, 2  ;;  %v6795_v30 = vadd.f32 %v19206_v38, %v6539_v21  ;;  %v16447_v19 = vrot.slane %v8460_v29, 5  ;;  %v19214_v48 = vld [vmem:[#allocation391_spill] sm:$0xff]  ;;  %v16463_v38 = vpop.f32.mrb[94].mxu1 }
 0x58c   :  { %v7301_v58 = vadd.f32 %v19203_v9, %v6789_v4  ;;  %v16449_v12 = vrot.slane %v8458_v47, 7  ;;  %v7757_v55 = vrot.slane %v7756_v7, 4  ;;  %v19208_v33 = vrot.slane %v19207_v41, 2  ;;  %v19212_v47 = vld [vmem:[#allocation129_spill] sm:$0xff] }
 0x58d   :  { %v7304_v63 = vadd.f32 %v19205_v37, %v6792_v2  ;;  %v19210_v18 = vrot.slane %v19209_v61, 2  ;;  %v6793_v53 = vadd.f32 %v6537_v17, %v19211_v28  ;;  %v19213_v13 = vrot.slane %v19212_v47, 2 }
 0x58e   :  { %v7302_v11 = vadd.f32 %v19208_v33, %v6790_v6  ;;  %v7742_v15 = vsel %vm7377_vm12, %v7301_v58, -inf  ;;  %v7758_v20 = vmax.f32 %v7756_v7, %v7757_v55  ;;  %v6540_v9 = vrot.slane %v19214_v48, 1  ;;  %v16468_v33 = vpop.f32.mrb[95].mxu1 }
 0x58f   :  { %v7763_v60 = vsel %vm7377_vm12, %v7304_v63, -inf  ;;  %v7307_v43 = vadd.f32 %v19210_v18, %v6795_v30  ;;  %v7743_v4 = vrot.slane %v7742_v15, 4  ;;  %v7305_v6 = vadd.f32 %v19213_v13, %v6793_v53  ;;  %v19215_v30 = vld [vmem:[#allocation176_spill] sm:$0xff] }
 0x590   :  { %v7764_v1 = vrot.slane %v7763_v60, 4  ;;  %v7749_v2 = vsel %vm7377_vm12, %v7302_v11, -inf  ;;  %v7759_v58 = vrot.slane %v7758_v20, 2  ;;  %v6796_v55 = vadd.f32 %v19215_v30, %v6540_v9 }
 0x591   :  { %v7750_v21 = vrot.slane %v7749_v2, 4  ;;  %v7784_v29 = vsel %vm7377_vm12, %v7307_v43, -inf  ;;  %v7744_v62 = vmax.f32 %v7742_v15, %v7743_v4  ;;  %v7770_v7 = vsel %vm7377_vm12, %v7305_v6, -inf  ;;  %v19216_v15 = vld [vmem:[#allocation6_spill] sm:$0xff] }
 0x592   :  { %v7765_v37 = vmax.f32 %v7763_v60, %v7764_v1  ;;  %v7785_v63 = vrot.slane %v7784_v29, 4  ;;  %v6538_v41 = vrot.slane %v16072_v36, 1  ;;  %v7760_v11 = vmax.f32 %v7758_v20, %v7759_v58  ;;  %v19218_v1 = vld [vmem:[#allocation178_spill] sm:$0xff]  ;;  %v19219_v58 = vld [vmem:[#allocation349_spill] sm:$0xff] }
 0x593   :  { %v7751_v17 = vmax.f32 %v7749_v2, %v7750_v21  ;;  %v7745_v61 = vrot.slane %v7744_v62, 2  ;;  %v7771_v53 = vrot.slane %v7770_v7, 4  ;;  %v19217_v60 = vrot.slane %v19216_v15, 2  ;;  %v16473_v2 = vpop.f32.mrb[96].mxu1 }
 0x594   :  { %v7766_v18 = vrot.slane %v7765_v37, 2  ;;  %v7786_v43 = vmax.f32 %v7784_v29, %v7785_v63  ;;  %v6794_v47 = vadd.f32 %v6538_v41, %v19218_v1  ;;  %v7761_v21 = vrot.slane %v7760_v11, 1 }
 0x595   :  { %v7752_v28 = vrot.slane %v7751_v17, 2  ;;  %v7308_v4 = vadd.f32 %v19217_v60, %v6796_v55  ;;  %v7746_v13 = vmax.f32 %v7744_v62, %v7745_v61  ;;  %v7772_v9 = vmax.f32 %v7770_v7, %v7771_v53  ;;  %v19245_v55 = vld [vmem:[#allocation192_spill] sm:$0xff] }
 0x596   :  { %v16475_v6 = vmax.f32 %v7765_v37, %v7766_v18  ;;  %v7787_v36 = vrot.slane %v7786_v43, 2  ;;  %v19220_v29 = vrot.slane %v19219_v58, 2  ;;  %v16480_v30 = vmax.f32 %v7760_v11, %v7761_v21 }
 0x597   :  { %v7753_v48 = vmax.f32 %v7751_v17, %v7752_v28  ;;  %v7791_v20 = vsel %vm7377_vm12, %v7308_v4, -inf  ;;  %v7747_v15 = vrot.slane %v7746_v13, 1  ;;  %v7773_v1 = vrot.slane %v7772_v9, 2 }
 0x598   :  { %v7306_v63 = vadd.f32 %v19220_v29, %v6794_v47  ;;  %v7788_v41 = vmax.f32 %v7786_v43, %v7787_v36  ;;  %v7792_v16 = vrot.slane %v7791_v20, 4  ;;  %v7713_v7 = vmax.f32 %v16376_v32, %v7712_v50 }
 0x599   :  { %v7754_v60 = vrot.slane %v7753_v48, 1  ;;  %v7748_v37 = vmax.f32 %v7746_v13, %v7747_v15  ;;  %v7774_v11 = vmax.f32 %v7772_v9, %v7773_v1  ;;  %v8326_v53 = vadd.f32 %v16291_v35, %v16387_v45  ;;  %v16494_v13 = vpop.f32.mrb[97].mxu1 }
 0x59a   :  { %v7777_v62 = vsel %vm7377_vm12, %v7306_v63, -inf  ;;  %v7789_v61 = vrot.slane %v7788_v41, 1  ;;  %v7793_v28 = vmax.f32 %v7791_v20, %v7792_v16  ;;  %v8327_v21 = vadd.f32 %v16291_v35, %v16384_v39 }
 0x59b   :  { %v7778_v17 = vrot.slane %v7777_v62, 4  ;;  %v16487_v18 = vmax.f32 %v7753_v48, %v7754_v60  ;;  %v8333_v43 = vadd.f32 %v16291_v35, %v7748_v37  ;;  %v7775_v36 = vrot.slane %v7774_v11, 1  ;;  %v16497_v48 = vpop.f32.mrb[98].mxu1 }
 0x59c   :  { %v7790_v4 = vmax.f32 %v7788_v41, %v7789_v61  ;;  %v7794_v58 = vrot.slane %v7793_v28, 2  ;;  %v8328_v32 = vadd.f32 %v16291_v35, %v7713_v7  ;;  %v8454_v50 = vmax.f32 %v8326_v53, 0.0 }
 0x59d   :  { %v7779_v47 = vmax.f32 %v7777_v62, %v7778_v17  ;;  %v8461_v16 = vmax.f32 %v8333_v43, 0.0  ;;  %v8455_v20 = vmax.f32 %v8327_v21, 0.0  ;;  %v7776_v29 = vmax.f32 %v7774_v11, %v7775_v36  ;;  %v16517_v43 = vpop.f32.mrb[99].mxu1 }
 0x59e   :  { %v8339_v9 = vadd.f32 %v16291_v35, %v7790_v4  ;;  %v7795_v63 = vmax.f32 %v7793_v28, %v7794_v58  ;;  %v8456_v15 = vmax.f32 %v8328_v32, 0.0  ;;  %v19221_v41 = vmax.f32 %v16309_v24, 0.0 }
 0x59f   :  { %v7780_v45 = vrot.slane %v7779_v47, 2  ;;  %v16504_v60 = vrot.slane %v8461_v16, 4  ;;  %v16509_v61 = vadd.f32 %v16291_v35, %v7776_v29  ;;  %v9118_v11 = vrot.slane %v8454_v50, 3  ;;  %v16524_v50 = vpop.f32.mrb[100].mxu1  ;;  %v19223_v29 = vld [vmem:[#allocation180_spill] sm:$0xff] }
 0x5a0   :  { %v9111_v39 = vsel %vm8666_vm11, %v16353_v31, %v19221_v41  ;;  %v8467_v1 = vmax.f32 %v8339_v9, 0.0  ;;  %v7796_v17 = vrot.slane %v7795_v63, 1  ;;  %v9120_v53 = vrot.slane %v8455_v20, 2  ;;  %19222 = vst [vmem:[#allocation65_spill] sm:$0xff] %v16524_v50  ;;  %v19225_v41 = vld [vmem:[#allocation287_spill] sm:$0xff] }
 0x5a1   :  { %v7781_v62 = vmax.f32 %v7779_v47, %v7780_v45  ;;  %v9113_v37 = vsel %vm8669_vm14, %v16320_v14, %v9111_v39  ;;  %v9122_v21 = vrot.slane %v8456_v15, 1  ;;  %v6541_v32 = vrot.slane %v16109_v3, 1  ;;  %v19224_v15 = vld [vmem:[#allocation182_spill] sm:$0xff] }
 0x5a2   :  { %v9115_v7 = vsel %vm8672_vm15, %v16351_v22, %v9113_v37  ;;  %v16513_v28 = vrot.slane %v8467_v1, 6  ;;  %v7797_v14 = vmax.f32 %v7795_v63, %v7796_v17  ;;  %v6543_v22 = vrot.slane %v16074_v40, 1  ;;  %v19226_v1 = vld [vmem:[#allocation184_spill] sm:$0xff]  ;;  %v19227_v37 = vld [vmem:[#allocation186_spill] sm:$0xff] }
 0x5a3   :  { %v7782_v24 = vrot.slane %v7781_v62, 1  ;;  %v9117_v31 = vsel %vm8675_vm0, %v16407_v56, %v9115_v7  ;;  %v6544_v9 = vrot.slane %v16139_v27, 1  ;;  %v6542_v45 = vrot.slane %v16146_v23, 1  ;;  %v19228_v7 = vld [vmem:[#allocation289_spill] sm:$0xff] }
 0x5a4   :  { %v9119_v47 = vsel %vm8678_vm1, %v9118_v11, %v9117_v31  ;;  %v8340_v56 = vadd.f32 %v16291_v35, %v7797_v14  ;;  %v6799_v63 = vadd.f32 %v19223_v29, %v6543_v22  ;;  %v6797_v40 = vadd.f32 %v6541_v32, %v19224_v15  ;;  %v19234_v22 = vld [vmem:[#allocation133_spill] sm:$0xff] }
 0x5a5   :  { %v7783_v36 = vmax.f32 %v7781_v62, %v7782_v24  ;;  %v9121_v58 = vsel %vm8681_vm2, %v9120_v53, %v9119_v47  ;;  %v6547_v3 = vrot.slane %v19225_v41, 1  ;;  %v6800_v62 = vadd.f32 %v19226_v1, %v6544_v9  ;;  %v19229_v24 = vld [vmem:[#allocation11_spill] sm:$0xff]  ;;  %v19239_v1 = vld [vmem:[#allocation10_spill] sm:$0xff] }
 0x5a6   :  { %v9123_v16 = vsel %vm8684_vm3, %v9122_v21, %v9121_v58  ;;  %v8468_v39 = vmax.f32 %v8340_v56, 0.0  ;;  %v6798_v17 = vadd.f32 %v6542_v45, %v19227_v37  ;;  %v6545_v11 = vrot.slane %v19228_v7, 1  ;;  %v19231_v53 = vld [vmem:[#allocation131_spill] sm:$0xff]  ;;  %v19233_v21 = vld [vmem:[#allocation188_spill] sm:$0xff]  ;;  %v19238_v45 = vld [vmem:[#allocation190_spill] sm:$0xff] }
 0x5a7   :  { %v8338_v20 = vadd.f32 %v16291_v35, %v7783_v36  ;;  %9274 = vrot.lane.b32.xlu1 %v9123_v16, %s12224_s0  ;;  %v19230_v23 = vrot.slane %v19229_v24, 2  ;;  %v19232_v14 = vrot.slane %v19231_v53, 2  ;;  %v6803_v36 = vadd.f32 %v19233_v21, %v6547_v3  ;;  %v19236_v16 = vld [vmem:[#allocation135_spill] sm:$0xff]  ;;  %v16556_v3 = vpop.f32.mrb[101].mxu1 }
 0x5a8   :  { %v16543_v58 = vrot.slane %v8468_v39, 5  ;;  %v19235_v32 = vrot.slane %v19234_v22, 2  ;;  %v19237_v9 = vrot.slane %v19236_v16, 2  ;;  %v6801_v15 = vadd.f32 %v6545_v11, %v19238_v45  ;;  %19241 = vst [vmem:[#allocation67_spill] sm:$0xff] %v16556_v3  ;;  %v19244_v22 = vld [vmem:[#allocation290_spill] sm:$0xff] }
 0x5a9   :  { %v8466_v27 = vmax.f32 %v8338_v20, 0.0  ;;  %v7311_v31 = vadd.f32 %v19230_v23, %v6799_v63  ;;  %v7309_v47 = vadd.f32 %v19232_v14, %v6797_v40  ;;  %v19240_v40 = vrot.slane %v19239_v1, 2 }
 0x5aa   :  { %v7312_v56 = vadd.f32 %v19235_v32, %v6800_v62  ;;  %v7310_v29 = vadd.f32 %v19237_v9, %v6798_v17 }
 0x5ab   :  { %v16550_v41 = vrot.slane %v8466_v27, 7  ;;  %v7812_v20 = vsel %vm7377_vm12, %v7311_v31, -inf  ;;  %v7798_v63 = vsel %vm7377_vm12, %v7309_v47, -inf  ;;  %v7315_v37 = vadd.f32 %v19240_v40, %v6803_v36  ;;  %v19242_v27 = vld [vmem:[#allocation139_spill] sm:$0xff] }
 0x5ac   :  { %v7813_v39 = vrot.slane %v7812_v20, 4  ;;  %v7799_v7 = vrot.slane %v7798_v63, 4  ;;  %v7819_v62 = vsel %vm7377_vm12, %v7312_v56, -inf  ;;  %v7805_v24 = vsel %vm7377_vm12, %v7310_v29, -inf }
 0x5ad   :  { %v7820_v17 = vrot.slane %v7819_v62, 4  ;;  %v7806_v23 = vrot.slane %v7805_v24, 4  ;;  %v7840_v11 = vsel %vm7377_vm12, %v7315_v37, -inf  ;;  %v19243_v53 = vrot.slane %v19242_v27, 2 }
 0x5ae   :  { %v7814_v14 = vmax.f32 %v7812_v20, %v7813_v39  ;;  %v7800_v47 = vmax.f32 %v7798_v63, %v7799_v7  ;;  %v7841_v21 = vrot.slane %v7840_v11, 4  ;;  %v6548_v36 = vrot.slane %v19244_v22, 1 }
 0x5af   :  { %v7313_v31 = vadd.f32 %v19243_v53, %v6801_v15  ;;  %v7821_v32 = vmax.f32 %v7819_v62, %v7820_v17  ;;  %v7807_v16 = vmax.f32 %v7805_v24, %v7806_v23  ;;  %v6546_v56 = vrot.slane %v16176_v42, 1  ;;  %v19246_v15 = vld [vmem:[#allocation194_spill] sm:$0xff]  ;;  %v19247_v17 = vld [vmem:[#allocation141_spill] sm:$0xff] }
 0x5b0   :  { %v7815_v45 = vrot.slane %v7814_v14, 2  ;;  %v7801_v29 = vrot.slane %v7800_v47, 2  ;;  %v7842_v1 = vmax.f32 %v7840_v11, %v7841_v21  ;;  %v6804_v27 = vadd.f32 %v19245_v55, %v6548_v36  ;;  %v16574_v21 = vpop.f32.mrb[102].mxu1 }
 0x5b1   :  { %v7826_v9 = vsel %vm7377_vm12, %v7313_v31, -inf  ;;  %v7822_v4 = vrot.slane %v7821_v32, 2  ;;  %v7808_v37 = vrot.slane %v7807_v16, 2  ;;  %v6802_v20 = vadd.f32 %v6546_v56, %v19246_v15  ;;  %v19249_v31 = vld [vmem:[#allocation355_spill] sm:$0xff] }
 0x5b2   :  { %v7827_v40 = vrot.slane %v7826_v9, 4  ;;  %v7816_v63 = vmax.f32 %v7814_v14, %v7815_v45  ;;  %v7802_v39 = vmax.f32 %v7800_v47, %v7801_v29  ;;  %v7843_v7 = vrot.slane %v7842_v1, 2 }
 0x5b3   :  { %v16568_v62 = vmax.f32 %v7821_v32, %v7822_v4  ;;  %v7809_v24 = vmax.f32 %v7807_v16, %v7808_v37  ;;  %v19248_v23 = vrot.slane %v19247_v17, 2  ;;  %v19250_v22 = vrot.slane %v19249_v31, 2  ;;  %v16579_v32 = vpop.f32.mrb[103].mxu1 }
 0x5b4   :  { %v7828_v53 = vmax.f32 %v7826_v9, %v7827_v40  ;;  %v7817_v3 = vrot.slane %v7816_v63, 1  ;;  %v7803_v50 = vrot.slane %v7802_v39, 1  ;;  %v7844_v55 = vmax.f32 %v7842_v1, %v7843_v7 }
 0x5b5   :  { %v7316_v42 = vadd.f32 %v19248_v23, %v6804_v27  ;;  %v7314_v11 = vadd.f32 %v19250_v22, %v6802_v20  ;;  %v7810_v47 = vrot.slane %v7809_v24, 1  ;;  %v19251_v1 = vrot.slane %v16475_v6, 1  ;;  %v16588_v20 = vpop.f32.mrb[104].mxu1 }
 0x5b6   :  { %v7829_v36 = vrot.slane %v7828_v53, 2  ;;  %v16581_v16 = vmax.f32 %v7816_v63, %v7817_v3  ;;  %v7804_v56 = vmax.f32 %v7802_v39, %v7803_v50  ;;  %v7845_v45 = vrot.slane %v7844_v55, 1 }
 0x5b7   :  { %v7847_v9 = vsel %vm7377_vm12, %v7316_v42, -inf  ;;  %v7833_v4 = vsel %vm7377_vm12, %v7314_v11, -inf  ;;  %v16583_v40 = vmax.f32 %v7809_v24, %v7810_v47  ;;  %v7769_v15 = vmax.f32 %v16475_v6, %v19251_v1 }
 0x5b8   :  { %v7830_v29 = vmax.f32 %v7828_v53, %v7829_v36  ;;  %v7848_v37 = vrot.slane %v7847_v9, 4  ;;  %v7834_v27 = vrot.slane %v7833_v4, 4  ;;  %v8341_v7 = vadd.f32 %v16291_v35, %v7804_v56 }
 0x5b9   :  { %v7846_v17 = vmax.f32 %v7844_v55, %v7845_v45  ;;  %v8334_v3 = vadd.f32 %v16291_v35, %v16487_v18  ;;  %v8335_v39 = vadd.f32 %v16291_v35, %v16480_v30  ;;  %v8336_v53 = vadd.f32 %v16291_v35, %v7769_v15 }
 0x5ba   :  { %v7831_v23 = vrot.slane %v7830_v29, 1  ;;  %v7849_v50 = vmax.f32 %v7847_v9, %v7848_v37  ;;  %v7835_v63 = vmax.f32 %v7833_v4, %v7834_v27  ;;  %v8469_v24 = vmax.f32 %v8341_v7, 0.0  ;;  %v16608_v27 = vpop.f32.mrb[105].mxu1 }
 0x5bb   :  { %v8347_v42 = vadd.f32 %v16291_v35, %v7846_v17  ;;  %v8462_v31 = vmax.f32 %v8334_v3, 0.0  ;;  %v8463_v36 = vmax.f32 %v8335_v39, 0.0  ;;  %v8464_v55 = vmax.f32 %v8336_v53, 0.0 }
 0x5bc   :  { %v7832_v6 = vmax.f32 %v7830_v29, %v7831_v23  ;;  %v7850_v22 = vrot.slane %v7849_v50, 2  ;;  %v7836_v11 = vrot.slane %v7835_v63, 2  ;;  %v16597_v47 = vrot.slane %v8469_v24, 4 }
 0x5bd   :  { %v8475_v56 = vmax.f32 %v8347_v42, 0.0  ;;  %v19252_v9 = vmax.f32 %v16412_v26, 0.0  ;;  %v9132_v37 = vrot.slane %v8462_v31, 3  ;;  %v9134_v17 = vrot.slane %v8463_v36, 2  ;;  %v16615_v26 = vpop.f32.mrb[106].mxu1 }
 0x5be   :  { %v16600_v18 = vadd.f32 %v16291_v35, %v7832_v6  ;;  %v7851_v4 = vmax.f32 %v7849_v50, %v7850_v22  ;;  %v7837_v45 = vmax.f32 %v7835_v63, %v7836_v11  ;;  %v9136_v50 = vrot.slane %v8464_v55, 1  ;;  %v19253_v22 = vld [vmem:[#allocation196_spill] sm:$0xff] }
 0x5bf   :  { %v9125_v30 = vsel %vm8666_vm11, %v16449_v12, %v19252_v9  ;;  %v16610_v1 = vrot.slane %v8475_v56, 6  ;;  %v6551_v63 = vrot.slane %v16179_v57, 1  ;;  %v6549_v39 = vrot.slane %v16211_v54, 1  ;;  %v19255_v55 = vld [vmem:[#allocation200_spill] sm:$0xff] }
 0x5c0   :  { %v9127_v29 = vsel %vm8669_vm14, %v16416_v34, %v9125_v30  ;;  %v7852_v23 = vrot.slane %v7851_v4, 1  ;;  %v7838_v12 = vrot.slane %v7837_v45, 1  ;;  %v6552_v53 = vrot.slane %v16238_v44, 1  ;;  %v19256_v44 = vld [vmem:[#allocation202_spill] sm:$0xff]  ;;  %v19257_v30 = vld [vmem:[#allocation61_spill] sm:$0xff] }
 0x5c1   :  { %v9129_v7 = vsel %vm8672_vm15, %v16447_v19, %v9127_v29  ;;  %v6550_v6 = vrot.slane %v16245_v49, 1  ;;  %v6807_v11 = vadd.f32 %v19253_v22, %v6551_v63  ;;  %v16641_v63 = vpop.f32.mrb[107].mxu1 }
 0x5c2   :  { %v9131_v3 = vsel %vm8675_vm0, %v16504_v60, %v9129_v7  ;;  %v7853_v24 = vmax.f32 %v7851_v4, %v7852_v23  ;;  %v7839_v42 = vmax.f32 %v7837_v45, %v7838_v12  ;;  %v19254_v60 = vld [vmem:[#allocation198_spill] sm:$0xff]  ;;  %v6808_v56 = vadd.f32 %v19255_v55, %v6552_v53  ;;  %v19258_v45 = vld [vmem:[#allocation143_spill] sm:$0xff]  ;;  %19265 = vst [vmem:[#allocation393_spill] sm:$0xff] %v16641_v63  ;;  %v16646_v22 = vpop.f32.mrb[108].mxu1 }
 0x5c3   :  { %v9133_v34 = vsel %vm8678_vm1, %v9132_v37, %v9131_v3  ;;  %v6805_v36 = vadd.f32 %v6549_v39, %v19254_v60  ;;  %v6806_v9 = vadd.f32 %v6550_v6, %v19256_v44  ;;  %v6555_v4 = vrot.slane %v19257_v30, 1  ;;  %v19260_v37 = vld [vmem:[#allocation12_spill] sm:$0xff]  ;;  %v19262_v23 = vld [vmem:[#allocation15_spill] sm:$0xff]  ;;  %19269 = vst [vmem:[#allocation301_spill] sm:$0xff] %v16646_v22  ;;  %v19270_v55 = vld [vmem:[#allocation206_spill] sm:$0xff] }
 0x5c4   :  { %v9135_v19 = vsel %vm8681_vm2, %v9134_v17, %v9133_v34  ;;  %v8348_v57 = vadd.f32 %v16291_v35, %v7853_v24  ;;  %v8346_v54 = vadd.f32 %v16291_v35, %v7839_v42  ;;  %v19259_v49 = vrot.slane %v19258_v45, 2  ;;  %v19266_v24 = vld [vmem:[#allocation356_spill] sm:$0xff] }
 0x5c5   :  { %v9137_v31 = vsel %vm8684_vm3, %v9136_v50, %v9135_v19  ;;  %v19261_v7 = vrot.slane %v19260_v37, 2  ;;  %v19263_v12 = vrot.slane %v19262_v23, 2  ;;  %v19264_v50 = vld [vmem:[#allocation209_spill] sm:$0xff]  ;;  %v19267_v42 = vrot.slane %v19266_v24, 2  ;;  %v19268_v6 = vld [vmem:[#allocation204_spill] sm:$0xff] }
 0x5c6   :  { %9276 = vrot.lane.b32.xlu0 %v9137_v31, %s12224_s0  ;;  %v7319_v29 = vadd.f32 %v19259_v49, %v6807_v11  ;;  %v6553_v34 = vrot.slane %v19264_v50, 1  ;;  %v8476_v39 = vmax.f32 %v8348_v57, 0.0  ;;  %v8474_v53 = vmax.f32 %v8346_v54, 0.0  ;;  %v19275_v50 = vld [vmem:[#allocation297_spill] sm:$0xff] }
 0x5c7   :  { %v7317_v17 = vadd.f32 %v19261_v7, %v6805_v36  ;;  %v7320_v3 = vadd.f32 %v19263_v12, %v6808_v56  ;;  %v7318_v19 = vadd.f32 %v19267_v42, %v6806_v9  ;;  %v6811_v31 = vadd.f32 %v19268_v6, %v6555_v4  ;;  %v19271_v4 = vld [vmem:[#allocation14_spill] sm:$0xff]  ;;  %v19273_v7 = vld [vmem:[#allocation147_spill] sm:$0xff] }
 0x5c8   :  { %v7868_v11 = vsel %vm7377_vm12, %v7319_v29, -inf  ;;  %v6809_v56 = vadd.f32 %v6553_v34, %v19270_v55  ;;  %v16652_v44 = vrot.slane %v8476_v39, 5  ;;  %v16654_v30 = vrot.slane %v8474_v53, 7 }
 0x5c9   :  { %v7854_v60 = vsel %vm7377_vm12, %v7317_v17, -inf  ;;  %v7875_v36 = vsel %vm7377_vm12, %v7320_v3, -inf  ;;  %v7869_v57 = vrot.slane %v7868_v11, 4  ;;  %v7861_v9 = vsel %vm7377_vm12, %v7318_v19, -inf }
 0x5ca   :  { %v7855_v54 = vrot.slane %v7854_v60, 4  ;;  %v7876_v45 = vrot.slane %v7875_v36, 4  ;;  %v19272_v49 = vrot.slane %v19271_v4, 2  ;;  %v19274_v29 = vrot.slane %v19273_v7, 2  ;;  %v19276_v7 = vld [vmem:[#allocation208_spill] sm:$0xff] }
 0x5cb   :  { %v7870_v17 = vmax.f32 %v7868_v11, %v7869_v57  ;;  %v7862_v3 = vrot.slane %v7861_v9, 4  ;;  %v6556_v34 = vrot.slane %v19275_v50, 1  ;;  %v6554_v42 = vrot.slane %v16279_v8, 1  ;;  %v19277_v11 = vld [vmem:[#allocation210_spill] sm:$0xff]  ;;  %v16667_v57 = vpop.f32.mrb[109].mxu1  ;;  %v19278_v8 = vld [vmem:[#allocation149_spill] sm:$0xff] }
 0x5cc   :  { %v7323_v37 = vadd.f32 %v19272_v49, %v6811_v31  ;;  %v7321_v23 = vadd.f32 %v19274_v29, %v6809_v56  ;;  %v7856_v12 = vmax.f32 %v7854_v60, %v7855_v54  ;;  %v7877_v39 = vmax.f32 %v7875_v36, %v7876_v45 }
 0x5cd   :  { %v7871_v6 = vrot.slane %v7870_v17, 2  ;;  %v7863_v55 = vmax.f32 %v7861_v9, %v7862_v3  ;;  %v6812_v56 = vadd.f32 %v19276_v7, %v6556_v34  ;;  %v6810_v60 = vadd.f32 %v6554_v42, %v19277_v11  ;;  %v19280_v9 = vld [vmem:[#allocation361_spill] sm:$0xff] }
 0x5ce   :  { %v7896_v53 = vsel %vm7377_vm12, %v7323_v37, -inf  ;;  %v7882_v24 = vsel %vm7377_vm12, %v7321_v23, -inf  ;;  %v7857_v19 = vrot.slane %v7856_v12, 2  ;;  %v7878_v31 = vrot.slane %v7877_v39, 2 }
 0x5cf   :  { %v7897_v4 = vrot.slane %v7896_v53, 4  ;;  %v7883_v49 = vrot.slane %v7882_v24, 4  ;;  %v7872_v54 = vmax.f32 %v7870_v17, %v7871_v6  ;;  %v7864_v45 = vrot.slane %v7863_v55, 2 }
 0x5d0   :  { %v7858_v36 = vmax.f32 %v7856_v12, %v7857_v19  ;;  %v16669_v29 = vmax.f32 %v7877_v39, %v7878_v31  ;;  %v19279_v50 = vrot.slane %v19278_v8, 2  ;;  %v19281_v3 = vrot.slane %v19280_v9, 2 }
 0x5d1   :  { %v7898_v37 = vmax.f32 %v7896_v53, %v7897_v4  ;;  %v7884_v23 = vmax.f32 %v7882_v24, %v7883_v49  ;;  %v7873_v22 = vrot.slane %v7872_v54, 1  ;;  %v7865_v34 = vmax.f32 %v7863_v55, %v7864_v45 }
 0x5d2   :  { %v7324_v15 = vadd.f32 %v19279_v50, %v6812_v56  ;;  %v7322_v14 = vadd.f32 %v19281_v3, %v6810_v60  ;;  %v7859_v63 = vrot.slane %v7858_v36, 1  ;;  %v19282_v49 = vrot.slane %v16568_v62, 1 }
 0x5d3   :  { %v7899_v7 = vrot.slane %v7898_v37, 2  ;;  %v7885_v11 = vrot.slane %v7884_v23, 2  ;;  %v16678_v39 = vmax.f32 %v7872_v54, %v7873_v22  ;;  %v7866_v24 = vrot.slane %v7865_v34, 1 }
 0x5d4   :  { %v7903_v17 = vsel %vm7377_vm12, %v7324_v15, -inf  ;;  %v7889_v12 = vsel %vm7377_vm12, %v7322_v14, -inf  ;;  %v7860_v53 = vmax.f32 %v7858_v36, %v7859_v63  ;;  %v7825_v55 = vmax.f32 %v16568_v62, %v19282_v49  ;;  %v12135_v36 = vld [vmem:[%s17934_s10 + $0x8] sm:$0xff]  }
 0x5d5   :  { %v7900_v6 = vmax.f32 %v7898_v37, %v7899_v7  ;;  %v7886_v19 = vmax.f32 %v7884_v23, %v7885_v11  ;;  %v7904_v4 = vrot.slane %v7903_v17, 4  ;;  %v7890_v31 = vrot.slane %v7889_v12, 4  ;;  %v12136_v62 = vld [vmem:[%s17933_s11 + $0x8] sm:$0xff]   ;;  %v16696_v37 = vpop.f32.mrb[110].mxu1  ;;  %12000 = vmatprep.subr.bf16.mxu1 %v12135_v36 }
 0x5d6   :  { %v8349_v56 = vadd.f32 %v16291_v35, %v7860_v53  ;;  %v16684_v60 = vmax.f32 %v7865_v34, %v7866_v24  ;;  %v8342_v14 = vadd.f32 %v16291_v35, %v16583_v40  ;;  %v8343_v54 = vadd.f32 %v16291_v35, %v16581_v16  ;;  %v16699_v9 = vpop.f32.mrb[111].mxu1  ;;  %12020 = vmatprep.subr.bf16.mxu0 %v12136_v62 }
 0x5d7   :  { %v7901_v45 = vrot.slane %v7900_v6, 1  ;;  %v7887_v15 = vrot.slane %v7886_v19, 1  ;;  %v7905_v22 = vmax.f32 %v7903_v17, %v7904_v4  ;;  %v7891_v63 = vmax.f32 %v7889_v12, %v7890_v31  ;;  %12001 = vmatpush3.bf16.msra.mxu1 %v12135_v36  ;;  %12021 = vmatpush3.bf16.msra.mxu0 %v12136_v62 }
 0x5d8   :  { %v8477_v23 = vmax.f32 %v8349_v56, 0.0  ;;  %v8344_v40 = vadd.f32 %v16291_v35, %v7825_v55  ;;  %v8470_v50 = vmax.f32 %v8342_v14, 0.0  ;;  %v8471_v7 = vmax.f32 %v8343_v54, 0.0 }
 0x5d9   :  { %v7902_v8 = vmax.f32 %v7900_v6, %v7901_v45  ;;  %v7888_v3 = vmax.f32 %v7886_v19, %v7887_v15  ;;  %v7906_v34 = vrot.slane %v7905_v22, 2  ;;  %v7892_v16 = vrot.slane %v7891_v63, 2  ;;  %v16708_v6 = vpop.f32.mrb[112].mxu1 }
 0x5da   :  { %v16701_v11 = vrot.slane %v8477_v23, 4  ;;  %v8472_v12 = vmax.f32 %v8344_v40, 0.0  ;;  %v19283_v53 = vmax.f32 %v16509_v61, 0.0  ;;  %v9146_v61 = vrot.slane %v8470_v50, 3  ;;  %v19284_v40 = vld [vmem:[#allocation212_spill] sm:$0xff] }
 0x5db   :  { %v8355_v17 = vadd.f32 %v16291_v35, %v7902_v8  ;;  %v16711_v19 = vadd.f32 %v16291_v35, %v7888_v3  ;;  %v7907_v4 = vmax.f32 %v7905_v22, %v7906_v34  ;;  %v7893_v31 = vmax.f32 %v7891_v63, %v7892_v16  ;;  %v19285_v3 = vld [vmem:[#allocation296_spill] sm:$0xff]  ;;  %v16734_v16 = vld [vmem:[%s17931_s5] ss:$0 sm:$0xff] }
 0x5dc   :  { %v9139_v24 = vsel %vm8666_vm11, %v16550_v41, %v19283_v53  ;;  %v9148_v45 = vrot.slane %v8471_v7, 2  ;;  %v9150_v63 = vrot.slane %v8472_v12, 1  ;;  %v6557_v23 = vrot.slane %v16318_v51, 1  ;;  %v16741_v51 = vld [vmem:[%s17932_s9] ss:$0 sm:$0xff] }
 0x5dd   :  { %v9141_v49 = vsel %vm8669_vm14, %v16513_v28, %v9139_v24  ;;  %v8483_v55 = vmax.f32 %v8355_v17, 0.0  ;;  %v7908_v14 = vrot.slane %v7907_v4, 1  ;;  %v7894_v15 = vrot.slane %v7893_v31, 1  ;;  %v19288_v53 = vld [vmem:[#allocation214_spill] sm:$0xff] }
 0x5de   :  { %v9143_v56 = vsel %vm8672_vm15, %v16543_v58, %v9141_v49  ;;  %v6559_v28 = vrot.slane %v16283_v5, 1  ;;  %v19286_v34 = vrot.slane %v19285_v3, 1  ;;  %v19287_v5 = vld [vmem:[#allocation307_spill] sm:$0xff]  ;;  %v6813_v24 = vadd.f32 %v6557_v23, %v19288_v53  ;;  %v16749_v49 = vpop.f32.mrb[113].mxu1 }
 0x5df   :  { %v9145_v54 = vsel %vm8675_vm0, %v16597_v47, %v9143_v56  ;;  %v16720_v35 = vrot.slane %v8483_v55, 6  ;;  %v7909_v36 = vmax.f32 %v7907_v4, %v7908_v14  ;;  %v7895_v62 = vmax.f32 %v7893_v31, %v7894_v15  ;;  %v19289_v4 = vld [vmem:[#allocation302_spill] sm:$0xff]  ;;  %v19290_v55 = vld [vmem:[#allocation16_spill] sm:$0xff]  ;;  %v19292_v15 = vld [vmem:[#allocation295_spill] sm:$0xff] }
 0x5e0   :  { %v9147_v22 = vsel %vm8678_vm1, %v9146_v61, %v9145_v54  ;;  %v6815_v50 = vadd.f32 %v19284_v40, %v6559_v28  ;;  %v3590_v47 = vmax.f32 %v19285_v3, %v19286_v34  ;;  %v4443_v7 = vadd.f32 %v16734_v16, %v19287_v5  ;;  %v16758_v28 = vpop.f32.mrb[114].mxu1  ;;  %v19298_v5 = vld [vmem:[#allocation303_spill] sm:$0xff] }
 0x5e1   :  { %v9149_v58 = vsel %vm8681_vm2, %v9148_v45, %v9147_v22  ;;  %v8356_v17 = vadd.f32 %v16741_v51, %v7909_v36  ;;  %v8354_v12 = vadd.f32 %v16741_v51, %v7895_v62  ;;  %v4444_v31 = vadd.f32 %v16734_v16, %v19289_v4  ;;  %v19294_v22 = vld [vmem:[#allocation55_spill] sm:$0xff] }
 0x5e2   :  { %v9151_v8 = vsel %vm8684_vm3, %v9150_v63, %v9149_v58  ;;  %v19291_v56 = vrot.slane %v19290_v55, 2  ;;  %v4445_v45 = vadd.f32 %v16734_v16, %v3590_v47  ;;  %v4571_v14 = vmax.f32 %v4443_v7, 0.0  ;;  %v19295_v58 = vld [vmem:[#allocation19_spill] sm:$0xff] }
 0x5e3   :  { %9278 = vrot.lane.b32.xlu1 %v9151_v8, %s12224_s0  ;;  %v19293_v54 = vmax.f32 %v19292_v15, 0.0  ;;  %v8484_v36 = vmax.f32 %v8356_v17, 0.0  ;;  %v8482_v62 = vmax.f32 %v8354_v12, 0.0  ;;  %v19296_v23 = vrot.slane %v19295_v58, 2  ;;  %v19300_v15 = vld [vmem:[#allocation300_spill] sm:$0xff] }
 0x5e4   :  { %v7327_v61 = vadd.f32 %v19291_v56, %v6815_v50  ;;  %v4572_v40 = vmax.f32 %v4444_v31, 0.0  ;;  %v4573_v34 = vmax.f32 %v4445_v45, 0.0  ;;  %v19297_v50 = vld [vmem:[#allocation299_spill] sm:$0xff]  ;;  %v19299_v7 = vmax.f32 %v19298_v5, 0.0  ;;  %v19302_v5 = vld [vmem:[#allocation298_spill] sm:$0xff] }
 0x5e5   :  { %v8667_v63 = vsel %vm8666_vm11, %v19294_v22, %v19293_v54  ;;  %v7325_v8 = vadd.f32 %v19296_v23, %v6813_v24  ;;  %v16767_v4 = vrot.slane %v8484_v36, 5  ;;  %v16769_v55 = vrot.slane %v8482_v62, 7  ;;  %v9265_v62 = vpop.permute.xlu0 %9264  ;;  %v19301_v23 = vld [vmem:[#allocation63_spill] sm:$0xff] }
 0x5e6   :  { %v7924_v3 = vsel %vm7377_vm12, %v7327_v61, -inf  ;;  %v8670_v47 = vsel %vm8669_vm14, %v19297_v50, %v8667_v63  ;;  %v8674_v53 = vrot.slane %v19299_v7, 4  ;;  %v8677_v31 = vrot.slane %v4571_v14, 3  ;;  %v16779_v7 = vpop.f32.mrb[115].mxu1 }
 0x5e7   :  { %v7925_v56 = vrot.slane %v7924_v3, 4  ;;  %v7910_v17 = vsel %vm7377_vm12, %v7325_v8, -inf  ;;  %v8673_v24 = vsel %vm8672_vm15, %v19300_v15, %v8670_v47  ;;  %v8680_v61 = vrot.slane %v4572_v40, 2  ;;  %19303 = vst [vmem:[#allocation51_spill] sm:$0xff] %v16779_v7  ;;  %v19304_v40 = vld [vmem:[#allocation216_spill] sm:$0xff] }
 0x5e8   :  { %v7911_v12 = vrot.slane %v7910_v17, 4  ;;  %v8676_v54 = vsel %vm8675_vm0, %v8674_v53, %v8673_v24  ;;  %v8683_v22 = vrot.slane %v4573_v34, 1  ;;  %v6560_v63 = vrot.slane %v16349_v25, 1  ;;  %v16784_v34 = vpop.f32.mrb[116].mxu1 }
 0x5e9   :  { %v7926_v45 = vmax.f32 %v7924_v3, %v7925_v56  ;;  %v8679_v36 = vsel %vm8678_vm1, %v8677_v31, %v8676_v54  ;;  %v6558_v50 = vrot.slane %v19301_v23, 1  ;;  %v6563_v8 = vrot.slane %v19302_v5, 1  ;;  %19305 = vst [vmem:[#allocation54_spill] sm:$0xff] %v16784_v34  ;;  %v19306_v56 = vld [vmem:[#allocation218_spill] sm:$0xff]  ;;  %v19314_v34 = vld [vmem:[#allocation159_spill] sm:$0xff] }
 0x5ea   :  { %v7912_v58 = vmax.f32 %v7910_v17, %v7911_v12  ;;  %v8682_v14 = vsel %vm8681_vm2, %v8680_v61, %v8679_v36  ;;  %v6816_v3 = vadd.f32 %v19304_v40, %v6560_v63  ;;  %v6561_v47 = vrot.slane %v16378_v46, 1  ;;  %v19307_v12 = vld [vmem:[#allocation220_spill] sm:$0xff]  ;;  %v19309_v54 = vld [vmem:[#allocation362_spill] sm:$0xff]  ;;  %v19312_v46 = vld [vmem:[#allocation363_spill] sm:$0xff] }
 0x5eb   :  { %v7927_v41 = vrot.slane %v7926_v45, 2  ;;  %v8685_v53 = vsel %vm8684_vm3, %v8683_v22, %v8682_v14  ;;  %v6814_v17 = vadd.f32 %v6558_v50, %v19306_v56  ;;  %v6819_v15 = vadd.f32 %v19307_v12, %v6563_v8  ;;  %v19311_v36 = vld [vmem:[#allocation222_spill] sm:$0xff] }
 0x5ec   :  { %v7913_v25 = vrot.slane %v7912_v58, 2  ;;  %v16790_v31 = vsel %vm1731_vm13, %v8685_v53, %v9265_v62  ;;  %v19310_v23 = vrot.slane %v19309_v54, 2  ;;  %v6817_v63 = vadd.f32 %v6561_v47, %v19311_v36 }
 0x5ed   :  { %v7928_v24 = vmax.f32 %v7926_v45, %v7927_v41  ;;  %19308 = vst [vmem:[#allocation69_spill] sm:$0xff] %v16790_v31  ;;  %v19313_v40 = vrot.slane %v19312_v46, 2  ;;  %v19315_v7 = vrot.slane %v19314_v34, 2  ;;  %v6564_v50 = vrot.slane %v16382_v0, 1  ;;  %v19316_v45 = vld [vmem:[#allocation18_spill] sm:$0xff] }
 0x5ee   :  { %v7328_v61 = vadd.f32 %v19310_v23, %v6816_v3  ;;  %v7914_v5 = vmax.f32 %v7912_v58, %v7913_v25  ;;  %v19317_v62 = vrot.slane %v19316_v45, 2  ;;  %v6562_v53 = vrot.slane %v16398_v59, 1  ;;  %v19318_v23 = vld [vmem:[#allocation224_spill] sm:$0xff]  ;;  %v19321_v45 = vld [vmem:[#allocation21_spill] sm:$0xff] }
 0x5ef   :  { %v7326_v42 = vadd.f32 %v19313_v40, %v6814_v17  ;;  %v7331_v22 = vadd.f32 %v19315_v7, %v6819_v15  ;;  %v7929_v14 = vrot.slane %v7928_v24, 1  ;;  %v16809_v17 = vpop.f32.mrb[117].mxu1 }
 0x5f0   :  { %v7931_v41 = vsel %vm7377_vm12, %v7328_v61, -inf  ;;  %v7329_v8 = vadd.f32 %v19317_v62, %v6817_v63  ;;  %v7915_v3 = vrot.slane %v7914_v5, 1  ;;  %v6820_v61 = vadd.f32 %v19318_v23, %v6564_v50  ;;  %v19319_v63 = vld [vmem:[#allocation226_spill] sm:$0xff] }
 0x5f1   :  { %v7932_v56 = vrot.slane %v7931_v41, 4  ;;  %v7917_v58 = vsel %vm7377_vm12, %v7326_v42, -inf  ;;  %v7952_v47 = vsel %vm7377_vm12, %v7331_v22, -inf  ;;  %v16806_v25 = vmax.f32 %v7928_v24, %v7929_v14 }
 0x5f2   :  { %v7918_v34 = vrot.slane %v7917_v58, 4  ;;  %v7953_v7 = vrot.slane %v7952_v47, 4  ;;  %v7938_v0 = vsel %vm7377_vm12, %v7329_v8, -inf  ;;  %v7916_v12 = vmax.f32 %v7914_v5, %v7915_v3  ;;  %v19323_v3 = vld [vmem:[#allocation365_spill] sm:$0xff] }
 0x5f3   :  { %v7933_v15 = vmax.f32 %v7931_v41, %v7932_v56  ;;  %v7939_v54 = vrot.slane %v7938_v0, 4  ;;  %v6818_v46 = vadd.f32 %v6562_v53, %v19319_v63  ;;  %v19320_v42 = vrot.slane %v16669_v29, 1 }
 0x5f4   :  { %v7919_v59 = vmax.f32 %v7917_v58, %v7918_v34  ;;  %v7954_v36 = vmax.f32 %v7952_v47, %v7953_v7  ;;  %v8357_v40 = vadd.f32 %v16741_v51, %v7916_v12  ;;  %v19322_v62 = vrot.slane %v19321_v45, 2 }
 0x5f5   :  { %v7881_v24 = vmax.f32 %v16669_v29, %v19320_v42  ;;  %v7934_v22 = vrot.slane %v7933_v15, 2  ;;  %v7940_v14 = vmax.f32 %v7938_v0, %v7939_v54  ;;  %v19324_v56 = vrot.slane %v19323_v3, 2 }
 0x5f6   :  { %v7332_v8 = vadd.f32 %v19322_v62, %v6820_v61  ;;  %v7920_v5 = vrot.slane %v7919_v59, 2  ;;  %v7955_v41 = vrot.slane %v7954_v36, 2  ;;  %v8350_v58 = vadd.f32 %v16741_v51, %v16684_v60 }
 0x5f7   :  { %v7330_v50 = vadd.f32 %v19324_v56, %v6818_v46  ;;  %v8485_v53 = vmax.f32 %v8357_v40, 0.0  ;;  %v16823_v47 = vmax.f32 %v7933_v15, %v7934_v22  ;;  %v7941_v34 = vrot.slane %v7940_v14, 2  ;;  %v16832_v40 = vpop.f32.mrb[118].mxu1 }
 0x5f8   :  { %v7959_v29 = vsel %vm7377_vm12, %v7332_v8, -inf  ;;  %v7921_v7 = vmax.f32 %v7919_v59, %v7920_v5  ;;  %v7956_v12 = vmax.f32 %v7954_v36, %v7955_v41  ;;  %v8351_v15 = vadd.f32 %v16741_v51, %v16678_v39  ;;  %v16835_v8 = vpop.f32.mrb[119].mxu1 }
 0x5f9   :  { %v7960_v0 = vrot.slane %v7959_v29, 4  ;;  %v7945_v54 = vsel %vm7377_vm12, %v7330_v50, -inf  ;;  %v16827_v23 = vrot.slane %v8485_v53, 4  ;;  %v7942_v63 = vmax.f32 %v7940_v14, %v7941_v34  ;;  %v16839_v56 = vpop.f32.mrb[120].mxu1 }
 0x5fa   :  { %v7946_v46 = vrot.slane %v7945_v54, 4  ;;  %v7922_v42 = vrot.slane %v7921_v7, 1  ;;  %v7957_v45 = vrot.slane %v7956_v12, 1  ;;  %v8352_v36 = vadd.f32 %v16741_v51, %v7881_v24 }
 0x5fb   :  { %v7961_v60 = vmax.f32 %v7959_v29, %v7960_v0  ;;  %v7943_v22 = vrot.slane %v7942_v63, 1  ;;  %v8478_v62 = vmax.f32 %v8350_v58, 0.0  ;;  %v8479_v3 = vmax.f32 %v8351_v15, 0.0 }
 0x5fc   :  { %v7947_v59 = vmax.f32 %v7945_v54, %v7946_v46  ;;  %v16837_v5 = vmax.f32 %v7921_v7, %v7922_v42  ;;  %v7958_v41 = vmax.f32 %v7956_v12, %v7957_v45  ;;  %v8480_v34 = vmax.f32 %v8352_v36, 0.0 }
 0x5fd   :  { %v7962_v14 = vrot.slane %v7961_v60, 2  ;;  %v7944_v50 = vmax.f32 %v7942_v63, %v7943_v22  ;;  %v19325_v39 = vmax.f32 %v16600_v18, 0.0  ;;  %v9160_v0 = vrot.slane %v8478_v62, 3 }
 0x5fe   :  { %v7948_v53 = vrot.slane %v7947_v59, 2  ;;  %v8363_v24 = vadd.f32 %v16741_v51, %v7958_v41  ;;  %v9162_v46 = vrot.slane %v8479_v3, 2  ;;  %v9164_v45 = vrot.slane %v8480_v34, 1  ;;  %v19326_v3 = vld [vmem:[#allocation228_spill] sm:$0xff] }
 0x5ff   :  { %v9153_v29 = vsel %vm8666_vm11, %v16654_v30, %v19325_v39  ;;  %v7963_v58 = vmax.f32 %v7961_v60, %v7962_v14  ;;  %v16849_v12 = vadd.f32 %v16741_v51, %v7944_v50  ;;  %v6567_v22 = vrot.slane %v16400_v52, 1  ;;  %v19327_v50 = vld [vmem:[#allocation310_spill] sm:$0xff]  ;;  %v19343_v60 = vld [vmem:[#allocation232_spill] sm:$0xff] }
 0x600   :  { %v9155_v7 = vsel %vm8669_vm14, %v16610_v1, %v9153_v29  ;;  %v7949_v54 = vmax.f32 %v7947_v59, %v7948_v53  ;;  %v8491_v42 = vmax.f32 %v8363_v24, 0.0  ;;  %v19328_v53 = vrot.slane %v19327_v50, 1  ;;  %v19329_v52 = vld [vmem:[#allocation230_spill] sm:$0xff] }
 0x601   :  { %v9157_v63 = vsel %vm8672_vm15, %v16652_v44, %v9155_v7  ;;  %v7964_v18 = vrot.slane %v7963_v58, 1  ;;  %v6565_v44 = vrot.slane %v16437_v10, 1  ;;  %v19330_v24 = vld [vmem:[#allocation70_spill] sm:$0xff]  ;;  %v19331_v7 = vld [vmem:[#allocation309_spill] sm:$0xff] }
 0x602   :  { %v9159_v30 = vsel %vm8675_vm0, %v16701_v11, %v9157_v63  ;;  %v7950_v15 = vrot.slane %v7949_v54, 1  ;;  %v16858_v36 = vrot.slane %v8491_v42, 6  ;;  %v6823_v11 = vadd.f32 %v19326_v3, %v6567_v22  ;;  %v19332_v63 = vld [vmem:[#allocation20_spill] sm:$0xff] }
 0x603   :  { %v9161_v1 = vsel %vm8678_vm1, %v9160_v0, %v9159_v30  ;;  %v7965_v59 = vmax.f32 %v7963_v58, %v7964_v18  ;;  %v3646_v34 = vmax.f32 %v19327_v50, %v19328_v53  ;;  %v6821_v29 = vadd.f32 %v6565_v44, %v19329_v52  ;;  %v16874_v0 = vpop.f32.mrb[121].mxu1  ;;  %v19334_v30 = vld [vmem:[#allocation305_spill] sm:$0xff] }
 0x604   :  { %v9163_v62 = vsel %vm8681_vm2, %v9162_v46, %v9161_v1  ;;  %v7951_v41 = vmax.f32 %v7949_v54, %v7950_v15  ;;  %v4451_v58 = vadd.f32 %v16734_v16, %v19330_v24  ;;  %v4452_v10 = vadd.f32 %v16734_v16, %v19331_v7  ;;  %v19336_v15 = vld [vmem:[#allocation314_spill] sm:$0xff]  ;;  %v16884_v22 = vpop.f32.mrb[122].mxu1 }
 0x605   :  { %v9165_v14 = vsel %vm8684_vm3, %v9164_v45, %v9163_v62  ;;  %v8364_v39 = vadd.f32 %v16741_v51, %v7965_v59  ;;  %v19333_v46 = vrot.slane %v19332_v63, 2  ;;  %v4453_v18 = vadd.f32 %v16734_v16, %v3646_v34  ;;  %v19337_v62 = vld [vmem:[#allocation163_spill] sm:$0xff]  ;;  %v16891_v24 = vpop.f32.mrb[123].mxu1 }
 0x606   :  { %9280 = vrot.lane.b32.xlu0 %v9165_v14, %s12224_s0  ;;  %v8362_v54 = vadd.f32 %v16741_v51, %v7951_v41  ;;  %v19335_v45 = vmax.f32 %v19334_v30, 0.0  ;;  %v19338_v44 = vrot.slane %v19337_v62, 2  ;;  %v4579_v3 = vmax.f32 %v4451_v58, 0.0 }
 0x607   :  { %v7335_v42 = vadd.f32 %v19333_v46, %v6823_v11  ;;  %v8492_v59 = vmax.f32 %v8364_v39, 0.0  ;;  %v4580_v50 = vmax.f32 %v4452_v10, 0.0  ;;  %v4581_v52 = vmax.f32 %v4453_v18, 0.0  ;;  %v19339_v11 = vld [vmem:[#allocation308_spill] sm:$0xff] }
 0x608   :  { %v8687_v1 = vsel %vm8666_vm11, %v19336_v15, %v19335_v45  ;;  %v7333_v14 = vadd.f32 %v19338_v44, %v6821_v29  ;;  %v8490_v53 = vmax.f32 %v8362_v54, 0.0  ;;  %v19340_v39 = vld [vmem:[#allocation312_spill] sm:$0xff]  ;;  %v16898_v29 = vpop.f32.mrb[124].mxu1  ;;  %v8694_v45 = vrot.slane %v4579_v3, 3 }
 0x609   :  { %v7980_v41 = vsel %vm7377_vm12, %v7335_v42, -inf  ;;  %v8689_v34 = vsel %vm8669_vm14, %v19339_v11, %v8687_v1  ;;  %v16893_v7 = vrot.slane %v8492_v59, 5  ;;  %v19341_v54 = vld [vmem:[#allocation316_spill] sm:$0xff]  ;;  %v8696_v1 = vrot.slane %v4580_v50, 2 }
 0x60a   :  { %v7981_v63 = vrot.slane %v7980_v41, 4  ;;  %v7966_v46 = vsel %vm7377_vm12, %v7333_v14, -inf  ;;  %v8691_v30 = vsel %vm8672_vm15, %v19340_v39, %v8689_v34  ;;  %v16900_v58 = vrot.slane %v8490_v53, 7  ;;  %v9267_v39 = vpop.permute.xlu1 %9266 }
 0x60b   :  { %v7967_v10 = vrot.slane %v7966_v46, 4  ;;  %v19342_v42 = vmax.f32 %v19341_v54, 0.0  ;;  %v8698_v62 = vrot.slane %v4581_v52, 1  ;;  %v6568_v59 = vrot.slane %v16463_v38, 1 }
 0x60c   :  { %v7982_v15 = vmax.f32 %v7980_v41, %v7981_v63  ;;  %v6566_v11 = vrot.slane %v16468_v33, 1  ;;  %v6571_v54 = vrot.slane %v16473_v2, 1  ;;  %v19344_v41 = vld [vmem:[#allocation234_spill] sm:$0xff]  ;;  %v6569_v38 = vrot.slane %v16494_v13, 1  ;;  %v19345_v33 = vld [vmem:[#allocation125_spill] sm:$0xff]  ;;  %v19349_v2 = vld [vmem:[#allocation372_spill] sm:$0xff] }
 0x60d   :  { %v8692_v18 = vrot.slane %v19342_v42, 4  ;;  %v7968_v44 = vmax.f32 %v7966_v46, %v7967_v10  ;;  %v6824_v61 = vadd.f32 %v19343_v60, %v6568_v59  ;;  %v19347_v42 = vld [vmem:[#allocation236_spill] sm:$0xff]  ;;  %v19350_v59 = vrot.slane %v19349_v2, 2 }
 0x60e   :  { %v7983_v34 = vrot.slane %v7982_v15, 2  ;;  %v6822_v52 = vadd.f32 %v6566_v11, %v19344_v41 }
 0x60f   :  { %v8693_v14 = vsel %vm8675_vm0, %v8692_v18, %v8691_v30  ;;  %v7969_v3 = vrot.slane %v7968_v44, 2  ;;  %v19346_v30 = vrot.slane %v19345_v33, 2  ;;  %v6827_v18 = vadd.f32 %v19347_v42, %v6571_v54 }
 0x610   :  { %v8695_v53 = vsel %vm8678_vm1, %v8694_v45, %v8693_v14  ;;  %v7984_v63 = vmax.f32 %v7982_v15, %v7983_v34  ;;  %v7334_v14 = vadd.f32 %v19350_v59, %v6822_v52 }
 0x611   :  { %v8697_v50 = vsel %vm8681_vm2, %v8696_v1, %v8695_v53  ;;  %v7336_v10 = vadd.f32 %v19346_v30, %v6824_v61  ;;  %v7970_v45 = vmax.f32 %v7968_v44, %v7969_v3  ;;  %v19351_v1 = vld [vmem:[#allocation238_spill] sm:$0xff]  ;;  %v6572_v30 = vrot.slane %v16497_v48, 1 }
 0x612   :  { %v8699_v46 = vsel %vm8684_vm3, %v8698_v62, %v8697_v50  ;;  %v6825_v53 = vadd.f32 %v6569_v38, %v19351_v1  ;;  %v7985_v11 = vrot.slane %v7984_v63, 1  ;;  %v19352_v62 = vld [vmem:[#allocation167_spill] sm:$0xff]  ;;  %v7973_v44 = vsel %vm7377_vm12, %v7334_v14, -inf  ;;  %v19356_v1 = vld [vmem:[#allocation240_spill] sm:$0xff] }
 0x613   :  { %v16918_v60 = vsel %vm1731_vm13, %v8699_v46, %v9267_v39  ;;  %v7987_v15 = vsel %vm7377_vm12, %v7336_v10, -inf  ;;  %v19353_v34 = vrot.slane %v19352_v62, 2  ;;  %v7971_v50 = vrot.slane %v7970_v45, 1  ;;  %v19354_v39 = vld [vmem:[#allocation169_spill] sm:$0xff]  ;;  %v16931_v46 = vpop.f32.mrb[125].mxu1 }
 0x614   :  { %19348 = vst [vmem:[#allocation71_spill] sm:$0xff] %v16918_v60  ;;  %v9328_v13 = vpack.c.bf16 %v16918_v60, %v16790_v31  ;;  %v7988_v54 = vrot.slane %v7987_v15, 4  ;;  %v19355_v3 = vrot.slane %v19354_v39, 2  ;;  %v16933_v52 = vmax.f32 %v7984_v63, %v7985_v11  ;;  %v19360_v39 = vld [vmem:[#allocation242_spill] sm:$0xff] }
 0x615   :  { %v7339_v61 = vadd.f32 %v19353_v34, %v6827_v18  ;;  %v7974_v38 = vrot.slane %v7973_v44, 4  ;;  %v7972_v10 = vmax.f32 %v7970_v45, %v7971_v50  ;;  %v6570_v63 = vrot.slane %v16517_v43, 1 }
 0x616   :  { %v7337_v41 = vadd.f32 %v19355_v3, %v6825_v53  ;;  %12002 = vmatprep.mubr.msk.bf16.mxu1 %vm9359_vm4, %v9328_v13  ;;  %12022 = vmatprep.mubr.msk.bf16.mxu0 %vm9359_vm4, %v9328_v13  ;;  %v7989_v42 = vmax.f32 %v7987_v15, %v7988_v54  ;;  %v6828_v53 = vadd.f32 %v19356_v1, %v6572_v30  ;;  %v19357_v13 = vrot.slane %v16823_v47, 1  ;;  %v19358_v15 = vld [vmem:[#allocation171_spill] sm:$0xff] }
 0x617   :  { %v8008_v33 = vsel %vm7377_vm12, %v7339_v61, -inf  ;;  %v7975_v59 = vmax.f32 %v7973_v44, %v7974_v38  ;;  %v8365_v11 = vadd.f32 %v16741_v51, %v7972_v10  ;;  %v19359_v50 = vrot.slane %v19358_v15, 2 }
 0x618   :  { %v8009_v18 = vrot.slane %v8008_v33, 4  ;;  %v7994_v2 = vsel %vm7377_vm12, %v7337_v41, -inf  ;;  %v7990_v62 = vrot.slane %v7989_v42, 2  ;;  %v7937_v61 = vmax.f32 %v16823_v47, %v19357_v13 }
 0x619   :  { %v7995_v14 = vrot.slane %v7994_v2, 4  ;;  %v7976_v48 = vrot.slane %v7975_v59, 2  ;;  %v7340_v54 = vadd.f32 %v19359_v50, %v6828_v53  ;;  %v6826_v44 = vadd.f32 %v6570_v63, %v19360_v39 }
 0x61a   :  { %v8010_v34 = vmax.f32 %v8008_v33, %v8009_v18  ;;  %v8493_v3 = vmax.f32 %v8365_v11, 0.0  ;;  %v16949_v41 = vmax.f32 %v7989_v42, %v7990_v62  ;;  %v8358_v43 = vadd.f32 %v16741_v51, %v16837_v5  ;;  %v19361_v18 = vld [vmem:[#allocation374_spill] sm:$0xff]  ;;  %v16959_v11 = vpop.f32.mrb[126].mxu1 }
 0x61b   :  { %v7996_v45 = vmax.f32 %v7994_v2, %v7995_v14  ;;  %v7977_v30 = vmax.f32 %v7975_v59, %v7976_v48  ;;  %v8015_v10 = vsel %vm7377_vm12, %v7340_v54, -inf  ;;  %v19362_v47 = vrot.slane %v19361_v18, 2  ;;  %v16964_v59 = vpop.f32.mrb[127].mxu1 }
 0x61c   :  { %v8011_v38 = vrot.slane %v8010_v34, 2  ;;  %v16956_v2 = vrot.slane %v8493_v3, 4  ;;  %v8016_v63 = vrot.slane %v8015_v10, 4  ;;  %v8359_v5 = vadd.f32 %v16741_v51, %v16806_v25  ;;  %v16967_v39 = vpop.f32.mrb[128].mxu1 }
 0x61d   :  { %v7997_v33 = vrot.slane %v7996_v45, 2  ;;  %v7338_v1 = vadd.f32 %v19362_v47, %v6826_v44  ;;  %v7978_v42 = vrot.slane %v7977_v30, 1  ;;  %v8360_v54 = vadd.f32 %v16741_v51, %v7937_v61 }
 0x61e   :  { %v8012_v53 = vmax.f32 %v8010_v34, %v8011_v38  ;;  %v8017_v15 = vmax.f32 %v8015_v10, %v8016_v63  ;;  %v8486_v3 = vmax.f32 %v8358_v43, 0.0  ;;  %v8487_v38 = vmax.f32 %v8359_v5, 0.0 }
 0x61f   :  { %v7998_v62 = vmax.f32 %v7996_v45, %v7997_v33  ;;  %v8001_v13 = vsel %vm7377_vm12, %v7338_v1, -inf  ;;  %v16969_v34 = vmax.f32 %v7977_v30, %v7978_v42  ;;  %v8488_v47 = vmax.f32 %v8360_v54, 0.0 }
 0x620   :  { %v8013_v48 = vrot.slane %v8012_v53, 1  ;;  %v8002_v50 = vrot.slane %v8001_v13, 4  ;;  %v8018_v33 = vrot.slane %v8017_v15, 2  ;;  %v19363_v25 = vmax.f32 %v16711_v19, 0.0  ;;  %v19364_v19 = vld [vmem:[#allocation65_spill] sm:$0xff] }
 0x621   :  { %v7999_v44 = vrot.slane %v7998_v62, 1  ;;  %v9174_v63 = vrot.slane %v8486_v3, 3  ;;  %v9176_v14 = vrot.slane %v8487_v38, 2  ;;  %v19366_v38 = vld [vmem:[#allocation67_spill] sm:$0xff] }
 0x622   :  { %v8014_v45 = vmax.f32 %v8012_v53, %v8013_v48  ;;  %v8003_v18 = vmax.f32 %v8001_v13, %v8002_v50  ;;  %v9167_v10 = vsel %vm8666_vm11, %v16769_v55, %v19363_v25  ;;  %v8019_v60 = vmax.f32 %v8017_v15, %v8018_v33  ;;  %v16986_v15 = vpop.f32.mrb[129].mxu1  ;;  %v19367_v25 = vld [vmem:[#allocation175_spill] sm:$0xff] }
 0x623   :  { %v8000_v1 = vmax.f32 %v7998_v62, %v7999_v44  ;;  %v9169_v43 = vsel %vm8669_vm14, %v16720_v35, %v9167_v10  ;;  %v9178_v62 = vrot.slane %v8488_v47, 1  ;;  %v6575_v13 = vrot.slane %v19364_v19, 1  ;;  %v19365_v44 = vld [vmem:[#allocation244_spill] sm:$0xff] }
 0x624   :  { %v8371_v61 = vadd.f32 %v16741_v51, %v8014_v45  ;;  %v8004_v30 = vrot.slane %v8003_v18, 2  ;;  %v9171_v42 = vsel %vm8672_vm15, %v16767_v4, %v9169_v43  ;;  %v8020_v55 = vrot.slane %v8019_v60, 1  ;;  %v16992_v4 = vpop.f32.mrb[130].mxu1 }
 0x625   :  { %v16979_v53 = vadd.f32 %v16741_v51, %v8000_v1  ;;  %v9173_v50 = vsel %vm8675_vm0, %v16827_v23, %v9171_v42  ;;  %v6831_v3 = vadd.f32 %v19365_v44, %v6575_v13  ;;  %v6573_v45 = vrot.slane %v19366_v38, 1  ;;  %v19375_v44 = vld [vmem:[#allocation24_spill] sm:$0xff] }
 0x626   :  { %v8499_v5 = vmax.f32 %v8371_v61, 0.0  ;;  %v8005_v48 = vmax.f32 %v8003_v18, %v8004_v30  ;;  %v9175_v35 = vsel %vm8678_vm1, %v9174_v63, %v9173_v50  ;;  %v8021_v47 = vmax.f32 %v8019_v60, %v8020_v55  ;;  %v19369_v30 = vld [vmem:[#allocation246_spill] sm:$0xff]  ;;  %v19370_v63 = vld [vmem:[#allocation320_spill] sm:$0xff]  ;;  %v19372_v60 = vld [vmem:[#allocation87_spill] sm:$0xff]  ;;  %v17010_v55 = vpop.f32.mrb[131].mxu1 }
 0x627   :  { %v9177_v18 = vsel %vm8681_vm2, %v9176_v14, %v9175_v35  ;;  %v19368_v10 = vrot.slane %v19367_v25, 2  ;;  %v6829_v43 = vadd.f32 %v6573_v45, %v19369_v30  ;;  %v19371_v42 = vrot.slane %v19370_v63, 1  ;;  %v19373_v14 = vld [vmem:[#allocation322_spill] sm:$0xff]  ;;  %19374 = vst [vmem:[#allocation56_spill] sm:$0xff] %v17010_v55 }
 0x628   :  { %v16994_v33 = vrot.slane %v8499_v5, 6  ;;  %v8006_v1 = vrot.slane %v8005_v48, 1  ;;  %v9179_v23 = vsel %vm8684_vm3, %v9178_v62, %v9177_v18  ;;  %v8372_v13 = vadd.f32 %v16741_v51, %v8021_v47  ;;  %v19377_v18 = vld [vmem:[#allocation318_spill] sm:$0xff] }
 0x629   :  { %v7343_v61 = vadd.f32 %v19368_v10, %v6831_v3  ;;  %v3702_v19 = vmax.f32 %v19370_v63, %v19371_v42  ;;  %9282 = vrot.lane.b32.xlu1 %v9179_v23, %s12224_s0  ;;  %v4459_v5 = vadd.f32 %v16734_v16, %v19372_v60  ;;  %v4460_v62 = vadd.f32 %v16734_v16, %v19373_v14 }
 0x62a   :  { %v8007_v50 = vmax.f32 %v8005_v48, %v8006_v1  ;;  %v19376_v3 = vrot.slane %v19375_v44, 2  ;;  %v19378_v47 = vmax.f32 %v19377_v18, 0.0  ;;  %v19379_v48 = vld [vmem:[#allocation325_spill] sm:$0xff]  ;;  %v8500_v23 = vmax.f32 %v8372_v13, 0.0 }
 0x62b   :  { %v8036_v35 = vsel %vm7377_vm12, %v7343_v61, -inf  ;;  %v4461_v45 = vadd.f32 %v16734_v16, %v3702_v19  ;;  %v4587_v30 = vmax.f32 %v4459_v5, 0.0  ;;  %v4588_v42 = vmax.f32 %v4460_v62, 0.0  ;;  %v19380_v61 = vld [vmem:[#allocation321_spill] sm:$0xff] }
 0x62c   :  { %v7341_v38 = vadd.f32 %v19376_v3, %v6829_v43  ;;  %v8701_v1 = vsel %vm8666_vm11, %v19379_v48, %v19378_v47  ;;  %v8370_v25 = vadd.f32 %v16741_v51, %v8007_v50  ;;  %v8037_v10 = vrot.slane %v8036_v35, 4  ;;  %v17024_v43 = vpop.f32.mrb[132].mxu1  ;;  %v19382_v47 = vld [vmem:[#allocation324_spill] sm:$0xff]  ;;  %v19383_v50 = vld [vmem:[#allocation327_spill] sm:$0xff] }
 0x62d   :  { %v4589_v60 = vmax.f32 %v4461_v45, 0.0  ;;  %v8703_v14 = vsel %vm8669_vm14, %v19380_v61, %v8701_v1  ;;  %19381 = vst [vmem:[#allocation58_spill] sm:$0xff] %v17024_v43  ;;  %v17026_v19 = vrot.slane %v8500_v23, 5  ;;  %v19384_v48 = vmax.f32 %v19383_v50, 0.0  ;;  %v9269_v50 = vpop.permute.xlu0 %9268  ;;  %v19391_v43 = vld [vmem:[#allocation376_spill] sm:$0xff] }
 0x62e   :  { %v8022_v63 = vsel %vm7377_vm12, %v7341_v38, -inf  ;;  %v8498_v44 = vmax.f32 %v8370_v25, 0.0  ;;  %v8038_v3 = vmax.f32 %v8036_v35, %v8037_v10  ;;  %v8705_v13 = vsel %vm8672_vm15, %v19382_v47, %v8703_v14 }
 0x62f   :  { %v8023_v18 = vrot.slane %v8022_v63, 4  ;;  %v8706_v5 = vrot.slane %v19384_v48, 4  ;;  %v8708_v54 = vrot.slane %v4587_v30, 3  ;;  %v8710_v38 = vrot.slane %v4588_v42, 2 }
 0x630   :  { %v17032_v62 = vrot.slane %v8498_v44, 7  ;;  %v8039_v45 = vrot.slane %v8038_v3, 2  ;;  %v8712_v1 = vrot.slane %v4589_v60, 1  ;;  %v6576_v23 = vrot.slane %v16574_v21, 1  ;;  %v19385_v44 = vld [vmem:[#allocation248_spill] sm:$0xff]  ;;  %v19386_v60 = vld [vmem:[#allocation250_spill] sm:$0xff] }
 0x631   :  { %v8024_v31 = vmax.f32 %v8022_v63, %v8023_v18  ;;  %v8707_v61 = vsel %vm8675_vm0, %v8706_v5, %v8705_v13  ;;  %v6574_v35 = vrot.slane %v16579_v32, 1  ;;  %v6579_v25 = vrot.slane %v16588_v20, 1  ;;  %v19387_v13 = vld [vmem:[#allocation251_spill] sm:$0xff]  ;;  %v19388_v20 = vld [vmem:[#allocation252_spill] sm:$0xff] }
 0x632   :  { %v8040_v10 = vmax.f32 %v8038_v3, %v8039_v45  ;;  %v8709_v47 = vsel %vm8678_vm1, %v8708_v54, %v8707_v61  ;;  %v6577_v30 = vrot.slane %v16608_v27, 1  ;;  %v6832_v63 = vadd.f32 %v19385_v44, %v6576_v23  ;;  %v19389_v54 = vld [vmem:[#allocation375_spill] sm:$0xff]  ;;  %v19393_v23 = vld [vmem:[#allocation26_spill] sm:$0xff] }
 0x633   :  { %v8025_v14 = vrot.slane %v8024_v31, 2  ;;  %v8711_v42 = vsel %vm8681_vm2, %v8710_v38, %v8709_v47  ;;  %v6830_v18 = vadd.f32 %v6574_v35, %v19386_v60  ;;  %v6835_v48 = vadd.f32 %v19387_v13, %v6579_v25 }
 0x634   :  { %v8041_v21 = vrot.slane %v8040_v10, 1  ;;  %v8713_v32 = vsel %vm8684_vm3, %v8712_v1, %v8711_v42  ;;  %v6833_v3 = vadd.f32 %v6577_v30, %v19388_v20  ;;  %v19390_v61 = vrot.slane %v19389_v54, 2  ;;  %v17060_v42 = vpop.f32.mrb[133].mxu1  ;;  %v19399_v54 = vld [vmem:[#allocation254_spill] sm:$0xff] }
 0x635   :  { %v8026_v5 = vmax.f32 %v8024_v31, %v8025_v14  ;;  %v17047_v45 = vsel %vm1731_vm13, %v8713_v32, %v9269_v50  ;;  %v19392_v38 = vrot.slane %v19391_v43, 2  ;;  %v19394_v44 = vrot.slane %v19393_v23, 2  ;;  %v19395_v31 = vld [vmem:[#allocation379_spill] sm:$0xff]  ;;  %19397 = vst [vmem:[#allocation217_spill] sm:$0xff] %v17060_v42 }
 0x636   :  { %v7344_v27 = vadd.f32 %v19390_v61, %v6832_v63  ;;  %v17055_v60 = vmax.f32 %v8040_v10, %v8041_v21  ;;  %v19396_v14 = vrot.slane %v19395_v31, 2  ;;  %v6580_v30 = vrot.slane %v16615_v26, 1  ;;  %v19400_v61 = vld [vmem:[#allocation256_spill] sm:$0xff] }
 0x637   :  { %v7342_v47 = vadd.f32 %v19392_v38, %v6830_v18  ;;  %v7347_v35 = vadd.f32 %v19394_v44, %v6835_v48  ;;  %v8027_v25 = vrot.slane %v8026_v5, 1  ;;  %v19398_v18 = vld [vmem:[#allocation393_spill] sm:$0xff]  ;;  %v19401_v38 = vrot.slane %v16949_v41, 1 }
 0x638   :  { %v7345_v1 = vadd.f32 %v19396_v14, %v6833_v3  ;;  %v8043_v50 = vsel %vm7377_vm12, %v7344_v27, -inf  ;;  %v6578_v13 = vrot.slane %v19398_v18, 1  ;;  %v6836_v3 = vadd.f32 %v19399_v54, %v6580_v30  ;;  %v19404_v18 = vld [vmem:[#allocation179_spill] sm:$0xff] }
 0x639   :  { %v8029_v63 = vsel %vm7377_vm12, %v7342_v47, -inf  ;;  %v8064_v43 = vsel %vm7377_vm12, %v7347_v35, -inf  ;;  %v8028_v32 = vmax.f32 %v8026_v5, %v8027_v25  ;;  %v8044_v48 = vrot.slane %v8043_v50, 4  ;;  %v19402_v5 = vld [vmem:[#allocation381_spill] sm:$0xff] }
 0x63a   :  { %v8030_v10 = vrot.slane %v8029_v63, 4  ;;  %v8065_v21 = vrot.slane %v8064_v43, 4  ;;  %v8050_v20 = vsel %vm7377_vm12, %v7345_v1, -inf  ;;  %v6834_v26 = vadd.f32 %v6578_v13, %v19400_v61 }
 0x63b   :  { %v7993_v27 = vmax.f32 %v16949_v41, %v19401_v38  ;;  %v8373_v47 = vadd.f32 %v16741_v51, %v8028_v32  ;;  %v8045_v23 = vmax.f32 %v8043_v50, %v8044_v48  ;;  %v8051_v31 = vrot.slane %v8050_v20, 4 }
 0x63c   :  { %v8031_v44 = vmax.f32 %v8029_v63, %v8030_v10  ;;  %v8066_v35 = vmax.f32 %v8064_v43, %v8065_v21  ;;  %v19403_v25 = vrot.slane %v19402_v5, 2  ;;  %v19405_v42 = vrot.slane %v19404_v18, 2  ;;  %v17083_v43 = vpop.f32.mrb[134].mxu1 }
 0x63d   :  { %v8366_v30 = vadd.f32 %v16741_v51, %v16969_v34  ;;  %v8501_v13 = vmax.f32 %v8373_v47, 0.0  ;;  %v8046_v54 = vrot.slane %v8045_v23, 2  ;;  %v8052_v41 = vmax.f32 %v8050_v20, %v8051_v31  ;;  %v17089_v21 = vpop.f32.mrb[135].mxu1 }
 0x63e   :  { %v7348_v14 = vadd.f32 %v19403_v25, %v6836_v3  ;;  %v7346_v1 = vadd.f32 %v19405_v42, %v6834_v26  ;;  %v8032_v61 = vrot.slane %v8031_v44, 2  ;;  %v8067_v55 = vrot.slane %v8066_v35, 2 }
 0x63f   :  { %v8367_v63 = vadd.f32 %v16741_v51, %v16933_v52  ;;  %v17085_v48 = vrot.slane %v8501_v13, 4  ;;  %v17087_v42 = vmax.f32 %v8045_v23, %v8046_v54  ;;  %v8053_v3 = vrot.slane %v8052_v41, 2 }
 0x640   :  { %v8071_v32 = vsel %vm7377_vm12, %v7348_v14, -inf  ;;  %v8057_v50 = vsel %vm7377_vm12, %v7346_v1, -inf  ;;  %v8033_v10 = vmax.f32 %v8031_v44, %v8032_v61  ;;  %v8068_v34 = vmax.f32 %v8066_v35, %v8067_v55 }
 0x641   :  { %v8072_v26 = vrot.slane %v8071_v32, 4  ;;  %v8058_v20 = vrot.slane %v8057_v50, 4  ;;  %v8368_v38 = vadd.f32 %v16741_v51, %v7993_v27  ;;  %v8494_v52 = vmax.f32 %v8366_v30, 0.0 }
 0x642   :  { %v8034_v31 = vrot.slane %v8033_v10, 1  ;;  %v8069_v5 = vrot.slane %v8068_v34, 1  ;;  %v8054_v25 = vmax.f32 %v8052_v41, %v8053_v3  ;;  %v8495_v1 = vmax.f32 %v8367_v63, 0.0 }
 0x643   :  { %v8073_v14 = vmax.f32 %v8071_v32, %v8072_v26  ;;  %v8059_v18 = vmax.f32 %v8057_v50, %v8058_v20  ;;  %v8496_v55 = vmax.f32 %v8368_v38, 0.0  ;;  %v19406_v35 = vmax.f32 %v16849_v12, 0.0  ;;  %v19407_v20 = vld [vmem:[#allocation301_spill] sm:$0xff] }
 0x644   :  { %v17093_v23 = vmax.f32 %v8033_v10, %v8034_v31  ;;  %v8070_v44 = vmax.f32 %v8068_v34, %v8069_v5  ;;  %v8055_v54 = vrot.slane %v8054_v25, 1  ;;  %v9188_v32 = vrot.slane %v8494_v52, 3 }
 0x645   :  { %v9181_v13 = vsel %vm8666_vm11, %v16900_v58, %v19406_v35  ;;  %v8074_v27 = vrot.slane %v8073_v14, 2  ;;  %v8060_v61 = vrot.slane %v8059_v18, 2  ;;  %v9190_v50 = vrot.slane %v8495_v1, 2 }
 0x646   :  { %v9183_v47 = vsel %vm8669_vm14, %v16858_v36, %v9181_v13  ;;  %v8379_v30 = vadd.f32 %v16741_v51, %v8070_v44  ;;  %v8056_v63 = vmax.f32 %v8054_v25, %v8055_v54  ;;  %v9192_v26 = vrot.slane %v8496_v55, 1  ;;  %v19408_v25 = vld [vmem:[#allocation259_spill] sm:$0xff]  ;;  %v19409_v55 = vld [vmem:[#allocation333_spill] sm:$0xff] }
 0x647   :  { %v9185_v41 = vsel %vm8672_vm15, %v16893_v7, %v9183_v47  ;;  %v8075_v10 = vmax.f32 %v8073_v14, %v8074_v27  ;;  %v8061_v34 = vmax.f32 %v8059_v18, %v8060_v61  ;;  %v6583_v38 = vrot.slane %v19407_v20, 1  ;;  %v19411_v54 = vld [vmem:[#allocation183_spill] sm:$0xff] }
 0x648   :  { %v9187_v12 = vsel %vm8675_vm0, %v16956_v2, %v9185_v41  ;;  %v8507_v58 = vmax.f32 %v8379_v30, 0.0  ;;  %v17109_v36 = vadd.f32 %v16741_v51, %v8056_v63  ;;  %v6581_v2 = vrot.slane %v16667_v57, 1  ;;  %v19413_v30 = vld [vmem:[#allocation260_spill] sm:$0xff]  ;;  %v19415_v63 = vld [vmem:[#allocation335_spill] sm:$0xff] }
 0x649   :  { %v9189_v3 = vsel %vm8678_vm1, %v9188_v32, %v9187_v12  ;;  %v8076_v31 = vrot.slane %v8075_v10, 1  ;;  %v8062_v5 = vrot.slane %v8061_v34, 1  ;;  %v6839_v14 = vadd.f32 %v19408_v25, %v6583_v38  ;;  %v19414_v32 = vld [vmem:[#allocation105_spill] sm:$0xff] }
 0x64a   :  { %v9191_v7 = vsel %vm8681_vm2, %v9190_v50, %v9189_v3  ;;  %v17112_v47 = vrot.slane %v8507_v58, 6  ;;  %v8505_v18 = vmax.f32 %v17109_v36, 0.0  ;;  %v19410_v35 = vrot.slane %v19409_v55, 1  ;;  %v19416_v58 = vld [vmem:[#allocation330_spill] sm:$0xff] }
 0x64b   :  { %v9193_v52 = vsel %vm8684_vm3, %v9192_v26, %v9191_v7  ;;  %v8077_v1 = vmax.f32 %v8075_v10, %v8076_v31  ;;  %v8063_v44 = vmax.f32 %v8061_v34, %v8062_v5  ;;  %v19412_v27 = vrot.slane %v19411_v54, 2  ;;  %v19418_v26 = vld [vmem:[#allocation337_spill] sm:$0xff]  ;;  %v19419_v31 = vld [vmem:[#allocation28_spill] sm:$0xff] }
 0x64c   :  { %9284 = vrot.lane.b32.xlu0 %v9193_v52, %s12224_s0  ;;  %v3758_v13 = vmax.f32 %v19409_v55, %v19410_v35  ;;  %v6837_v41 = vadd.f32 %v6581_v2, %v19413_v30  ;;  %v4467_v50 = vadd.f32 %v16734_v16, %v19414_v32  ;;  %v4468_v57 = vadd.f32 %v16734_v16, %v19415_v63  ;;  %v19421_v35 = vld [vmem:[#allocation334_spill] sm:$0xff]  ;;  %v19424_v63 = vld [vmem:[#allocation336_spill] sm:$0xff] }
 0x64d   :  { %v7351_v61 = vadd.f32 %v19412_v27, %v6839_v14  ;;  %v8380_v10 = vadd.f32 %v16741_v51, %v8077_v1  ;;  %v8378_v34 = vadd.f32 %v16741_v51, %v8063_v44  ;;  %v19417_v3 = vmax.f32 %v19416_v58, 0.0 }
 0x64e   :  { %v4469_v12 = vadd.f32 %v16734_v16, %v3758_v13  ;;  %v19420_v5 = vrot.slane %v19419_v31, 2  ;;  %v4595_v52 = vmax.f32 %v4467_v50, 0.0  ;;  %v4596_v25 = vmax.f32 %v4468_v57, 0.0  ;;  %v19422_v13 = vld [vmem:[#allocation339_spill] sm:$0xff] }
 0x64f   :  { %v8715_v20 = vsel %vm8666_vm11, %v19418_v26, %v19417_v3  ;;  %v8092_v38 = vsel %vm7377_vm12, %v7351_v61, -inf  ;;  %v8508_v14 = vmax.f32 %v8380_v10, 0.0  ;;  %v8506_v2 = vmax.f32 %v8378_v34, 0.0 }
 0x650   :  { %v7349_v7 = vadd.f32 %v19420_v5, %v6837_v41  ;;  %v8093_v55 = vrot.slane %v8092_v38, 4  ;;  %v4597_v1 = vmax.f32 %v4469_v12, 0.0  ;;  %v8717_v16 = vsel %vm8669_vm14, %v19421_v35, %v8715_v20  ;;  %v9271_v5 = vpop.permute.xlu1 %9270  ;;  %v19427_v35 = vld [vmem:[#allocation13_spill] sm:$0xff] }
 0x651   :  { %v19423_v54 = vmax.f32 %v19422_v13, 0.0  ;;  %v8722_v30 = vrot.slane %v4595_v52, 3  ;;  %v17144_v32 = vrot.slane %v8508_v14, 5  ;;  %v17146_v61 = vrot.slane %v8506_v2, 7  ;;  %v19429_v13 = vld [vmem:[#allocation267_spill] sm:$0xff] }
 0x652   :  { %v8078_v44 = vsel %vm7377_vm12, %v7349_v7, -inf  ;;  %v8094_v41 = vmax.f32 %v8092_v38, %v8093_v55  ;;  %v8719_v57 = vsel %vm8672_vm15, %v19424_v63, %v8717_v16  ;;  %v8724_v10 = vrot.slane %v4596_v25, 2  ;;  %v19425_v7 = vld [vmem:[#allocation262_spill] sm:$0xff] }
 0x653   :  { %v8720_v27 = vrot.slane %v19423_v54, 4  ;;  %v8079_v50 = vrot.slane %v8078_v44, 4  ;;  %v8726_v34 = vrot.slane %v4597_v1, 1  ;;  %v6584_v12 = vrot.slane %v16696_v37, 1  ;;  %v19426_v37 = vld [vmem:[#allocation264_spill] sm:$0xff] }
 0x654   :  { %v8095_v58 = vrot.slane %v8094_v41, 2  ;;  %v6582_v20 = vrot.slane %v16699_v9, 1  ;;  %v6587_v38 = vrot.slane %v16708_v6, 1  ;;  %v6585_v14 = vrot.slane %v16749_v49, 1  ;;  %v19431_v49 = vld [vmem:[#allocation354_spill] sm:$0xff] }
 0x655   :  { %v8080_v3 = vmax.f32 %v8078_v44, %v8079_v50  ;;  %v8721_v26 = vsel %vm8675_vm0, %v8720_v27, %v8719_v57  ;;  %v6840_v52 = vadd.f32 %v19425_v7, %v6584_v12  ;;  %v19428_v16 = vrot.slane %v19427_v35, 2  ;;  %v19430_v27 = vld [vmem:[#allocation268_spill] sm:$0xff]  ;;  %v19433_v12 = vld [vmem:[#allocation191_spill] sm:$0xff] }
 0x656   :  { %v8723_v31 = vsel %vm8678_vm1, %v8722_v30, %v8721_v26  ;;  %v8096_v2 = vmax.f32 %v8094_v41, %v8095_v58  ;;  %v6838_v1 = vadd.f32 %v6582_v20, %v19426_v37  ;;  %v6843_v54 = vadd.f32 %v19429_v13, %v6587_v38  ;;  %v19435_v20 = vld [vmem:[#allocation30_spill] sm:$0xff] }
 0x657   :  { %v8081_v25 = vrot.slane %v8080_v3, 2  ;;  %v8725_v55 = vsel %vm8681_vm2, %v8724_v10, %v8723_v31  ;;  %v7352_v9 = vadd.f32 %v19428_v16, %v6840_v52  ;;  %v6841_v30 = vadd.f32 %v6585_v14, %v19430_v27 }
 0x658   :  { %v8727_v44 = vsel %vm8684_vm3, %v8726_v34, %v8725_v55  ;;  %v8097_v50 = vrot.slane %v8096_v2, 1  ;;  %v19432_v41 = vrot.slane %v19431_v49, 2  ;;  %v19434_v58 = vrot.slane %v19433_v12, 2 }
 0x659   :  { %v8082_v63 = vmax.f32 %v8080_v3, %v8081_v25  ;;  %v17165_v6 = vsel %vm1731_vm13, %v8727_v44, %v9271_v5  ;;  %v8099_v34 = vsel %vm7377_vm12, %v7352_v9, -inf  ;;  %v19436_v31 = vrot.slane %v19435_v20, 2  ;;  %v19437_v9 = vld [vmem:[#allocation270_spill] sm:$0xff] }
 0x65a   :  { %v7350_v57 = vadd.f32 %v19432_v41, %v6838_v1  ;;  %v9329_v10 = vpack.c.bf16 %v17165_v6, %v17047_v45  ;;  %v7355_v26 = vadd.f32 %v19434_v58, %v6843_v54  ;;  %v17176_v52 = vmax.f32 %v8096_v2, %v8097_v50  ;;  %v19438_v54 = vld [vmem:[#allocation51_spill] sm:$0xff]  ;;  %v19442_v58 = vld [vmem:[#allocation272_spill] sm:$0xff] }
 0x65b   :  { %v7353_v7 = vadd.f32 %v19436_v31, %v6841_v30  ;;  %v8083_v3 = vrot.slane %v8082_v63, 1  ;;  %v8100_v38 = vrot.slane %v8099_v34, 4  ;;  %v6588_v37 = vrot.slane %v16758_v28, 1  ;;  %v19440_v28 = vld [vmem:[#allocation383_spill] sm:$0xff] }
 0x65c   :  { %v8085_v5 = vsel %vm7377_vm12, %v7350_v57, -inf  ;;  %12003 = vmatmul.mubr.msk.bf16.vlgmr.msra.gmra.mrb[136].mxu1 %vm9359_vm4, %v9329_v10  ;;  %12023 = vmatmul.mubr.msk.bf16.vlgmr.msra.gmra.mrb[120].mxu0 %vm9359_vm4, %v9329_v10  ;;  %v8120_v25 = vsel %vm7377_vm12, %v7355_v26, -inf  ;;  %v6586_v27 = vrot.slane %v19438_v54, 1  ;;  %v19439_v30 = vrot.slane %v17087_v42, 1 }
 0x65d   :  { %v8086_v14 = vrot.slane %v8085_v5, 4  ;;  %v8106_v55 = vsel %vm7377_vm12, %v7353_v7, -inf  ;;  %v8084_v1 = vmax.f32 %v8082_v63, %v8083_v3  ;;  %v8101_v44 = vmax.f32 %v8099_v34, %v8100_v38 }
 0x65e   :  { %v8121_v35 = vrot.slane %v8120_v25, 4  ;;  %v8107_v2 = vrot.slane %v8106_v55, 4  ;;  %v6844_v13 = vadd.f32 %v19437_v9, %v6588_v37  ;;  %v8049_v50 = vmax.f32 %v17087_v42, %v19439_v30 }
 0x65f   :  { %v8087_v16 = vmax.f32 %v8085_v5, %v8086_v14  ;;  %v8381_v49 = vadd.f32 %v16741_v51, %v8084_v1  ;;  %v8102_v41 = vrot.slane %v8101_v44, 2  ;;  %v19441_v63 = vrot.slane %v19440_v28, 2  ;;  %v19443_v14 = vld [vmem:[#allocation384_spill] sm:$0xff] }
 0x660   :  { %v8122_v57 = vmax.f32 %v8120_v25, %v8121_v35  ;;  %v8108_v10 = vmax.f32 %v8106_v55, %v8107_v2  ;;  %v6842_v26 = vadd.f32 %v6586_v27, %v19442_v58  ;;  %v8374_v20 = vadd.f32 %v16741_v51, %v17093_v23 }
 0x661   :  { %v8088_v12 = vrot.slane %v8087_v16, 2  ;;  %v7356_v34 = vadd.f32 %v19441_v63, %v6844_v13  ;;  %v8509_v31 = vmax.f32 %v8381_v49, 0.0  ;;  %v17195_v7 = vmax.f32 %v8101_v44, %v8102_v41 }
 0x662   :  { %v8123_v3 = vrot.slane %v8122_v57, 2  ;;  %v8109_v38 = vrot.slane %v8108_v10, 2  ;;  %v19444_v25 = vrot.slane %v19443_v14, 2  ;;  %v8375_v37 = vadd.f32 %v16741_v51, %v17055_v60 }
 0x663   :  { %v8089_v42 = vmax.f32 %v8087_v16, %v8088_v12  ;;  %v8127_v5 = vsel %vm7377_vm12, %v7356_v34, -inf  ;;  %v17202_v1 = vrot.slane %v8509_v31, 4  ;;  %v8104_v35 = vrot.slane %v17195_v7, 1  ;;  %v17209_v16 = vld [vmem:[%s17932_s9] ss:$0 sm:$0xff] }
 0x664   :  { %v7354_v55 = vadd.f32 %v19444_v25, %v6842_v26  ;;  %v8124_v2 = vmax.f32 %v8122_v57, %v8123_v3  ;;  %v8110_v23 = vmax.f32 %v8108_v10, %v8109_v38  ;;  %v8128_v44 = vrot.slane %v8127_v5, 4  ;;  %v19446_v25 = vld [vmem:[#allocation54_spill] sm:$0xff] }
 0x665   :  { %v8090_v9 = vrot.slane %v8089_v42, 1  ;;  %v8376_v54 = vadd.f32 %v17209_v16, %v8049_v50  ;;  %v8502_v60 = vmax.f32 %v8374_v20, 0.0  ;;  %v8503_v57 = vmax.f32 %v8375_v37, 0.0 }
 0x666   :  { %v8113_v13 = vsel %vm7377_vm12, %v7354_v55, -inf  ;;  %v8125_v27 = vrot.slane %v8124_v2, 1  ;;  %v8111_v30 = vrot.slane %v8110_v23, 1  ;;  %v8129_v41 = vmax.f32 %v8127_v5, %v8128_v44 }
 0x667   :  { %v8114_v51 = vrot.slane %v8113_v13, 4  ;;  %v17212_v49 = vmax.f32 %v8089_v42, %v8090_v9  ;;  %v8504_v10 = vmax.f32 %v8376_v54, 0.0  ;;  %v19445_v34 = vmax.f32 %v16979_v53, 0.0 }
 0x668   :  { %v8126_v12 = vmax.f32 %v8124_v2, %v8125_v27  ;;  %v8112_v28 = vmax.f32 %v8110_v23, %v8111_v30  ;;  %v8130_v26 = vrot.slane %v8129_v41, 2  ;;  %v9202_v31 = vrot.slane %v8502_v60, 3  ;;  %v19448_v60 = vld [vmem:[#allocation346_spill] sm:$0xff] }
 0x669   :  { %v8115_v63 = vmax.f32 %v8113_v13, %v8114_v51  ;;  %v9195_v58 = vsel %vm8666_vm11, %v17032_v62, %v19445_v34  ;;  %v9204_v3 = vrot.slane %v8503_v57, 2  ;;  %v9206_v62 = vrot.slane %v8504_v10, 1  ;;  %v19447_v13 = vld [vmem:[#allocation275_spill] sm:$0xff]  ;;  %v17240_v51 = vld [vmem:[%s17931_s5] ss:$0 sm:$0xff]  ;;  %v19452_v34 = vld [vmem:[#allocation344_spill] sm:$0xff] }
 0x66a   :  { %v9197_v50 = vsel %vm8669_vm14, %v16994_v33, %v9195_v58  ;;  %v8387_v20 = vadd.f32 %v17209_v16, %v8126_v12  ;;  %v17222_v38 = vadd.f32 %v17209_v16, %v8112_v28  ;;  %v8131_v14 = vmax.f32 %v8129_v41, %v8130_v26  ;;  %v19449_v10 = vld [vmem:[#allocation35_spill] sm:$0xff] }
 0x66b   :  { %v8116_v42 = vrot.slane %v8115_v63, 2  ;;  %v9199_v5 = vsel %vm8672_vm15, %v17026_v19, %v9197_v50  ;;  %v6591_v55 = vrot.slane %v19446_v25, 1  ;;  %v6589_v19 = vrot.slane %v16809_v17, 1  ;;  %v19451_v17 = vld [vmem:[#allocation276_spill] sm:$0xff] }
 0x66c   :  { %v9201_v53 = vsel %vm8675_vm0, %v17085_v48, %v9199_v5  ;;  %v8515_v37 = vmax.f32 %v8387_v20, 0.0  ;;  %v8513_v33 = vmax.f32 %v17222_v38, 0.0  ;;  %v8132_v9 = vrot.slane %v8131_v14, 1 }
 0x66d   :  { %v8117_v2 = vmax.f32 %v8115_v63, %v8116_v42  ;;  %v9203_v23 = vsel %vm8678_vm1, %v9202_v31, %v9201_v53  ;;  %v6847_v54 = vadd.f32 %v19447_v13, %v6591_v55  ;;  %v4477_v41 = vadd.f32 %v17240_v51, %v19448_v60  ;;  %v19453_v31 = vld [vmem:[#allocation2_spill] sm:$0xff]  ;;  %v19455_v53 = vld [vmem:[#allocation145_spill] sm:$0xff]  ;;  %v9273_v60 = vpop.permute.xlu0 %9272 }
 0x66e   :  { %v9205_v44 = vsel %vm8681_vm2, %v9204_v3, %v9203_v23  ;;  %v17234_v27 = vrot.slane %v8515_v37, 6  ;;  %v8133_v57 = vmax.f32 %v8131_v14, %v8132_v9  ;;  %v19450_v12 = vrot.slane %v19449_v10, 2  ;;  %v19454_v3 = vld [vmem:[#allocation343_spill] sm:$0xff]  ;;  %v19457_v55 = vld [vmem:[#allocation345_spill] sm:$0xff] }
 0x66f   :  { %v8118_v30 = vrot.slane %v8117_v2, 1  ;;  %v9207_v48 = vsel %vm8684_vm3, %v9206_v62, %v9205_v44  ;;  %v6845_v63 = vadd.f32 %v6589_v19, %v19451_v17  ;;  %v4604_v58 = vmax.f32 %v19452_v34, 0.0  ;;  %v19458_v9 = vld [vmem:[#allocation121_spill] sm:$0xff] }
 0x670   :  { %9286 = vrot.lane.b32.xlu1 %v9207_v48, %s12224_s0  ;;  %v7359_v28 = vadd.f32 %v19450_v12, %v6847_v54  ;;  %v4605_v50 = vmax.f32 %v4477_v41, 0.0  ;;  %v8731_v20 = vsel %vm8669_vm14, %v19454_v3, %v19453_v31  ;;  %v6592_v42 = vrot.slane %v16832_v40, 1  ;;  %v19459_v19 = vld [vmem:[#allocation9_spill] sm:$0xff] }
 0x671   :  { %v8119_v26 = vmax.f32 %v8117_v2, %v8118_v30  ;;  %v8388_v5 = vadd.f32 %v17209_v16, %v8133_v57  ;;  %v19456_v62 = vrot.slane %v19455_v53, 2  ;;  %v8733_v37 = vsel %vm8672_vm15, %v19457_v55, %v8731_v20  ;;  %v19461_v20 = vld [vmem:[#allocation387_spill] sm:$0xff]  ;;  %v19463_v53 = vld [vmem:[#allocation280_spill] sm:$0xff] }
 0x672   :  { %v8148_v14 = vsel %vm7377_vm12, %v7359_v28, -inf  ;;  %v8735_v44 = vsel %vm8675_vm0, %v19458_v9, %v8733_v37  ;;  %v8738_v13 = vrot.slane %v4604_v58, 2  ;;  %v8740_v48 = vrot.slane %v4605_v50, 1  ;;  %v19464_v9 = vld [vmem:[#allocation195_spill] sm:$0xff] }
 0x673   :  { %v7357_v25 = vadd.f32 %v19456_v62, %v6845_v63  ;;  %v8386_v23 = vadd.f32 %v17209_v16, %v8119_v26  ;;  %v8149_v2 = vrot.slane %v8148_v14, 4  ;;  %v8516_v54 = vmax.f32 %v8388_v5, 0.0  ;;  %v19460_v63 = vld [vmem:[#allocation278_spill] sm:$0xff] }
 0x674   :  { %v8737_v30 = vsel %vm8678_vm1, %v19459_v19, %v8735_v44  ;;  %v6848_v34 = vadd.f32 %v19460_v63, %v6592_v42  ;;  %v6590_v58 = vrot.slane %v16835_v8, 1  ;;  %v19462_v5 = vrot.slane %v19461_v20, 2  ;;  %v19467_v19 = vld [vmem:[#allocation284_spill] sm:$0xff] }
 0x675   :  { %v8134_v40 = vsel %vm7377_vm12, %v7357_v25, -inf  ;;  %v8514_v41 = vmax.f32 %v8386_v23, 0.0  ;;  %v8150_v57 = vmax.f32 %v8148_v14, %v8149_v2  ;;  %v8739_v12 = vsel %vm8681_vm2, %v8738_v13, %v8737_v30 }
 0x676   :  { %v8135_v10 = vrot.slane %v8134_v40, 4  ;;  %v17266_v28 = vrot.slane %v8516_v54, 5  ;;  %v8741_v17 = vsel %vm8684_vm3, %v8740_v48, %v8739_v12  ;;  %v7360_v14 = vadd.f32 %v19462_v5, %v6848_v34  ;;  %v19466_v54 = vld [vmem:[#allocation283_spill] sm:$0xff]  ;;  %v19473_v34 = vld [vmem:[#allocation288_spill] sm:$0xff] }
 0x677   :  { %v17271_v26 = vrot.slane %v8514_v41, 7  ;;  %v8151_v31 = vrot.slane %v8150_v57, 2  ;;  %v17274_v50 = vsel %vm1731_vm13, %v8741_v17, %v9273_v60  ;;  %v6846_v62 = vadd.f32 %v6590_v58, %v19463_v53  ;;  %v19468_v41 = vld [vmem:[#allocation286_spill] sm:$0xff] }
 0x678   :  { %v8136_v3 = vmax.f32 %v8134_v40, %v8135_v10  ;;  %v6595_v25 = vrot.slane %v16839_v56, 1  ;;  %v6593_v55 = vrot.slane %v16874_v0, 1  ;;  %v6596_v8 = vrot.slane %v16884_v22, 1  ;;  %v19469_v10 = vld [vmem:[#allocation201_spill] sm:$0xff] }
 0x679   :  { %v8152_v37 = vmax.f32 %v8150_v57, %v8151_v31  ;;  %v6594_v23 = vrot.slane %v16891_v24, 1  ;;  %v8155_v2 = vsel %vm7377_vm12, %v7360_v14, -inf  ;;  %v19465_v44 = vrot.slane %v19464_v9, 2  ;;  %v19471_v24 = vld [vmem:[#allocation34_spill] sm:$0xff] }
 0x67a   :  { %v8137_v42 = vrot.slane %v8136_v3, 2  ;;  %v6851_v40 = vadd.f32 %v19466_v54, %v6595_v25  ;;  %v6849_v30 = vadd.f32 %v6593_v55, %v19467_v19  ;;  %v8156_v56 = vrot.slane %v8155_v2, 4 }
 0x67b   :  { %v7358_v13 = vadd.f32 %v19465_v44, %v6846_v62  ;;  %v8153_v48 = vrot.slane %v8152_v37, 1  ;;  %v6852_v0 = vadd.f32 %v19468_v41, %v6596_v8  ;;  %v19470_v22 = vrot.slane %v19469_v10, 2  ;;  %v19474_v62 = vld [vmem:[#allocation390_spill] sm:$0xff] }
 0x67c   :  { %v8138_v60 = vmax.f32 %v8136_v3, %v8137_v42  ;;  %v19472_v17 = vrot.slane %v19471_v24, 2  ;;  %v6850_v58 = vadd.f32 %v6594_v23, %v19473_v34  ;;  %v8157_v5 = vmax.f32 %v8155_v2, %v8156_v56  ;;  %v19476_v42 = vld [vmem:[#allocation392_spill] sm:$0xff] }
 0x67d   :  { %v8141_v57 = vsel %vm7377_vm12, %v7358_v13, -inf  ;;  %v7363_v12 = vadd.f32 %v19470_v22, %v6851_v40  ;;  %v17295_v31 = vmax.f32 %v8152_v37, %v8153_v48  ;;  %v19475_v25 = vrot.slane %v19474_v62, 2 }
 0x67e   :  { %v7361_v63 = vadd.f32 %v19472_v17, %v6849_v30  ;;  %v8139_v20 = vrot.slane %v8138_v60, 1  ;;  %v8142_v14 = vrot.slane %v8141_v57, 4  ;;  %v19477_v8 = vrot.slane %v19476_v42, 2 }
 0x67f   :  { %v8176_v3 = vsel %vm7377_vm12, %v7363_v12, -inf  ;;  %v7364_v55 = vadd.f32 %v19475_v25, %v6852_v0  ;;  %v8158_v13 = vrot.slane %v8157_v5, 2  ;;  %v8105_v19 = vmax.f32 %v17195_v7, %v8104_v35 }
 0x680   :  { %v8162_v53 = vsel %vm7377_vm12, %v7361_v63, -inf  ;;  %v7362_v9 = vadd.f32 %v19477_v8, %v6850_v58  ;;  %v8140_v44 = vmax.f32 %v8138_v60, %v8139_v20  ;;  %v8143_v54 = vmax.f32 %v8141_v57, %v8142_v14 }
 0x681   :  { %v8177_v40 = vrot.slane %v8176_v3, 4  ;;  %v8163_v23 = vrot.slane %v8162_v53, 4  ;;  %v8183_v37 = vsel %vm7377_vm12, %v7364_v55, -inf  ;;  %v17309_v48 = vmax.f32 %v8157_v5, %v8158_v13 }
 0x682   :  { %v8169_v2 = vsel %vm7377_vm12, %v7362_v9, -inf  ;;  %v8389_v30 = vadd.f32 %v17209_v16, %v8140_v44  ;;  %v8144_v56 = vrot.slane %v8143_v54, 2  ;;  %v8184_v60 = vrot.slane %v8183_v37, 4 }
 0x683   :  { %v8178_v41 = vmax.f32 %v8176_v3, %v8177_v40  ;;  %v8164_v0 = vmax.f32 %v8162_v53, %v8163_v23  ;;  %v8170_v10 = vrot.slane %v8169_v2, 4  ;;  %v8382_v57 = vadd.f32 %v17209_v16, %v17212_v49 }
 0x684   :  { %v8517_v22 = vmax.f32 %v8389_v30, 0.0  ;;  %v8160_v12 = vrot.slane %v17309_v48, 1  ;;  %v8145_v24 = vmax.f32 %v8143_v54, %v8144_v56  ;;  %v8185_v34 = vmax.f32 %v8183_v37, %v8184_v60 }
 0x685   :  { %v8179_v17 = vrot.slane %v8178_v41, 2  ;;  %v8165_v63 = vrot.slane %v8164_v0, 2  ;;  %v8171_v7 = vmax.f32 %v8169_v2, %v8170_v10  ;;  %v8383_v35 = vadd.f32 %v17209_v16, %v17176_v52 }
 0x686   :  { %v17316_v58 = vrot.slane %v8517_v22, 4  ;;  %v8146_v20 = vrot.slane %v8145_v24, 1  ;;  %v8384_v14 = vadd.f32 %v17209_v16, %v8105_v19  ;;  %v8186_v53 = vrot.slane %v8185_v34, 2 }
 0x687   :  { %v8180_v5 = vmax.f32 %v8178_v41, %v8179_v17  ;;  %v8166_v3 = vmax.f32 %v8164_v0, %v8165_v63  ;;  %v8172_v49 = vrot.slane %v8171_v7, 2  ;;  %v8510_v62 = vmax.f32 %v8382_v57, 0.0 }
 0x688   :  { %v17319_v25 = vmax.f32 %v8145_v24, %v8146_v20  ;;  %v8511_v42 = vmax.f32 %v8383_v35, 0.0  ;;  %v8512_v8 = vmax.f32 %v8384_v14, 0.0  ;;  %v8187_v44 = vmax.f32 %v8185_v34, %v8186_v53  ;;  %v19478_v24 = vld [vmem:[#allocation291_spill] sm:$0xff]  ;;  %v19481_v14 = vld [vmem:[#allocation292_spill] sm:$0xff]  ;;  %v19482_v53 = vld [vmem:[#allocation137_spill] sm:$0xff] }
 0x689   :  { %v8181_v55 = vrot.slane %v8180_v5, 1  ;;  %v8167_v9 = vrot.slane %v8166_v3, 1  ;;  %v8173_v13 = vmax.f32 %v8171_v7, %v8172_v49  ;;  %v9209_v52 = vsel %vm8666_vm11, %v17146_v61, %v8505_v18  ;;  %v19479_v35 = vld [vmem:[#allocation203_spill] sm:$0xff] }
 0x68a   :  { %v9211_v40 = vsel %vm8669_vm14, %v17112_v47, %v9209_v52  ;;  %v9216_v23 = vrot.slane %v8510_v62, 3  ;;  %v9218_v37 = vrot.slane %v8511_v42, 2  ;;  %v8188_v19 = vrot.slane %v8187_v44, 1  ;;  %v19486_v52 = vld [vmem:[#allocation205_spill] sm:$0xff] }
 0x68b   :  { %v8182_v54 = vmax.f32 %v8180_v5, %v8181_v55  ;;  %v8168_v2 = vmax.f32 %v8166_v3, %v8167_v9  ;;  %v8174_v30 = vrot.slane %v8173_v13, 1  ;;  %v9213_v56 = vsel %vm8672_vm15, %v17144_v32, %v9211_v40  ;;  %v19483_v55 = vld [vmem:[#allocation351_spill] sm:$0xff]  ;;  %v19485_v9 = vld [vmem:[#allocation350_spill] sm:$0xff] }
 0x68c   :  { %v9215_v36 = vsel %vm8675_vm0, %v17202_v1, %v9213_v56  ;;  %v9220_v0 = vrot.slane %v8512_v8, 1  ;;  %v6599_v18 = vrot.slane %v16898_v29, 1  ;;  %v8189_v47 = vmax.f32 %v8187_v44, %v8188_v19  ;;  %v19484_v8 = vld [vmem:[#allocation8_spill] sm:$0xff] }
 0x68d   :  { %v8395_v41 = vadd.f32 %v17209_v16, %v8182_v54  ;;  %v17334_v61 = vadd.f32 %v17209_v16, %v8168_v2  ;;  %v8175_v60 = vmax.f32 %v8173_v13, %v8174_v30  ;;  %v9217_v10 = vsel %vm8678_vm1, %v9216_v23, %v9215_v36 }
 0x68e   :  { %v9219_v22 = vsel %vm8681_vm2, %v9218_v37, %v9217_v10  ;;  %v6855_v32 = vadd.f32 %v19478_v24, %v6599_v18  ;;  %v6597_v17 = vrot.slane %v16931_v46, 1  ;;  %v8396_v1 = vadd.f32 %v17209_v16, %v8189_v47  ;;  %v19488_v37 = vld [vmem:[#allocation352_spill] sm:$0xff]  ;;  %v19490_v18 = vld [vmem:[#allocation357_spill] sm:$0xff]  ;;  %v9275_v24 = vpop.permute.xlu1 %9274 }
 0x68f   :  { %v8523_v57 = vmax.f32 %v8395_v41, 0.0  ;;  %v8521_v63 = vmax.f32 %v17334_v61, 0.0  ;;  %v8394_v29 = vadd.f32 %v17209_v16, %v8175_v60  ;;  %v9221_v34 = vsel %vm8684_vm3, %v9220_v0, %v9219_v22  ;;  %v19489_v41 = vld [vmem:[#allocation353_spill] sm:$0xff] }
 0x690   :  { %9288 = vrot.lane.b32.xlu0 %v9221_v34, %s12224_s0  ;;  %v19480_v20 = vrot.slane %v19479_v35, 2  ;;  %v6853_v3 = vadd.f32 %v6597_v17, %v19481_v14  ;;  %v4485_v46 = vadd.f32 %v17240_v51, %v19482_v53  ;;  %v8524_v49 = vmax.f32 %v8396_v1, 0.0 }
 0x691   :  { %v17344_v7 = vrot.slane %v8523_v57, 6  ;;  %v8522_v62 = vmax.f32 %v8394_v29, 0.0  ;;  %v4612_v42 = vmax.f32 %v19483_v55, 0.0  ;;  %v8745_v44 = vsel %vm8669_vm14, %v19485_v9, %v19484_v8  ;;  %v19494_v55 = vld [vmem:[#allocation43_spill] sm:$0xff] }
 0x692   :  { %v7367_v5 = vadd.f32 %v19480_v20, %v6855_v32  ;;  %v19487_v54 = vrot.slane %v19486_v52, 2  ;;  %v4613_v23 = vmax.f32 %v4485_v46, 0.0  ;;  %v8747_v2 = vsel %vm8672_vm15, %v19488_v37, %v8745_v44 }
 0x693   :  { %v17361_v19 = vrot.slane %v8524_v49, 5  ;;  %v17363_v30 = vrot.slane %v8522_v62, 7  ;;  %v8749_v36 = vsel %vm8675_vm0, %v19489_v41, %v8747_v2  ;;  %v8752_v60 = vrot.slane %v4612_v42, 2  ;;  %v19501_v2 = vld [vmem:[#allocation213_spill] sm:$0xff] }
 0x694   :  { %v8204_v13 = vsel %vm7377_vm12, %v7367_v5, -inf  ;;  %v7365_v40 = vadd.f32 %v19487_v54, %v6853_v3  ;;  %v8751_v47 = vsel %vm8678_vm1, %v19490_v18, %v8749_v36  ;;  %v8754_v10 = vrot.slane %v4613_v23, 1  ;;  %v19491_v3 = vld [vmem:[#allocation293_spill] sm:$0xff]  ;;  %v19503_v36 = vld [vmem:[#allocation44_spill] sm:$0xff] }
 0x695   :  { %v8205_v56 = vrot.slane %v8204_v13, 4  ;;  %v6600_v32 = vrot.slane %v16959_v11, 1  ;;  %v6598_v17 = vrot.slane %v16964_v59, 1  ;;  %v8753_v1 = vsel %vm8681_vm2, %v8752_v60, %v8751_v47  ;;  %v19492_v11 = vld [vmem:[#allocation294_spill] sm:$0xff] }
 0x696   :  { %v8190_v0 = vsel %vm7377_vm12, %v7365_v40, -inf  ;;  %v6603_v29 = vrot.slane %v16967_v39, 1  ;;  %v6601_v34 = vrot.slane %v16986_v15, 1  ;;  %v6604_v35 = vrot.slane %v16992_v4, 1  ;;  %v19493_v59 = vld [vmem:[#allocation42_spill] sm:$0xff]  ;;  %v19499_v40 = vld [vmem:[#allocation157_spill] sm:$0xff] }
 0x697   :  { %v8206_v57 = vmax.f32 %v8204_v13, %v8205_v56  ;;  %v8191_v22 = vrot.slane %v8190_v0, 4  ;;  %v8755_v14 = vsel %vm8684_vm3, %v8754_v10, %v8753_v1  ;;  %v6856_v53 = vadd.f32 %v19491_v3, %v6600_v32  ;;  %v19495_v4 = vld [vmem:[#allocation38_spill] sm:$0xff]  ;;  %v19497_v13 = vld [vmem:[#allocation45_spill] sm:$0xff]  ;;  %v19504_v10 = vld [vmem:[#allocation56_spill] sm:$0xff] }
 0x698   :  { %v17379_v46 = vsel %vm1731_vm13, %v8755_v14, %v9275_v24  ;;  %v6854_v49 = vadd.f32 %v6598_v17, %v19492_v11  ;;  %v6859_v62 = vadd.f32 %v19493_v59, %v6603_v29  ;;  %v6857_v42 = vadd.f32 %v6601_v34, %v19494_v55  ;;  %v19505_v14 = vld [vmem:[#allocation394_spill] sm:$0xff] }
 0x699   :  { %v8207_v20 = vrot.slane %v8206_v57, 2  ;;  %v8192_v5 = vmax.f32 %v8190_v0, %v8191_v22  ;;  %v9330_v15 = vpack.c.bf16 %v17379_v46, %v17274_v50  ;;  %v19496_v9 = vrot.slane %v19495_v4, 2  ;;  %v19507_v11 = vld [vmem:[#allocation46_spill] sm:$0xff]  ;;  %v19508_v4 = vld [vmem:[#allocation215_spill] sm:$0xff] }
 0x69a   :  { %v19498_v52 = vrot.slane %v19497_v13, 2  ;;  %v19500_v23 = vrot.slane %v19499_v40, 2  ;;  %v19502_v56 = vrot.slane %v19501_v2, 2  ;;  %v6860_v0 = vadd.f32 %v19503_v36, %v6604_v35 }
 0x69b   :  { %v8208_v39 = vmax.f32 %v8206_v57, %v8207_v20  ;;  %v8193_v8 = vrot.slane %v8192_v5, 2  ;;  %v7368_v44 = vadd.f32 %v19496_v9, %v6856_v53  ;;  %12006 = vmatprep.mubr.msk.bf16.mxu1 %vm9359_vm4, %v9330_v15  ;;  %12026 = vmatprep.mubr.msk.bf16.mxu0 %vm9359_vm4, %v9330_v15  ;;  %v6602_v57 = vrot.slane %v19504_v10, 1 }
 0x69c   :  { %v7366_v54 = vadd.f32 %v19498_v52, %v6854_v49  ;;  %v7371_v37 = vadd.f32 %v19500_v23, %v6859_v62  ;;  %v7369_v41 = vadd.f32 %v19502_v56, %v6857_v42  ;;  %v19506_v3 = vrot.slane %v19505_v14, 2 }
 0x69d   :  { %v8209_v18 = vrot.slane %v8208_v39, 1  ;;  %v8194_v47 = vmax.f32 %v8192_v5, %v8193_v8  ;;  %v8211_v60 = vsel %vm7377_vm12, %v7368_v44, -inf  ;;  %v6858_v49 = vadd.f32 %v6602_v57, %v19507_v11 }
 0x69e   :  { %v8212_v22 = vrot.slane %v8211_v60, 4  ;;  %v8197_v24 = vsel %vm7377_vm12, %v7366_v54, -inf  ;;  %v8232_v32 = vsel %vm7377_vm12, %v7371_v37, -inf  ;;  %v8218_v17 = vsel %vm7377_vm12, %v7369_v41, -inf }
 0x69f   :  { %v17402_v1 = vmax.f32 %v8208_v39, %v8209_v18  ;;  %v8195_v29 = vrot.slane %v8194_v47, 1  ;;  %v8198_v34 = vrot.slane %v8197_v24, 4  ;;  %v8233_v35 = vrot.slane %v8232_v32, 4 }
 0x6a0   :  { %v8213_v20 = vmax.f32 %v8211_v60, %v8212_v22  ;;  %v8219_v5 = vrot.slane %v8218_v17, 4  ;;  %v7372_v53 = vadd.f32 %v19506_v3, %v6860_v0  ;;  %v8161_v42 = vmax.f32 %v17309_v48, %v8160_v12 }
 0x6a1   :  { %v8196_v59 = vmax.f32 %v8194_v47, %v8195_v29  ;;  %v8199_v62 = vmax.f32 %v8197_v24, %v8198_v34  ;;  %v8234_v55 = vmax.f32 %v8232_v32, %v8233_v35  ;;  %v19509_v9 = vrot.slane %v19508_v4, 2 }
 0x6a2   :  { %v8214_v8 = vrot.slane %v8213_v20, 2  ;;  %v8220_v39 = vmax.f32 %v8218_v17, %v8219_v5  ;;  %v8239_v15 = vsel %vm7377_vm12, %v7372_v53, -inf  ;;  %v8390_v48 = vadd.f32 %v17209_v16, %v17319_v25 }
 0x6a3   :  { %v7370_v44 = vadd.f32 %v19509_v9, %v6858_v49  ;;  %v8397_v13 = vadd.f32 %v17209_v16, %v8196_v59  ;;  %v8200_v52 = vrot.slane %v8199_v62, 2  ;;  %v8235_v54 = vrot.slane %v8234_v55, 2 }
 0x6a4   :  { %v8240_v40 = vrot.slane %v8239_v15, 4  ;;  %v17414_v23 = vmax.f32 %v8213_v20, %v8214_v8  ;;  %v8221_v37 = vrot.slane %v8220_v39, 2  ;;  %v8391_v60 = vadd.f32 %v17209_v16, %v17295_v31 }
 0x6a5   :  { %v8225_v2 = vsel %vm7377_vm12, %v7370_v44, -inf  ;;  %v8525_v12 = vmax.f32 %v8397_v13, 0.0  ;;  %v8201_v56 = vmax.f32 %v8199_v62, %v8200_v52  ;;  %v8236_v41 = vmax.f32 %v8234_v55, %v8235_v54  ;;  %v19510_v44 = vld [vmem:[#allocation58_spill] sm:$0xff] }
 0x6a6   :  { %v8241_v36 = vmax.f32 %v8239_v15, %v8240_v40  ;;  %v8216_v0 = vrot.slane %v17414_v23, 1  ;;  %v8222_v18 = vmax.f32 %v8220_v39, %v8221_v37  ;;  %v8226_v47 = vrot.slane %v8225_v2, 4  ;;  %v19511_v40 = vld [vmem:[#allocation217_spill] sm:$0xff] }
 0x6a7   :  { %v17422_v10 = vrot.slane %v8525_v12, 4  ;;  %v8202_v57 = vrot.slane %v8201_v56, 1  ;;  %v8237_v22 = vrot.slane %v8236_v41, 1  ;;  %v8392_v25 = vadd.f32 %v17209_v16, %v8161_v42 }
 0x6a8   :  { %v8242_v24 = vrot.slane %v8241_v36, 2  ;;  %v8223_v32 = vrot.slane %v8222_v18, 1  ;;  %v8227_v17 = vmax.f32 %v8225_v2, %v8226_v47  ;;  %v8518_v29 = vmax.f32 %v8390_v48, 0.0 }
 0x6a9   :  { %v17425_v34 = vmax.f32 %v8201_v56, %v8202_v57  ;;  %v8238_v35 = vmax.f32 %v8236_v41, %v8237_v22  ;;  %v8519_v5 = vmax.f32 %v8391_v60, 0.0  ;;  %v8520_v53 = vmax.f32 %v8392_v25, 0.0  ;;  %v19513_v56 = vld [vmem:[#allocation151_spill] sm:$0xff]  ;;  %v19515_v60 = vld [vmem:[#allocation360_spill] sm:$0xff]  ;;  %v19516_v22 = vld [vmem:[#allocation17_spill] sm:$0xff] }
 0x6aa   :  { %v8243_v20 = vmax.f32 %v8241_v36, %v8242_v24  ;;  %v8224_v14 = vmax.f32 %v8222_v18, %v8223_v32  ;;  %v8228_v3 = vrot.slane %v8227_v17, 2  ;;  %v9223_v31 = vsel %vm8666_vm11, %v17271_v26, %v8513_v33  ;;  %v19514_v18 = vld [vmem:[#allocation49_spill] sm:$0xff]  ;;  %v19517_v24 = vld [vmem:[#allocation358_spill] sm:$0xff] }
 0x6ab   :  { %v8403_v11 = vadd.f32 %v17209_v16, %v8238_v35  ;;  %v9225_v59 = vsel %vm8669_vm14, %v17234_v27, %v9223_v31  ;;  %v9230_v62 = vrot.slane %v8518_v29, 3  ;;  %v9232_v39 = vrot.slane %v8519_v5, 2  ;;  %v19518_v25 = vld [vmem:[#allocation161_spill] sm:$0xff]  ;;  %v19520_v5 = vld [vmem:[#allocation359_spill] sm:$0xff] }
 0x6ac   :  { %v8244_v49 = vrot.slane %v8243_v20, 1  ;;  %v17435_v55 = vadd.f32 %v17209_v16, %v8224_v14  ;;  %v8229_v42 = vmax.f32 %v8227_v17, %v8228_v3  ;;  %v9227_v8 = vsel %vm8672_vm15, %v17266_v28, %v9225_v59 }
 0x6ad   :  { %v8531_v15 = vmax.f32 %v8403_v11, 0.0  ;;  %v9229_v33 = vsel %vm8675_vm0, %v17316_v58, %v9227_v8  ;;  %v9234_v26 = vrot.slane %v8520_v53, 1  ;;  %v6607_v13 = vrot.slane %v19510_v44, 1  ;;  %v19512_v58 = vld [vmem:[#allocation48_spill] sm:$0xff]  ;;  %v19521_v53 = vld [vmem:[#allocation221_spill] sm:$0xff] }
 0x6ae   :  { %v8245_v38 = vmax.f32 %v8243_v20, %v8244_v49  ;;  %v8529_v4 = vmax.f32 %v17435_v55, 0.0  ;;  %v8230_v9 = vrot.slane %v8229_v42, 1  ;;  %v9231_v27 = vsel %vm8678_vm1, %v9230_v62, %v9229_v33  ;;  %v19523_v49 = vld [vmem:[#allocation153_spill] sm:$0xff]  ;;  %v9277_v33 = vpop.permute.xlu0 %9276 }
 0x6af   :  { %v17444_v52 = vrot.slane %v8531_v15, 6  ;;  %v9233_v28 = vsel %vm8681_vm2, %v9232_v39, %v9231_v27  ;;  %v6605_v37 = vrot.slane %v19511_v40, 1  ;;  %v6863_v12 = vadd.f32 %v19512_v58, %v6607_v13  ;;  %v19524_v39 = vld [vmem:[#allocation366_spill] sm:$0xff] }
 0x6b0   :  { %v8404_v54 = vadd.f32 %v17209_v16, %v8245_v38  ;;  %v8231_v2 = vmax.f32 %v8229_v42, %v8230_v9  ;;  %v9235_v48 = vsel %vm8684_vm3, %v9234_v26, %v9233_v28  ;;  %v4493_v41 = vadd.f32 %v17240_v51, %v19513_v56 }
 0x6b1   :  { %9290 = vrot.lane.b32.xlu1 %v9235_v48, %s12224_s0  ;;  %v6861_v47 = vadd.f32 %v6605_v37, %v19514_v18  ;;  %v4620_v57 = vmax.f32 %v19515_v60, 0.0  ;;  %v8759_v32 = vsel %vm8669_vm14, %v19517_v24, %v19516_v22  ;;  %v19519_v29 = vrot.slane %v19518_v25, 2  ;;  %v19525_v48 = vld [vmem:[#allocation50_spill] sm:$0xff]  ;;  %v19529_v24 = vld [vmem:[#allocation368_spill] sm:$0xff] }
 0x6b2   :  { %v8532_v36 = vmax.f32 %v8404_v54, 0.0  ;;  %v8402_v17 = vadd.f32 %v17209_v16, %v8231_v2  ;;  %v4621_v20 = vmax.f32 %v4493_v41, 0.0  ;;  %v8761_v14 = vsel %vm8672_vm15, %v19520_v5, %v8759_v32  ;;  %v19526_v41 = vld [vmem:[#allocation52_spill] sm:$0xff] }
 0x6b3   :  { %v7375_v35 = vadd.f32 %v19519_v29, %v6863_v12  ;;  %v19522_v31 = vrot.slane %v19521_v53, 2  ;;  %v8763_v59 = vsel %vm8675_vm0, %v19523_v49, %v8761_v14  ;;  %v8766_v62 = vrot.slane %v4620_v57, 2 }
 0x6b4   :  { %v17464_v3 = vrot.slane %v8532_v36, 5  ;;  %v8530_v42 = vmax.f32 %v8402_v17, 0.0  ;;  %v8765_v15 = vsel %vm8678_vm1, %v19524_v39, %v8763_v59  ;;  %v8768_v38 = vrot.slane %v4621_v20, 1 }
 0x6b5   :  { %v7373_v11 = vadd.f32 %v19522_v31, %v6861_v47  ;;  %v8260_v8 = vsel %vm7377_vm12, %v7375_v35, -inf  ;;  %v8767_v27 = vsel %vm8681_vm2, %v8766_v62, %v8765_v15  ;;  %v6608_v44 = vrot.slane %v17083_v43, 1  ;;  %v19527_v47 = vld [vmem:[#allocation57_spill] sm:$0xff] }
 0x6b6   :  { %v8261_v26 = vrot.slane %v8260_v8, 4  ;;  %v9250_v13 = vrot.slane %v8530_v42, 7  ;;  %v8769_v28 = vsel %vm8684_vm3, %v8768_v38, %v8767_v27  ;;  %v6606_v40 = vrot.slane %v17089_v21, 1  ;;  %v19531_v15 = vld [vmem:[#allocation165_spill] sm:$0xff] }
 0x6b7   :  { %v8246_v9 = vsel %vm7377_vm12, %v7373_v11, -inf  ;;  %v17479_v2 = vsel %vm1731_vm13, %v8769_v28, %v9277_v33  ;;  %v6864_v58 = vadd.f32 %v19525_v48, %v6608_v44  ;;  %v8217_v12 = vmax.f32 %v17414_v23, %v8216_v0  ;;  %v19533_v28 = vld [vmem:[#allocation370_spill] sm:$0xff] }
 0x6b8   :  { %v8247_v54 = vrot.slane %v8246_v9, 4  ;;  %v8262_v37 = vmax.f32 %v8260_v8, %v8261_v26  ;;  %v6862_v36 = vadd.f32 %v6606_v40, %v19526_v41  ;;  %v8398_v43 = vadd.f32 %v17209_v16, %v17425_v34  ;;  %v19534_v40 = vld [vmem:[#allocation369_spill] sm:$0xff] }
 0x6b9   :  { %v8399_v18 = vadd.f32 %v17209_v16, %v17402_v1  ;;  %v19528_v60 = vrot.slane %v19527_v47, 2  ;;  %v8400_v22 = vadd.f32 %v17209_v16, %v8217_v12  ;;  %v9237_v23 = vsel %vm8666_vm11, %v17363_v30, %v8521_v63  ;;  %v19535_v12 = vld [vmem:[#allocation23_spill] sm:$0xff] }
 0x6ba   :  { %v8248_v56 = vmax.f32 %v8246_v9, %v8247_v54  ;;  %v8263_v21 = vrot.slane %v8262_v37, 2  ;;  %v19530_v32 = vrot.slane %v19529_v24, 2  ;;  %v8526_v25 = vmax.f32 %v8398_v43, 0.0  ;;  %v19532_v9 = vld [vmem:[#allocation371_spill] sm:$0xff]  ;;  %v19536_v43 = vld [vmem:[#allocation22_spill] sm:$0xff] }
 0x6bb   :  { %v7376_v57 = vadd.f32 %v19528_v60, %v6864_v58  ;;  %v8527_v34 = vmax.f32 %v8399_v18, 0.0  ;;  %v8528_v35 = vmax.f32 %v8400_v22, 0.0  ;;  %v9239_v20 = vsel %vm8669_vm14, %v17344_v7, %v9237_v23  ;;  %v19537_v22 = vld [vmem:[#allocation377_spill] sm:$0xff] }
 0x6bc   :  { %v8249_v0 = vrot.slane %v8248_v56, 2  ;;  %v7374_v17 = vadd.f32 %v19530_v32, %v6862_v36  ;;  %v8264_v29 = vmax.f32 %v8262_v37, %v8263_v21  ;;  %v9241_v63 = vsel %vm8672_vm15, %v17361_v19, %v9239_v20 }
 0x6bd   :  { %v8267_v1 = vsel %vm7377_vm12, %v7376_v57, -inf  ;;  %v9243_v31 = vsel %vm8675_vm0, %v17422_v10, %v9241_v63  ;;  %v9244_v11 = vrot.slane %v8526_v25, 3  ;;  %v9246_v62 = vrot.slane %v8527_v34, 2 }
 0x6be   :  { %v8250_v5 = vmax.f32 %v8248_v56, %v8249_v0  ;;  %v8268_v14 = vrot.slane %v8267_v1, 4  ;;  %v8253_v61 = vsel %vm7377_vm12, %v7374_v17, -inf  ;;  %v8265_v30 = vrot.slane %v8264_v29, 1  ;;  %v9279_v0 = vpop.permute.xlu1 %9278 }
 0x6bf   :  { %v8254_v53 = vrot.slane %v8253_v61, 4  ;;  %v9248_v42 = vrot.slane %v8528_v35, 1  ;;  %v9245_v7 = vsel %vm8678_vm1, %v9244_v11, %v9243_v31  ;;  %v4501_v38 = vadd.f32 %v17240_v51, %v19531_v15  ;;  %v19540_v11 = vld [vmem:[#allocation382_spill] sm:$0xff] }
 0x6c0   :  { %v8251_v49 = vrot.slane %v8250_v5, 1  ;;  %v8269_v59 = vmax.f32 %v8267_v1, %v8268_v14  ;;  %v8266_v8 = vmax.f32 %v8264_v29, %v8265_v30  ;;  %v9247_v19 = vsel %vm8681_vm2, %v9246_v62, %v9245_v7  ;;  %v19539_v30 = vld [vmem:[#allocation380_spill] sm:$0xff]  ;;  %v19542_v62 = vld [vmem:[#allocation199_spill] sm:$0xff] }
 0x6c1   :  { %v8255_v39 = vmax.f32 %v8253_v61, %v8254_v53  ;;  %v4628_v27 = vmax.f32 %v19532_v9, 0.0  ;;  %v9249_v10 = vsel %vm8684_vm3, %v9248_v42, %v9247_v19  ;;  %v4629_v54 = vmax.f32 %v4501_v38, 0.0  ;;  %v19544_v38 = vld [vmem:[#allocation389_spill] sm:$0xff] }
 0x6c2   :  { %v8252_v33 = vmax.f32 %v8250_v5, %v8251_v49  ;;  %v8270_v26 = vrot.slane %v8269_v59, 2  ;;  %v8773_v37 = vsel %vm8669_vm14, %v19534_v40, %v19533_v28  ;;  %9292 = vrot.lane.b32.xlu0 %v9249_v10, %s12224_s0  ;;  %v8407_v47 = vadd.f32 %v17209_v16, %v8266_v8  ;;  %v19541_v49 = vld [vmem:[#allocation378_spill] sm:$0xff]  ;;  %v19546_v10 = vld [vmem:[#allocation385_spill] sm:$0xff]  ;;  %v9281_v28 = vpop.permute.xlu0 %9280  ;;  %v19547_v40 = vld [vmem:[#allocation388_spill] sm:$0xff] }
 0x6c3   :  { %v8256_v44 = vrot.slane %v8255_v39, 2  ;;  %v8775_v56 = vsel %vm8672_vm15, %v19535_v12, %v8773_v37  ;;  %v8780_v41 = vrot.slane %v4628_v27, 2  ;;  %v8782_v21 = vrot.slane %v4629_v54, 1  ;;  %v19548_v37 = vld [vmem:[#allocation32_spill] sm:$0xff] }
 0x6c4   :  { %v8405_v48 = vadd.f32 %v17209_v16, %v8252_v33  ;;  %v8271_v58 = vmax.f32 %v8269_v59, %v8270_v26  ;;  %v8777_v18 = vsel %vm8675_vm0, %v19536_v43, %v8775_v56  ;;  %v9251_v24 = vsel %vm8666_vm11, %v9250_v13, %v8529_v4  ;;  %v19538_v4 = vld [vmem:[#allocation181_spill] sm:$0xff] }
 0x6c5   :  { %v8257_v36 = vmax.f32 %v8255_v39, %v8256_v44  ;;  %v8779_v23 = vsel %vm8678_vm1, %v19537_v22, %v8777_v18  ;;  %v8535_v25 = vmax.f32 %v8407_v47, 0.0  ;;  %v9253_v34 = vsel %vm8669_vm14, %v17444_v52, %v9251_v24  ;;  %v19543_v39 = vld [vmem:[#allocation29_spill] sm:$0xff]  ;;  %v19552_v22 = vld [vmem:[#allocation211_spill] sm:$0xff] }
 0x6c6   :  { %v8533_v60 = vmax.f32 %v8405_v48, 0.0  ;;  %v8272_v57 = vrot.slane %v8271_v58, 1  ;;  %v8781_v17 = vsel %vm8681_vm2, %v8780_v41, %v8779_v23  ;;  %v9255_v20 = vsel %vm8672_vm15, %v17464_v3, %v9253_v34  ;;  %v19545_v26 = vld [vmem:[#allocation185_spill] sm:$0xff]  ;;  %v19549_v41 = vld [vmem:[#allocation386_spill] sm:$0xff]  ;;  %v19554_v34 = vld [vmem:[#allocation155_spill] sm:$0xff] }
 0x6c7   :  { %v8258_v32 = vrot.slane %v8257_v36, 1  ;;  %v8783_v1 = vsel %vm8684_vm3, %v8782_v21, %v8781_v17  ;;  %v9260_v55 = vrot.slane %v8535_v25, 2  ;;  %v4509_v13 = vadd.f32 %v17240_v51, %v19538_v4  ;;  %v19550_v21 = vld [vmem:[#allocation39_spill] sm:$0xff]  ;;  %v9283_v25 = vpop.permute.xlu1 %9282  ;;  %v19556_v4 = vld [vmem:[#allocation53_spill] sm:$0xff] }
 0x6c8   :  { %v9256_v29 = vrot.slane %v8533_v60, 4  ;;  %v8273_v35 = vmax.f32 %v8271_v58, %v8272_v57  ;;  %v17535_v14 = vsel %vm1731_vm13, %v8783_v1, %v9279_v0  ;;  %v4636_v53 = vmax.f32 %v19539_v30, 0.0  ;;  %v19551_v60 = vld [vmem:[#allocation364_spill] sm:$0xff] }
 0x6c9   :  { %v8259_v5 = vmax.f32 %v8257_v36, %v8258_v32  ;;  %v9331_v61 = vpack.c.bf16 %v17535_v14, %v17479_v2  ;;  %v4637_v3 = vmax.f32 %v4509_v13, 0.0  ;;  %v8787_v59 = vsel %vm8669_vm14, %v19541_v49, %v19540_v11  ;;  %v19553_v32 = vld [vmem:[#allocation207_spill] sm:$0xff] }
 0x6ca   :  { %v8408_v52 = vadd.f32 %v17209_v16, %v8273_v35  ;;  %v9257_v63 = vsel %vm8675_vm0, %v9256_v29, %v9255_v20  ;;  %v4517_v42 = vadd.f32 %v17240_v51, %v19542_v62  ;;  %v8789_v7 = vsel %vm8672_vm15, %v19543_v39, %v8787_v59  ;;  %v19555_v29 = vld [vmem:[#allocation47_spill] sm:$0xff] }
 0x6cb   :  { %v8406_v31 = vadd.f32 %v17209_v16, %v8259_v5  ;;  %12007 = vmatmul.mubr.msk.bf16.gmra.mrb[140].mxu1 %vm9359_vm4, %v9331_v61  ;;  %12027 = vmatmul.mubr.msk.bf16.gmra.mrb[124].mxu0 %vm9359_vm4, %v9331_v61  ;;  %v8794_v15 = vrot.slane %v4636_v53, 2  ;;  %v4644_v33 = vmax.f32 %v19544_v38, 0.0  ;;  %v8791_v19 = vsel %vm8675_vm0, %v19545_v26, %v8789_v7  ;;  %v19559_v49 = vld [vmem:[#allocation227_spill] sm:$0xff]  ;;  %v19561_v7 = vld [vmem:[#allocation36_spill] sm:$0xff]  ;;  %v19563_v26 = vld [vmem:[#allocation225_spill] sm:$0xff] }
 0x6cc   :  { %v8536_v8 = vmax.f32 %v8408_v52, 0.0  ;;  %v8796_v9 = vrot.slane %v4637_v3, 1  ;;  %v4645_v27 = vmax.f32 %v4517_v42, 0.0  ;;  %v8793_v54 = vsel %vm8678_vm1, %v19546_v10, %v8791_v19 }
 0x6cd   :  { %v8534_v16 = vmax.f32 %v8406_v31, 0.0  ;;  %v8801_v48 = vsel %vm8669_vm14, %v19548_v37, %v19547_v40  ;;  %v8808_v58 = vrot.slane %v4644_v33, 2  ;;  %v8795_v56 = vsel %vm8681_vm2, %v8794_v15, %v8793_v54  ;;  %v19562_v15 = vld [vmem:[#allocation223_spill] sm:$0xff]  ;;  %v19567_v37 = vld [vmem:[#allocation373_spill] sm:$0xff] }
 0x6ce   :  { %v9262_v44 = vrot.slane %v8536_v8, 1  ;;  %v8803_v36 = vsel %vm8672_vm15, %v19549_v41, %v8801_v48  ;;  %v8810_v43 = vrot.slane %v4645_v27, 1  ;;  %v8797_v18 = vsel %vm8684_vm3, %v8796_v9, %v8795_v56  ;;  %v19560_v8 = vld [vmem:[#allocation41_spill] sm:$0xff]  ;;  %v19564_v9 = vld [vmem:[#allocation239_spill] sm:$0xff] }
 0x6cf   :  { %v9258_v12 = vrot.slane %v8534_v16, 3  ;;  %v8805_v47 = vsel %vm8675_vm0, %v19550_v21, %v8803_v36  ;;  %v4525_v57 = vadd.f32 %v17240_v51, %v19551_v60  ;;  %v4652_v23 = vmax.f32 %v19552_v22, 0.0  ;;  %v19566_v54 = vld [vmem:[#allocation231_spill] sm:$0xff]  ;;  %v19569_v36 = vld [vmem:[#allocation237_spill] sm:$0xff] }
 0x6d0   :  { %v17573_v24 = vsel %vm1731_vm13, %v8797_v18, %v9281_v28  ;;  %v8807_v17 = vsel %vm8678_vm1, %v19553_v32, %v8805_v47  ;;  %v8815_v1 = vsel %vm8669_vm14, %v19555_v29, %v19554_v34  ;;  %v4533_v59 = vadd.f32 %v17240_v51, %v19559_v49  ;;  %v19571_v47 = vld [vmem:[#allocation235_spill] sm:$0xff]  ;;  %v19573_v32 = vld [vmem:[#allocation173_spill] sm:$0xff] }
 0x6d1   :  { %v9259_v0 = vsel %vm8678_vm1, %v9258_v12, %v9257_v63  ;;  %v8809_v20 = vsel %vm8681_vm2, %v8808_v58, %v8807_v17  ;;  %v4653_v5 = vmax.f32 %v4525_v57, 0.0  ;;  %v8817_v13 = vsel %vm8672_vm15, %v19556_v4, %v8815_v1  ;;  %v19557_v63 = vld [vmem:[#allocation59_spill] sm:$0xff]  ;;  %v19568_v58 = vld [vmem:[#allocation233_spill] sm:$0xff] }
 0x6d2   :  { %v9261_v35 = vsel %vm8681_vm2, %v9260_v55, %v9259_v0  ;;  %v8811_v52 = vsel %vm8684_vm3, %v8810_v43, %v8809_v20  ;;  %v8819_v30 = vsel %vm8675_vm0, %v19557_v63, %v8817_v13  ;;  %v8822_v53 = vrot.slane %v4652_v23, 2  ;;  %v19558_v55 = vld [vmem:[#allocation367_spill] sm:$0xff]  ;;  %v19570_v43 = vld [vmem:[#allocation25_spill] sm:$0xff] }
 0x6d3   :  { %v9263_v61 = vsel %vm8684_vm3, %v9262_v44, %v9261_v35  ;;  %v17590_v31 = vsel %vm1731_vm13, %v8811_v52, %v9283_v25  ;;  %v8821_v3 = vsel %vm8678_vm1, %v19558_v55, %v8819_v30  ;;  %v8824_v11 = vrot.slane %v4653_v5, 1  ;;  %v19565_v44 = vld [vmem:[#allocation271_spill] sm:$0xff]  ;;  %v19574_v34 = vld [vmem:[#allocation245_spill] sm:$0xff] }
 0x6d4   :  { %9294 = vrot.lane.b32.xlu1 %v9263_v61, %s12224_s0  ;;  %v9332_v62 = vpack.c.bf16 %v17590_v31, %v17573_v24  ;;  %v8823_v42 = vsel %vm8681_vm2, %v8822_v53, %v8821_v3  ;;  %v4660_v39 = vmax.f32 %v19560_v8, 0.0  ;;  %v8829_v38 = vsel %vm8669_vm14, %v19562_v15, %v19561_v7  ;;  %v19572_v22 = vld [vmem:[#allocation247_spill] sm:$0xff]  ;;  %v19575_v1 = vld [vmem:[#allocation241_spill] sm:$0xff] }
 0x6d5   :  { %v17604_v33 = vsel %vm8684_vm3, %v8824_v11, %v8823_v42  ;;  %v4661_v16 = vmax.f32 %v4533_v59, 0.0  ;;  %v8831_v19 = vsel %vm8672_vm15, %v19563_v26, %v8829_v38  ;;  %v4541_v27 = vadd.f32 %v17240_v51, %v19564_v9  ;;  %v19576_v5 = vld [vmem:[#allocation243_spill] sm:$0xff]  ;;  %v19578_v61 = vld [vmem:[#allocation261_spill] sm:$0xff]  ;;  %v19583_v38 = vld [vmem:[#allocation258_spill] sm:$0xff] }
 0x6d6   :  { %v4691_v10 = vmax.f32 %v19565_v44, 0.0  ;;  %12010 = vmatprep.mubr.msk.bf16.mxu1 %vm9359_vm4, %v9332_v62  ;;  %12030 = vmatprep.mubr.msk.bf16.mxu0 %vm9359_vm4, %v9332_v62  ;;  %v8833_v28 = vsel %vm8675_vm0, %v19566_v54, %v8831_v19  ;;  %v8836_v40 = vrot.slane %v4660_v39, 2  ;;  %v4668_v48 = vmax.f32 %v19567_v37, 0.0  ;;  %v19577_v4 = vld [vmem:[#allocation27_spill] sm:$0xff]  ;;  %v19579_v53 = vld [vmem:[#allocation177_spill] sm:$0xff] }
 0x6d7   :  { %v8835_v12 = vsel %vm8678_vm1, %v19568_v58, %v8833_v28  ;;  %v8838_v56 = vrot.slane %v4661_v16, 1  ;;  %v4669_v41 = vmax.f32 %v4541_v27, 0.0  ;;  %v8843_v18 = vsel %vm8669_vm14, %v19570_v43, %v19569_v36  ;;  %v19580_v3 = vld [vmem:[#allocation31_spill] sm:$0xff]  ;;  %v19581_v59 = vld [vmem:[#allocation249_spill] sm:$0xff]  ;;  %v12137_v27 = vld [vmem:[%s17935_s14] sm:$0xff]  }
 0x6d8   :  { %v8837_v21 = vsel %vm8681_vm2, %v8836_v40, %v8835_v12  ;;  %v8845_v60 = vsel %vm8672_vm15, %v19571_v47, %v8843_v18  ;;  %v8850_v57 = vrot.slane %v4668_v48, 2  ;;  %v4549_v23 = vadd.f32 %v17240_v51, %v19572_v22  ;;  %v19582_v39 = vld [vmem:[#allocation253_spill] sm:$0xff]  ;;  %v19584_v16 = vld [vmem:[#allocation255_spill] sm:$0xff]  ;;  %12038 = vmatprep.subr.bf16.mxu1 %v12137_v27 }
 0x6d9   :  { %v8839_v0 = vsel %vm8684_vm3, %v8838_v56, %v8837_v21  ;;  %v8847_v17 = vsel %vm8675_vm0, %v19573_v32, %v8845_v60  ;;  %v8852_v25 = vrot.slane %v4669_v41, 1  ;;  %v4676_v29 = vmax.f32 %v19574_v34, 0.0  ;;  %v19585_v19 = vld [vmem:[#allocation193_spill] sm:$0xff]  ;;  %v12138_v48 = vld [vmem:[%s17935_s14 + $0x8] sm:$0xff]   ;;  %v19589_v41 = vld [vmem:[#allocation266_spill] sm:$0xff]  ;;  %12039 = vmatpush3.bf16.msra.mxu1 %v12137_v27 }
 0x6da   :  { %v8849_v35 = vsel %vm8678_vm1, %v19575_v1, %v8847_v17  ;;  %v4677_v20 = vmax.f32 %v4549_v23, 0.0  ;;  %v8857_v13 = vsel %vm8669_vm14, %v19577_v4, %v19576_v5  ;;  %v4557_v52 = vadd.f32 %v17240_v51, %v19578_v61  ;;  %v19587_v40 = vld [vmem:[#allocation33_spill] sm:$0xff]  ;;  %v19588_v12 = vld [vmem:[#allocation263_spill] sm:$0xff]  ;;  %12040 = vmatprep.subr.bf16.mxu1 %v12138_v48 }
 0x6db   :  { %v8890_v63 = vrot.slane %v4691_v10, 3  ;;  %v8851_v30 = vsel %vm8681_vm2, %v8850_v57, %v8849_v35  ;;  %v8859_v55 = vsel %vm8672_vm15, %v19579_v53, %v8857_v13  ;;  %v4684_v11 = vmax.f32 %v19580_v3, 0.0  ;;  %v19586_v10 = vld [vmem:[#allocation257_spill] sm:$0xff]  ;;  %v19591_v18 = vld [vmem:[#allocation187_spill] sm:$0xff]  ;;  %v9285_v35 = vpop.permute.xlu0 %9284 }
 0x6dc   :  { %v8853_v49 = vsel %vm8684_vm3, %v8852_v25, %v8851_v30  ;;  %v8861_v62 = vsel %vm8675_vm0, %v19581_v59, %v8859_v55  ;;  %v8864_v42 = vrot.slane %v4676_v29, 2  ;;  %v4685_v8 = vmax.f32 %v4557_v52, 0.0  ;;  %v19590_v36 = vld [vmem:[#allocation189_spill] sm:$0xff] }
 0x6dd   :  { %v8863_v7 = vsel %vm8678_vm1, %v19582_v39, %v8861_v62  ;;  %v8866_v15 = vrot.slane %v4677_v20, 1  ;;  %v8871_v26 = vsel %vm8669_vm14, %v19584_v16, %v19583_v38  ;;  %v4565_v9 = vadd.f32 %v17240_v51, %v19585_v19  ;;  %v19592_v60 = vld [vmem:[#allocation265_spill] sm:$0xff]  ;;  %12041 = vmatpush3.bf16.msra.mxu1 %v12138_v48 }
 0x6de   :  { %v8865_v44 = vsel %vm8681_vm2, %v8864_v42, %v8863_v7  ;;  %v8873_v54 = vsel %vm8672_vm15, %v19586_v10, %v8871_v26  ;;  %v8878_v28 = vrot.slane %v4684_v11, 2  ;;  %v4692_v37 = vmax.f32 %v19587_v40, 0.0  ;;  %v19593_v23 = vld [vmem:[#allocation269_spill] sm:$0xff] }
 0x6df   :  { %v8867_v58 = vsel %vm8684_vm3, %v8866_v15, %v8865_v44  ;;  %v8875_v51 = vsel %vm8675_vm0, %v19588_v12, %v8873_v54  ;;  %v4693_v56 = vmax.f32 %v4565_v9, 0.0  ;;  %v8885_v43 = vsel %vm8669_vm14, %v19590_v36, %v19589_v41  ;;  %v17721_v36 = vld [vmem:[%s17937_s12] ss:$0 sm:$0xff] }
 0x6e0   :  { %v8877_v21 = vsel %vm8678_vm1, %v19591_v18, %v8875_v51  ;;  %v8880_v47 = vrot.slane %v4685_v8, 1  ;;  %v8887_v57 = vsel %vm8672_vm15, %v19592_v60, %v8885_v43  ;;  %v8892_v17 = vrot.slane %v4692_v37, 2 }
 0x6e1   :  { %v8879_v22 = vsel %vm8681_vm2, %v8878_v28, %v8877_v21  ;;  %v8889_v32 = vsel %vm8675_vm0, %v19593_v23, %v8887_v57  ;;  %v8894_v34 = vrot.slane %v4693_v56, 1  ;;  %v17680_v4 = vsel %vm1731_vm13, %v17604_v33, %v9285_v35 }
 0x6e2   :  { %v8881_v25 = vsel %vm8684_vm3, %v8880_v47, %v8879_v22  ;;  %v8891_v29 = vsel %vm8678_vm1, %v8890_v63, %v8889_v32  ;;  %v9287_v5 = vpop.permute.xlu1 %9286 }
 0x6e3   :  { %v8893_v1 = vsel %vm8681_vm2, %v8892_v17, %v8891_v29  ;;  %v17683_v13 = vsel %vm1731_vm13, %v8839_v0, %v9287_v5  ;;  %v17702_v0 = vld [vmem:[%s17936_s13] ss:$0 sm:$0xff] }
 0x6e4   :  { %v8895_v20 = vsel %vm8684_vm3, %v8894_v34, %v8893_v1  ;;  %v9333_v61 = vpack.c.bf16 %v17683_v13, %v17680_v4 }
 0x6e6   :  { %12011 = vmatmul.mubr.msk.bf16.gmra.mrb[144].mxu1 %vm9359_vm4, %v9333_v61  ;;  %12031 = vmatmul.mubr.msk.bf16.gmra.mrb[128].mxu0 %vm9359_vm4, %v9333_v61  ;;  %v19594_v61 = vld [vmem:[#allocation69_spill] sm:$0xff] }
 0x702   :  { %v9289_v52 = vpop.permute.xlu0 %9288 }
 0x703   :  { %v17690_v30 = vsel %vm1731_vm13, %v8853_v49, %v9289_v52 }
 0x723   :  { %v9291_v63 = vpop.permute.xlu1 %9290 }
 0x724   :  { %v17693_v53 = vsel %vm1731_vm13, %v8867_v58, %v9291_v63 }
 0x725   :  { %v9334_v33 = vpack.c.bf16 %v17693_v53, %v17690_v30 }
 0x727   :  { %12014 = vmatprep.mubr.msk.bf16.mxu1 %vm9359_vm4, %v9334_v33  ;;  %12034 = vmatprep.mubr.msk.bf16.mxu0 %vm9359_vm4, %v9334_v33 }
 0x72f   :  { %v12004_v55 = vpop.f32.mrb[136].mxu1  ;;  %v12024_v3 = vpop.f32.mrb[120].mxu0 }
 0x730   :  { %v9418_v11 = vpop.f32.mrb[137].mxu1  ;;  %v9563_v49 = vadd.f32 %v12024_v3, %v17702_v0  ;;  %v9554_v59 = vpop.f32.mrb[121].mxu0  ;;  %v9427_v43 = vadd.f32 %v12004_v55, %v17721_v36 }
 0x731   :  { %v12005_v62 = vpop.f32.mrb[138].mxu1  ;;  %v9555_v42 = vadd.f32 %v17702_v0, %v9554_v59  ;;  %v12025_v8 = vpop.f32.mrb[122].mxu0  ;;  %v9419_v18 = vadd.f32 %v17721_v36, %v9418_v11 }
 0x732   :  { %v9421_v39 = vpop.f32.mrb[139].mxu1  ;;  %v10720_v7 = vmul.f32 -1.442695, %v9563_v49  ;;  %v9566_v15 = vadd.f32 %v12025_v8, %v17702_v0  ;;  %v9557_v38 = vpop.f32.mrb[123].mxu0  ;;  %v9430_v21 = vadd.f32 %v12005_v62, %v17721_v36  ;;  %v9483_v22 = vmax.f32 %v9427_v43, 0.0  ;;  %v19595_v49 = vld [vmem:[#allocation71_spill] sm:$0xff] }
 0x733   :  { %v10718_v16 = vmul.f32 -1.442695, %v9555_v42  ;;  %v9558_v26 = vadd.f32 %v17702_v0, %v9557_v38  ;;  %v9422_v60 = vadd.f32 %v17721_v36, %v9421_v39  ;;  %v9481_v17 = vmax.f32 %v9419_v18, 0.0 }
 0x734   :  { %12150 = vpow2.f32 %v10720_v7  ;;  %v10721_v19 = vmul.f32 -1.442695, %v9566_v15  ;;  %v9293_v27 = vpop.permute.xlu0 %9292  ;;  %v9484_v35 = vmax.f32 %v9430_v21, 0.0 }
 0x735   :  { %12152 = vpow2.f32 %v10718_v16  ;;  %v10719_v9 = vmul.f32 -1.442695, %v9558_v26  ;;  %v17709_v28 = vsel %vm1731_vm13, %v8881_v25, %v9293_v27  ;;  %v9482_v5 = vmax.f32 %v9422_v60, 0.0 }
 0x736   :  { %12154 = vpow2.f32 %v10721_v19 }
 0x737   :  { %12156 = vpow2.f32 %v10719_v9 }
 0x73e   :  { %v12151_v44 = vpop.eup %12150 }
 0x73f   :  { %v12153_v54 = vpop.eup %12152  ;;  %v9667_v37 = vadd.f32 1.0, %v12151_v44 }
 0x740   :  { %v12155_v48 = vpop.eup %12154  ;;  %v9665_v12 = vadd.f32 1.0, %v12153_v54 }
 0x741   :  { %v12157_v51 = vpop.eup %12156  ;;  %12158 = vrcp.f32 %v9667_v37  ;;  %v9668_v56 = vadd.f32 1.0, %v12155_v48 }
 0x742   :  { %12160 = vrcp.f32 %v9665_v12  ;;  %v9666_v41 = vadd.f32 1.0, %v12157_v51 }
 0x743   :  { %12162 = vrcp.f32 %v9668_v56 }
 0x744   :  { %12164 = vrcp.f32 %v9666_v41 }
 0x746   :  { %v9295_v10 = vpop.permute.xlu1 %9294 }
 0x747   :  { %v17712_v40 = vsel %vm1731_vm13, %v8895_v20, %v9295_v10 }
 0x748   :  { %v9335_v58 = vpack.c.bf16 %v17712_v40, %v17709_v28 }
 0x74a   :  { %12015 = vmatmul.mubr.msk.bf16.gmra.mrb[148].mxu1 %vm9359_vm4, %v9335_v58  ;;  %12035 = vmatmul.mubr.msk.bf16.gmra.mrb[132].mxu0 %vm9359_vm4, %v9335_v58 }
 0x74b   :  { %v12159_v47 = vpop.eup %12158 }
 0x74c   :  { %v12161_v57 = vpop.eup %12160  ;;  %v9731_v23 = vsub.f32 1.0, %v12159_v47  ;;  %v9715_v29 = vmul.f32 %v12159_v47, %v17047_v45 }
 0x74d   :  { %v12163_v32 = vpop.eup %12162  ;;  %v9729_v25 = vsub.f32 1.0, %v12161_v57  ;;  %v9713_v52 = vmul.f32 %v12161_v57, %v19594_v61 }
 0x74e   :  { %v12165_v34 = vpop.eup %12164  ;;  %v9747_v1 = vmul.f32 %v9731_v23, %v9483_v22  ;;  %v9732_v20 = vsub.f32 1.0, %v12163_v32  ;;  %v9716_v3 = vmul.f32 %v12163_v32, %v17165_v6 }
 0x74f   :  { %v9730_v63 = vsub.f32 1.0, %v12165_v34  ;;  %v9745_v33 = vmul.f32 %v9729_v25, %v9481_v17  ;;  %v9714_v59 = vmul.f32 %v12165_v34, %v19595_v49 }
 0x750   :  { %v9763_v55 = vadd.f32 %v9747_v1, %v9715_v29  ;;  %v9748_v11 = vmul.f32 %v9732_v20, %v9484_v35 }
 0x751   :  { %v9746_v62 = vmul.f32 %v9730_v63, %v9482_v5  ;;  %v9761_v42 = vadd.f32 %v9745_v33, %v9713_v52 }
 0x752   :  { %v9764_v8 = vadd.f32 %v9748_v11, %v9716_v3 }
 0x753   :  { %v9762_v39 = vadd.f32 %v9746_v62, %v9714_v59 }
 0x754   :  { %v9778_v7 = vpack.c.bf16 %v9764_v8, %v9763_v55 }
 0x755   :  { %v9777_v45 = vpack.c.bf16 %v9762_v39, %v9761_v42 }
 0x757   :  { %12042 = vmatprep.mubr.msk.bf16.mxu1 %vm9359_vm4, %v9777_v45 }
 0x758   :  { %12043 = vmatmul.mubr.msk.bf16.vlgmr.msra.gmra.mrb[152].mxu1 %vm9359_vm4, %v9778_v7 }
 0x79e   :  { %v12008_v15 = vpop.f32.mrb[140].mxu1  ;;  %v12028_v38 = vpop.f32.mrb[124].mxu0 }
 0x79f   :  { %v9579_v16 = vadd.f32 %v12028_v38, %v17702_v0  ;;  %v9434_v26 = vpop.f32.mrb[141].mxu1  ;;  %v9570_v19 = vpop.f32.mrb[125].mxu0  ;;  %v9443_v22 = vadd.f32 %v12008_v15, %v17721_v36 }
 0x7a0   :  { %v9571_v6 = vadd.f32 %v17702_v0, %v9570_v19  ;;  %v12009_v9 = vpop.f32.mrb[142].mxu1  ;;  %v12029_v27 = vpop.f32.mrb[126].mxu0  ;;  %v9435_v23 = vadd.f32 %v17721_v36, %v9434_v26 }
 0x7a1   :  { %v10724_v44 = vmul.f32 -1.442695, %v9579_v16  ;;  %v9582_v10 = vadd.f32 %v12029_v27, %v17702_v0  ;;  %v9437_v54 = vpop.f32.mrb[143].mxu1  ;;  %v9573_v37 = vpop.f32.mrb[127].mxu0  ;;  %v9446_v32 = vadd.f32 %v12009_v9, %v17721_v36  ;;  %v9487_v29 = vmax.f32 %v9443_v22, 0.0 }
 0x7a2   :  { %v10722_v48 = vmul.f32 -1.442695, %v9571_v6  ;;  %v9574_v58 = vadd.f32 %v17702_v0, %v9573_v37  ;;  %v9438_v25 = vadd.f32 %v17721_v36, %v9437_v54  ;;  %v9485_v20 = vmax.f32 %v9435_v23, 0.0 }
 0x7a3   :  { %12166 = vpow2.f32 %v10724_v44  ;;  %v10725_v12 = vmul.f32 -1.442695, %v9582_v10  ;;  %v9488_v33 = vmax.f32 %v9446_v32, 0.0  ;;  %v12144_v32 = vld [vmem:[%s17939_s1 + $0x20] sm:$0xff]  }
 0x7a4   :  { %12168 = vpow2.f32 %v10722_v48  ;;  %v10723_v51 = vmul.f32 -1.442695, %v9574_v58  ;;  %v9486_v49 = vmax.f32 %v9438_v25, 0.0 }
 0x7a5   :  { %12170 = vpow2.f32 %v10725_v12 }
 0x7a6   :  { %12172 = vpow2.f32 %v10723_v51 }
 0x7ad   :  { %v12167_v56 = vpop.eup %12166 }
 0x7ae   :  { %v12169_v41 = vpop.eup %12168  ;;  %v9671_v43 = vadd.f32 1.0, %v12167_v56  ;;  %v12140_v56 = vld [vmem:[%s17939_s1] sm:$0xff]  }
 0x7af   :  { %v12171_v18 = vpop.eup %12170  ;;  %v9669_v21 = vadd.f32 1.0, %v12169_v41  ;;  %12060 = vmatprep.mubr.msk.bf16.mxu0 %vm1731_vm13, %v12140_v56 }
 0x7b0   :  { %v12173_v47 = vpop.eup %12172  ;;  %12174 = vrcp.f32 %v9671_v43  ;;  %v9672_v60 = vadd.f32 1.0, %v12171_v18  ;;  %v12141_v43 = vld [vmem:[%s17939_s1 + $0x8] sm:$0xff]   ;;  %v12142_v18 = vld [vmem:[%s17939_s1 + $0x10] sm:$0xff]  }
 0x7b1   :  { %12176 = vrcp.f32 %v9669_v21  ;;  %v9670_v57 = vadd.f32 1.0, %v12173_v47  ;;  %v12143_v21 = vld [vmem:[%s17939_s1 + $0x18] sm:$0xff]   ;;  %v12148_v47 = vld [vmem:[%s17940_s16] sm:$0xff]  }
 0x7b2   :  { %12178 = vrcp.f32 %v9672_v60 }
 0x7b3   :  { %12180 = vrcp.f32 %v9670_v57  ;;  %v12149_v57 = vld [vmem:[%s17940_s16 + $0x8] sm:$0xff]  }
 0x7b9   :  { %v17742_v3 = vpop.f32.mrb[144].mxu1  ;;  %v12032_v11 = vpop.f32.mrb[128].mxu0 }
 0x7ba   :  { %v12175_v17 = vpop.eup %12174  ;;  %v17745_v8 = vpop.f32.mrb[145].mxu1 }
 0x7bb   :  { %v12177_v34 = vpop.eup %12176  ;;  %v9735_v1 = vsub.f32 1.0, %v12175_v17  ;;  %v9719_v52 = vmul.f32 %v12175_v17, %v17479_v2  ;;  %v9586_v39 = vpop.f32.mrb[129].mxu0  ;;  %v9595_v2 = vadd.f32 %v12032_v11, %v17702_v0 }
 0x7bc   :  { %v12179_v35 = vpop.eup %12178  ;;  %v9733_v5 = vsub.f32 1.0, %v12177_v34  ;;  %v9717_v59 = vmul.f32 %v12177_v34, %v17274_v50  ;;  %v17749_v38 = vpop.f32.mrb[146].mxu1  ;;  %v9587_v50 = vadd.f32 %v17702_v0, %v9586_v39  ;;  %v12147_v39 = vld [vmem:[%s17939_s1 + $0x38] sm:$0xff]  }
 0x7bd   :  { %v12181_v61 = vpop.eup %12180  ;;  %v9751_v63 = vmul.f32 %v9735_v1, %v9487_v29  ;;  %v9736_v55 = vsub.f32 1.0, %v12179_v35  ;;  %v9720_v45 = vmul.f32 %v12179_v35, %v17535_v14  ;;  %v12033_v16 = vpop.f32.mrb[130].mxu0  ;;  %v10728_v10 = vmul.f32 -1.442695, %v9595_v2  ;;  %v12145_v35 = vld [vmem:[%s17939_s1 + $0x28] sm:$0xff]  }
 0x7be   :  { %v9734_v62 = vsub.f32 1.0, %v12181_v61  ;;  %v9749_v42 = vmul.f32 %v9733_v5, %v9485_v20  ;;  %v9718_v26 = vmul.f32 %v12181_v61, %v17379_v46  ;;  %v17753_v9 = vpop.f32.mrb[147].mxu1  ;;  %v9589_v27 = vpop.f32.mrb[131].mxu0  ;;  %v10726_v37 = vmul.f32 -1.442695, %v9587_v50  ;;  %v12139_v46 = vld [vmem:[%s17938_s17] sm:$0xff]  }
 0x7bf   :  { %v9767_v7 = vadd.f32 %v9751_v63, %v9719_v52  ;;  %v9752_v15 = vmul.f32 %v9736_v55, %v9488_v33  ;;  %v9598_v14 = vadd.f32 %v12033_v16, %v17702_v0  ;;  %12182 = vpow2.f32 %v10728_v10  ;;  %12058 = vmatprep.subr.bf16.mxu0 %v12139_v46  ;;  %v12146_v20 = vld [vmem:[%s17939_s1 + $0x30] sm:$0xff]  }
 0x7c0   :  { %v9750_v19 = vmul.f32 %v9734_v62, %v9486_v49  ;;  %v9765_v6 = vadd.f32 %v9749_v42, %v9717_v59  ;;  %v9590_v58 = vadd.f32 %v17702_v0, %v9589_v27  ;;  %12184 = vpow2.f32 %v10726_v37  ;;  %12059 = vmatpush3.bf16.msra.mxu0 %v12139_v46 }
 0x7c1   :  { %v9768_v44 = vadd.f32 %v9752_v15, %v9720_v45  ;;  %v10729_v51 = vmul.f32 -1.442695, %v9598_v14  ;;  %12076 = vmatprep.subr.bf16.mxu0 %v12148_v47  ;;  %v9459_v5 = vadd.f32 %v17742_v3, %v17721_v36  ;;  %v9451_v61 = vadd.f32 %v17721_v36, %v17745_v8 }
 0x7c2   :  { %v9766_v54 = vadd.f32 %v9750_v19, %v9718_v26  ;;  %v10727_v41 = vmul.f32 -1.442695, %v9590_v58  ;;  %v9462_v63 = vadd.f32 %v17749_v38, %v17721_v36  ;;  %v9454_v49 = vadd.f32 %v17721_v36, %v17753_v9 }
 0x7c3   :  { %v9780_v48 = vpack.c.bf16 %v9768_v44, %v9767_v7  ;;  %12186 = vpow2.f32 %v10729_v51  ;;  %12061 = vmatmul.mubr.msk.bf16.vlgmr.msra.gmra.mrb[136].mxu0 %vm1731_vm13, %v12141_v43  ;;  %v9491_v55 = vmax.f32 %v9459_v5, 0.0  ;;  %v9489_v59 = vmax.f32 %v9451_v61, 0.0 }
 0x7c4   :  { %v9779_v12 = vpack.c.bf16 %v9766_v54, %v9765_v6  ;;  %12188 = vpow2.f32 %v10727_v41  ;;  %12064 = vmatprep.mubr.msk.bf16.mxu0 %vm1731_vm13, %v12142_v18  ;;  %12077 = vmatpush3.bf16.msra.mxu0 %v12148_v47  ;;  %v9492_v45 = vmax.f32 %v9462_v63, 0.0  ;;  %v9490_v26 = vmax.f32 %v9454_v49, 0.0 }
 0x7c5   :  { %12078 = vmatprep.subr.bf16.mxu0 %v12149_v57 }
 0x7c6   :  { %12046 = vmatprep.mubr.msk.bf16.mxu1 %vm9359_vm4, %v9779_v12 }
 0x7c7   :  { %12047 = vmatmul.mubr.msk.bf16.gmra.mrb[156].mxu1 %vm9359_vm4, %v9780_v48 }
 0x7c8   :  { %12079 = vmatpush3.bf16.msra.mxu0 %v12149_v57 }
 0x7c9   :  { %v12183_v60 = vpop.eup %12182 }
 0x7ca   :  { %v12185_v22 = vpop.eup %12184  ;;  %v9675_v23 = vadd.f32 1.0, %v12183_v60 }
 0x7cb   :  { %v9673_v17 = vadd.f32 1.0, %v12185_v22  ;;  %12065 = vmatmul.mubr.msk.bf16.gmra.mrb[140].mxu0 %vm1731_vm13, %v12143_v21 }
 0x7cc   :  { %12190 = vrcp.f32 %v9675_v23  ;;  %12068 = vmatprep.mubr.msk.bf16.mxu0 %vm1731_vm13, %v12144_v32 }
 0x7cd   :  { %v12187_v25 = vpop.eup %12186  ;;  %12192 = vrcp.f32 %v9673_v17 }
 0x7ce   :  { %v12189_v34 = vpop.eup %12188  ;;  %v9676_v29 = vadd.f32 1.0, %v12187_v25 }
 0x7cf   :  { %v9674_v1 = vadd.f32 1.0, %v12189_v34 }
 0x7d0   :  { %12194 = vrcp.f32 %v9676_v29 }
 0x7d1   :  { %12196 = vrcp.f32 %v9674_v1 }
 0x7d3   :  { %12069 = vmatmul.mubr.msk.bf16.gmra.mrb[144].mxu0 %vm1731_vm13, %v12145_v35 }
 0x7d4   :  { %12072 = vmatprep.mubr.msk.bf16.mxu0 %vm1731_vm13, %v12146_v20 }
 0x7d6   :  { %v12191_v52 = vpop.eup %12190 }
 0x7d7   :  { %v12193_v33 = vpop.eup %12192  ;;  %v9739_v11 = vsub.f32 1.0, %v12191_v52  ;;  %v9723_v42 = vmul.f32 %v12191_v52, %v17680_v4 }
 0x7d8   :  { %v9737_v62 = vsub.f32 1.0, %v12193_v33  ;;  %v9721_v2 = vmul.f32 %v12193_v33, %v17573_v24 }
 0x7d9   :  { %v9755_v8 = vmul.f32 %v9739_v11, %v9491_v55 }
 0x7da   :  { %v12195_v3 = vpop.eup %12194  ;;  %v9753_v38 = vmul.f32 %v9737_v62, %v9489_v59 }
 0x7db   :  { %v12197_v7 = vpop.eup %12196  ;;  %v9740_v15 = vsub.f32 1.0, %v12195_v3  ;;  %v9771_v16 = vadd.f32 %v9755_v8, %v9723_v42  ;;  %v9724_v6 = vmul.f32 %v12195_v3, %v17683_v13  ;;  %12073 = vmatmul.mubr.msk.bf16.gmra.mrb[148].mxu0 %vm1731_vm13, %v12147_v39 }
 0x7dc   :  { %v9738_v19 = vsub.f32 1.0, %v12197_v7  ;;  %v9769_v9 = vadd.f32 %v9753_v38, %v9721_v2  ;;  %v9722_v4 = vmul.f32 %v12197_v7, %v17590_v31 }
 0x7dd   :  { %v9756_v50 = vmul.f32 %v9740_v15, %v9492_v45 }
 0x7de   :  { %v9754_v27 = vmul.f32 %v9738_v19, %v9490_v26 }
 0x7df   :  { %v9772_v44 = vadd.f32 %v9756_v50, %v9724_v6 }
 0x7e0   :  { %v9770_v10 = vadd.f32 %v9754_v27, %v9722_v4 }
 0x7e1   :  { %v9782_v54 = vpack.c.bf16 %v9772_v44, %v9771_v16 }
 0x7e2   :  { %v9781_v37 = vpack.c.bf16 %v9770_v10, %v9769_v9 }
 0x7e4   :  { %12050 = vmatprep.mubr.msk.bf16.mxu1 %vm9359_vm4, %v9781_v37 }
 0x7e5   :  { %12051 = vmatmul.mubr.msk.bf16.gmra.mrb[160].mxu1 %vm9359_vm4, %v9782_v54 }
 0x81d   :  { %v12016_v24 = vpop.f32.mrb[148].mxu1  ;;  %v12036_v14 = vpop.f32.mrb[132].mxu0 }
 0x81e   :  { %v9611_v48 = vadd.f32 %v12036_v14, %v17702_v0  ;;  %v9466_v13 = vpop.f32.mrb[149].mxu1  ;;  %v9602_v58 = vpop.f32.mrb[133].mxu0  ;;  %v9475_v5 = vadd.f32 %v12016_v24, %v17721_v36 }
 0x81f   :  { %v9603_v46 = vadd.f32 %v17702_v0, %v9602_v58  ;;  %v12017_v31 = vpop.f32.mrb[150].mxu1  ;;  %v12037_v12 = vpop.f32.mrb[134].mxu0  ;;  %v9467_v33 = vadd.f32 %v17721_v36, %v9466_v13 }
 0x820   :  { %v10732_v51 = vmul.f32 -1.442695, %v9611_v48  ;;  %v9614_v56 = vadd.f32 %v12037_v12, %v17702_v0  ;;  %v9469_v41 = vpop.f32.mrb[151].mxu1  ;;  %v9605_v43 = vpop.f32.mrb[135].mxu0  ;;  %v9478_v49 = vadd.f32 %v12017_v31, %v17721_v36  ;;  %v9495_v39 = vmax.f32 %v9475_v5, 0.0 }
 0x821   :  { %v10730_v18 = vmul.f32 -1.442695, %v9603_v46  ;;  %v9606_v21 = vadd.f32 %v17702_v0, %v9605_v43  ;;  %v17821_v0 = vld [vmem:[%s17941_s15] ss:$0 sm:$0xff]  ;;  %v9470_v3 = vadd.f32 %v17721_v36, %v9469_v41  ;;  %v9493_v15 = vmax.f32 %v9467_v33, 0.0 }
 0x822   :  { %12198 = vpow2.f32 %v10732_v51  ;;  %v10733_v47 = vmul.f32 -1.442695, %v9614_v56  ;;  %v9496_v19 = vmax.f32 %v9478_v49, 0.0 }
 0x823   :  { %12200 = vpow2.f32 %v10730_v18  ;;  %v10731_v60 = vmul.f32 -1.442695, %v9606_v21  ;;  %v9494_v50 = vmax.f32 %v9470_v3, 0.0 }
 0x824   :  { %12202 = vpow2.f32 %v10733_v47 }
 0x825   :  { %12204 = vpow2.f32 %v10731_v60 }
 0x82b   :  { %v12044_v1 = vpop.f32.mrb[152].mxu1 }
 0x82c   :  { %v12199_v57 = vpop.eup %12198  ;;  %v9866_v35 = vpop.f32.mrb[153].mxu1  ;;  %v9875_v61 = vadd.f32 %v12044_v1, %v17821_v0 }
 0x82d   :  { %v12201_v22 = vpop.eup %12200  ;;  %v9679_v23 = vadd.f32 1.0, %v12199_v57  ;;  %v12045_v20 = vpop.f32.mrb[154].mxu1  ;;  %v9867_v55 = vadd.f32 %v17821_v0, %v9866_v35 }
 0x82e   :  { %v12203_v32 = vpop.eup %12202  ;;  %v9677_v17 = vadd.f32 1.0, %v12201_v22  ;;  %v9878_v52 = vadd.f32 %v12045_v20, %v17821_v0  ;;  %v9869_v63 = vpop.f32.mrb[155].mxu1 }
 0x82f   :  { %v12205_v25 = vpop.eup %12204  ;;  %12206 = vrcp.f32 %v9679_v23  ;;  %v9680_v34 = vadd.f32 1.0, %v12203_v32  ;;  %v9870_v11 = vadd.f32 %v17821_v0, %v9869_v63 }
 0x830   :  { %12208 = vrcp.f32 %v9677_v17  ;;  %v9678_v29 = vadd.f32 1.0, %v12205_v25  ;;  %v9930_v59 = vpack.c.bf16 %v9878_v52, %v9875_v61  ;;  %v10772_v25 = vld [vmem:[%s17942_s18] ss:$0 sm:$0xff] }
 0x831   :  { %12210 = vrcp.f32 %v9680_v34  ;;  %v9929_v42 = vpack.c.bf16 %v9870_v11, %v9867_v55 }
 0x832   :  { %12212 = vrcp.f32 %v9678_v29 }
 0x833   :  { %12080 = vmatprep.mubr.msk.bf16.mxu0 %vm9359_vm4, %v9929_v42 }
 0x834   :  { %12081 = vmatmul.mubr.msk.bf16.vlgmr.msra.gmra.mrb[136].mxu0 %vm9359_vm4, %v9930_v59 }
 0x839   :  { %v12207_v62 = vpop.eup %12206 }
 0x83a   :  { %v12209_v8 = vpop.eup %12208  ;;  %v9743_v7 = vsub.f32 1.0, %v12207_v62  ;;  %v9727_v16 = vmul.f32 %v12207_v62, %v17709_v28 }
 0x83b   :  { %v12211_v45 = vpop.eup %12210  ;;  %v9741_v2 = vsub.f32 1.0, %v12209_v8  ;;  %v9725_v36 = vmul.f32 %v12209_v8, %v17690_v30 }
 0x83c   :  { %v12213_v38 = vpop.eup %12212  ;;  %v9759_v26 = vmul.f32 %v9743_v7, %v9495_v39  ;;  %v9744_v6 = vsub.f32 1.0, %v12211_v45  ;;  %v9728_v44 = vmul.f32 %v12211_v45, %v17712_v40 }
 0x83d   :  { %v9742_v9 = vsub.f32 1.0, %v12213_v38  ;;  %v9757_v4 = vmul.f32 %v9741_v2, %v9493_v15  ;;  %v9726_v54 = vmul.f32 %v12213_v38, %v17693_v53 }
 0x83e   :  { %v9775_v27 = vadd.f32 %v9759_v26, %v9727_v16  ;;  %v9760_v10 = vmul.f32 %v9744_v6, %v9496_v19 }
 0x83f   :  { %v9758_v37 = vmul.f32 %v9742_v9, %v9494_v50  ;;  %v9773_v24 = vadd.f32 %v9757_v4, %v9725_v36 }
 0x840   :  { %v9776_v14 = vadd.f32 %v9760_v10, %v9728_v44 }
 0x841   :  { %v9774_v28 = vadd.f32 %v9758_v37, %v9726_v54 }
 0x842   :  { %v9784_v48 = vpack.c.bf16 %v9776_v14, %v9775_v27 }
 0x843   :  { %v9783_v13 = vpack.c.bf16 %v9774_v28, %v9773_v24 }
 0x845   :  { %12054 = vmatprep.mubr.msk.bf16.mxu1 %vm9359_vm4, %v9783_v13 }
 0x846   :  { %12055 = vmatmul.mubr.msk.bf16.gmra.mrb[164].mxu1 %vm9359_vm4, %v9784_v48 }
 0x89a   :  { %v12048_v58 = vpop.f32.mrb[156].mxu1 }
 0x89b   :  { %v9882_v30 = vpop.f32.mrb[157].mxu1  ;;  %v9891_v31 = vadd.f32 %v12048_v58, %v17821_v0 }
 0x89c   :  { %v12049_v46 = vpop.f32.mrb[158].mxu1  ;;  %v9883_v53 = vadd.f32 %v17821_v0, %v9882_v30 }
 0x89d   :  { %v9894_v40 = vadd.f32 %v12049_v46, %v17821_v0  ;;  %v9885_v12 = vpop.f32.mrb[159].mxu1 }
 0x89e   :  { %v9886_v51 = vadd.f32 %v17821_v0, %v9885_v12 }
 0x89f   :  { %v9932_v56 = vpack.c.bf16 %v9894_v40, %v9891_v31 }
 0x8a0   :  { %v9931_v41 = vpack.c.bf16 %v9886_v51, %v9883_v53 }
 0x8a2   :  { %12084 = vmatprep.mubr.msk.bf16.mxu0 %vm9359_vm4, %v9931_v41 }
 0x8a3   :  { %12085 = vmatmul.mubr.msk.bf16.gmra.mrb[140].mxu0 %vm9359_vm4, %v9932_v56 }
 0x8b8   :  { %v12052_v43 = vpop.f32.mrb[160].mxu1 }
 0x8b9   :  { %v9898_v18 = vpop.f32.mrb[161].mxu1  ;;  %v9907_v47 = vadd.f32 %v12052_v43, %v17821_v0 }
 0x8ba   :  { %v12053_v21 = vpop.f32.mrb[162].mxu1  ;;  %v9899_v22 = vadd.f32 %v17821_v0, %v9898_v18 }
 0x8bb   :  { %v9910_v60 = vadd.f32 %v12053_v21, %v17821_v0  ;;  %v9901_v57 = vpop.f32.mrb[163].mxu1 }
 0x8bc   :  { %v9902_v23 = vadd.f32 %v17821_v0, %v9901_v57 }
 0x8bd   :  { %v9934_v32 = vpack.c.bf16 %v9910_v60, %v9907_v47 }
 0x8be   :  { %v9933_v17 = vpack.c.bf16 %v9902_v23, %v9899_v22 }
 0x8c0   :  { %12088 = vmatprep.mubr.msk.bf16.mxu0 %vm9359_vm4, %v9933_v17 }
 0x8c1   :  { %12089 = vmatmul.mubr.msk.bf16.gmra.mrb[144].mxu0 %vm9359_vm4, %v9934_v32 }
 0x907   :  { %v12082_v34 = vpop.f32.mrb[136].mxu0 }
 0x908   :  { %v10268_v29 = vadd.f32 %v12082_v34, %v10772_v25  ;;  %v10196_v1 = vpop.f32.mrb[137].mxu0 }
 0x909   :  { %v10266_v35 = vadd.f32 %v10772_v25, %v10196_v1  ;;  %v12083_v20 = vpop.f32.mrb[138].mxu0 }
 0x90a   :  { %10284 = vst.msk [vmem:[%s17943_s19 + $0x10] sm:$0xff] %vm9359_vm4, %v10268_v29  ;;  %v10269_v5 = vadd.f32 %v12083_v20, %v10772_v25  ;;  %v10199_v61 = vpop.f32.mrb[139].mxu0 }
 0x90b   :  { %10282 = vst.msk [vmem:[%s17943_s19] sm:$0xff] %vm9359_vm4, %v10266_v35  ;;  %v10267_v52 = vadd.f32 %v10772_v25, %v10199_v61 }
 0x90c   :  { %10285 = vst.msk [vmem:[%s17943_s19 + $0x18] sm:$0xff] %vm9359_vm4, %v10269_v5 }
 0x90d   :  { %10283 = vst.msk [vmem:[%s17943_s19 + $0x8] sm:$0xff] %vm9359_vm4, %v10267_v52 }
 0x919   :  { %v12056_v63 = vpop.f32.mrb[164].mxu1 }
 0x91a   :  { %v9914_v33 = vpop.f32.mrb[165].mxu1  ;;  %v9923_v11 = vadd.f32 %v12056_v63, %v17821_v0 }
 0x91b   :  { %v12057_v55 = vpop.f32.mrb[166].mxu1  ;;  %v9915_v62 = vadd.f32 %v17821_v0, %v9914_v33 }
 0x91c   :  { %v9926_v49 = vadd.f32 %v12057_v55, %v17821_v0  ;;  %v9917_v59 = vpop.f32.mrb[167].mxu1 }
 0x91d   :  { %v9918_v3 = vadd.f32 %v17821_v0, %v9917_v59 }
 0x91e   :  { %v9936_v42 = vpack.c.bf16 %v9926_v49, %v9923_v11 }
 0x91f   :  { %v9935_v8 = vpack.c.bf16 %v9918_v3, %v9915_v62 }
 0x921   :  { %12092 = vmatprep.mubr.msk.bf16.mxu0 %vm9359_vm4, %v9935_v8 }
 0x922   :  { %12093 = vmatmul.mubr.msk.bf16.gmra.mrb[148].mxu0 %vm9359_vm4, %v9936_v42 }
 0x976   :  { %v12086_v39 = vpop.f32.mrb[140].mxu0 }
 0x977   :  { %v10272_v7 = vadd.f32 %v12086_v39, %v10772_v25  ;;  %v10212_v45 = vpop.f32.mrb[141].mxu0 }
 0x978   :  { %v10270_v15 = vadd.f32 %v10772_v25, %v10212_v45  ;;  %v12087_v2 = vpop.f32.mrb[142].mxu0 }
 0x979   :  { %10288 = vst.msk [vmem:[%s17943_s19 + $0x30] sm:$0xff] %vm9359_vm4, %v10272_v7  ;;  %v10273_v38 = vadd.f32 %v12087_v2, %v10772_v25  ;;  %v10215_v16 = vpop.f32.mrb[143].mxu0 }
 0x97a   :  { %10286 = vst.msk [vmem:[%s17943_s19 + $0x20] sm:$0xff] %vm9359_vm4, %v10270_v15  ;;  %v10271_v0 = vadd.f32 %v10772_v25, %v10215_v16 }
 0x97b   :  { %10289 = vst.msk [vmem:[%s17943_s19 + $0x38] sm:$0xff] %vm9359_vm4, %v10273_v38 }
 0x97c   :  { %10287 = vst.msk [vmem:[%s17943_s19 + $0x28] sm:$0xff] %vm9359_vm4, %v10271_v0 }
 0x994   :  { %v12090_v26 = vpop.f32.mrb[144].mxu0 }
 0x995   :  { %v10276_v19 = vadd.f32 %v12090_v26, %v10772_v25  ;;  %v10228_v6 = vpop.f32.mrb[145].mxu0 }
 0x996   :  { %v10274_v50 = vadd.f32 %v10772_v25, %v10228_v6  ;;  %v12091_v36 = vpop.f32.mrb[146].mxu0 }
 0x997   :  { %10292 = vst.msk [vmem:[%s17943_s19 + $0x50] sm:$0xff] %vm9359_vm4, %v10276_v19  ;;  %v10277_v9 = vadd.f32 %v12091_v36, %v10772_v25  ;;  %v10231_v4 = vpop.f32.mrb[147].mxu0 }
 0x998   :  { %10290 = vst.msk [vmem:[%s17943_s19 + $0x40] sm:$0xff] %vm9359_vm4, %v10274_v50  ;;  %v10275_v27 = vadd.f32 %v10772_v25, %v10231_v4 }
 0x999   :  { %10293 = vst.msk [vmem:[%s17943_s19 + $0x58] sm:$0xff] %vm9359_vm4, %v10277_v9 }
 0x99a   :  { %10291 = vst.msk [vmem:[%s17943_s19 + $0x48] sm:$0xff] %vm9359_vm4, %v10275_v27 }
 0x9f5   :  { %v12094_v44 = vpop.f32.mrb[148].mxu0 }
 0x9f6   :  { %v10280_v10 = vadd.f32 %v12094_v44, %v10772_v25  ;;  %v10244_v54 = vpop.f32.mrb[149].mxu0 }
 0x9f7   :  { %v10278_v37 = vadd.f32 %v10772_v25, %v10244_v54  ;;  %v12095_v24 = vpop.f32.mrb[150].mxu0 }
 0x9f8   :  { %10296 = vst.msk [vmem:[%s17943_s19 + $0x70] sm:$0xff] %vm9359_vm4, %v10280_v10  ;;  %v10281_v14 = vadd.f32 %v12095_v24, %v10772_v25  ;;  %v10247_v28 = vpop.f32.mrb[151].mxu0 }
 0x9f9   :  { %10294 = vst.msk [vmem:[%s17943_s19 + $0x60] sm:$0xff] %vm9359_vm4, %v10278_v37  ;;  %v10279_v48 = vadd.f32 %v10772_v25, %v10247_v28 }
 0x9fa   :  { %10297 = vst.msk [vmem:[%s17943_s19 + $0x78] sm:$0xff] %vm9359_vm4, %v10281_v14 }
 0x9fb   :  { %10295 = vst.msk [vmem:[%s17943_s19 + $0x68] sm:$0xff] %vm9359_vm4, %v10279_v48 }

</bundles_post_ra>
